<compile_context>
chip_gen: v6e
topology: v6e:2x2x1
jax: 0.10.0
libtpu: 0.0.40
codegen_flags: <defaults>
</compile_context>

<pallas_src>
import functools
import math

import jax
import jax.numpy as jnp
from jax.experimental import pallas as pl
from jax.experimental.pallas import tpu as pltpu


LN_EPS = 1e-5           # torch.nn.LayerNorm default
HEAD_PAD = 128          # lane-dense padded width of the fused head output
_PER_LAYER_REFS = 12    # refs consumed per encoder layer inside the kernel


# ---------------- in-kernel math helpers ----------------

def _erf_approx(x):
    # Abramowitz & Stegun 7.1.26 (max abs err ~1.5e-7): matches torch's exact
    # erf-based GELU to float32 precision using only basic VPU/EUP ops.
    a1, a2, a3, a4, a5 = 0.254829592, -0.284496736, 1.421413741, -1.453152027, 1.061405429
    p = 0.3275911
    sgn = jnp.where(x >= 0.0, 1.0, -1.0)
    ax = jnp.abs(x)
    t = 1.0 / (1.0 + p * ax)
    poly = ((((a5 * t + a4) * t + a3) * t + a2) * t + a1) * t
    return sgn * (1.0 - poly * jnp.exp(-ax * ax))


def _gelu_exact(x):
    return 0.5 * x * (1.0 + _erf_approx(x * 0.7071067811865476))


def _layernorm(z, g, b, eps):
    mean = jnp.mean(z, axis=-1, keepdims=True)
    c = z - mean
    var = jnp.mean(c * c, axis=-1, keepdims=True)
    return (c * jax.lax.rsqrt(var + eps)) * g + b


# ---------------- the fused whole-model kernel ----------------

def _make_forward_kernel(num_layers, nhead, B, T):
    def kernel(*refs):
        x_ref, w_in_ref, b_in_ref, adj_ref, sel_ref = refs[:5]
        rest = refs[5:]
        layer_refs = [rest[l * _PER_LAYER_REFS:(l + 1) * _PER_LAYER_REFS]
                      for l in range(num_layers)]
        base = num_layers * _PER_LAYER_REFS
        w1_ref, b1_ref, w2_ref, b2_ref = rest[base:base + 4]
        o_ref = rest[-1]

        D = w_in_ref.shape[1]
        dh = D // nhead
        G = B * nhead
        N = B * T
        scale = 1.0 / math.sqrt(dh)

        # ---- input projection + positional encoding + CLS slot fix-up ----
        # x rows b*T are zero; adjust row 0 = cls_token - b_in, rows 1.. = PE,
        # so after this add, row b*T == cls_token and the rest == proj + PE.
        h = jnp.dot(x_ref[...], w_in_ref[...],
                    preferred_element_type=jnp.float32) + b_in_ref[...]        # (N, D)
        h = (h.reshape(B, T, D) + adj_ref[...]).reshape(N, D)

        # ---- encoder layers (post-norm, exact GELU), fully fused ----
        for (wqkv_ref, bqkv_ref, wo_ref, bo_ref, ln1g_ref, ln1b_ref,
             wff1_ref, bff1_ref, wff2_ref, bff2_ref,
             ln2g_ref, ln2b_ref) in layer_refs:

            # Batched per-(batch, head) attention: one leading G = B*nhead
            # batch axis everywhere; contraction dims stay lane-dense (D=128).
            h_g = jnp.broadcast_to(h.reshape(B, 1, T, D),
                                   (B, nhead, T, D)).reshape(G, T, D)

            def head_proj(i):
                # w_qkv[i]: (nhead, dh, D); contract over D (rhs minor dim).
                w_g = jnp.broadcast_to(wqkv_ref[i][None],
                                       (B, nhead, dh, D)).reshape(G, dh, D)
                b_g = jnp.broadcast_to(bqkv_ref[i][None],
                                       (B, nhead, 1, dh)).reshape(G, 1, dh)
                y = jax.lax.dot_general(h_g, w_g, (((2,), (2,)), ((0,), (0,))),
                                        preferred_element_type=jnp.float32)
                return y + b_g                                                 # (G, T, dh)

            q_g = head_proj(0)
            k_g = head_proj(1)
            v_g = head_proj(2)

            s = jax.lax.dot_general(q_g, k_g, (((2,), (2,)), ((0,), (0,))),
                                    preferred_element_type=jnp.float32) * scale   # (G,T,T)
            s = s - jnp.max(s, axis=-1, keepdims=True)
            p = jnp.exp(s)
            p = p / jnp.sum(p, axis=-1, keepdims=True)           # exact softmax
            ctx = jax.lax.dot_general(p, v_g, (((2,), (1,)), ((0,), (0,))),
                                      preferred_element_type=jnp.float32)         # (G,T,dh)

            # Output projection, still batched over G; then merge heads with a
            # plain vreg-add tree (no concat / lane shuffles).
            wo_g = jnp.broadcast_to(wo_ref[...][None],
                                    (B, nhead, dh, D)).reshape(G, dh, D)
            part = jax.lax.dot_general(ctx, wo_g, (((2,), (1,)), ((0,), (0,))),
                                       preferred_element_type=jnp.float32)        # (G,T,D)
            part4 = part.reshape(B, nhead, T, D)
            attn = part4[:, 0]
            for hh in range(1, nhead):
                attn = attn + part4[:, hh]                                         # (B,T,D)
            attn = (attn + bo_ref[...]).reshape(N, D)

            h1 = _layernorm(h + attn, ln1g_ref[...], ln1b_ref[...], LN_EPS)

            ff = jnp.dot(h1, wff1_ref[...],
                         preferred_element_type=jnp.float32) + bff1_ref[...]
            ff = _gelu_exact(ff)
            ff = jnp.dot(ff, wff2_ref[...],
                         preferred_element_type=jnp.float32) + bff2_ref[...]

            h = _layernorm(h1 + ff, ln2g_ref[...], ln2b_ref[...], LN_EPS)

        # ---- fused prediction heads on the CLS rows (rows b*T), in-kernel ----
        cls = jnp.dot(sel_ref[...], h, preferred_element_type=jnp.float32)     # (B, D)
        z = jnp.dot(cls, w1_ref[...], preferred_element_type=jnp.float32) + b1_ref[...]
        z = jnp.maximum(z, 0.0)                      # ReLU; Dropout = id (eval)
        y = jnp.dot(z, w2_ref[...], preferred_element_type=jnp.float32) + b2_ref[...]
        o_ref[...] = y.astype(o_ref.dtype)

    return kernel


# ---------------- wrapper ----------------

def forward(params, x, *, nhead):
    """Fused Pallas forward pass.  x: (B, S, input_dim) float32."""
    B, S, Din = x.shape
    D = params["w_in"].shape[1]
    T = S + 1
    N = B * T
    num_layers = len(params["layers"])
    f32 = jnp.float32

    # CLS slot: one zero input row per sample; the kernel's `adjust` add turns
    # row b*T into exactly cls_token (PyTorch adds PE before the CLS concat,
    # so the CLS row carries no positional encoding).
    x_pad = jnp.zeros((B, T, Din), f32).at[:, 1:, :].set(x.astype(f32)).reshape(N, Din)
    adjust = jnp.concatenate(
        [params["cls_token"] - params["b_in"][None, :], params["pe"][:S]], axis=0)   # (T, D)
    cls_sel = jax.nn.one_hot(jnp.arange(B) * T, N, dtype=f32)                         # (B, N)

    args = [x_pad, params["w_in"], params["b_in"].reshape(1, D), adjust, cls_sel]
    for lyr in params["layers"]:
        Dff = lyr["w_ff1"].shape[1]
        args += [lyr["w_qkv"], lyr["b_qkv"], lyr["w_o"], lyr["b_o"].reshape(1, D),
                 lyr["ln1_g"].reshape(1, D), lyr["ln1_b"].reshape(1, D),
                 lyr["w_ff1"], lyr["b_ff1"].reshape(1, Dff),
                 lyr["w_ff2"], lyr["b_ff2"].reshape(1, D),
                 lyr["ln2_g"].reshape(1, D), lyr["ln2_b"].reshape(1, D)]
    hd = params["heads"]
    args += [hd["w1"], hd["b1"].reshape(1, -1), hd["w2"], hd["b2"].reshape(1, -1)]

    vmem = pl.BlockSpec(memory_space=pltpu.MemorySpace.VMEM)
    out = pl.pallas_call(
        _make_forward_kernel(num_layers, nhead, B, T),
        out_shape=jax.ShapeDtypeStruct((B, HEAD_PAD), jnp.float32),
        in_specs=[vmem] * len(args),
        out_specs=vmem,
        # Single invocation, no grid: all weights + activations fit VMEM with
        # huge headroom on v5e/v6e/v7x, so there is nothing to pipeline.
        # TODO(synk): for large batches, add a batch-chunk grid axis marked
        # "parallel" (>= 8-16 samples per chunk) to engage both v7x TCs.
    )(*args)

    price = out[:, 0:1]
    direction = out[:, 1:3]
    magnitude = out[:, 3:6]
    return price, direction, magnitude


# ---------------- parameters (deterministic synthetic init) ----------------

def positional_encoding(seq_len, d_model):
    pos = jnp.arange(seq_len, dtype=jnp.float32)[:, None]
    div = jnp.exp(jnp.arange(0, d_model, 2, dtype=jnp.float32)
                  * (-math.log(10000.0) / d_model))
    pe = jnp.zeros((seq_len, d_model), jnp.float32)
    pe = pe.at[:, 0::2].set(jnp.sin(pos * div))
    pe = pe.at[:, 1::2].set(jnp.cos(pos * div))
    return pe


def init_params(key, input_dim, d_model, nhead, num_layers, seq_len):
    keys = iter(jax.random.split(key, 16 + 8 * num_layers))

    def w(shape, scale=0.02):
        return scale * jax.random.normal(next(keys), shape, dtype=jnp.float32)

    zeros = lambda s: jnp.zeros(s, jnp.float32)
    ones = lambda s: jnp.ones(s, jnp.float32)

    dh = d_model // nhead
    d_ff = 4 * d_model
    d_half = d_model // 2

    params = {
        "w_in": w((input_dim, d_model)),
        "b_in": zeros((d_model,)),
        "pe": positional_encoding(seq_len, d_model),
        "cls_token": w((1, d_model), scale=1.0),
        "layers": [],
    }
    for _ in range(num_layers):
        params["layers"].append({
            # Attention weights stored in per-head, lane-dense layouts:
            #   w_qkv[i, h, e, d]  = in_proj_weight[i*D + h*dh + e, d]
            #   w_o  [h, e, d_out] = out_proj.weight[d_out, h*dh + e]
            "w_qkv": w((3, nhead, dh, d_model)),
            "b_qkv": zeros((3, nhead, 1, dh)),
            "w_o": w((nhead, dh, d_model)),
            "b_o": zeros((d_model,)),
            "ln1_g": ones((d_model,)), "ln1_b": zeros((d_model,)),
            "w_ff1": w((d_model, d_ff)), "b_ff1": zeros((d_ff,)),
            "w_ff2": w((d_ff, d_model)), "b_ff2": zeros((d_model,)),
            "ln2_g": ones((d_model,)), "ln2_b": zeros((d_model,)),
        })

    # Fused prediction heads: concatenate the three first-layer weights and
    # block-diagonal-pad the three second-layer weights into one lane-dense
    # (3*d_half, HEAD_PAD) matmul.  Output columns: price -> [0:1],
    # direction -> [1:3], magnitude -> [3:6].
    head_dims = (1, 2, 3)
    w1s, b1s, w2s, b2s = [], [], [], []
    for out_dim in head_dims:
        w1s.append(w((d_model, d_half))); b1s.append(zeros((d_half,)))
        w2s.append(w((d_half, out_dim))); b2s.append(zeros((out_dim,)))
    w1_cat = jnp.concatenate(w1s, axis=1)
    b1_cat = jnp.concatenate(b1s, axis=0)
    w2_pad = jnp.zeros((3 * d_half, HEAD_PAD), jnp.float32)
    b2_pad = jnp.zeros((HEAD_PAD,), jnp.float32)
    col = 0
    for i, out_dim in enumerate(head_dims):
        w2_pad = w2_pad.at[i * d_half:(i + 1) * d_half, col:col + out_dim].set(w2s[i])
        b2_pad = b2_pad.at[col:col + out_dim].set(b2s[i])
        col += out_dim
    params["heads"] = {"w1": w1_cat, "b1": b1_cat, "w2": w2_pad, "b2": b2_pad}
    # NOTE: self.attention_pool (nn.MultiheadAttention) is unused in forward().
    return params


# ---------------- demo ----------------

if __name__ == "__main__":
    B, S, INPUT_DIM = 2, 7, 16            # T = S + 1 = 8 tokens incl. CLS
    D_MODEL, NHEAD, NUM_LAYERS = 128, 8, 2

    key = jax.random.PRNGKey(0)
    pkey, xkey = jax.random.split(key)
    params = init_params(pkey, INPUT_DIM, D_MODEL, NHEAD, NUM_LAYERS, seq_len=S)
    x = jax.random.normal(xkey, (B, S, INPUT_DIM), dtype=jnp.float32)

    fwd = jax.jit(functools.partial(forward, nhead=NHEAD))
    price, direction, magnitude = fwd(params, x)
    jax.block_until_ready((price, direction, magnitude))
    assert price.shape == (B, 1)
    assert direction.shape == (B, 2)
    assert magnitude.shape == (B, 3)
    print("KERNEL_OK")
</pallas_src>

<mosaic_0001>
module attributes {stable_mosaic.version = 11 : i64} {
  func.func @kernel(%arg0: memref<16x16xf32, #tpu.memory_space<vmem>>, %arg1: memref<16x128xf32, #tpu.memory_space<vmem>>, %arg2: memref<1x128xf32, #tpu.memory_space<vmem>>, %arg3: memref<8x128xf32, #tpu.memory_space<vmem>>, %arg4: memref<2x16xf32, #tpu.memory_space<vmem>>, %arg5: memref<3x8x16x128xf32, #tpu.memory_space<vmem>>, %arg6: memref<3x8x1x16xf32, #tpu.memory_space<vmem>>, %arg7: memref<8x16x128xf32, #tpu.memory_space<vmem>>, %arg8: memref<1x128xf32, #tpu.memory_space<vmem>>, %arg9: memref<1x128xf32, #tpu.memory_space<vmem>>, %arg10: memref<1x128xf32, #tpu.memory_space<vmem>>, %arg11: memref<128x512xf32, #tpu.memory_space<vmem>>, %arg12: memref<1x512xf32, #tpu.memory_space<vmem>>, %arg13: memref<512x128xf32, #tpu.memory_space<vmem>>, %arg14: memref<1x128xf32, #tpu.memory_space<vmem>>, %arg15: memref<1x128xf32, #tpu.memory_space<vmem>>, %arg16: memref<1x128xf32, #tpu.memory_space<vmem>>, %arg17: memref<3x8x16x128xf32, #tpu.memory_space<vmem>>, %arg18: memref<3x8x1x16xf32, #tpu.memory_space<vmem>>, %arg19: memref<8x16x128xf32, #tpu.memory_space<vmem>>, %arg20: memref<1x128xf32, #tpu.memory_space<vmem>>, %arg21: memref<1x128xf32, #tpu.memory_space<vmem>>, %arg22: memref<1x128xf32, #tpu.memory_space<vmem>>, %arg23: memref<128x512xf32, #tpu.memory_space<vmem>>, %arg24: memref<1x512xf32, #tpu.memory_space<vmem>>, %arg25: memref<512x128xf32, #tpu.memory_space<vmem>>, %arg26: memref<1x128xf32, #tpu.memory_space<vmem>>, %arg27: memref<1x128xf32, #tpu.memory_space<vmem>>, %arg28: memref<1x128xf32, #tpu.memory_space<vmem>>, %arg29: memref<128x192xf32, #tpu.memory_space<vmem>>, %arg30: memref<1x192xf32, #tpu.memory_space<vmem>>, %arg31: memref<192x128xf32, #tpu.memory_space<vmem>>, %arg32: memref<1x128xf32, #tpu.memory_space<vmem>>, %arg33: memref<2x128xf32, #tpu.memory_space<vmem>>) attributes {dimension_semantics = [], scalar_prefetch = 0 : i64, scratch_operands = 0 : i64, tpu.core_type = #tpu.core_type<tc>} {
    %c0 = arith.constant 0 : index
    %c0_0 = arith.constant 0 : index
    %0 = vector.load %arg0[%c0, %c0_0] : memref<16x16xf32, #tpu.memory_space<vmem>>, vector<16x16xf32>
    %c0_1 = arith.constant 0 : index
    %c0_2 = arith.constant 0 : index
    %1 = vector.load %arg1[%c0_1, %c0_2] : memref<16x128xf32, #tpu.memory_space<vmem>>, vector<16x128xf32>
    %cst = arith.constant dense<0.000000e+00> : vector<16x128xf32>
    %2 = tpu.matmul %0, %1, %cst {dimension_numbers = #tpu.dot_dimension_numbers<[1], [0], [0], [1], [0, 0, 1, 1], [], []>} : vector<16x16xf32>, vector<16x128xf32>, vector<16x128xf32> -> vector<16x128xf32>
    %c0_3 = arith.constant 0 : index
    %c0_4 = arith.constant 0 : index
    %3 = vector.load %arg2[%c0_3, %c0_4] : memref<1x128xf32, #tpu.memory_space<vmem>>, vector<1x128xf32>
    %4 = vector.broadcast %3 : vector<1x128xf32> to vector<16x128xf32>
    %5 = arith.addf %2, %4 : vector<16x128xf32>
    %6 = vector.shape_cast %5 : vector<16x128xf32> to vector<2x8x128xf32>
    %c0_5 = arith.constant 0 : index
    %c0_6 = arith.constant 0 : index
    %7 = vector.load %arg3[%c0_5, %c0_6] : memref<8x128xf32, #tpu.memory_space<vmem>>, vector<8x128xf32>
    %8 = vector.shape_cast %7 : vector<8x128xf32> to vector<1x8x128xf32>
    %9 = vector.broadcast %8 : vector<1x8x128xf32> to vector<2x8x128xf32>
    %10 = arith.addf %6, %9 : vector<2x8x128xf32>
    %11 = vector.shape_cast %10 : vector<2x8x128xf32> to vector<16x128xf32>
    %12 = vector.shape_cast %11 : vector<16x128xf32> to vector<2x1x8x128xf32>
    %13 = vector.shape_cast %12 : vector<2x1x8x128xf32> to vector<2x1x8x128xf32>
    %14 = vector.broadcast %13 : vector<2x1x8x128xf32> to vector<2x8x8x128xf32>
    %15 = vector.shape_cast %14 : vector<2x8x8x128xf32> to vector<16x8x128xf32>
    %c0_7 = arith.constant 0 : index
    %c0_8 = arith.constant 0 : index
    %c0_9 = arith.constant 0 : index
    %c0_10 = arith.constant 0 : index
    %16 = vector.load %arg5[%c0_7, %c0_8, %c0_9, %c0_10] : memref<3x8x16x128xf32, #tpu.memory_space<vmem>>, vector<1x8x16x128xf32>
    %17 = vector.shape_cast %16 : vector<1x8x16x128xf32> to vector<8x16x128xf32>
    %18 = vector.shape_cast %17 : vector<8x16x128xf32> to vector<1x8x16x128xf32>
    %19 = vector.shape_cast %18 : vector<1x8x16x128xf32> to vector<1x8x16x128xf32>
    %20 = vector.broadcast %19 : vector<1x8x16x128xf32> to vector<2x8x16x128xf32>
    %21 = vector.shape_cast %20 : vector<2x8x16x128xf32> to vector<16x16x128xf32>
    %c0_11 = arith.constant 0 : index
    %c0_12 = arith.constant 0 : index
    %c0_13 = arith.constant 0 : index
    %c0_14 = arith.constant 0 : index
    %22 = vector.load %arg6[%c0_11, %c0_12, %c0_13, %c0_14] : memref<3x8x1x16xf32, #tpu.memory_space<vmem>>, vector<1x8x1x16xf32>
    %23 = vector.shape_cast %22 : vector<1x8x1x16xf32> to vector<8x1x16xf32>
    %24 = vector.shape_cast %23 : vector<8x1x16xf32> to vector<1x8x1x16xf32>
    %25 = vector.shape_cast %24 : vector<1x8x1x16xf32> to vector<1x8x1x16xf32>
    %26 = vector.broadcast %25 : vector<1x8x1x16xf32> to vector<2x8x1x16xf32>
    %27 = vector.shape_cast %26 : vector<2x8x1x16xf32> to vector<16x1x16xf32>
    %cst_15 = arith.constant dense<0.000000e+00> : vector<16x8x16xf32>
    %28 = tpu.matmul %15, %21, %cst_15 {dimension_numbers = #tpu.dot_dimension_numbers<[2], [2], [1], [1], [0, 0, 0, 1, 1, 1], [0], [0]>} : vector<16x8x128xf32>, vector<16x16x128xf32>, vector<16x8x16xf32> -> vector<16x8x16xf32>
    %29 = vector.broadcast %27 : vector<16x1x16xf32> to vector<16x8x16xf32>
    %30 = arith.addf %28, %29 : vector<16x8x16xf32>
    %c1 = arith.constant 1 : index
    %c0_16 = arith.constant 0 : index
    %c0_17 = arith.constant 0 : index
    %c0_18 = arith.constant 0 : index
    %31 = vector.load %arg5[%c1, %c0_16, %c0_17, %c0_18] : memref<3x8x16x128xf32, #tpu.memory_space<vmem>>, vector<1x8x16x128xf32>
    %32 = vector.shape_cast %31 : vector<1x8x16x128xf32> to vector<8x16x128xf32>
    %33 = vector.shape_cast %32 : vector<8x16x128xf32> to vector<1x8x16x128xf32>
    %34 = vector.shape_cast %33 : vector<1x8x16x128xf32> to vector<1x8x16x128xf32>
    %35 = vector.broadcast %34 : vector<1x8x16x128xf32> to vector<2x8x16x128xf32>
    %36 = vector.shape_cast %35 : vector<2x8x16x128xf32> to vector<16x16x128xf32>
    %c1_19 = arith.constant 1 : index
    %c0_20 = arith.constant 0 : index
    %c0_21 = arith.constant 0 : index
    %c0_22 = arith.constant 0 : index
    %37 = vector.load %arg6[%c1_19, %c0_20, %c0_21, %c0_22] : memref<3x8x1x16xf32, #tpu.memory_space<vmem>>, vector<1x8x1x16xf32>
    %38 = vector.shape_cast %37 : vector<1x8x1x16xf32> to vector<8x1x16xf32>
    %39 = vector.shape_cast %38 : vector<8x1x16xf32> to vector<1x8x1x16xf32>
    %40 = vector.shape_cast %39 : vector<1x8x1x16xf32> to vector<1x8x1x16xf32>
    %41 = vector.broadcast %40 : vector<1x8x1x16xf32> to vector<2x8x1x16xf32>
    %42 = vector.shape_cast %41 : vector<2x8x1x16xf32> to vector<16x1x16xf32>
    %cst_23 = arith.constant dense<0.000000e+00> : vector<16x8x16xf32>
    %43 = tpu.matmul %15, %36, %cst_23 {dimension_numbers = #tpu.dot_dimension_numbers<[2], [2], [1], [1], [0, 0, 0, 1, 1, 1], [0], [0]>} : vector<16x8x128xf32>, vector<16x16x128xf32>, vector<16x8x16xf32> -> vector<16x8x16xf32>
    %44 = vector.broadcast %42 : vector<16x1x16xf32> to vector<16x8x16xf32>
    %45 = arith.addf %43, %44 : vector<16x8x16xf32>
    %c2 = arith.constant 2 : index
    %c0_24 = arith.constant 0 : index
    %c0_25 = arith.constant 0 : index
    %c0_26 = arith.constant 0 : index
    %46 = vector.load %arg5[%c2, %c0_24, %c0_25, %c0_26] : memref<3x8x16x128xf32, #tpu.memory_space<vmem>>, vector<1x8x16x128xf32>
    %47 = vector.shape_cast %46 : vector<1x8x16x128xf32> to vector<8x16x128xf32>
    %48 = vector.shape_cast %47 : vector<8x16x128xf32> to vector<1x8x16x128xf32>
    %49 = vector.shape_cast %48 : vector<1x8x16x128xf32> to vector<1x8x16x128xf32>
    %50 = vector.broadcast %49 : vector<1x8x16x128xf32> to vector<2x8x16x128xf32>
    %51 = vector.shape_cast %50 : vector<2x8x16x128xf32> to vector<16x16x128xf32>
    %c2_27 = arith.constant 2 : index
    %c0_28 = arith.constant 0 : index
    %c0_29 = arith.constant 0 : index
    %c0_30 = arith.constant 0 : index
    %52 = vector.load %arg6[%c2_27, %c0_28, %c0_29, %c0_30] : memref<3x8x1x16xf32, #tpu.memory_space<vmem>>, vector<1x8x1x16xf32>
    %53 = vector.shape_cast %52 : vector<1x8x1x16xf32> to vector<8x1x16xf32>
    %54 = vector.shape_cast %53 : vector<8x1x16xf32> to vector<1x8x1x16xf32>
    %55 = vector.shape_cast %54 : vector<1x8x1x16xf32> to vector<1x8x1x16xf32>
    %56 = vector.broadcast %55 : vector<1x8x1x16xf32> to vector<2x8x1x16xf32>
    %57 = vector.shape_cast %56 : vector<2x8x1x16xf32> to vector<16x1x16xf32>
    %cst_31 = arith.constant dense<0.000000e+00> : vector<16x8x16xf32>
    %58 = tpu.matmul %15, %51, %cst_31 {dimension_numbers = #tpu.dot_dimension_numbers<[2], [2], [1], [1], [0, 0, 0, 1, 1, 1], [0], [0]>} : vector<16x8x128xf32>, vector<16x16x128xf32>, vector<16x8x16xf32> -> vector<16x8x16xf32>
    %59 = vector.broadcast %57 : vector<16x1x16xf32> to vector<16x8x16xf32>
    %60 = arith.addf %58, %59 : vector<16x8x16xf32>
    %cst_32 = arith.constant dense<0.000000e+00> : vector<16x8x8xf32>
    %61 = tpu.matmul %30, %45, %cst_32 {dimension_numbers = #tpu.dot_dimension_numbers<[2], [2], [1], [1], [0, 0, 0, 1, 1, 1], [0], [0]>} : vector<16x8x16xf32>, vector<16x8x16xf32>, vector<16x8x8xf32> -> vector<16x8x8xf32>
    %cst_33 = arith.constant 2.500000e-01 : f32
    %62 = vector.broadcast %cst_33 : f32 to vector<16x8x8xf32>
    %63 = arith.mulf %61, %62 : vector<16x8x8xf32>
    %cst_34 = arith.constant dense<0xFF800000> : vector<16x8xf32>
    %64 = vector.multi_reduction <maximumf>, %63, %cst_34 [2] : vector<16x8x8xf32> to vector<16x8xf32>
    %65 = vector.shape_cast %64 : vector<16x8xf32> to vector<16x8x1xf32>
    %66 = vector.broadcast %65 : vector<16x8x1xf32> to vector<16x8x8xf32>
    %67 = arith.subf %63, %66 : vector<16x8x8xf32>
    %68 = math.exp %67 : vector<16x8x8xf32>
    %cst_35 = arith.constant dense<0.000000e+00> : vector<16x8xf32>
    %69 = vector.multi_reduction <add>, %68, %cst_35 [2] : vector<16x8x8xf32> to vector<16x8xf32>
    %70 = vector.shape_cast %69 : vector<16x8xf32> to vector<16x8x1xf32>
    %71 = vector.broadcast %70 : vector<16x8x1xf32> to vector<16x8x8xf32>
    %72 = arith.divf %68, %71 : vector<16x8x8xf32>
    %cst_36 = arith.constant dense<0.000000e+00> : vector<16x8x16xf32>
    %73 = tpu.matmul %72, %60, %cst_36 {dimension_numbers = #tpu.dot_dimension_numbers<[2], [1], [1], [2], [0, 0, 0, 1, 1, 2], [0], [0]>} : vector<16x8x8xf32>, vector<16x8x16xf32>, vector<16x8x16xf32> -> vector<16x8x16xf32>
    %c0_37 = arith.constant 0 : index
    %c0_38 = arith.constant 0 : index
    %c0_39 = arith.constant 0 : index
    %74 = vector.load %arg7[%c0_37, %c0_38, %c0_39] : memref<8x16x128xf32, #tpu.memory_space<vmem>>, vector<8x16x128xf32>
    %75 = vector.shape_cast %74 : vector<8x16x128xf32> to vector<1x8x16x128xf32>
    %76 = vector.shape_cast %75 : vector<1x8x16x128xf32> to vector<1x8x16x128xf32>
    %77 = vector.broadcast %76 : vector<1x8x16x128xf32> to vector<2x8x16x128xf32>
    %78 = vector.shape_cast %77 : vector<2x8x16x128xf32> to vector<16x16x128xf32>
    %cst_40 = arith.constant dense<0.000000e+00> : vector<16x8x128xf32>
    %79 = tpu.matmul %73, %78, %cst_40 {dimension_numbers = #tpu.dot_dimension_numbers<[2], [1], [1], [2], [0, 0, 0, 1, 1, 2], [0], [0]>} : vector<16x8x16xf32>, vector<16x16x128xf32>, vector<16x8x128xf32> -> vector<16x8x128xf32>
    %80 = vector.shape_cast %79 : vector<16x8x128xf32> to vector<2x8x8x128xf32>
    %81 = vector.extract_strided_slice %80 {offsets = [0, 0, 0, 0], sizes = [2, 1, 8, 128], strides = [1, 1, 1, 1]} : vector<2x8x8x128xf32> to vector<2x1x8x128xf32>
    %82 = vector.shape_cast %81 : vector<2x1x8x128xf32> to vector<2x8x128xf32>
    %83 = vector.extract_strided_slice %80 {offsets = [0, 1, 0, 0], sizes = [2, 1, 8, 128], strides = [1, 1, 1, 1]} : vector<2x8x8x128xf32> to vector<2x1x8x128xf32>
    %84 = vector.shape_cast %83 : vector<2x1x8x128xf32> to vector<2x8x128xf32>
    %85 = arith.addf %82, %84 : vector<2x8x128xf32>
    %86 = vector.extract_strided_slice %80 {offsets = [0, 2, 0, 0], sizes = [2, 1, 8, 128], strides = [1, 1, 1, 1]} : vector<2x8x8x128xf32> to vector<2x1x8x128xf32>
    %87 = vector.shape_cast %86 : vector<2x1x8x128xf32> to vector<2x8x128xf32>
    %88 = arith.addf %85, %87 : vector<2x8x128xf32>
    %89 = vector.extract_strided_slice %80 {offsets = [0, 3, 0, 0], sizes = [2, 1, 8, 128], strides = [1, 1, 1, 1]} : vector<2x8x8x128xf32> to vector<2x1x8x128xf32>
    %90 = vector.shape_cast %89 : vector<2x1x8x128xf32> to vector<2x8x128xf32>
    %91 = arith.addf %88, %90 : vector<2x8x128xf32>
    %92 = vector.extract_strided_slice %80 {offsets = [0, 4, 0, 0], sizes = [2, 1, 8, 128], strides = [1, 1, 1, 1]} : vector<2x8x8x128xf32> to vector<2x1x8x128xf32>
    %93 = vector.shape_cast %92 : vector<2x1x8x128xf32> to vector<2x8x128xf32>
    %94 = arith.addf %91, %93 : vector<2x8x128xf32>
    %95 = vector.extract_strided_slice %80 {offsets = [0, 5, 0, 0], sizes = [2, 1, 8, 128], strides = [1, 1, 1, 1]} : vector<2x8x8x128xf32> to vector<2x1x8x128xf32>
    %96 = vector.shape_cast %95 : vector<2x1x8x128xf32> to vector<2x8x128xf32>
    %97 = arith.addf %94, %96 : vector<2x8x128xf32>
    %98 = vector.extract_strided_slice %80 {offsets = [0, 6, 0, 0], sizes = [2, 1, 8, 128], strides = [1, 1, 1, 1]} : vector<2x8x8x128xf32> to vector<2x1x8x128xf32>
    %99 = vector.shape_cast %98 : vector<2x1x8x128xf32> to vector<2x8x128xf32>
    %100 = arith.addf %97, %99 : vector<2x8x128xf32>
    %101 = vector.extract_strided_slice %80 {offsets = [0, 7, 0, 0], sizes = [2, 1, 8, 128], strides = [1, 1, 1, 1]} : vector<2x8x8x128xf32> to vector<2x1x8x128xf32>
    %102 = vector.shape_cast %101 : vector<2x1x8x128xf32> to vector<2x8x128xf32>
    %103 = arith.addf %100, %102 : vector<2x8x128xf32>
    %c0_41 = arith.constant 0 : index
    %c0_42 = arith.constant 0 : index
    %104 = vector.load %arg8[%c0_41, %c0_42] : memref<1x128xf32, #tpu.memory_space<vmem>>, vector<1x128xf32>
    %105 = vector.shape_cast %104 : vector<1x128xf32> to vector<1x1x128xf32>
    %106 = vector.broadcast %105 : vector<1x1x128xf32> to vector<2x8x128xf32>
    %107 = arith.addf %103, %106 : vector<2x8x128xf32>
    %108 = vector.shape_cast %107 : vector<2x8x128xf32> to vector<16x128xf32>
    %109 = arith.addf %11, %108 : vector<16x128xf32>
    %c0_43 = arith.constant 0 : index
    %c0_44 = arith.constant 0 : index
    %110 = vector.load %arg9[%c0_43, %c0_44] : memref<1x128xf32, #tpu.memory_space<vmem>>, vector<1x128xf32>
    %c0_45 = arith.constant 0 : index
    %c0_46 = arith.constant 0 : index
    %111 = vector.load %arg10[%c0_45, %c0_46] : memref<1x128xf32, #tpu.memory_space<vmem>>, vector<1x128xf32>
    %cst_47 = arith.constant dense<0.000000e+00> : vector<16xf32>
    %112 = vector.multi_reduction <add>, %109, %cst_47 [1] : vector<16x128xf32> to vector<16xf32>
    %113 = vector.shape_cast %112 : vector<16xf32> to vector<16x1xf32>
    %cst_48 = arith.constant 1.280000e+02 : f32
    %114 = vector.broadcast %cst_48 : f32 to vector<16x1xf32>
    %115 = arith.divf %113, %114 : vector<16x1xf32>
    %116 = vector.broadcast %115 : vector<16x1xf32> to vector<16x128xf32>
    %117 = arith.subf %109, %116 : vector<16x128xf32>
    %118 = arith.mulf %117, %117 : vector<16x128xf32>
    %cst_49 = arith.constant dense<0.000000e+00> : vector<16xf32>
    %119 = vector.multi_reduction <add>, %118, %cst_49 [1] : vector<16x128xf32> to vector<16xf32>
    %120 = vector.shape_cast %119 : vector<16xf32> to vector<16x1xf32>
    %cst_50 = arith.constant 1.280000e+02 : f32
    %121 = vector.broadcast %cst_50 : f32 to vector<16x1xf32>
    %122 = arith.divf %120, %121 : vector<16x1xf32>
    %cst_51 = arith.constant 9.99999974E-6 : f32
    %123 = vector.broadcast %cst_51 : f32 to vector<16x1xf32>
    %124 = arith.addf %122, %123 : vector<16x1xf32>
    %125 = math.rsqrt %124 : vector<16x1xf32>
    %126 = vector.broadcast %125 : vector<16x1xf32> to vector<16x128xf32>
    %127 = arith.mulf %117, %126 : vector<16x128xf32>
    %128 = vector.broadcast %110 : vector<1x128xf32> to vector<16x128xf32>
    %129 = arith.mulf %127, %128 : vector<16x128xf32>
    %130 = vector.broadcast %111 : vector<1x128xf32> to vector<16x128xf32>
    %131 = arith.addf %129, %130 : vector<16x128xf32>
    %c0_52 = arith.constant 0 : index
    %c0_53 = arith.constant 0 : index
    %132 = vector.load %arg11[%c0_52, %c0_53] : memref<128x512xf32, #tpu.memory_space<vmem>>, vector<128x512xf32>
    %cst_54 = arith.constant dense<0.000000e+00> : vector<16x512xf32>
    %133 = tpu.matmul %131, %132, %cst_54 {dimension_numbers = #tpu.dot_dimension_numbers<[1], [0], [0], [1], [0, 0, 1, 1], [], []>} : vector<16x128xf32>, vector<128x512xf32>, vector<16x512xf32> -> vector<16x512xf32>
    %c0_55 = arith.constant 0 : index
    %c0_56 = arith.constant 0 : index
    %134 = vector.load %arg12[%c0_55, %c0_56] : memref<1x512xf32, #tpu.memory_space<vmem>>, vector<1x512xf32>
    %135 = vector.broadcast %134 : vector<1x512xf32> to vector<16x512xf32>
    %136 = arith.addf %133, %135 : vector<16x512xf32>
    %cst_57 = arith.constant 5.000000e-01 : f32
    %137 = vector.broadcast %cst_57 : f32 to vector<16x512xf32>
    %138 = arith.mulf %137, %136 : vector<16x512xf32>
    %cst_58 = arith.constant 0.707106769 : f32
    %139 = vector.broadcast %cst_58 : f32 to vector<16x512xf32>
    %140 = arith.mulf %136, %139 : vector<16x512xf32>
    %cst_59 = arith.constant 0.000000e+00 : f32
    %141 = vector.broadcast %cst_59 : f32 to vector<16x512xf32>
    %142 = arith.cmpf oge, %140, %141 : vector<16x512xf32>
    %cst_60 = arith.constant 1.000000e+00 : f32
    %cst_61 = arith.constant -1.000000e+00 : f32
    %143 = vector.broadcast %cst_60 : f32 to vector<16x512xf32>
    %144 = vector.broadcast %cst_61 : f32 to vector<16x512xf32>
    %145 = arith.select %142, %143, %144 : vector<16x512xi1>, vector<16x512xf32>
    %146 = math.absf %140 : vector<16x512xf32>
    %cst_62 = arith.constant 0.327591091 : f32
    %147 = vector.broadcast %cst_62 : f32 to vector<16x512xf32>
    %148 = arith.mulf %147, %146 : vector<16x512xf32>
    %cst_63 = arith.constant 1.000000e+00 : f32
    %149 = vector.broadcast %cst_63 : f32 to vector<16x512xf32>
    %150 = arith.addf %149, %148 : vector<16x512xf32>
    %cst_64 = arith.constant 1.000000e+00 : f32
    %151 = vector.broadcast %cst_64 : f32 to vector<16x512xf32>
    %152 = arith.divf %151, %150 : vector<16x512xf32>
    %cst_65 = arith.constant 1.06140542 : f32
    %153 = vector.broadcast %cst_65 : f32 to vector<16x512xf32>
    %154 = arith.mulf %153, %152 : vector<16x512xf32>
    %cst_66 = arith.constant -1.45315206 : f32
    %155 = vector.broadcast %cst_66 : f32 to vector<16x512xf32>
    %156 = arith.addf %154, %155 : vector<16x512xf32>
    %157 = arith.mulf %156, %152 : vector<16x512xf32>
    %cst_67 = arith.constant 1.42141378 : f32
    %158 = vector.broadcast %cst_67 : f32 to vector<16x512xf32>
    %159 = arith.addf %157, %158 : vector<16x512xf32>
    %160 = arith.mulf %159, %152 : vector<16x512xf32>
    %cst_68 = arith.constant -0.284496725 : f32
    %161 = vector.broadcast %cst_68 : f32 to vector<16x512xf32>
    %162 = arith.addf %160, %161 : vector<16x512xf32>
    %163 = arith.mulf %162, %152 : vector<16x512xf32>
    %cst_69 = arith.constant 0.254829586 : f32
    %164 = vector.broadcast %cst_69 : f32 to vector<16x512xf32>
    %165 = arith.addf %163, %164 : vector<16x512xf32>
    %166 = arith.mulf %165, %152 : vector<16x512xf32>
    %cst_70 = arith.constant 0.000000e+00 : f32
    %167 = vector.broadcast %cst_70 : f32 to vector<16x512xf32>
    %168 = arith.subf %167, %146 : vector<16x512xf32>
    %169 = arith.mulf %168, %146 : vector<16x512xf32>
    %170 = math.exp %169 : vector<16x512xf32>
    %171 = arith.mulf %166, %170 : vector<16x512xf32>
    %cst_71 = arith.constant 1.000000e+00 : f32
    %172 = vector.broadcast %cst_71 : f32 to vector<16x512xf32>
    %173 = arith.subf %172, %171 : vector<16x512xf32>
    %174 = arith.mulf %145, %173 : vector<16x512xf32>
    %cst_72 = arith.constant 1.000000e+00 : f32
    %175 = vector.broadcast %cst_72 : f32 to vector<16x512xf32>
    %176 = arith.addf %175, %174 : vector<16x512xf32>
    %177 = arith.mulf %138, %176 : vector<16x512xf32>
    %c0_73 = arith.constant 0 : index
    %c0_74 = arith.constant 0 : index
    %178 = vector.load %arg13[%c0_73, %c0_74] : memref<512x128xf32, #tpu.memory_space<vmem>>, vector<512x128xf32>
    %cst_75 = arith.constant dense<0.000000e+00> : vector<16x128xf32>
    %179 = tpu.matmul %177, %178, %cst_75 {dimension_numbers = #tpu.dot_dimension_numbers<[1], [0], [0], [1], [0, 0, 1, 1], [], []>} : vector<16x512xf32>, vector<512x128xf32>, vector<16x128xf32> -> vector<16x128xf32>
    %c0_76 = arith.constant 0 : index
    %c0_77 = arith.constant 0 : index
    %180 = vector.load %arg14[%c0_76, %c0_77] : memref<1x128xf32, #tpu.memory_space<vmem>>, vector<1x128xf32>
    %181 = vector.broadcast %180 : vector<1x128xf32> to vector<16x128xf32>
    %182 = arith.addf %179, %181 : vector<16x128xf32>
    %183 = arith.addf %131, %182 : vector<16x128xf32>
    %c0_78 = arith.constant 0 : index
    %c0_79 = arith.constant 0 : index
    %184 = vector.load %arg15[%c0_78, %c0_79] : memref<1x128xf32, #tpu.memory_space<vmem>>, vector<1x128xf32>
    %c0_80 = arith.constant 0 : index
    %c0_81 = arith.constant 0 : index
    %185 = vector.load %arg16[%c0_80, %c0_81] : memref<1x128xf32, #tpu.memory_space<vmem>>, vector<1x128xf32>
    %cst_82 = arith.constant dense<0.000000e+00> : vector<16xf32>
    %186 = vector.multi_reduction <add>, %183, %cst_82 [1] : vector<16x128xf32> to vector<16xf32>
    %187 = vector.shape_cast %186 : vector<16xf32> to vector<16x1xf32>
    %cst_83 = arith.constant 1.280000e+02 : f32
    %188 = vector.broadcast %cst_83 : f32 to vector<16x1xf32>
    %189 = arith.divf %187, %188 : vector<16x1xf32>
    %190 = vector.broadcast %189 : vector<16x1xf32> to vector<16x128xf32>
    %191 = arith.subf %183, %190 : vector<16x128xf32>
    %192 = arith.mulf %191, %191 : vector<16x128xf32>
    %cst_84 = arith.constant dense<0.000000e+00> : vector<16xf32>
    %193 = vector.multi_reduction <add>, %192, %cst_84 [1] : vector<16x128xf32> to vector<16xf32>
    %194 = vector.shape_cast %193 : vector<16xf32> to vector<16x1xf32>
    %cst_85 = arith.constant 1.280000e+02 : f32
    %195 = vector.broadcast %cst_85 : f32 to vector<16x1xf32>
    %196 = arith.divf %194, %195 : vector<16x1xf32>
    %cst_86 = arith.constant 9.99999974E-6 : f32
    %197 = vector.broadcast %cst_86 : f32 to vector<16x1xf32>
    %198 = arith.addf %196, %197 : vector<16x1xf32>
    %199 = math.rsqrt %198 : vector<16x1xf32>
    %200 = vector.broadcast %199 : vector<16x1xf32> to vector<16x128xf32>
    %201 = arith.mulf %191, %200 : vector<16x128xf32>
    %202 = vector.broadcast %184 : vector<1x128xf32> to vector<16x128xf32>
    %203 = arith.mulf %201, %202 : vector<16x128xf32>
    %204 = vector.broadcast %185 : vector<1x128xf32> to vector<16x128xf32>
    %205 = arith.addf %203, %204 : vector<16x128xf32>
    %206 = vector.shape_cast %205 : vector<16x128xf32> to vector<2x1x8x128xf32>
    %207 = vector.shape_cast %206 : vector<2x1x8x128xf32> to vector<2x1x8x128xf32>
    %208 = vector.broadcast %207 : vector<2x1x8x128xf32> to vector<2x8x8x128xf32>
    %209 = vector.shape_cast %208 : vector<2x8x8x128xf32> to vector<16x8x128xf32>
    %c0_87 = arith.constant 0 : index
    %c0_88 = arith.constant 0 : index
    %c0_89 = arith.constant 0 : index
    %c0_90 = arith.constant 0 : index
    %210 = vector.load %arg17[%c0_87, %c0_88, %c0_89, %c0_90] : memref<3x8x16x128xf32, #tpu.memory_space<vmem>>, vector<1x8x16x128xf32>
    %211 = vector.shape_cast %210 : vector<1x8x16x128xf32> to vector<8x16x128xf32>
    %212 = vector.shape_cast %211 : vector<8x16x128xf32> to vector<1x8x16x128xf32>
    %213 = vector.shape_cast %212 : vector<1x8x16x128xf32> to vector<1x8x16x128xf32>
    %214 = vector.broadcast %213 : vector<1x8x16x128xf32> to vector<2x8x16x128xf32>
    %215 = vector.shape_cast %214 : vector<2x8x16x128xf32> to vector<16x16x128xf32>
    %c0_91 = arith.constant 0 : index
    %c0_92 = arith.constant 0 : index
    %c0_93 = arith.constant 0 : index
    %c0_94 = arith.constant 0 : index
    %216 = vector.load %arg18[%c0_91, %c0_92, %c0_93, %c0_94] : memref<3x8x1x16xf32, #tpu.memory_space<vmem>>, vector<1x8x1x16xf32>
    %217 = vector.shape_cast %216 : vector<1x8x1x16xf32> to vector<8x1x16xf32>
    %218 = vector.shape_cast %217 : vector<8x1x16xf32> to vector<1x8x1x16xf32>
    %219 = vector.shape_cast %218 : vector<1x8x1x16xf32> to vector<1x8x1x16xf32>
    %220 = vector.broadcast %219 : vector<1x8x1x16xf32> to vector<2x8x1x16xf32>
    %221 = vector.shape_cast %220 : vector<2x8x1x16xf32> to vector<16x1x16xf32>
    %cst_95 = arith.constant dense<0.000000e+00> : vector<16x8x16xf32>
    %222 = tpu.matmul %209, %215, %cst_95 {dimension_numbers = #tpu.dot_dimension_numbers<[2], [2], [1], [1], [0, 0, 0, 1, 1, 1], [0], [0]>} : vector<16x8x128xf32>, vector<16x16x128xf32>, vector<16x8x16xf32> -> vector<16x8x16xf32>
    %223 = vector.broadcast %221 : vector<16x1x16xf32> to vector<16x8x16xf32>
    %224 = arith.addf %222, %223 : vector<16x8x16xf32>
    %c1_96 = arith.constant 1 : index
    %c0_97 = arith.constant 0 : index
    %c0_98 = arith.constant 0 : index
    %c0_99 = arith.constant 0 : index
    %225 = vector.load %arg17[%c1_96, %c0_97, %c0_98, %c0_99] : memref<3x8x16x128xf32, #tpu.memory_space<vmem>>, vector<1x8x16x128xf32>
    %226 = vector.shape_cast %225 : vector<1x8x16x128xf32> to vector<8x16x128xf32>
    %227 = vector.shape_cast %226 : vector<8x16x128xf32> to vector<1x8x16x128xf32>
    %228 = vector.shape_cast %227 : vector<1x8x16x128xf32> to vector<1x8x16x128xf32>
    %229 = vector.broadcast %228 : vector<1x8x16x128xf32> to vector<2x8x16x128xf32>
    %230 = vector.shape_cast %229 : vector<2x8x16x128xf32> to vector<16x16x128xf32>
    %c1_100 = arith.constant 1 : index
    %c0_101 = arith.constant 0 : index
    %c0_102 = arith.constant 0 : index
    %c0_103 = arith.constant 0 : index
    %231 = vector.load %arg18[%c1_100, %c0_101, %c0_102, %c0_103] : memref<3x8x1x16xf32, #tpu.memory_space<vmem>>, vector<1x8x1x16xf32>
    %232 = vector.shape_cast %231 : vector<1x8x1x16xf32> to vector<8x1x16xf32>
    %233 = vector.shape_cast %232 : vector<8x1x16xf32> to vector<1x8x1x16xf32>
    %234 = vector.shape_cast %233 : vector<1x8x1x16xf32> to vector<1x8x1x16xf32>
    %235 = vector.broadcast %234 : vector<1x8x1x16xf32> to vector<2x8x1x16xf32>
    %236 = vector.shape_cast %235 : vector<2x8x1x16xf32> to vector<16x1x16xf32>
    %cst_104 = arith.constant dense<0.000000e+00> : vector<16x8x16xf32>
    %237 = tpu.matmul %209, %230, %cst_104 {dimension_numbers = #tpu.dot_dimension_numbers<[2], [2], [1], [1], [0, 0, 0, 1, 1, 1], [0], [0]>} : vector<16x8x128xf32>, vector<16x16x128xf32>, vector<16x8x16xf32> -> vector<16x8x16xf32>
    %238 = vector.broadcast %236 : vector<16x1x16xf32> to vector<16x8x16xf32>
    %239 = arith.addf %237, %238 : vector<16x8x16xf32>
    %c2_105 = arith.constant 2 : index
    %c0_106 = arith.constant 0 : index
    %c0_107 = arith.constant 0 : index
    %c0_108 = arith.constant 0 : index
    %240 = vector.load %arg17[%c2_105, %c0_106, %c0_107, %c0_108] : memref<3x8x16x128xf32, #tpu.memory_space<vmem>>, vector<1x8x16x128xf32>
    %241 = vector.shape_cast %240 : vector<1x8x16x128xf32> to vector<8x16x128xf32>
    %242 = vector.shape_cast %241 : vector<8x16x128xf32> to vector<1x8x16x128xf32>
    %243 = vector.shape_cast %242 : vector<1x8x16x128xf32> to vector<1x8x16x128xf32>
    %244 = vector.broadcast %243 : vector<1x8x16x128xf32> to vector<2x8x16x128xf32>
    %245 = vector.shape_cast %244 : vector<2x8x16x128xf32> to vector<16x16x128xf32>
    %c2_109 = arith.constant 2 : index
    %c0_110 = arith.constant 0 : index
    %c0_111 = arith.constant 0 : index
    %c0_112 = arith.constant 0 : index
    %246 = vector.load %arg18[%c2_109, %c0_110, %c0_111, %c0_112] : memref<3x8x1x16xf32, #tpu.memory_space<vmem>>, vector<1x8x1x16xf32>
    %247 = vector.shape_cast %246 : vector<1x8x1x16xf32> to vector<8x1x16xf32>
    %248 = vector.shape_cast %247 : vector<8x1x16xf32> to vector<1x8x1x16xf32>
    %249 = vector.shape_cast %248 : vector<1x8x1x16xf32> to vector<1x8x1x16xf32>
    %250 = vector.broadcast %249 : vector<1x8x1x16xf32> to vector<2x8x1x16xf32>
    %251 = vector.shape_cast %250 : vector<2x8x1x16xf32> to vector<16x1x16xf32>
    %cst_113 = arith.constant dense<0.000000e+00> : vector<16x8x16xf32>
    %252 = tpu.matmul %209, %245, %cst_113 {dimension_numbers = #tpu.dot_dimension_numbers<[2], [2], [1], [1], [0, 0, 0, 1, 1, 1], [0], [0]>} : vector<16x8x128xf32>, vector<16x16x128xf32>, vector<16x8x16xf32> -> vector<16x8x16xf32>
    %253 = vector.broadcast %251 : vector<16x1x16xf32> to vector<16x8x16xf32>
    %254 = arith.addf %252, %253 : vector<16x8x16xf32>
    %cst_114 = arith.constant dense<0.000000e+00> : vector<16x8x8xf32>
    %255 = tpu.matmul %224, %239, %cst_114 {dimension_numbers = #tpu.dot_dimension_numbers<[2], [2], [1], [1], [0, 0, 0, 1, 1, 1], [0], [0]>} : vector<16x8x16xf32>, vector<16x8x16xf32>, vector<16x8x8xf32> -> vector<16x8x8xf32>
    %cst_115 = arith.constant 2.500000e-01 : f32
    %256 = vector.broadcast %cst_115 : f32 to vector<16x8x8xf32>
    %257 = arith.mulf %255, %256 : vector<16x8x8xf32>
    %cst_116 = arith.constant dense<0xFF800000> : vector<16x8xf32>
    %258 = vector.multi_reduction <maximumf>, %257, %cst_116 [2] : vector<16x8x8xf32> to vector<16x8xf32>
    %259 = vector.shape_cast %258 : vector<16x8xf32> to vector<16x8x1xf32>
    %260 = vector.broadcast %259 : vector<16x8x1xf32> to vector<16x8x8xf32>
    %261 = arith.subf %257, %260 : vector<16x8x8xf32>
    %262 = math.exp %261 : vector<16x8x8xf32>
    %cst_117 = arith.constant dense<0.000000e+00> : vector<16x8xf32>
    %263 = vector.multi_reduction <add>, %262, %cst_117 [2] : vector<16x8x8xf32> to vector<16x8xf32>
    %264 = vector.shape_cast %263 : vector<16x8xf32> to vector<16x8x1xf32>
    %265 = vector.broadcast %264 : vector<16x8x1xf32> to vector<16x8x8xf32>
    %266 = arith.divf %262, %265 : vector<16x8x8xf32>
    %cst_118 = arith.constant dense<0.000000e+00> : vector<16x8x16xf32>
    %267 = tpu.matmul %266, %254, %cst_118 {dimension_numbers = #tpu.dot_dimension_numbers<[2], [1], [1], [2], [0, 0, 0, 1, 1, 2], [0], [0]>} : vector<16x8x8xf32>, vector<16x8x16xf32>, vector<16x8x16xf32> -> vector<16x8x16xf32>
    %c0_119 = arith.constant 0 : index
    %c0_120 = arith.constant 0 : index
    %c0_121 = arith.constant 0 : index
    %268 = vector.load %arg19[%c0_119, %c0_120, %c0_121] : memref<8x16x128xf32, #tpu.memory_space<vmem>>, vector<8x16x128xf32>
    %269 = vector.shape_cast %268 : vector<8x16x128xf32> to vector<1x8x16x128xf32>
    %270 = vector.shape_cast %269 : vector<1x8x16x128xf32> to vector<1x8x16x128xf32>
    %271 = vector.broadcast %270 : vector<1x8x16x128xf32> to vector<2x8x16x128xf32>
    %272 = vector.shape_cast %271 : vector<2x8x16x128xf32> to vector<16x16x128xf32>
    %cst_122 = arith.constant dense<0.000000e+00> : vector<16x8x128xf32>
    %273 = tpu.matmul %267, %272, %cst_122 {dimension_numbers = #tpu.dot_dimension_numbers<[2], [1], [1], [2], [0, 0, 0, 1, 1, 2], [0], [0]>} : vector<16x8x16xf32>, vector<16x16x128xf32>, vector<16x8x128xf32> -> vector<16x8x128xf32>
    %274 = vector.shape_cast %273 : vector<16x8x128xf32> to vector<2x8x8x128xf32>
    %275 = vector.extract_strided_slice %274 {offsets = [0, 0, 0, 0], sizes = [2, 1, 8, 128], strides = [1, 1, 1, 1]} : vector<2x8x8x128xf32> to vector<2x1x8x128xf32>
    %276 = vector.shape_cast %275 : vector<2x1x8x128xf32> to vector<2x8x128xf32>
    %277 = vector.extract_strided_slice %274 {offsets = [0, 1, 0, 0], sizes = [2, 1, 8, 128], strides = [1, 1, 1, 1]} : vector<2x8x8x128xf32> to vector<2x1x8x128xf32>
    %278 = vector.shape_cast %277 : vector<2x1x8x128xf32> to vector<2x8x128xf32>
    %279 = arith.addf %276, %278 : vector<2x8x128xf32>
    %280 = vector.extract_strided_slice %274 {offsets = [0, 2, 0, 0], sizes = [2, 1, 8, 128], strides = [1, 1, 1, 1]} : vector<2x8x8x128xf32> to vector<2x1x8x128xf32>
    %281 = vector.shape_cast %280 : vector<2x1x8x128xf32> to vector<2x8x128xf32>
    %282 = arith.addf %279, %281 : vector<2x8x128xf32>
    %283 = vector.extract_strided_slice %274 {offsets = [0, 3, 0, 0], sizes = [2, 1, 8, 128], strides = [1, 1, 1, 1]} : vector<2x8x8x128xf32> to vector<2x1x8x128xf32>
    %284 = vector.shape_cast %283 : vector<2x1x8x128xf32> to vector<2x8x128xf32>
    %285 = arith.addf %282, %284 : vector<2x8x128xf32>
    %286 = vector.extract_strided_slice %274 {offsets = [0, 4, 0, 0], sizes = [2, 1, 8, 128], strides = [1, 1, 1, 1]} : vector<2x8x8x128xf32> to vector<2x1x8x128xf32>
    %287 = vector.shape_cast %286 : vector<2x1x8x128xf32> to vector<2x8x128xf32>
    %288 = arith.addf %285, %287 : vector<2x8x128xf32>
    %289 = vector.extract_strided_slice %274 {offsets = [0, 5, 0, 0], sizes = [2, 1, 8, 128], strides = [1, 1, 1, 1]} : vector<2x8x8x128xf32> to vector<2x1x8x128xf32>
    %290 = vector.shape_cast %289 : vector<2x1x8x128xf32> to vector<2x8x128xf32>
    %291 = arith.addf %288, %290 : vector<2x8x128xf32>
    %292 = vector.extract_strided_slice %274 {offsets = [0, 6, 0, 0], sizes = [2, 1, 8, 128], strides = [1, 1, 1, 1]} : vector<2x8x8x128xf32> to vector<2x1x8x128xf32>
    %293 = vector.shape_cast %292 : vector<2x1x8x128xf32> to vector<2x8x128xf32>
    %294 = arith.addf %291, %293 : vector<2x8x128xf32>
    %295 = vector.extract_strided_slice %274 {offsets = [0, 7, 0, 0], sizes = [2, 1, 8, 128], strides = [1, 1, 1, 1]} : vector<2x8x8x128xf32> to vector<2x1x8x128xf32>
    %296 = vector.shape_cast %295 : vector<2x1x8x128xf32> to vector<2x8x128xf32>
    %297 = arith.addf %294, %296 : vector<2x8x128xf32>
    %c0_123 = arith.constant 0 : index
    %c0_124 = arith.constant 0 : index
    %298 = vector.load %arg20[%c0_123, %c0_124] : memref<1x128xf32, #tpu.memory_space<vmem>>, vector<1x128xf32>
    %299 = vector.shape_cast %298 : vector<1x128xf32> to vector<1x1x128xf32>
    %300 = vector.broadcast %299 : vector<1x1x128xf32> to vector<2x8x128xf32>
    %301 = arith.addf %297, %300 : vector<2x8x128xf32>
    %302 = vector.shape_cast %301 : vector<2x8x128xf32> to vector<16x128xf32>
    %303 = arith.addf %205, %302 : vector<16x128xf32>
    %c0_125 = arith.constant 0 : index
    %c0_126 = arith.constant 0 : index
    %304 = vector.load %arg21[%c0_125, %c0_126] : memref<1x128xf32, #tpu.memory_space<vmem>>, vector<1x128xf32>
    %c0_127 = arith.constant 0 : index
    %c0_128 = arith.constant 0 : index
    %305 = vector.load %arg22[%c0_127, %c0_128] : memref<1x128xf32, #tpu.memory_space<vmem>>, vector<1x128xf32>
    %cst_129 = arith.constant dense<0.000000e+00> : vector<16xf32>
    %306 = vector.multi_reduction <add>, %303, %cst_129 [1] : vector<16x128xf32> to vector<16xf32>
    %307 = vector.shape_cast %306 : vector<16xf32> to vector<16x1xf32>
    %cst_130 = arith.constant 1.280000e+02 : f32
    %308 = vector.broadcast %cst_130 : f32 to vector<16x1xf32>
    %309 = arith.divf %307, %308 : vector<16x1xf32>
    %310 = vector.broadcast %309 : vector<16x1xf32> to vector<16x128xf32>
    %311 = arith.subf %303, %310 : vector<16x128xf32>
    %312 = arith.mulf %311, %311 : vector<16x128xf32>
    %cst_131 = arith.constant dense<0.000000e+00> : vector<16xf32>
    %313 = vector.multi_reduction <add>, %312, %cst_131 [1] : vector<16x128xf32> to vector<16xf32>
    %314 = vector.shape_cast %313 : vector<16xf32> to vector<16x1xf32>
    %cst_132 = arith.constant 1.280000e+02 : f32
    %315 = vector.broadcast %cst_132 : f32 to vector<16x1xf32>
    %316 = arith.divf %314, %315 : vector<16x1xf32>
    %cst_133 = arith.constant 9.99999974E-6 : f32
    %317 = vector.broadcast %cst_133 : f32 to vector<16x1xf32>
    %318 = arith.addf %316, %317 : vector<16x1xf32>
    %319 = math.rsqrt %318 : vector<16x1xf32>
    %320 = vector.broadcast %319 : vector<16x1xf32> to vector<16x128xf32>
    %321 = arith.mulf %311, %320 : vector<16x128xf32>
    %322 = vector.broadcast %304 : vector<1x128xf32> to vector<16x128xf32>
    %323 = arith.mulf %321, %322 : vector<16x128xf32>
    %324 = vector.broadcast %305 : vector<1x128xf32> to vector<16x128xf32>
    %325 = arith.addf %323, %324 : vector<16x128xf32>
    %c0_134 = arith.constant 0 : index
    %c0_135 = arith.constant 0 : index
    %326 = vector.load %arg23[%c0_134, %c0_135] : memref<128x512xf32, #tpu.memory_space<vmem>>, vector<128x512xf32>
    %cst_136 = arith.constant dense<0.000000e+00> : vector<16x512xf32>
    %327 = tpu.matmul %325, %326, %cst_136 {dimension_numbers = #tpu.dot_dimension_numbers<[1], [0], [0], [1], [0, 0, 1, 1], [], []>} : vector<16x128xf32>, vector<128x512xf32>, vector<16x512xf32> -> vector<16x512xf32>
    %c0_137 = arith.constant 0 : index
    %c0_138 = arith.constant 0 : index
    %328 = vector.load %arg24[%c0_137, %c0_138] : memref<1x512xf32, #tpu.memory_space<vmem>>, vector<1x512xf32>
    %329 = vector.broadcast %328 : vector<1x512xf32> to vector<16x512xf32>
    %330 = arith.addf %327, %329 : vector<16x512xf32>
    %cst_139 = arith.constant 5.000000e-01 : f32
    %331 = vector.broadcast %cst_139 : f32 to vector<16x512xf32>
    %332 = arith.mulf %331, %330 : vector<16x512xf32>
    %cst_140 = arith.constant 0.707106769 : f32
    %333 = vector.broadcast %cst_140 : f32 to vector<16x512xf32>
    %334 = arith.mulf %330, %333 : vector<16x512xf32>
    %cst_141 = arith.constant 0.000000e+00 : f32
    %335 = vector.broadcast %cst_141 : f32 to vector<16x512xf32>
    %336 = arith.cmpf oge, %334, %335 : vector<16x512xf32>
    %cst_142 = arith.constant 1.000000e+00 : f32
    %cst_143 = arith.constant -1.000000e+00 : f32
    %337 = vector.broadcast %cst_142 : f32 to vector<16x512xf32>
    %338 = vector.broadcast %cst_143 : f32 to vector<16x512xf32>
    %339 = arith.select %336, %337, %338 : vector<16x512xi1>, vector<16x512xf32>
    %340 = math.absf %334 : vector<16x512xf32>
    %cst_144 = arith.constant 0.327591091 : f32
    %341 = vector.broadcast %cst_144 : f32 to vector<16x512xf32>
    %342 = arith.mulf %341, %340 : vector<16x512xf32>
    %cst_145 = arith.constant 1.000000e+00 : f32
    %343 = vector.broadcast %cst_145 : f32 to vector<16x512xf32>
    %344 = arith.addf %343, %342 : vector<16x512xf32>
    %cst_146 = arith.constant 1.000000e+00 : f32
    %345 = vector.broadcast %cst_146 : f32 to vector<16x512xf32>
    %346 = arith.divf %345, %344 : vector<16x512xf32>
    %cst_147 = arith.constant 1.06140542 : f32
    %347 = vector.broadcast %cst_147 : f32 to vector<16x512xf32>
    %348 = arith.mulf %347, %346 : vector<16x512xf32>
    %cst_148 = arith.constant -1.45315206 : f32
    %349 = vector.broadcast %cst_148 : f32 to vector<16x512xf32>
    %350 = arith.addf %348, %349 : vector<16x512xf32>
    %351 = arith.mulf %350, %346 : vector<16x512xf32>
    %cst_149 = arith.constant 1.42141378 : f32
    %352 = vector.broadcast %cst_149 : f32 to vector<16x512xf32>
    %353 = arith.addf %351, %352 : vector<16x512xf32>
    %354 = arith.mulf %353, %346 : vector<16x512xf32>
    %cst_150 = arith.constant -0.284496725 : f32
    %355 = vector.broadcast %cst_150 : f32 to vector<16x512xf32>
    %356 = arith.addf %354, %355 : vector<16x512xf32>
    %357 = arith.mulf %356, %346 : vector<16x512xf32>
    %cst_151 = arith.constant 0.254829586 : f32
    %358 = vector.broadcast %cst_151 : f32 to vector<16x512xf32>
    %359 = arith.addf %357, %358 : vector<16x512xf32>
    %360 = arith.mulf %359, %346 : vector<16x512xf32>
    %cst_152 = arith.constant 0.000000e+00 : f32
    %361 = vector.broadcast %cst_152 : f32 to vector<16x512xf32>
    %362 = arith.subf %361, %340 : vector<16x512xf32>
    %363 = arith.mulf %362, %340 : vector<16x512xf32>
    %364 = math.exp %363 : vector<16x512xf32>
    %365 = arith.mulf %360, %364 : vector<16x512xf32>
    %cst_153 = arith.constant 1.000000e+00 : f32
    %366 = vector.broadcast %cst_153 : f32 to vector<16x512xf32>
    %367 = arith.subf %366, %365 : vector<16x512xf32>
    %368 = arith.mulf %339, %367 : vector<16x512xf32>
    %cst_154 = arith.constant 1.000000e+00 : f32
    %369 = vector.broadcast %cst_154 : f32 to vector<16x512xf32>
    %370 = arith.addf %369, %368 : vector<16x512xf32>
    %371 = arith.mulf %332, %370 : vector<16x512xf32>
    %c0_155 = arith.constant 0 : index
    %c0_156 = arith.constant 0 : index
    %372 = vector.load %arg25[%c0_155, %c0_156] : memref<512x128xf32, #tpu.memory_space<vmem>>, vector<512x128xf32>
    %cst_157 = arith.constant dense<0.000000e+00> : vector<16x128xf32>
    %373 = tpu.matmul %371, %372, %cst_157 {dimension_numbers = #tpu.dot_dimension_numbers<[1], [0], [0], [1], [0, 0, 1, 1], [], []>} : vector<16x512xf32>, vector<512x128xf32>, vector<16x128xf32> -> vector<16x128xf32>
    %c0_158 = arith.constant 0 : index
    %c0_159 = arith.constant 0 : index
    %374 = vector.load %arg26[%c0_158, %c0_159] : memref<1x128xf32, #tpu.memory_space<vmem>>, vector<1x128xf32>
    %375 = vector.broadcast %374 : vector<1x128xf32> to vector<16x128xf32>
    %376 = arith.addf %373, %375 : vector<16x128xf32>
    %377 = arith.addf %325, %376 : vector<16x128xf32>
    %c0_160 = arith.constant 0 : index
    %c0_161 = arith.constant 0 : index
    %378 = vector.load %arg27[%c0_160, %c0_161] : memref<1x128xf32, #tpu.memory_space<vmem>>, vector<1x128xf32>
    %c0_162 = arith.constant 0 : index
    %c0_163 = arith.constant 0 : index
    %379 = vector.load %arg28[%c0_162, %c0_163] : memref<1x128xf32, #tpu.memory_space<vmem>>, vector<1x128xf32>
    %cst_164 = arith.constant dense<0.000000e+00> : vector<16xf32>
    %380 = vector.multi_reduction <add>, %377, %cst_164 [1] : vector<16x128xf32> to vector<16xf32>
    %381 = vector.shape_cast %380 : vector<16xf32> to vector<16x1xf32>
    %cst_165 = arith.constant 1.280000e+02 : f32
    %382 = vector.broadcast %cst_165 : f32 to vector<16x1xf32>
    %383 = arith.divf %381, %382 : vector<16x1xf32>
    %384 = vector.broadcast %383 : vector<16x1xf32> to vector<16x128xf32>
    %385 = arith.subf %377, %384 : vector<16x128xf32>
    %386 = arith.mulf %385, %385 : vector<16x128xf32>
    %cst_166 = arith.constant dense<0.000000e+00> : vector<16xf32>
    %387 = vector.multi_reduction <add>, %386, %cst_166 [1] : vector<16x128xf32> to vector<16xf32>
    %388 = vector.shape_cast %387 : vector<16xf32> to vector<16x1xf32>
    %cst_167 = arith.constant 1.280000e+02 : f32
    %389 = vector.broadcast %cst_167 : f32 to vector<16x1xf32>
    %390 = arith.divf %388, %389 : vector<16x1xf32>
    %cst_168 = arith.constant 9.99999974E-6 : f32
    %391 = vector.broadcast %cst_168 : f32 to vector<16x1xf32>
    %392 = arith.addf %390, %391 : vector<16x1xf32>
    %393 = math.rsqrt %392 : vector<16x1xf32>
    %394 = vector.broadcast %393 : vector<16x1xf32> to vector<16x128xf32>
    %395 = arith.mulf %385, %394 : vector<16x128xf32>
    %396 = vector.broadcast %378 : vector<1x128xf32> to vector<16x128xf32>
    %397 = arith.mulf %395, %396 : vector<16x128xf32>
    %398 = vector.broadcast %379 : vector<1x128xf32> to vector<16x128xf32>
    %399 = arith.addf %397, %398 : vector<16x128xf32>
    %c0_169 = arith.constant 0 : index
    %c0_170 = arith.constant 0 : index
    %400 = vector.load %arg4[%c0_169, %c0_170] : memref<2x16xf32, #tpu.memory_space<vmem>>, vector<2x16xf32>
    %cst_171 = arith.constant dense<0.000000e+00> : vector<2x128xf32>
    %401 = tpu.matmul %400, %399, %cst_171 {dimension_numbers = #tpu.dot_dimension_numbers<[1], [0], [0], [1], [0, 0, 1, 1], [], []>} : vector<2x16xf32>, vector<16x128xf32>, vector<2x128xf32> -> vector<2x128xf32>
    %c0_172 = arith.constant 0 : index
    %c0_173 = arith.constant 0 : index
    %402 = vector.load %arg29[%c0_172, %c0_173] : memref<128x192xf32, #tpu.memory_space<vmem>>, vector<128x192xf32>
    %cst_174 = arith.constant dense<0.000000e+00> : vector<2x192xf32>
    %403 = tpu.matmul %401, %402, %cst_174 {dimension_numbers = #tpu.dot_dimension_numbers<[1], [0], [0], [1], [0, 0, 1, 1], [], []>} : vector<2x128xf32>, vector<128x192xf32>, vector<2x192xf32> -> vector<2x192xf32>
    %c0_175 = arith.constant 0 : index
    %c0_176 = arith.constant 0 : index
    %404 = vector.load %arg30[%c0_175, %c0_176] : memref<1x192xf32, #tpu.memory_space<vmem>>, vector<1x192xf32>
    %405 = vector.broadcast %404 : vector<1x192xf32> to vector<2x192xf32>
    %406 = arith.addf %403, %405 : vector<2x192xf32>
    %cst_177 = arith.constant 0.000000e+00 : f32
    %407 = vector.broadcast %cst_177 : f32 to vector<2x192xf32>
    %408 = arith.maximumf %406, %407 : vector<2x192xf32>
    %c0_178 = arith.constant 0 : index
    %c0_179 = arith.constant 0 : index
    %409 = vector.load %arg31[%c0_178, %c0_179] : memref<192x128xf32, #tpu.memory_space<vmem>>, vector<192x128xf32>
    %cst_180 = arith.constant dense<0.000000e+00> : vector<2x128xf32>
    %410 = tpu.matmul %408, %409, %cst_180 {dimension_numbers = #tpu.dot_dimension_numbers<[1], [0], [0], [1], [0, 0, 1, 1], [], []>} : vector<2x192xf32>, vector<192x128xf32>, vector<2x128xf32> -> vector<2x128xf32>
    %c0_181 = arith.constant 0 : index
    %c0_182 = arith.constant 0 : index
    %411 = vector.load %arg32[%c0_181, %c0_182] : memref<1x128xf32, #tpu.memory_space<vmem>>, vector<1x128xf32>
    %412 = vector.broadcast %411 : vector<1x128xf32> to vector<2x128xf32>
    %413 = arith.addf %410, %412 : vector<2x128xf32>
    %c0_183 = arith.constant 0 : index
    %c0_184 = arith.constant 0 : index
    %414 = vector.load %arg33[%c0_183, %c0_184] : memref<2x128xf32, #tpu.memory_space<vmem>>, vector<2x128xf32>
    tpu.vector_store %arg33[%c0_183, %c0_184], %413 {strides = array<i32>} : memref<2x128xf32, #tpu.memory_space<vmem>>, vector<2x128xf32>,
    return
  }
}

</mosaic_0001>

<bundles_post_ra>
// kernel: forward.1
= control target key start
LH: loop header
LB: loop body
LE: loop exit
PB: predicated region body
PF: predicated region fallthrough
CT: control target
= control target key end

     0   :  { %s19925_s6 = smov 1   ;;  %s19926_s10 = smov 2   ;;  %s22552_s0 = inlined_call_operand.smem [shape: u32[34], index: -1, kind: input, shape index: {}] }
   0x1   :  { %s19994_s5 = sld [smem:[%s22552_s0]]   ;;  %s19927_s14 = smov 3  }
   0x2   :  { %s19999_s9 = sld [smem:[%s22552_s0 + %s19925_s6]]   ;;  %s19928_s18 = smov 4  }
   0x3   :  { %s20004_s13 = sld [smem:[%s22552_s0 + %s19926_s10]]   ;;  %s19929_s22 = smov 5  }
   0x4   :  { %s20009_s17 = sld [smem:[%s22552_s0 + %s19927_s14]]   ;;  %s19930_s26 = smov 6  }
   0x5   :  { %s20014_s21 = sld [smem:[%s22552_s0 + %s19928_s18]]   ;;  %s19931_s30 = smov 7  }
   0x6   :  { %s20019_s25 = sld [smem:[%s22552_s0 + %s19929_s22]]   ;;  %s19932_s4 = smov 8  }
   0x7   :  { %22559 = sst [smem:[#allocation45_spill]] %s19994_s5  ;;  %s19933_s10 = smov 9  }
   0x8   :  { %22560 = sst [smem:[#allocation46_spill]] %s19999_s9  ;;  %s19934_s15 = smov 10  }
   0x9   :  { %22561 = sst [smem:[#allocation47_spill]] %s20004_s13  ;;  %s19935_s20 = smov 11  }
   0xa   :  { %22562 = sst [smem:[#allocation48_spill]] %s20009_s17  ;;  %s19937_s1 = smov 13  }
   0xb   :  { %22563 = sst [smem:[#allocation49_spill]] %s20014_s21  ;;  %s19938_s7 = smov 14  }
   0xc   :  { %s20024_s29 = sld [smem:[%s22552_s0 + %s19930_s26]]   ;;  %s19936_s26 = smov 12  }
   0xd   :  { %s20029_s3 = sld [smem:[%s22552_s0 + %s19931_s30]]   ;;  %s19940_s22 = smov 16  }
   0xe   :  { %s20034_s8 = sld [smem:[%s22552_s0 + %s19932_s4]]   ;;  %s19941_s28 = smov 17  }
   0xf   :  { %s20039_s14 = sld [smem:[%s22552_s0 + %s19933_s10]]  }
  0x10   :  { %s20044_s19 = sld [smem:[%s22552_s0 + %s19934_s15]]   ;;  %s19939_s15 = smov 15  }
  0x11   :  { %s20049_s24 = sld [smem:[%s22552_s0 + %s19935_s20]]  }
  0x12   :  { %22564 = sst [smem:[#allocation50_spill]] %s20024_s29 }
  0x13   :  { %s20054_s30 = sld [smem:[%s22552_s0 + %s19936_s26]]  }
  0x14   :  { %s20059_s6 = sld [smem:[%s22552_s0 + %s19937_s1]]  }
  0x15   :  { %s20064_s12 = sld [smem:[%s22552_s0 + %s19938_s7]]   ;;  %s19942_s7 = smov 18  }
  0x16   :  { %s20069_s20 = sld [smem:[%s22552_s0 + %s19939_s15]]   ;;  %s19943_s15 = smov 19  }
  0x17   :  { %22565 = sst [smem:[#allocation51_spill]] %s20049_s24 }
  0x18   :  { %s20074_s27 = sld [smem:[%s22552_s0 + %s19940_s22]]   ;;  %s19944_s22 = smov 20  }
  0x19   :  { %s20079_s4 = sld [smem:[%s22552_s0 + %s19941_s28]]   ;;  %s19945_s28 = smov 21  }
  0x1a   :  { %s20084_s21 = sld [smem:[%s22552_s0 + %s19942_s7]]   ;;  %s19946_s7 = smov 22  }
  0x1b   :  { %s20089_s24 = sld [smem:[%s22552_s0 + %s19943_s15]]   ;;  %s19947_s15 = smov 23  }
  0x1c   :  { %s20094_s29 = sld [smem:[%s22552_s0 + %s19944_s22]]   ;;  %s19948_s22 = smov 24  }
  0x1d   :  { %s20099_s17 = sld [smem:[%s22552_s0 + %s19945_s28]]   ;;  %s19949_s28 = smov 25  }
  0x1e   :  { %s20109_s13 = sld [smem:[%s22552_s0 + %s19947_s15]]   ;;  %s19951_s15 = smov 27  }
  0x1f   :  { %22566 = sst [smem:[#allocation52_spill]] %s20079_s4 }
  0x20   :  { %22567 = sst [smem:[#allocation53_spill]] %s20084_s21 }
  0x21   :  { %s20104_s21 = sld [smem:[%s22552_s0 + %s19946_s7]]   ;;  %s19950_s7 = smov 26  }
  0x22   :  { %22568 = sst [smem:[#allocation54_spill]] %s20094_s29 }
  0x23   :  { %22569 = sst [smem:[#allocation55_spill]] %s20099_s17 }
  0x24   :  { %22570 = sst [smem:[#allocation56_spill]] %s20109_s13 }
  0x25   :  { %s20114_s29 = sld [smem:[%s22552_s0 + %s19948_s22]]   ;;  %s19952_s22 = smov 28  }
  0x26   :  { %s20119_s5 = sld [smem:[%s22552_s0 + %s19949_s28]]   ;;  %s19953_s28 = smov 29  }
  0x27   :  { %s20124_s9 = sld [smem:[%s22552_s0 + %s19950_s7]]   ;;  %s19954_s7 = smov 30  }
  0x28   :  { %s20129_s13 = sld [smem:[%s22552_s0 + %s19951_s15]]   ;;  %s19955_s15 = smov 31  }
  0x29   :  { %s20134_s17 = sld [smem:[%s22552_s0 + %s19952_s22]]   ;;  %s19956_s22 = smov 32  }
  0x2a   :  { %s20144_s4 = sld [smem:[%s22552_s0 + %s19954_s7]]  }
  0x2c   :  { %22571 = sst [smem:[#allocation57_spill]] %s20119_s5 }
  0x2d   :  { %s20139_s5 = sld [smem:[%s22552_s0 + %s19953_s28]]   ;;  %s19957_s28 = smov 33  }
  0x2e   :  { %22572 = sst [smem:[#allocation58_spill]] %s20129_s13 }
  0x2f   :  { %22573 = sst [smem:[#allocation59_spill]] %s20134_s17 }
  0x30   :  { %s20149_s13 = sld [smem:[%s22552_s0 + %s19955_s15]]  }
  0x31   :  { %s20154_s17 = sld [smem:[%s22552_s0 + %s19956_s22]]  }
  0x33   :  { %22574 = sst [smem:[#allocation60_spill]] %s20139_s5 }
  0x34   :  { %s20159_s5 = sld [smem:[%s22552_s0 + %s19957_s28]]  }
  0x35   :  { %72 = vsyncpa [#allocation3], 0 }
  0x36   :  { %73 = vsyncpa [#allocation5], 0 }
  0x37   :  { %74 = vsyncpa [#allocation8], 0 }
  0x38   :  { %75 = vsyncpa [#allocation11], 0 }
  0x39   :  { %76 = vsyncpa [#allocation14], 0 }
  0x3a   :  { %77 = vsyncpa [#allocation17], 0 }
  0x3b   :  { %78 = vsyncpa [#allocation20], 0 }
  0x3c   :  { %79 = vsyncpa [#allocation23], 0 }
  0x3d   :  { %80 = vsyncpa [#allocation26], 0 }
  0x3e   :  { %81 = vsyncpa [#allocation29], 0 }
  0x3f   :  { %82 = vsyncpa [#allocation32], 0  ;;  %s19958_s7 = smov [#allocation4]   ;;  %s19959_s11 = smov [#allocation7]  }
  0x40   :  { %s112_s10 = sshll.u32 %s19958_s7, 4  ;;  %s135_s15 = sshll.u32 %s19959_s11, 4  ;;  %s113_s10 = int_to_ptr.vmem [resolvable:$true] %s112_s10  ;;  %s136_s15 = int_to_ptr.vmem [resolvable:$true] %s135_s15 }
  0x41   :  { %s19491_s16 = scalar_lea.vmem %s113_s10, 2048  ;;  %p19496_p1 = scmp.lt.s32.totalorder %s113_s10, %s113_s10 }
  0x42   :  { %p19492_p0 = scmp.ne.s32.totalorder %s113_s10, %s19491_s16  ;;  %p19497_p2 = scmp.lt.s32.totalorder %s19491_s16, %s19491_s16 }
  0x44   :  { %p19498_p3 = por %p19497_p2, %p19496_p1 }
  0x46   :  { %p19499_p4 = pnand %p19498_p3, %p19492_p0 }
  0x48   :  { %19502 = shalt.err (!%p19499_p4)
}
  0x49   :  { %s19960_s0 = smov 128   ;;  %s19961_s18 = smov 8  }
  0x4a   :  { %118 = dma.hbm_to_vmem [thread:$0]  %s20029_s3, 2048, %s113_s10, [#allocation5], %s19960_s0, %s19960_s0, %s19961_s18  }
  0x4b   :  { %s19511_s22 = scalar_lea.vmem %s136_s15, 16  ;;  %s19515_s23 = scalar_lea.vmem %s136_s15, 32 }
  0x4c   :  { %p19512_p5 = scmp.ne.s32.totalorder %s136_s15, %s19511_s22  ;;  %p19516_p6 = scmp.lt.s32.totalorder %s136_s15, %s136_s15 }
  0x4d   :  { %p19517_p7 = scmp.lt.s32.totalorder %s19515_s23, %s19511_s22 }
  0x4f   :  { %p19518_p8 = por %p19517_p7, %p19516_p6 }
  0x51   :  { %p19519_p9 = pnand %p19518_p8, %p19512_p5 }
  0x53   :  { %19522 = shalt.err (!%p19519_p9)
}
  0x54   :  { %138 = dma.hbm_to_vmem [thread:$0]  %s20039_s14, 16, %s136_s15, [#allocation8]  }
  0x55   :  { %s19962_s26 = smov [#allocation10]   ;;  %s19963_s1 = smov [#allocation13]  }
  0x56   :  { %s157_s28 = sshll.u32 %s19962_s26, 4  ;;  %s179_s2 = sshll.u32 %s19963_s1, 4  ;;  %s158_s28 = int_to_ptr.vmem [resolvable:$true] %s157_s28  ;;  %s180_s2 = int_to_ptr.vmem [resolvable:$true] %s179_s2 }
  0x57   :  { %s19531_s7 = scalar_lea.vmem %s158_s28, 64  ;;  %p19536_p11 = scmp.lt.s32.totalorder %s158_s28, %s158_s28 }
  0x58   :  { %p19532_p10 = scmp.ne.s32.totalorder %s158_s28, %s19531_s7  ;;  %p19537_p12 = scmp.lt.s32.totalorder %s19531_s7, %s19531_s7 }
  0x5a   :  { %p19538_p13 = por %p19537_p12, %p19536_p11 }
  0x5c   :  { %p19539_p0 = pnand %p19538_p13, %p19532_p10 }
  0x5e   :  { %19542 = shalt.err (!%p19539_p0)
}
  0x5f   :  { %160 = dma.hbm_to_vmem [thread:$0]  %s20054_s30, 64, %s158_s28, [#allocation11]  }
  0x60   :  { %s19551_s3 = scalar_lea.vmem %s180_s2, 16  ;;  %s19555_s10 = scalar_lea.vmem %s180_s2, 32 }
  0x61   :  { %p19552_p1 = scmp.ne.s32.totalorder %s180_s2, %s19551_s3  ;;  %p19556_p2 = scmp.lt.s32.totalorder %s180_s2, %s180_s2 }
  0x62   :  { %p19557_p3 = scmp.lt.s32.totalorder %s19555_s10, %s19551_s3 }
  0x64   :  { %p19558_p4 = por %p19557_p3, %p19556_p2 }
  0x66   :  { %p19559_p5 = pnand %p19558_p4, %p19552_p1 }
  0x68   :  { %19562 = shalt.err (!%p19559_p5)
}
  0x69   :  { %182 = dma.hbm_to_vmem [thread:$0]  %s20064_s12, 16, %s180_s2, [#allocation14]  }
  0x6a   :  { %s19964_s14 = smov [#allocation16]   ;;  %s19965_s15 = smov [#allocation19]  }
  0x6b   :  { %s199_s11 = sshll.u32 %s19964_s14, 4  ;;  %s222_s16 = sshll.u32 %s19965_s15, 4  ;;  %s200_s11 = int_to_ptr.vmem [resolvable:$true] %s199_s11  ;;  %s223_s16 = int_to_ptr.vmem [resolvable:$true] %s222_s16 }
  0x6c   :  { %s19571_s22 = scalar_lea.vmem %s200_s11, 16  ;;  %s19575_s23 = scalar_lea.vmem %s200_s11, 32 }
  0x6d   :  { %p19572_p6 = scmp.ne.s32.totalorder %s200_s11, %s19571_s22  ;;  %p19576_p7 = scmp.lt.s32.totalorder %s200_s11, %s200_s11 }
  0x6e   :  { %p19577_p8 = scmp.lt.s32.totalorder %s19575_s23, %s19571_s22 }
  0x70   :  { %p19578_p9 = por %p19577_p8, %p19576_p7 }
  0x72   :  { %p19579_p10 = pnand %p19578_p9, %p19572_p6 }
  0x74   :  { %19582 = shalt.err (!%p19579_p10)
}
  0x75   :  { %202 = dma.hbm_to_vmem [thread:$0]  %s20074_s27, 16, %s200_s11, [#allocation17]  }
  0x76   :  { %s19591_s30 = scalar_lea.vmem %s223_s16, 2048  ;;  %p19596_p12 = scmp.lt.s32.totalorder %s223_s16, %s223_s16 }
  0x77   :  { %p19592_p11 = scmp.ne.s32.totalorder %s223_s16, %s19591_s30  ;;  %p19597_p13 = scmp.lt.s32.totalorder %s19591_s30, %s19591_s30 }
  0x79   :  { %p19598_p0 = por %p19597_p13, %p19596_p12 }
  0x7b   :  { %p19599_p1 = pnand %p19598_p0, %p19592_p11 }
  0x7d   :  { %19602 = shalt.err (!%p19599_p1)
}
  0x7e   :  { %228 = dma.hbm_to_vmem [thread:$0]  %s20089_s24, 2048, %s223_s16, [#allocation20], %s19960_s0, %s19960_s0, %s19961_s18  }
  0x7f   :  { %s19966_s12 = smov [#allocation22]   ;;  %s19967_s28 = smov [#allocation25]  }
  0x80   :  { %s247_s26 = sshll.u32 %s19966_s12, 4  ;;  %s269_s1 = sshll.u32 %s19967_s28, 4  ;;  %s248_s26 = int_to_ptr.vmem [resolvable:$true] %s247_s26  ;;  %s270_s1 = int_to_ptr.vmem [resolvable:$true] %s269_s1 }
  0x81   :  { %s19611_s2 = scalar_lea.vmem %s248_s26, 16  ;;  %s19615_s27 = scalar_lea.vmem %s248_s26, 32 }
  0x82   :  { %p19612_p2 = scmp.ne.s32.totalorder %s248_s26, %s19611_s2  ;;  %p19616_p3 = scmp.lt.s32.totalorder %s248_s26, %s248_s26 }
  0x83   :  { %p19617_p4 = scmp.lt.s32.totalorder %s19615_s27, %s19611_s2 }
  0x85   :  { %p19618_p5 = por %p19617_p4, %p19616_p3 }
  0x87   :  { %p19619_p6 = pnand %p19618_p5, %p19612_p2 }
  0x89   :  { %19622 = shalt.err (!%p19619_p6)
}
  0x8a   :  { %250 = dma.hbm_to_vmem [thread:$0]  %s20104_s21, 16, %s248_s26, [#allocation23]  }
  0x8b   :  { %s19631_s7 = scalar_lea.vmem %s270_s1, 64  ;;  %p19636_p8 = scmp.lt.s32.totalorder %s270_s1, %s270_s1 }
  0x8c   :  { %p19632_p7 = scmp.ne.s32.totalorder %s270_s1, %s19631_s7  ;;  %p19637_p9 = scmp.lt.s32.totalorder %s19631_s7, %s19631_s7 }
  0x8e   :  { %p19638_p10 = por %p19637_p9, %p19636_p8 }
  0x90   :  { %p19639_p11 = pnand %p19638_p10, %p19632_p7 }
  0x92   :  { %19642 = shalt.err (!%p19639_p11)
}
  0x93   :  { %272 = dma.hbm_to_vmem [thread:$0]  %s20114_s29, 64, %s270_s1, [#allocation26]  }
  0x94   :  { %s19968_s24 = smov [#allocation28]   ;;  %s19969_s10 = smov [#allocation31]  }
  0x95   :  { %s291_s3 = sshll.u32 %s19968_s24, 4  ;;  %s316_s14 = sshll.u32 %s19969_s10, 4  ;;  %s292_s3 = int_to_ptr.vmem [resolvable:$true] %s291_s3  ;;  %s317_s14 = int_to_ptr.vmem [resolvable:$true] %s316_s14 }
  0x96   :  { %s19651_s11 = scalar_lea.vmem %s292_s3, 16  ;;  %s19655_s15 = scalar_lea.vmem %s292_s3, 32 }
  0x97   :  { %p19652_p12 = scmp.ne.s32.totalorder %s292_s3, %s19651_s11  ;;  %p19656_p13 = scmp.lt.s32.totalorder %s292_s3, %s292_s3 }
  0x98   :  { %p19657_p0 = scmp.lt.s32.totalorder %s19655_s15, %s19651_s11 }
  0x9a   :  { %p19658_p1 = por %p19657_p0, %p19656_p13 }
  0x9c   :  { %p19659_p2 = pnand %p19658_p1, %p19652_p12 }
  0x9e   :  { %19662 = shalt.err (!%p19659_p2)
}
  0x9f   :  { %294 = dma.hbm_to_vmem [thread:$0]  %s20124_s9, 16, %s292_s3, [#allocation29]  }
  0xa0   :  { %s19671_s21 = scalar_lea.vmem %s317_s14, 3072  ;;  %p19676_p4 = scmp.lt.s32.totalorder %s317_s14, %s317_s14 }
  0xa1   :  { %p19672_p3 = scmp.ne.s32.totalorder %s317_s14, %s19671_s21  ;;  %p19677_p5 = scmp.lt.s32.totalorder %s19671_s21, %s19671_s21 }
  0xa3   :  { %p19678_p6 = por %p19677_p5, %p19676_p4 }
  0xa5   :  { %p19679_p7 = pnand %p19678_p6, %p19672_p3 }
  0xa7   :  { %19682 = shalt.err (!%p19679_p7)
}
  0xa8   :  { %322 = dma.hbm_to_vmem [thread:$0]  %s20149_s13, 3072, %s317_s14, [#allocation32], %s19960_s0, %s19960_s0, %s19961_s18  }
  0xa9   :  { %s19970_s29 = smov [#allocation2]   ;;  %s19971_s22 = smov [#allocation6]  }
  0xaa   :  { %s98_s16 = sshll.u32 %s19970_s29, 4  ;;  %s125_s23 = sshll.u32 %s19971_s22, 4  ;;  %s99_s16 = int_to_ptr.vmem [resolvable:$true] %s98_s16  ;;  %s126_s23 = int_to_ptr.vmem [resolvable:$true] %s125_s23 }
  0xab   :  { %s19691_s30 = scalar_lea.vmem %s99_s16, 6144  ;;  %p19696_p9 = scmp.lt.s32.totalorder %s99_s16, %s99_s16 }
  0xac   :  { %p19692_p8 = scmp.ne.s32.totalorder %s99_s16, %s19691_s30  ;;  %p19697_p10 = scmp.lt.s32.totalorder %s19691_s30, %s19691_s30 }
  0xae   :  { %p19698_p11 = por %p19697_p10, %p19696_p9 }
  0xb0   :  { %p19699_p12 = pnand %p19698_p11, %p19692_p8 }
  0xb2   :  { %19702 = shalt.err (!%p19699_p12)
}
  0xb3   :  { %104 = dma.hbm_to_vmem [thread:$0]  %s20019_s25, 6144, %s99_s16, [#allocation3], %s19960_s0, %s19960_s0, %s19961_s18  }
  0xb4   :  { %s19711_s9 = scalar_lea.vmem %s126_s23, 16  ;;  %s19715_s13 = scalar_lea.vmem %s126_s23, 32 }
  0xb5   :  { %p19712_p13 = scmp.ne.s32.totalorder %s126_s23, %s19711_s9  ;;  %p19716_p0 = scmp.lt.s32.totalorder %s126_s23, %s126_s23 }
  0xb6   :  { %p19717_p1 = scmp.lt.s32.totalorder %s19715_s13, %s19711_s9 }
  0xb8   :  { %p19718_p2 = por %p19717_p1, %p19716_p0 }
  0xba   :  { %p19719_p3 = pnand %p19718_p2, %p19712_p13 }
  0xbc   :  { %19722 = shalt.err (!%p19719_p3)
}
  0xbd   :  { %128 = dma.hbm_to_vmem [thread:$0]  %s20034_s8, 16, %s126_s23, [#allocation5]  }
  0xbe   :  { %s19972_s12 = smov [#allocation9]   ;;  %s19973_s28 = smov [#allocation12]  }
  0xbf   :  { %s145_s26 = sshll.u32 %s19972_s12, 4  ;;  %s166_s1 = sshll.u32 %s19973_s28, 4  ;;  %s146_s26 = int_to_ptr.vmem [resolvable:$true] %s145_s26  ;;  %s167_s1 = int_to_ptr.vmem [resolvable:$true] %s166_s1 }
  0xc0   :  { %s19731_s2 = scalar_lea.vmem %s146_s26, 16  ;;  %s19735_s27 = scalar_lea.vmem %s146_s26, 32 }
  0xc1   :  { %p19732_p4 = scmp.ne.s32.totalorder %s146_s26, %s19731_s2  ;;  %p19736_p5 = scmp.lt.s32.totalorder %s146_s26, %s146_s26 }
  0xc2   :  { %p19737_p6 = scmp.lt.s32.totalorder %s19735_s27, %s19731_s2 }
  0xc4   :  { %p19738_p7 = por %p19737_p6, %p19736_p5 }
  0xc6   :  { %p19739_p8 = pnand %p19738_p7, %p19732_p4 }
  0xc8   :  { %19742 = shalt.err (!%p19739_p8)
}
  0xc9   :  { %148 = dma.hbm_to_vmem [thread:$0]  %s20044_s19, 16, %s146_s26, [#allocation8]  }
  0xca   :  { %s19751_s25 = scalar_lea.vmem %s167_s1, 8192  ;;  %p19756_p10 = scmp.lt.s32.totalorder %s167_s1, %s167_s1 }
  0xcb   :  { %p19752_p9 = scmp.ne.s32.totalorder %s167_s1, %s19751_s25  ;;  %p19757_p11 = scmp.lt.s32.totalorder %s19751_s25, %s19751_s25 }
  0xcd   :  { %p19758_p12 = por %p19757_p11, %p19756_p10 }
  0xcf   :  { %p19759_p13 = pnand %p19758_p12, %p19752_p9 }
  0xd1   :  { %19762 = shalt.err (!%p19759_p13)
}
  0xd2   :  { %172 = dma.hbm_to_vmem [thread:$0]  %s20059_s6, 8192, %s167_s1, [#allocation11], %s19960_s0, %s19960_s0, %s19961_s18  }
  0xd3   :  { %s19974_s8 = smov [#allocation15]   ;;  %s19975_s24 = smov [#allocation18]  }
  0xd4   :  { %s189_s7 = sshll.u32 %s19974_s8, 4  ;;  %s208_s3 = sshll.u32 %s19975_s24, 4  ;;  %s190_s7 = int_to_ptr.vmem [resolvable:$true] %s189_s7  ;;  %s209_s3 = int_to_ptr.vmem [resolvable:$true] %s208_s3 }
  0xd5   :  { %s19771_s10 = scalar_lea.vmem %s190_s7, 16  ;;  %s19775_s19 = scalar_lea.vmem %s190_s7, 32 }
  0xd6   :  { %p19772_p0 = scmp.ne.s32.totalorder %s190_s7, %s19771_s10  ;;  %p19776_p1 = scmp.lt.s32.totalorder %s190_s7, %s190_s7 }
  0xd7   :  { %p19777_p2 = scmp.lt.s32.totalorder %s19775_s19, %s19771_s10 }
  0xd9   :  { %p19778_p3 = por %p19777_p2, %p19776_p1 }
  0xdb   :  { %p19779_p4 = pnand %p19778_p3, %p19772_p0 }
  0xdd   :  { %19782 = shalt.err (!%p19779_p4)
}
  0xde   :  { %192 = dma.hbm_to_vmem [thread:$0]  %s20069_s20, 16, %s190_s7, [#allocation14]  }
  0xdf   :  { %s19791_s14 = scalar_lea.vmem %s209_s3, 6144  ;;  %p19796_p6 = scmp.lt.s32.totalorder %s209_s3, %s209_s3 }
  0xe0   :  { %p19792_p5 = scmp.ne.s32.totalorder %s209_s3, %s19791_s14  ;;  %p19797_p7 = scmp.lt.s32.totalorder %s19791_s14, %s19791_s14 }
  0xe2   :  { %p19798_p8 = por %p19797_p7, %p19796_p6 }
  0xe4   :  { %p19799_p9 = pnand %p19798_p8, %p19792_p5 }
  0xe6   :  { %19802 = shalt.err (!%p19799_p9)
}
  0xe7   :  { %s22575_s6 = sld [smem:[#allocation52_spill]]  ;;  %s19976_s11 = smov [#allocation21]  }
  0xe8   :  { %s237_s15 = sshll.u32 %s19976_s11, 4  ;;  %s19977_s21 = smov [#allocation24]   ;;  %s238_s15 = int_to_ptr.vmem [resolvable:$true] %s237_s15 }
  0xe9   :  { %s256_s29 = sshll.u32 %s19977_s21, 4  ;;  %s19811_s16 = scalar_lea.vmem %s238_s15, 16  ;;  %s257_s29 = int_to_ptr.vmem [resolvable:$true] %s256_s29 }
  0xea   :  { %p19812_p10 = scmp.ne.s32.totalorder %s238_s15, %s19811_s16  ;;  %s19815_s20 = scalar_lea.vmem %s238_s15, 32 }
  0xeb   :  { %p19816_p11 = scmp.lt.s32.totalorder %s238_s15, %s238_s15  ;;  %p19817_p12 = scmp.lt.s32.totalorder %s19815_s20, %s19811_s16 }
  0xed   :  { %214 = dma.hbm_to_vmem [thread:$0]  %s22575_s6, 6144, %s209_s3, [#allocation17], %s19960_s0, %s19960_s0, %s19961_s18  }
  0xee   :  { %p19818_p13 = por %p19817_p12, %p19816_p11 }
  0xf0   :  { %p19819_p0 = pnand %p19818_p13, %p19812_p10 }
  0xf2   :  { %19822 = shalt.err (!%p19819_p0)
}
  0xf3   :  { %s22576_s22 = sld [smem:[#allocation55_spill]]  ;;  %s19831_s23 = scalar_lea.vmem %s257_s29, 8192 }
  0xf4   :  { %p19832_p1 = scmp.ne.s32.totalorder %s257_s29, %s19831_s23  ;;  %p19836_p2 = scmp.lt.s32.totalorder %s257_s29, %s257_s29 }
  0xf5   :  { %p19837_p3 = scmp.lt.s32.totalorder %s19831_s23, %s19831_s23 }
  0xf7   :  { %p19838_p4 = por %p19837_p3, %p19836_p2 }
  0xf9   :  { %240 = dma.hbm_to_vmem [thread:$0]  %s22576_s22, 16, %s238_s15, [#allocation20]  }
  0xfa   :  { %p19839_p5 = pnand %p19838_p4, %p19832_p1 }
  0xfc   :  { %19842 = shalt.err (!%p19839_p5)
}
  0xfd   :  { %s19978_s30 = smov 512   ;;  %s22577_s9 = sld [smem:[#allocation56_spill]] }
  0xfe   :  { %s19979_s13 = smov 32   ;;  %s19980_s12 = smov [#allocation27]  }
  0xff   :  { %s278_s26 = sshll.u32 %s19980_s12, 4  ;;  %s19981_s28 = smov [#allocation30]   ;;  %s279_s26 = int_to_ptr.vmem [resolvable:$true] %s278_s26 }
 0x100   :  { %s307_s1 = sshll.u32 %s19981_s28, 4  ;;  %s19851_s2 = scalar_lea.vmem %s279_s26, 8192  ;;  %s308_s1 = int_to_ptr.vmem [resolvable:$true] %s307_s1 }
 0x101   :  { %p19852_p6 = scmp.ne.s32.totalorder %s279_s26, %s19851_s2  ;;  %p19856_p7 = scmp.lt.s32.totalorder %s279_s26, %s279_s26 }
 0x102   :  { %p19857_p8 = scmp.lt.s32.totalorder %s19851_s2, %s19851_s2 }
 0x103   :  { %262 = dma.hbm_to_vmem [thread:$0]  %s22577_s9, 8192, %s257_s29, [#allocation23], %s19978_s30, %s19978_s30, %s19979_s13  }
 0x104   :  { %p19858_p9 = por %p19857_p8, %p19856_p7 }
 0x106   :  { %p19859_p10 = pnand %p19858_p9, %p19852_p6 }
 0x108   :  { %19862 = shalt.err (!%p19859_p10)
}
 0x109   :  { %s22578_s27 = sld [smem:[#allocation57_spill]]  ;;  %s19871_s25 = scalar_lea.vmem %s308_s1, 32 }
 0x10a   :  { %p19872_p11 = scmp.ne.s32.totalorder %s308_s1, %s19871_s25  ;;  %p19876_p12 = scmp.lt.s32.totalorder %s308_s1, %s308_s1 }
 0x10b   :  { %p19877_p13 = scmp.lt.s32.totalorder %s19871_s25, %s19871_s25 }
 0x10d   :  { %p19878_p0 = por %p19877_p13, %p19876_p12 }
 0x10f   :  { %284 = dma.hbm_to_vmem [thread:$0]  %s22578_s27, 8192, %s279_s26, [#allocation26], %s19960_s0, %s19960_s0, %s19961_s18  }
 0x110   :  { %p19879_p1 = pnand %p19878_p0, %p19872_p11 }
 0x112   :  { %19882 = shalt.err (!%p19879_p1)
}
 0x113   :  { %310 = dma.hbm_to_vmem [thread:$0]  %s20144_s4, 32, %s308_s1, [#allocation29]  }
 0x114   :  { %s19982_s8 = smov [#allocation33]  }
 0x115   :  { %s329_s7 = sshll.u32 %s19982_s8, 4  ;;  %s330_s7 = int_to_ptr.vmem [resolvable:$true] %s329_s7 }
 0x116   :  { %s19891_s24 = scalar_lea.vmem %s330_s7, 16  ;;  %s19895_s3 = scalar_lea.vmem %s330_s7, 32 }
 0x117   :  { %p19892_p2 = scmp.ne.s32.totalorder %s330_s7, %s19891_s24  ;;  %p19896_p3 = scmp.lt.s32.totalorder %s330_s7, %s330_s7 }
 0x118   :  { %p19897_p4 = scmp.lt.s32.totalorder %s19895_s3, %s19891_s24 }
 0x11a   :  { %p19898_p5 = por %p19897_p4, %p19896_p3 }
 0x11c   :  { %p19899_p6 = pnand %p19898_p5, %p19892_p2 }
 0x11e   :  { %19902 = shalt.err (!%p19899_p6)
}
 0x11f   :  { %332 = dma.hbm_to_vmem [thread:$0]  %s20154_s17, 16, %s330_s7, [#allocation32]  }
 0x120   :  { %19903 = dma.done.wait [#allocation3], 6144  }
 0x121   :  { %19904 = vsyncadd [#allocation3], 4294961152 }
 0x122   :  { %19905 = dma.done.wait [#allocation5], 2064  }
 0x123   :  { %19906 = vsyncadd [#allocation5], 4294965232 }
 0x124   :  { %19907 = dma.done.wait [#allocation8], 32  }
 0x125   :  { %19908 = vsyncadd [#allocation8], 4294967264 }
 0x126   :  { %19909 = dma.done.wait [#allocation11], 8256  }
 0x127   :  { %19910 = vsyncadd [#allocation11], 4294959040 }
 0x128   :  { %19911 = dma.done.wait [#allocation14], 32  }
 0x129   :  { %19912 = vsyncadd [#allocation14], 4294967264 }
 0x12a   :  { %19913 = dma.done.wait [#allocation17], 6160  }
 0x12b   :  { %19914 = vsyncadd [#allocation17], 4294961136 }
 0x12c   :  { %19915 = dma.done.wait [#allocation20], 2064  }
 0x12d   :  { %19916 = vsyncadd [#allocation20], 4294965232 }
 0x12e   :  { %19917 = dma.done.wait [#allocation23], 8208  }
 0x12f   :  { %19918 = vsyncadd [#allocation23], 4294959088 }
 0x130   :  { %19919 = dma.done.wait [#allocation26], 8256  }
 0x131   :  { %19920 = vsyncadd [#allocation26], 4294959040 }
 0x132   :  { %19921 = dma.done.wait [#allocation29], 48  }
 0x133   :  { %19922 = vsyncadd [#allocation29], 4294967248 }
 0x134   :  { %19923 = dma.done.wait [#allocation32], 3088  }
 0x135   :  { %19924 = vsyncadd [#allocation32], 4294964208  ;;  %s22579_s17 = sld [smem:[#allocation46_spill]]  ;;  %v19983_v0 = vmov 0.0   ;;  %vm407_vm0 = vcmask 130048   ;;  %v20208_v4 = vld [vmem:[#allocation2 + $0x28] sm:$0xff] }
 0x136   :  { %s22580_s4 = sld [smem:[#allocation45_spill]]  ;;  %18005 = vmatprep.subr.mxu1 %v19983_v0  ;;  %v493_v6 = vld [vmem:[#allocation2 + $0x8] sm:$0xff]  ;;  %v492_v7 = vld [vmem:[#allocation2] sm:$0xff]  ;;  %vm19984_vm1 = vmmov 0   ;;  %v20229_v15 = vld [vmem:[#allocation2 + $0x18] sm:$0xff]  ;;  %vm5304_vm2 = vcmask 64512  }
 0x137   :  { %18006 = vmatpush3.xpose.msra.mxu1 %v20208_v4  ;;  %s22581_s0 = sld [smem:[#allocation47_spill]]  ;;  %v20216_v8 = vld [vmem:[#allocation2 + $0x20] sm:$0xff]  ;;  %18009 = vmatprep.mubr.msk.f32.mxu1 %vm19984_vm1, %v19983_v0  ;;  %v20231_v16 = vld [vmem:[#allocation2 + $0x48] sm:$0xff]  ;;  %v494_v17 = vld [vmem:[#allocation2 + $0x10] sm:$0xff] }
 0x138   :  { %18007 = vmatprep.subr.mxu1 %v19983_v0  ;;  %s22582_s18 = sld [smem:[#allocation48_spill]]  ;;  %v500_v18 = vld [vmem:[#allocation2 + $0x40] sm:$0xff]  ;;  %v499_v19 = vld [vmem:[#allocation2 + $0x38] sm:$0xff]  ;;  %v505_v20 = vld [vmem:[#allocation2 + $0x68] sm:$0xff] }
 0x139   :  { %v498_v21 = vld [vmem:[#allocation2 + $0x30] sm:$0xff]  ;;  %v504_v22 = vld [vmem:[#allocation2 + $0x60] sm:$0xff]  ;;  %v503_v23 = vld [vmem:[#allocation2 + $0x58] sm:$0xff]  ;;  %s22583_s10 = sld [smem:[#allocation50_spill]] }
 0x13a   :  { %v502_v25 = vld [vmem:[#allocation2 + $0x50] sm:$0xff]  ;;  %v507_v27 = vld [vmem:[#allocation2 + $0x78] sm:$0xff]  ;;  %v20301_v29 = vld [vmem:[#allocation2 + $0x88] sm:$0xff]  ;;  %s22584_s19 = sld [smem:[#allocation51_spill]] }
 0x13b   :  { %v399_v1 = vld [vmem:[%s22579_s17 + $0x8] sm:$0xff]  ;;  %v398_v2 = vld [vmem:[%s22579_s17] sm:$0xff]  ;;  %18008 = vmatpush3.xpose.msra.mxu1 %v20216_v8  ;;  %v506_v28 = vld [vmem:[#allocation2 + $0x70] sm:$0xff]  ;;  %s22585_s14 = sld [smem:[#allocation53_spill]] }
 0x13c   :  { %v396_v3 = vld [vmem:[%s22580_s4] sm:$0xff]  ;;  %17984 = vmatprep.subr.mxu0 %v399_v1  ;;  %v397_v5 = vld [vmem:[%s22580_s4 + $0x8] sm:$0xff]  ;;  %18019 = vmatprep.subr.mxu1 %v19983_v0  ;;  %v1688_v33 = vld [vmem:[#allocation2 + $0x98] sm:$0xff]  ;;  %s22586_s6 = sld [smem:[#allocation54_spill]] }
 0x13d   :  { %17988 = vmatprep.mubr.msk.f32.mxu0 %vm407_vm0, %v396_v3  ;;  %17985 = vmatpush3.msra.mxu0 %v399_v1  ;;  %v17087_v10 = vld [vmem:[%s22581_s0] ss:$0 sm:$0xff]  ;;  %v20317_v31 = vld [vmem:[#allocation2 + $0xa8] sm:$0xff]  ;;  %v1687_v35 = vld [vmem:[#allocation2 + $0x90] sm:$0xff]  ;;  %s22587_s11 = sld [smem:[#allocation60_spill]] }
 0x13e   :  { %17986 = vmatprep.subr.mxu0 %v398_v2  ;;  %v489_v13 = vld [vmem:[%s22582_s18] sm:$0xff]  ;;  %v1694_v34 = vld [vmem:[#allocation2 + $0xc8] sm:$0xff]  ;;  %v1692_v37 = vld [vmem:[#allocation2 + $0xb8] sm:$0xff]  ;;  %s22588_s15 = sld [smem:[#allocation58_spill]] }
 0x13f   :  { %17987 = vmatpush3.msra.mxu0 %v398_v2  ;;  %v20308_v30 = vld [vmem:[#allocation2 + $0x80] sm:$0xff]  ;;  %v1698_v38 = vld [vmem:[#allocation2 + $0xe8] sm:$0xff]  ;;  %v1691_v39 = vld [vmem:[#allocation2 + $0xb0] sm:$0xff]  ;;  %s22589_s21 = sld [smem:[#allocation59_spill]] }
 0x140   :  { %17989 = vmatmul.mubr.msk.f32.vlgmr.msra.gmra.mxu0 %vm407_vm0, %v397_v5  ;;  %17991 = vmatprep.subr.mxu0 %v19983_v0  ;;  %v20324_v32 = vld [vmem:[#allocation2 + $0xa0] sm:$0xff]  ;;  %v1696_v41 = vld [vmem:[#allocation2 + $0xd8] sm:$0xff]  ;;  %v1695_v42 = vld [vmem:[#allocation2 + $0xd0] sm:$0xff]  ;;  %s22590_s29 = sld [smem:[#allocation49_spill]] }
 0x141   :  { %17992 = vmatpush3.xpose.msra.mxu0 %v493_v6  ;;  %17995 = vmatprep.mubr.msk.f32.mxu0 %vm19984_vm1, %v19983_v0  ;;  %v1693_v36 = vld [vmem:[#allocation2 + $0xc0] sm:$0xff]  ;;  %v1700_v43 = vld [vmem:[#allocation2 + $0xf8] sm:$0xff]  ;;  %v1699_v44 = vld [vmem:[#allocation2 + $0xf0] sm:$0xff] }
 0x142   :  { %17993 = vmatprep.subr.mxu0 %v19983_v0  ;;  %v1697_v40 = vld [vmem:[#allocation2 + $0xe0] sm:$0xff]  ;;  %v20397_v45 = vld [vmem:[#allocation2 + $0x108] sm:$0xff]  ;;  %v2882_v49 = vld [vmem:[#allocation2 + $0x118] sm:$0xff] }
 0x143   :  { %v20404_v46 = vld [vmem:[#allocation2 + $0x100] sm:$0xff]  ;;  %v20413_v47 = vld [vmem:[#allocation2 + $0x128] sm:$0xff]  ;;  %v2881_v51 = vld [vmem:[#allocation2 + $0x110] sm:$0xff] }
 0x144   :  { %v20420_v48 = vld [vmem:[#allocation2 + $0x120] sm:$0xff]  ;;  %v2888_v50 = vld [vmem:[#allocation2 + $0x148] sm:$0xff]  ;;  %v2886_v53 = vld [vmem:[#allocation2 + $0x138] sm:$0xff] }
 0x145   :  { %17994 = vmatpush3.xpose.msra.mxu0 %v492_v7  ;;  %v2887_v52 = vld [vmem:[#allocation2 + $0x140] sm:$0xff]  ;;  %v2892_v54 = vld [vmem:[#allocation2 + $0x168] sm:$0xff]  ;;  %v2885_v55 = vld [vmem:[#allocation2 + $0x130] sm:$0xff] }
 0x146   :  { %17998 = vmatprep.subr.mxu0 %v19983_v0  ;;  %v2891_v56 = vld [vmem:[#allocation2 + $0x160] sm:$0xff]  ;;  %v2890_v57 = vld [vmem:[#allocation2 + $0x158] sm:$0xff]  ;;  %v2889_v58 = vld [vmem:[#allocation2 + $0x150] sm:$0xff] }
 0x147   :  { %v2894_v59 = vld [vmem:[#allocation2 + $0x178] sm:$0xff]  ;;  %v2893_v60 = vld [vmem:[#allocation2 + $0x170] sm:$0xff] }
 0x200   :  { %v17990_v9 = vpop.f32.mrf.mxu0 }
 0x201   :  { %v486_v24 = vadd.f32 %v17990_v9, %v17087_v10 }
 0x202   :  { %v480_v11 = vpop.f32.mrf.mxu0 }
 0x203   :  { %v481_v12 = vadd.f32 %v17087_v10, %v480_v11  ;;  %v20263_v26 = vadd.f32 %v489_v13, %v486_v24 }
 0x205   :  { %v20227_v14 = vadd.f32 %v489_v13, %v481_v12 }
 0x207   :  { %17996 = vmatmul.mubr.f32.vlgmr.msra.gmra.mxu0 %v20227_v14  ;;  %18010 = vmatmul.mubr.f32.vlgmr.msra.gmra.mxu1 %v20227_v14 }
 0x208   :  { %17999 = vmatpush3.xpose.msra.mxu0 %v20229_v15  ;;  %18020 = vmatpush3.xpose.msra.mxu1 %v20231_v16 }
 0x209   :  { %18000 = vmatprep.subr.mxu0 %v19983_v0  ;;  %18021 = vmatprep.subr.mxu1 %v19983_v0 }
 0x20a   :  { %18002 = vmatprep.mubr.msk.f32.mxu0 %vm19984_vm1, %v19983_v0  ;;  %18023 = vmatprep.mubr.msk.f32.mxu1 %vm19984_vm1, %v19983_v0 }
 0x20c   :  { %18001 = vmatpush3.xpose.msra.mxu0 %v494_v17  ;;  %18022 = vmatpush3.xpose.msra.mxu1 %v500_v18 }
 0x20d   :  { %18012 = vmatprep.subr.mxu0 %v19983_v0  ;;  %18033 = vmatprep.subr.mxu1 %v19983_v0 }
 0x20f   :  { %18003 = vmatmul.mubr.f32.vlgmr.msra.gmra.mxu0 %v20227_v14  ;;  %18024 = vmatmul.mubr.f32.vlgmr.msra.gmra.mxu1 %v20227_v14 }
 0x210   :  { %18013 = vmatpush3.xpose.msra.mxu0 %v499_v19  ;;  %18034 = vmatpush3.xpose.msra.mxu1 %v505_v20 }
 0x211   :  { %18014 = vmatprep.subr.mxu0 %v19983_v0  ;;  %18035 = vmatprep.subr.mxu1 %v19983_v0 }
 0x212   :  { %18016 = vmatprep.mubr.msk.f32.mxu0 %vm19984_vm1, %v19983_v0  ;;  %18037 = vmatprep.mubr.msk.f32.mxu1 %vm19984_vm1, %v19983_v0 }
 0x214   :  { %18015 = vmatpush3.xpose.msra.mxu0 %v498_v21  ;;  %18036 = vmatpush3.xpose.msra.mxu1 %v504_v22 }
 0x215   :  { %18026 = vmatprep.subr.mxu0 %v19983_v0  ;;  %18047 = vmatprep.subr.mxu1 %v19983_v0 }
 0x217   :  { %18017 = vmatmul.mubr.f32.vlgmr.msra.gmra.mxu0 %v20227_v14  ;;  %18038 = vmatmul.mubr.f32.vlgmr.msra.gmra.mxu1 %v20227_v14 }
 0x218   :  { %18027 = vmatpush3.xpose.msra.mxu0 %v503_v23  ;;  %18048 = vmatpush3.xpose.msra.mxu1 %v493_v6 }
 0x219   :  { %18028 = vmatprep.subr.mxu0 %v19983_v0  ;;  %18049 = vmatprep.subr.mxu1 %v19983_v0 }
 0x21a   :  { %18030 = vmatprep.mubr.msk.f32.mxu0 %vm19984_vm1, %v19983_v0  ;;  %18051 = vmatprep.mubr.msk.f32.mxu1 %vm19984_vm1, %v19983_v0 }
 0x21c   :  { %18029 = vmatpush3.xpose.msra.mxu0 %v502_v25  ;;  %18050 = vmatpush3.xpose.msra.mxu1 %v492_v7 }
 0x21d   :  { %18040 = vmatprep.subr.mxu0 %v19983_v0  ;;  %18061 = vmatprep.subr.mxu1 %v19983_v0 }
 0x21f   :  { %18031 = vmatmul.mubr.f32.vlgmr.msra.gmra.mxu0 %v20227_v14  ;;  %18052 = vmatmul.mubr.f32.vlgmr.msra.gmra.mxu1 %v20263_v26 }
 0x220   :  { %18041 = vmatpush3.xpose.msra.mxu0 %v507_v27  ;;  %18062 = vmatpush3.xpose.msra.mxu1 %v20208_v4 }
 0x221   :  { %18042 = vmatprep.subr.mxu0 %v19983_v0  ;;  %18063 = vmatprep.subr.mxu1 %v19983_v0 }
 0x222   :  { %18044 = vmatprep.mubr.msk.f32.mxu0 %vm19984_vm1, %v19983_v0  ;;  %18065 = vmatprep.mubr.msk.f32.mxu1 %vm19984_vm1, %v19983_v0 }
 0x224   :  { %18043 = vmatpush3.xpose.msra.mxu0 %v506_v28  ;;  %18064 = vmatpush3.xpose.msra.mxu1 %v20216_v8 }
 0x225   :  { %18054 = vmatprep.subr.mxu0 %v19983_v0  ;;  %18075 = vmatprep.subr.mxu1 %v19983_v0 }
 0x227   :  { %18045 = vmatmul.mubr.f32.vlgmr.msra.gmra.mxu0 %v20227_v14  ;;  %18066 = vmatmul.mubr.f32.vlgmr.msra.gmra.mxu1 %v20263_v26 }
 0x228   :  { %18055 = vmatpush3.xpose.msra.mxu0 %v20229_v15  ;;  %18076 = vmatpush3.xpose.msra.mxu1 %v20231_v16 }
 0x229   :  { %18056 = vmatprep.subr.mxu0 %v19983_v0  ;;  %18077 = vmatprep.subr.mxu1 %v19983_v0 }
 0x22a   :  { %18058 = vmatprep.mubr.msk.f32.mxu0 %vm19984_vm1, %v19983_v0  ;;  %18079 = vmatprep.mubr.msk.f32.mxu1 %vm19984_vm1, %v19983_v0 }
 0x22c   :  { %18057 = vmatpush3.xpose.msra.mxu0 %v494_v17  ;;  %18078 = vmatpush3.xpose.msra.mxu1 %v500_v18 }
 0x22d   :  { %18068 = vmatprep.subr.mxu0 %v19983_v0  ;;  %18089 = vmatprep.subr.mxu1 %v19983_v0 }
 0x22f   :  { %18059 = vmatmul.mubr.f32.vlgmr.msra.gmra.mxu0 %v20263_v26  ;;  %18080 = vmatmul.mubr.f32.vlgmr.msra.gmra.mxu1 %v20263_v26 }
 0x230   :  { %18069 = vmatpush3.xpose.msra.mxu0 %v499_v19  ;;  %18090 = vmatpush3.xpose.msra.mxu1 %v505_v20 }
 0x231   :  { %18070 = vmatprep.subr.mxu0 %v19983_v0  ;;  %18091 = vmatprep.subr.mxu1 %v19983_v0 }
 0x232   :  { %18072 = vmatprep.mubr.msk.f32.mxu0 %vm19984_vm1, %v19983_v0  ;;  %18093 = vmatprep.mubr.msk.f32.mxu1 %vm19984_vm1, %v19983_v0 }
 0x234   :  { %18071 = vmatpush3.xpose.msra.mxu0 %v498_v21  ;;  %18092 = vmatpush3.xpose.msra.mxu1 %v504_v22 }
 0x235   :  { %18082 = vmatprep.subr.mxu0 %v19983_v0  ;;  %18103 = vmatprep.subr.mxu1 %v19983_v0 }
 0x237   :  { %18073 = vmatmul.mubr.f32.vlgmr.msra.gmra.mxu0 %v20263_v26  ;;  %18094 = vmatmul.mubr.f32.vlgmr.msra.gmra.mxu1 %v20263_v26 }
 0x238   :  { %18083 = vmatpush3.xpose.msra.mxu0 %v503_v23  ;;  %18104 = vmatpush3.xpose.msra.mxu1 %v20301_v29 }
 0x239   :  { %18084 = vmatprep.subr.mxu0 %v19983_v0  ;;  %18105 = vmatprep.subr.mxu1 %v19983_v0 }
 0x23a   :  { %18086 = vmatprep.mubr.msk.f32.mxu0 %vm19984_vm1, %v19983_v0  ;;  %18107 = vmatprep.mubr.msk.f32.mxu1 %vm19984_vm1, %v19983_v0 }
 0x23c   :  { %18085 = vmatpush3.xpose.msra.mxu0 %v502_v25  ;;  %18106 = vmatpush3.xpose.msra.mxu1 %v20308_v30 }
 0x23d   :  { %18096 = vmatprep.subr.mxu0 %v19983_v0  ;;  %18117 = vmatprep.subr.mxu1 %v19983_v0 }
 0x23f   :  { %18087 = vmatmul.mubr.f32.vlgmr.msra.gmra.mxu0 %v20263_v26  ;;  %18108 = vmatmul.mubr.f32.vlgmr.msra.gmra.mxu1 %v20227_v14 }
 0x240   :  { %18097 = vmatpush3.xpose.msra.mxu0 %v507_v27  ;;  %18118 = vmatpush3.xpose.msra.mxu1 %v20317_v31 }
 0x241   :  { %18098 = vmatprep.subr.mxu0 %v19983_v0  ;;  %18119 = vmatprep.subr.mxu1 %v19983_v0 }
 0x242   :  { %18100 = vmatprep.mubr.msk.f32.mxu0 %vm19984_vm1, %v19983_v0  ;;  %18121 = vmatprep.mubr.msk.f32.mxu1 %vm19984_vm1, %v19983_v0 }
 0x244   :  { %18099 = vmatpush3.xpose.msra.mxu0 %v506_v28  ;;  %18120 = vmatpush3.xpose.msra.mxu1 %v20324_v32  ;;  %v20530_v28 = vld [vmem:[%s22583_s10 + $0x8] ss:$0 sm:$0xff] }
 0x245   :  { %18110 = vmatprep.subr.mxu0 %v19983_v0  ;;  %18131 = vmatprep.subr.mxu1 %v19983_v0 }
 0x247   :  { %18101 = vmatmul.mubr.f32.vlgmr.msra.gmra.mxu0 %v20263_v26  ;;  %18122 = vmatmul.mubr.f32.vlgmr.msra.gmra.mxu1 %v20227_v14 }
 0x248   :  { %18111 = vmatpush3.xpose.msra.mxu0 %v1688_v33  ;;  %18132 = vmatpush3.xpose.msra.mxu1 %v1694_v34 }
 0x249   :  { %18112 = vmatprep.subr.mxu0 %v19983_v0  ;;  %18133 = vmatprep.subr.mxu1 %v19983_v0 }
 0x24a   :  { %18114 = vmatprep.mubr.msk.f32.mxu0 %vm19984_vm1, %v19983_v0  ;;  %18135 = vmatprep.mubr.msk.f32.mxu1 %vm19984_vm1, %v19983_v0 }
 0x24c   :  { %18113 = vmatpush3.xpose.msra.mxu0 %v1687_v35  ;;  %18134 = vmatpush3.xpose.msra.mxu1 %v1693_v36 }
 0x24d   :  { %18124 = vmatprep.subr.mxu0 %v19983_v0  ;;  %18145 = vmatprep.subr.mxu1 %v19983_v0 }
 0x24f   :  { %18115 = vmatmul.mubr.f32.vlgmr.msra.gmra.mxu0 %v20227_v14  ;;  %18136 = vmatmul.mubr.f32.vlgmr.msra.gmra.mxu1 %v20227_v14 }
 0x250   :  { %18125 = vmatpush3.xpose.msra.mxu0 %v1692_v37  ;;  %18146 = vmatpush3.xpose.msra.mxu1 %v1698_v38 }
 0x251   :  { %18126 = vmatprep.subr.mxu0 %v19983_v0  ;;  %18147 = vmatprep.subr.mxu1 %v19983_v0 }
 0x252   :  { %18128 = vmatprep.mubr.msk.f32.mxu0 %vm19984_vm1, %v19983_v0  ;;  %18149 = vmatprep.mubr.msk.f32.mxu1 %vm19984_vm1, %v19983_v0 }
 0x254   :  { %18127 = vmatpush3.xpose.msra.mxu0 %v1691_v39  ;;  %18148 = vmatpush3.xpose.msra.mxu1 %v1697_v40 }
 0x255   :  { %18138 = vmatprep.subr.mxu0 %v19983_v0  ;;  %18159 = vmatprep.subr.mxu1 %v19983_v0 }
 0x257   :  { %18129 = vmatmul.mubr.f32.vlgmr.msra.gmra.mxu0 %v20227_v14  ;;  %18150 = vmatmul.mubr.f32.vlgmr.msra.gmra.mxu1 %v20227_v14 }
 0x258   :  { %18139 = vmatpush3.xpose.msra.mxu0 %v1696_v41  ;;  %18160 = vmatpush3.xpose.msra.mxu1 %v20301_v29 }
 0x259   :  { %18140 = vmatprep.subr.mxu0 %v19983_v0  ;;  %18161 = vmatprep.subr.mxu1 %v19983_v0 }
 0x25a   :  { %18142 = vmatprep.mubr.msk.f32.mxu0 %vm19984_vm1, %v19983_v0  ;;  %18163 = vmatprep.mubr.msk.f32.mxu1 %vm19984_vm1, %v19983_v0 }
 0x25c   :  { %18141 = vmatpush3.xpose.msra.mxu0 %v1695_v42  ;;  %18162 = vmatpush3.xpose.msra.mxu1 %v20308_v30 }
 0x25d   :  { %18152 = vmatprep.subr.mxu0 %v19983_v0  ;;  %18173 = vmatprep.subr.mxu1 %v19983_v0 }
 0x25f   :  { %18143 = vmatmul.mubr.f32.vlgmr.msra.gmra.mxu0 %v20227_v14  ;;  %18164 = vmatmul.mubr.f32.vlgmr.msra.gmra.mxu1 %v20263_v26 }
 0x260   :  { %18153 = vmatpush3.xpose.msra.mxu0 %v1700_v43  ;;  %18174 = vmatpush3.xpose.msra.mxu1 %v20317_v31  ;;  %v20535_v31 = vld [vmem:[%s22583_s10] ss:$0 sm:$0xff] }
 0x261   :  { %18154 = vmatprep.subr.mxu0 %v19983_v0  ;;  %18175 = vmatprep.subr.mxu1 %v19983_v0 }
 0x262   :  { %18156 = vmatprep.mubr.msk.f32.mxu0 %vm19984_vm1, %v19983_v0  ;;  %18177 = vmatprep.mubr.msk.f32.mxu1 %vm19984_vm1, %v19983_v0 }
 0x264   :  { %18155 = vmatpush3.xpose.msra.mxu0 %v1699_v44  ;;  %18176 = vmatpush3.xpose.msra.mxu1 %v20324_v32 }
 0x265   :  { %18166 = vmatprep.subr.mxu0 %v19983_v0  ;;  %18187 = vmatprep.subr.mxu1 %v19983_v0 }
 0x267   :  { %18157 = vmatmul.mubr.f32.vlgmr.msra.gmra.mxu0 %v20227_v14  ;;  %18178 = vmatmul.mubr.f32.vlgmr.msra.gmra.mxu1 %v20263_v26 }
 0x268   :  { %18167 = vmatpush3.xpose.msra.mxu0 %v1688_v33  ;;  %18188 = vmatpush3.xpose.msra.mxu1 %v1694_v34 }
 0x269   :  { %18168 = vmatprep.subr.mxu0 %v19983_v0  ;;  %18189 = vmatprep.subr.mxu1 %v19983_v0 }
 0x26a   :  { %18170 = vmatprep.mubr.msk.f32.mxu0 %vm19984_vm1, %v19983_v0  ;;  %18191 = vmatprep.mubr.msk.f32.mxu1 %vm19984_vm1, %v19983_v0 }
 0x26c   :  { %18169 = vmatpush3.xpose.msra.mxu0 %v1687_v35  ;;  %18190 = vmatpush3.xpose.msra.mxu1 %v1693_v36  ;;  %v20543_v36 = vld [vmem:[%s22583_s10 + $0xa] ss:$0 sm:$0xff] }
 0x26d   :  { %18180 = vmatprep.subr.mxu0 %v19983_v0  ;;  %18201 = vmatprep.subr.mxu1 %v19983_v0 }
 0x26f   :  { %18171 = vmatmul.mubr.f32.vlgmr.msra.gmra.mxu0 %v20263_v26  ;;  %18192 = vmatmul.mubr.f32.vlgmr.msra.gmra.mxu1 %v20263_v26 }
 0x270   :  { %18181 = vmatpush3.xpose.msra.mxu0 %v1692_v37  ;;  %18202 = vmatpush3.xpose.msra.mxu1 %v1698_v38 }
 0x271   :  { %18182 = vmatprep.subr.mxu0 %v19983_v0  ;;  %18203 = vmatprep.subr.mxu1 %v19983_v0 }
 0x272   :  { %18184 = vmatprep.mubr.msk.f32.mxu0 %vm19984_vm1, %v19983_v0  ;;  %18205 = vmatprep.mubr.msk.f32.mxu1 %vm19984_vm1, %v19983_v0 }
 0x274   :  { %18183 = vmatpush3.xpose.msra.mxu0 %v1691_v39  ;;  %18204 = vmatpush3.xpose.msra.mxu1 %v1697_v40  ;;  %v20550_v39 = vld [vmem:[%s22583_s10 + $0x2] ss:$0 sm:$0xff] }
 0x275   :  { %18194 = vmatprep.subr.mxu0 %v19983_v0  ;;  %18215 = vmatprep.subr.mxu1 %v19983_v0 }
 0x277   :  { %18185 = vmatmul.mubr.f32.vlgmr.msra.gmra.mxu0 %v20263_v26  ;;  %18206 = vmatmul.mubr.f32.vlgmr.msra.gmra.mxu1 %v20263_v26 }
 0x278   :  { %18195 = vmatpush3.xpose.msra.mxu0 %v1696_v41  ;;  %18216 = vmatpush3.xpose.msra.mxu1 %v20397_v45 }
 0x279   :  { %18196 = vmatprep.subr.mxu0 %v19983_v0  ;;  %18217 = vmatprep.subr.mxu1 %v19983_v0 }
 0x27a   :  { %18198 = vmatprep.mubr.msk.f32.mxu0 %vm19984_vm1, %v19983_v0  ;;  %18219 = vmatprep.mubr.msk.f32.mxu1 %vm19984_vm1, %v19983_v0 }
 0x27c   :  { %18197 = vmatpush3.xpose.msra.mxu0 %v1695_v42  ;;  %18218 = vmatpush3.xpose.msra.mxu1 %v20404_v46 }
 0x27d   :  { %18208 = vmatprep.subr.mxu0 %v19983_v0  ;;  %18229 = vmatprep.subr.mxu1 %v19983_v0 }
 0x27f   :  { %18199 = vmatmul.mubr.f32.vlgmr.msra.gmra.mxu0 %v20263_v26  ;;  %18220 = vmatmul.mubr.f32.vlgmr.msra.gmra.mxu1 %v20227_v14 }
 0x280   :  { %18209 = vmatpush3.xpose.msra.mxu0 %v1700_v43  ;;  %18230 = vmatpush3.xpose.msra.mxu1 %v20413_v47 }
 0x281   :  { %18210 = vmatprep.subr.mxu0 %v19983_v0  ;;  %18231 = vmatprep.subr.mxu1 %v19983_v0 }
 0x282   :  { %18212 = vmatprep.mubr.msk.f32.mxu0 %vm19984_vm1, %v19983_v0  ;;  %18233 = vmatprep.mubr.msk.f32.mxu1 %vm19984_vm1, %v19983_v0 }
 0x284   :  { %18211 = vmatpush3.xpose.msra.mxu0 %v1699_v44  ;;  %18232 = vmatpush3.xpose.msra.mxu1 %v20420_v48  ;;  %v20558_v44 = vld [vmem:[%s22583_s10 + $0x9] ss:$0 sm:$0xff] }
 0x285   :  { %18222 = vmatprep.subr.mxu0 %v19983_v0  ;;  %18243 = vmatprep.subr.mxu1 %v19983_v0 }
 0x287   :  { %18213 = vmatmul.mubr.f32.vlgmr.msra.gmra.mxu0 %v20263_v26  ;;  %18234 = vmatmul.mubr.f32.vlgmr.msra.gmra.mxu1 %v20227_v14 }
 0x288   :  { %18223 = vmatpush3.xpose.msra.mxu0 %v2882_v49  ;;  %18244 = vmatpush3.xpose.msra.mxu1 %v2888_v50 }
 0x289   :  { %18224 = vmatprep.subr.mxu0 %v19983_v0  ;;  %18245 = vmatprep.subr.mxu1 %v19983_v0 }
 0x28a   :  { %18226 = vmatprep.mubr.msk.f32.mxu0 %vm19984_vm1, %v19983_v0  ;;  %18247 = vmatprep.mubr.msk.f32.mxu1 %vm19984_vm1, %v19983_v0 }
 0x28c   :  { %18225 = vmatpush3.xpose.msra.mxu0 %v2881_v51  ;;  %18246 = vmatpush3.xpose.msra.mxu1 %v2887_v52 }
 0x28d   :  { %18236 = vmatprep.subr.mxu0 %v19983_v0  ;;  %18257 = vmatprep.subr.mxu1 %v19983_v0 }
 0x28f   :  { %18227 = vmatmul.mubr.f32.vlgmr.msra.gmra.mxu0 %v20227_v14  ;;  %18248 = vmatmul.mubr.f32.vlgmr.msra.gmra.mxu1 %v20227_v14 }
 0x290   :  { %18237 = vmatpush3.xpose.msra.mxu0 %v2886_v53  ;;  %18258 = vmatpush3.xpose.msra.mxu1 %v2892_v54 }
 0x291   :  { %18238 = vmatprep.subr.mxu0 %v19983_v0  ;;  %18259 = vmatprep.subr.mxu1 %v19983_v0 }
 0x292   :  { %18240 = vmatprep.mubr.msk.f32.mxu0 %vm19984_vm1, %v19983_v0  ;;  %18261 = vmatprep.mubr.msk.f32.mxu1 %vm19984_vm1, %v19983_v0 }
 0x294   :  { %18239 = vmatpush3.xpose.msra.mxu0 %v2885_v55  ;;  %18260 = vmatpush3.xpose.msra.mxu1 %v2891_v56 }
 0x295   :  { %18250 = vmatprep.subr.mxu0 %v19983_v0  ;;  %18271 = vmatprep.subr.mxu1 %v19983_v0 }
 0x297   :  { %18241 = vmatmul.mubr.f32.vlgmr.msra.gmra.mxu0 %v20227_v14  ;;  %18262 = vmatmul.mubr.f32.vlgmr.msra.gmra.mxu1 %v20227_v14 }
 0x298   :  { %18251 = vmatpush3.xpose.msra.mxu0 %v2890_v57  ;;  %18272 = vmatpush3.xpose.msra.mxu1 %v20397_v45  ;;  %v20561_v45 = vld [vmem:[%s22583_s10 + $0xc] ss:$0 sm:$0xff] }
 0x299   :  { %18252 = vmatprep.subr.mxu0 %v19983_v0  ;;  %18273 = vmatprep.subr.mxu1 %v19983_v0 }
 0x29a   :  { %18254 = vmatprep.mubr.msk.f32.mxu0 %vm19984_vm1, %v19983_v0  ;;  %18275 = vmatprep.mubr.msk.f32.mxu1 %vm19984_vm1, %v19983_v0 }
 0x29c   :  { %18253 = vmatpush3.xpose.msra.mxu0 %v2889_v58  ;;  %18274 = vmatpush3.xpose.msra.mxu1 %v20404_v46 }
 0x29d   :  { %18264 = vmatprep.subr.mxu0 %v19983_v0  ;;  %18285 = vmatprep.subr.mxu1 %v19983_v0 }
 0x29f   :  { %18255 = vmatmul.mubr.f32.vlgmr.msra.gmra.mxu0 %v20227_v14  ;;  %18276 = vmatmul.mubr.f32.vlgmr.msra.gmra.mxu1 %v20263_v26 }
 0x2a0   :  { %18265 = vmatpush3.xpose.msra.mxu0 %v2894_v59  ;;  %18286 = vmatpush3.xpose.msra.mxu1 %v20413_v47 }
 0x2a1   :  { %18266 = vmatprep.subr.mxu0 %v19983_v0  ;;  %18287 = vmatprep.subr.mxu1 %v19983_v0 }
 0x2a2   :  { %18268 = vmatprep.mubr.msk.f32.mxu0 %vm19984_vm1, %v19983_v0  ;;  %18289 = vmatprep.mubr.msk.f32.mxu1 %vm19984_vm1, %v19983_v0 }
 0x2a4   :  { %18267 = vmatpush3.xpose.msra.mxu0 %v2893_v60  ;;  %18288 = vmatpush3.xpose.msra.mxu1 %v20420_v48  ;;  %v20566_v48 = vld [vmem:[%s22583_s10 + $0x1] ss:$0 sm:$0xff] }
 0x2a5   :  { %18278 = vmatprep.subr.mxu0 %v19983_v0  ;;  %18299 = vmatprep.subr.mxu1 %v19983_v0 }
 0x2a7   :  { %18269 = vmatmul.mubr.f32.vlgmr.msra.gmra.mxu0 %v20227_v14  ;;  %18290 = vmatmul.mubr.f32.vlgmr.msra.gmra.mxu1 %v20263_v26 }
 0x2a8   :  { %18279 = vmatpush3.xpose.msra.mxu0 %v2882_v49  ;;  %18300 = vmatpush3.xpose.msra.mxu1 %v2888_v50  ;;  %v20569_v49 = vld [vmem:[%s22583_s10 + $0x4] ss:$0 sm:$0xff] }
 0x2a9   :  { %18280 = vmatprep.subr.mxu0 %v19983_v0  ;;  %18301 = vmatprep.subr.mxu1 %v19983_v0 }
 0x2aa   :  { %18282 = vmatprep.mubr.msk.f32.mxu0 %vm19984_vm1, %v19983_v0  ;;  %18303 = vmatprep.mubr.msk.f32.mxu1 %vm19984_vm1, %v19983_v0 }
 0x2ac   :  { %18281 = vmatpush3.xpose.msra.mxu0 %v2881_v51  ;;  %18302 = vmatpush3.xpose.msra.mxu1 %v2887_v52 }
 0x2ad   :  { %18292 = vmatprep.subr.mxu0 %v19983_v0  ;;  %18313 = vmatprep.subr.mxu1 %v19983_v0 }
 0x2af   :  { %18283 = vmatmul.mubr.f32.vlgmr.msra.gmra.mxu0 %v20263_v26  ;;  %18304 = vmatmul.mubr.f32.vlgmr.msra.gmra.mxu1 %v20263_v26 }
 0x2b0   :  { %18293 = vmatpush3.xpose.msra.mxu0 %v2886_v53  ;;  %18314 = vmatpush3.xpose.msra.mxu1 %v2892_v54 }
 0x2b1   :  { %18294 = vmatprep.subr.mxu0 %v19983_v0  ;;  %18315 = vmatprep.subr.mxu1 %v19983_v0 }
 0x2b2   :  { %18296 = vmatprep.mubr.msk.f32.mxu0 %vm19984_vm1, %v19983_v0  ;;  %18317 = vmatprep.mubr.msk.f32.mxu1 %vm19984_vm1, %v19983_v0 }
 0x2b4   :  { %18295 = vmatpush3.xpose.msra.mxu0 %v2885_v55  ;;  %18316 = vmatpush3.xpose.msra.mxu1 %v2891_v56  ;;  %v20582_v56 = vld [vmem:[%s22583_s10 + $0xb] ss:$0 sm:$0xff] }
 0x2b5   :  { %18306 = vmatprep.subr.mxu0 %v19983_v0  ;;  %18327 = vmatprep.subr.mxu1 %v19983_v0 }
 0x2b7   :  { %18297 = vmatmul.mubr.f32.vlgmr.msra.gmra.mxu0 %v20263_v26  ;;  %18318 = vmatmul.mubr.f32.vlgmr.msra.gmra.mxu1 %v20263_v26 }
 0x2b8   :  { %18307 = vmatpush3.xpose.msra.mxu0 %v2890_v57  ;;  %18310 = vmatprep.mubr.msk.f32.mxu0 %vm19984_vm1, %v19983_v0  ;;  %v20585_v57 = vld [vmem:[%s22583_s10 + $0xe] ss:$0 sm:$0xff] }
 0x2b9   :  { %18308 = vmatprep.subr.mxu0 %v19983_v0  ;;  %18329 = vmatprep.mubr.msk.f32.mxu1 %vm19984_vm1, %v19983_v0 }
 0x2bc   :  { %18309 = vmatpush3.xpose.msra.mxu0 %v2889_v58 }
 0x2bd   :  { %18320 = vmatprep.subr.mxu0 %v19983_v0 }
 0x2bf   :  { %18311 = vmatmul.mubr.f32.vlgmr.msra.gmra.mxu0 %v20263_v26 }
 0x2c0   :  { %18321 = vmatpush3.xpose.msra.mxu0 %v2894_v59  ;;  %18324 = vmatprep.mubr.msk.f32.mxu0 %vm19984_vm1, %v19983_v0 }
 0x2c1   :  { %18322 = vmatprep.subr.mxu0 %v19983_v0 }
 0x2c4   :  { %18323 = vmatpush3.xpose.msra.mxu0 %v2893_v60  ;;  %v20592_v60 = vld [vmem:[%s22583_s10 + $0x3] ss:$0 sm:$0xff] }
 0x2c5   :  { %18332 = vmatprep.subr.mxu0 %v19983_v0 }
 0x2c7   :  { %18325 = vmatmul.mubr.f32.vlgmr.msra.gmra.mxu0 %v20263_v26  ;;  %v630_v61 = vpop.f32.mrf.mxu0  ;;  %v770_v62 = vpop.f32.mrf.mxu1 }
 0x2c8   :  { %18334 = vmatprep.mubr.msk.f32.mxu0 %vm19984_vm1, %v19983_v0  ;;  %v631_v35 = vadd.f32 %v20535_v31, %v630_v61  ;;  %v771_v43 = vadd.f32 %v20550_v39, %v770_v62  ;;  %v20595_v61 = vld [vmem:[%s22583_s10 + $0x6] ss:$0 sm:$0xff] }
 0x2c9   :  { %v17997_v63 = vpop.f32.mrf.mxu0  ;;  %v18011_v1 = vpop.f32.mrf.mxu1 }
 0x2cf   :  { %v700_v2 = vpop.f32.mrf.mxu0  ;;  %v910_v3 = vpop.f32.mrf.mxu1 }
 0x2d0   :  { %v701_v54 = vadd.f32 %v20566_v48, %v700_v2  ;;  %v911_v55 = vadd.f32 %v20569_v49, %v910_v3 }
 0x2d1   :  { %v18004_v4 = vpop.f32.mrf.mxu0  ;;  %v18025_v5 = vpop.f32.mrf.mxu1 }
 0x2d2   :  { %v20610_v5 = vld [vmem:[%s22583_s10 + $0xd] ss:$0 sm:$0xff] }
 0x2d7   :  { %v20509_v6 = vpop.f32.mrf.mxu0  ;;  %v20511_v7 = vpop.f32.mrf.mxu1 }
 0x2d8   :  { %v841_v3 = vadd.f32 %v20592_v60, %v20509_v6  ;;  %v1051_v4 = vadd.f32 %v20595_v61, %v20511_v7  ;;  %v20617_v7 = vld [vmem:[%s22583_s10 + $0x5] ss:$0 sm:$0xff] }
 0x2d9   :  { %v18018_v8 = vpop.f32.mrf.mxu0  ;;  %v18039_v9 = vpop.f32.mrf.mxu1 }
 0x2df   :  { %v20513_v10 = vpop.f32.mrf.mxu0  ;;  %v20515_v11 = vpop.f32.mrf.mxu1 }
 0x2e1   :  { %v18032_v12 = vpop.f32.mrf.mxu0  ;;  %v18053_v13 = vpop.f32.mrf.mxu1 }
 0x2e7   :  { %v20517_v15 = vpop.f32.mrf.mxu0  ;;  %v20519_v16 = vpop.f32.mrf.mxu1 }
 0x2e9   :  { %v18046_v17 = vpop.f32.mrf.mxu0  ;;  %v18067_v18 = vpop.f32.mrf.mxu1 }
 0x2ea   :  { %v981_v18 = vadd.f32 %v20617_v7, %v20513_v10 }
 0x2ef   :  { %v20521_v19 = vpop.f32.mrf.mxu0  ;;  %v20523_v20 = vpop.f32.mrf.mxu1 }
 0x2f1   :  { %v18060_v21 = vpop.f32.mrf.mxu0  ;;  %v18081_v22 = vpop.f32.mrf.mxu1 }
 0x2f2   :  { %v1191_v21 = vadd.f32 %v20535_v31, %v20515_v11  ;;  %v20632_v22 = vld [vmem:[%s22583_s10 + $0xf] ss:$0 sm:$0xff] }
 0x2f7   :  { %v20525_v23 = vpop.f32.mrf.mxu0  ;;  %v20527_v24 = vpop.f32.mrf.mxu1 }
 0x2f9   :  { %v18074_v25 = vpop.f32.mrf.mxu0  ;;  %v18095_v27 = vpop.f32.mrf.mxu1 }
 0x2fa   :  { %v20639_v27 = vld [vmem:[%s22583_s10 + $0x7] ss:$0 sm:$0xff] }
 0x2ff   :  { %v20532_v29 = vpop.f32.mrf.mxu0  ;;  %v1824_v30 = vpop.f32.mrf.mxu1 }
 0x300   :  { %v1825_v32 = vadd.f32 %v20530_v28, %v1824_v30 }
 0x301   :  { %v18088_v33 = vpop.f32.mrf.mxu0  ;;  %v18109_v34 = vpop.f32.mrf.mxu1 }
 0x302   :  { %18328 = vmatpush3.xpose.msk.msra.mxu1 %vm407_vm0, %v1825_v32  ;;  %v1121_v32 = vadd.f32 %v20639_v27, %v20517_v15  ;;  %v1331_v33 = vadd.f32 %v20550_v39, %v20519_v16  ;;  %v1261_v39 = vadd.f32 %v20566_v48, %v20521_v19 }
 0x303   :  { %18337 = vmatprep.subr.mxu1 %v19983_v0 }
 0x305   :  { %18330 = vmatmul.mubr.msk.f32.vlgmr.msra.gmra.mxu1 %vm407_vm0, %v631_v35 }
 0x306   :  { %18339 = vmatprep.mubr.msk.f32.mxu1 %vm19984_vm1, %v19983_v0 }
 0x307   :  { %v20547_v37 = vpop.f32.mrf.mxu0  ;;  %v1964_v38 = vpop.f32.mrf.mxu1 }
 0x308   :  { %v1965_v40 = vadd.f32 %v20543_v36, %v1964_v38 }
 0x309   :  { %v18102_v41 = vpop.f32.mrf.mxu0  ;;  %v18123_v42 = vpop.f32.mrf.mxu1 }
 0x30a   :  { %18338 = vmatpush3.xpose.msk.msra.mxu1 %vm407_vm0, %v1965_v40  ;;  %v1471_v40 = vadd.f32 %v20569_v49, %v20523_v20 }
 0x30b   :  { %18347 = vmatprep.subr.mxu1 %v19983_v0 }
 0x30d   :  { %18340 = vmatmul.mubr.msk.f32.vlgmr.msra.gmra.mxu1 %vm407_vm0, %v771_v43 }
 0x30e   :  { %18349 = vmatprep.mubr.msk.f32.mxu1 %vm19984_vm1, %v19983_v0 }
 0x30f   :  { %v1894_v46 = vpop.f32.mrf.mxu0  ;;  %v2104_v47 = vpop.f32.mrf.mxu1 }
 0x310   :  { %v1895_v50 = vadd.f32 %v20558_v44, %v1894_v46  ;;  %v2105_v51 = vadd.f32 %v20561_v45, %v2104_v47  ;;  %v1611_v46 = vadd.f32 %v20595_v61, %v20527_v24  ;;  %v17122_v47 = vld [vmem:[%s22583_s10 + $0x10] ss:$0 sm:$0xff] }
 0x311   :  { %v18116_v52 = vpop.f32.mrf.mxu0  ;;  %v18137_v53 = vpop.f32.mrf.mxu1 }
 0x312   :  { %18333 = vmatpush3.xpose.msk.msra.mxu0 %vm407_vm0, %v1895_v50  ;;  %18348 = vmatpush3.xpose.msk.msra.mxu1 %vm407_vm0, %v2105_v51  ;;  %v1541_v52 = vadd.f32 %v20617_v7, %v20532_v29  ;;  %v1681_v29 = vadd.f32 %v20639_v27, %v20547_v37 }
 0x313   :  { %18342 = vmatprep.subr.mxu0 %v19983_v0  ;;  %18357 = vmatprep.subr.mxu1 %v19983_v0 }
 0x315   :  { %18335 = vmatmul.mubr.msk.f32.vlgmr.msra.gmra.mxu0 %vm407_vm0, %v701_v54  ;;  %18350 = vmatmul.mubr.msk.f32.vlgmr.msra.gmra.mxu1 %vm407_vm0, %v911_v55 }
 0x316   :  { %18344 = vmatprep.mubr.msk.f32.mxu0 %vm19984_vm1, %v19983_v0  ;;  %18359 = vmatprep.mubr.msk.f32.mxu1 %vm19984_vm1, %v19983_v0 }
 0x317   :  { %v2034_v58 = vpop.f32.mrf.mxu0  ;;  %v2244_v59 = vpop.f32.mrf.mxu1 }
 0x318   :  { %v2035_v62 = vadd.f32 %v20582_v56, %v2034_v58  ;;  %v2245_v63 = vadd.f32 %v20585_v57, %v2244_v59  ;;  %v17123_v58 = vld [vmem:[%s22583_s10 + $0x11] ss:$0 sm:$0xff] }
 0x319   :  { %v18130_v1 = vpop.f32.mrf.mxu0  ;;  %v18151_v2 = vpop.f32.mrf.mxu1 }
 0x31a   :  { %18343 = vmatpush3.xpose.msk.msra.mxu0 %vm407_vm0, %v2035_v62  ;;  %18358 = vmatpush3.xpose.msk.msra.mxu1 %vm407_vm0, %v2245_v63 }
 0x31b   :  { %18352 = vmatprep.subr.mxu0 %v19983_v0  ;;  %18367 = vmatprep.subr.mxu1 %v19983_v0 }
 0x31d   :  { %18345 = vmatmul.mubr.msk.f32.vlgmr.msra.gmra.mxu0 %vm407_vm0, %v841_v3  ;;  %18360 = vmatmul.mubr.msk.f32.vlgmr.msra.gmra.mxu1 %vm407_vm0, %v1051_v4 }
 0x31e   :  { %18354 = vmatprep.mubr.msk.f32.mxu0 %vm19984_vm1, %v19983_v0  ;;  %18369 = vmatprep.mubr.msk.f32.mxu1 %vm19984_vm1, %v19983_v0 }
 0x31f   :  { %v2174_v6 = vpop.f32.mrf.mxu0  ;;  %v2384_v8 = vpop.f32.mrf.mxu1 }
 0x320   :  { %v2175_v9 = vadd.f32 %v20610_v5, %v2174_v6  ;;  %v2385_v12 = vadd.f32 %v20530_v28, %v2384_v8 }
 0x321   :  { %v18144_v13 = vpop.f32.mrf.mxu0  ;;  %v18165_v17 = vpop.f32.mrf.mxu1 }
 0x322   :  { %18353 = vmatpush3.xpose.msk.msra.mxu0 %vm407_vm0, %v2175_v9  ;;  %18368 = vmatpush3.xpose.msk.msra.mxu1 %vm407_vm0, %v2385_v12 }
 0x323   :  { %18362 = vmatprep.subr.mxu0 %v19983_v0  ;;  %18377 = vmatprep.subr.mxu1 %v19983_v0 }
 0x325   :  { %18355 = vmatmul.mubr.msk.f32.vlgmr.msra.gmra.mxu0 %vm407_vm0, %v981_v18  ;;  %18370 = vmatmul.mubr.msk.f32.vlgmr.msra.gmra.mxu1 %vm407_vm0, %v1191_v21 }
 0x326   :  { %18364 = vmatprep.mubr.msk.f32.mxu0 %vm19984_vm1, %v19983_v0  ;;  %18379 = vmatprep.mubr.msk.f32.mxu1 %vm19984_vm1, %v19983_v0 }
 0x327   :  { %v2314_v10 = vpop.f32.mrf.mxu0  ;;  %v2524_v25 = vpop.f32.mrf.mxu1 }
 0x328   :  { %v2315_v11 = vadd.f32 %v20632_v22, %v2314_v10  ;;  %v2525_v28 = vadd.f32 %v20543_v36, %v2524_v25 }
 0x329   :  { %v18158_v30 = vpop.f32.mrf.mxu0  ;;  %v18179_v31 = vpop.f32.mrf.mxu1 }
 0x32a   :  { %18363 = vmatpush3.xpose.msk.msra.mxu0 %vm407_vm0, %v2315_v11  ;;  %18378 = vmatpush3.xpose.msk.msra.mxu1 %vm407_vm0, %v2525_v28 }
 0x32b   :  { %18372 = vmatprep.subr.mxu0 %v19983_v0  ;;  %18387 = vmatprep.subr.mxu1 %v19983_v0 }
 0x32d   :  { %18365 = vmatmul.mubr.msk.f32.vlgmr.msra.gmra.mxu0 %vm407_vm0, %v1121_v32  ;;  %18380 = vmatmul.mubr.msk.f32.vlgmr.msra.gmra.mxu1 %vm407_vm0, %v1331_v33 }
 0x32e   :  { %18374 = vmatprep.mubr.msk.f32.mxu0 %vm19984_vm1, %v19983_v0  ;;  %18389 = vmatprep.mubr.msk.f32.mxu1 %vm19984_vm1, %v19983_v0 }
 0x32f   :  { %v2454_v34 = vpop.f32.mrf.mxu0  ;;  %v2664_v35 = vpop.f32.mrf.mxu1 }
 0x330   :  { %v2455_v15 = vadd.f32 %v20558_v44, %v2454_v34  ;;  %v2665_v16 = vadd.f32 %v20561_v45, %v2664_v35  ;;  %v1401_v45 = vadd.f32 %v20592_v60, %v20525_v23 }
 0x331   :  { %v18172_v36 = vpop.f32.mrf.mxu0  ;;  %v18193_v38 = vpop.f32.mrf.mxu1 }
 0x332   :  { %18373 = vmatpush3.xpose.msk.msra.mxu0 %vm407_vm0, %v2455_v15  ;;  %18388 = vmatpush3.xpose.msk.msra.mxu1 %vm407_vm0, %v2665_v16 }
 0x333   :  { %18382 = vmatprep.subr.mxu0 %v19983_v0  ;;  %18397 = vmatprep.subr.mxu1 %v19983_v0 }
 0x335   :  { %18375 = vmatmul.mubr.msk.f32.vlgmr.msra.gmra.mxu0 %vm407_vm0, %v1261_v39  ;;  %18390 = vmatmul.mubr.msk.f32.vlgmr.msra.gmra.mxu1 %vm407_vm0, %v1471_v40 }
 0x336   :  { %18384 = vmatprep.mubr.msk.f32.mxu0 %vm19984_vm1, %v19983_v0  ;;  %18399 = vmatprep.mubr.msk.f32.mxu1 %vm19984_vm1, %v19983_v0 }
 0x337   :  { %v2594_v41 = vpop.f32.mrf.mxu0  ;;  %v2804_v19 = vpop.f32.mrf.mxu1 }
 0x338   :  { %v2595_v42 = vadd.f32 %v20582_v56, %v2594_v41  ;;  %v2805_v20 = vadd.f32 %v20585_v57, %v2804_v19 }
 0x339   :  { %v18186_v43 = vpop.f32.mrf.mxu0  ;;  %v18207_v44 = vpop.f32.mrf.mxu1 }
 0x33a   :  { %18383 = vmatpush3.xpose.msk.msra.mxu0 %vm407_vm0, %v2595_v42  ;;  %18398 = vmatpush3.xpose.msk.msra.mxu1 %vm407_vm0, %v2805_v20 }
 0x33b   :  { %18392 = vmatprep.subr.mxu0 %v19983_v0  ;;  %18407 = vmatprep.subr.mxu1 %v19983_v0 }
 0x33d   :  { %18385 = vmatmul.mubr.msk.f32.vlgmr.msra.gmra.mxu0 %vm407_vm0, %v1401_v45  ;;  %18400 = vmatmul.mubr.msk.f32.vlgmr.msra.gmra.mxu1 %vm407_vm0, %v1611_v46 }
 0x33e   :  { %18394 = vmatprep.mubr.msk.f32.mxu0 %vm19984_vm1, %v19983_v0  ;;  %18409 = vmatprep.mubr.msk.f32.mxu1 %vm19984_vm1, %v19983_v0 }
 0x33f   :  { %v2734_v48 = vpop.f32.mrf.mxu0  ;;  %v3018_v23 = vpop.f32.mrf.mxu1 }
 0x340   :  { %v2735_v49 = vadd.f32 %v20610_v5, %v2734_v48  ;;  %v3019_v24 = vadd.f32 %v17122_v47, %v3018_v23 }
 0x341   :  { %v18200_v50 = vpop.f32.mrf.mxu0  ;;  %v18221_v51 = vpop.f32.mrf.mxu1 }
 0x342   :  { %18393 = vmatpush3.xpose.msk.msra.mxu0 %vm407_vm0, %v2735_v49  ;;  %18408 = vmatpush3.msra.mxu1 %v3019_v24 }
 0x343   :  { %18402 = vmatprep.subr.mxu0 %v19983_v0  ;;  %18417 = vmatprep.subr.mxu1 %v19983_v0 }
 0x345   :  { %18395 = vmatmul.mubr.msk.f32.vlgmr.msra.gmra.mxu0 %vm407_vm0, %v1541_v52 }
 0x346   :  { %18404 = vmatprep.mubr.msk.f32.mxu0 %vm19984_vm1, %v19983_v0 }
 0x347   :  { %v2874_v53 = vpop.f32.mrf.mxu0  ;;  %v20699_v54 = vpop.f32.mrf.mxu1 }
 0x348   :  { %v2875_v55 = vadd.f32 %v20632_v22, %v2874_v53 }
 0x349   :  { %v18214_v56 = vpop.f32.mrf.mxu0  ;;  %v18235_v57 = vpop.f32.mrf.mxu1 }
 0x34a   :  { %18403 = vmatpush3.xpose.msk.msra.mxu0 %vm407_vm0, %v2875_v55 }
 0x34b   :  { %18412 = vmatprep.subr.mxu0 %v19983_v0 }
 0x34d   :  { %18405 = vmatmul.mubr.msk.f32.vlgmr.msra.gmra.mxu0 %vm407_vm0, %v1681_v29 }
 0x34e   :  { %18414 = vmatprep.mubr.msk.f32.mxu0 %vm19984_vm1, %v19983_v0 }
 0x34f   :  { %v3088_v59 = vpop.f32.mrf.mxu0  ;;  %v20710_v60 = vpop.f32.mrf.mxu1 }
 0x350   :  { %v3089_v61 = vadd.f32 %v17123_v58, %v3088_v59 }
 0x351   :  { %v18228_v62 = vpop.f32.mrf.mxu0  ;;  %v18249_v63 = vpop.f32.mrf.mxu1 }
 0x352   :  { %18413 = vmatpush3.msra.mxu0 %v3089_v61 }
 0x353   :  { %18422 = vmatprep.subr.mxu0 %v19983_v0 }
 0x357   :  { %v20713_v1 = vpop.f32.mrf.mxu0  ;;  %v20715_v37 = vpop.f32.mrf.mxu1 }
 0x359   :  { %v18242_v2 = vpop.f32.mrf.mxu0  ;;  %v18263_v3 = vpop.f32.mrf.mxu1 }
 0x35f   :  { %v20717_v4 = vpop.f32.mrf.mxu0  ;;  %v3578_v5 = vpop.f32.mrf.mxu1 }
 0x360   :  { %v20719_v6 = vadd.f32 %v17122_v47, %v3578_v5 }
 0x361   :  { %v18256_v8 = vpop.f32.mrf.mxu0  ;;  %v18277_v7 = vpop.f32.mrf.mxu1 }
 0x367   :  { %v20721_v9 = vpop.f32.mrf.mxu0  ;;  %v20723_v12 = vpop.f32.mrf.mxu1 }
 0x369   :  { %v18270_v13 = vpop.f32.mrf.mxu0  ;;  %v18291_v17 = vpop.f32.mrf.mxu1 }
 0x36f   :  { %v3648_v18 = vpop.f32.mrf.mxu0  ;;  %v20725_v21 = vpop.f32.mrf.mxu1 }
 0x370   :  { %v20727_v22 = vadd.f32 %v17123_v58, %v3648_v18 }
 0x371   :  { %v18284_v10 = vpop.f32.mrf.mxu0  ;;  %v18305_v25 = vpop.f32.mrf.mxu1 }
 0x377   :  { %v20729_v27 = vpop.f32.mrf.mxu0  ;;  %v20731_v11 = vpop.f32.mrf.mxu1 }
 0x379   :  { %v18298_v28 = vpop.f32.mrf.mxu0  ;;  %v18319_v30 = vpop.f32.mrf.mxu1 }
 0x37f   :  { %v20733_v31 = vpop.f32.mrf.mxu0 }
 0x381   :  { %v18312_v32 = vpop.f32.mrf.mxu0 }
 0x387   :  { %v20735_v33 = vpop.f32.mrf.mxu0 }
 0x389   :  { %v18326_v34 = vpop.f32.mrf.mxu0 }
 0x3c5   :  { %v4144_v35 = vpop.f32.mrf.mxu1 }
 0x3c6   :  { %v20737_v15 = vmul.f32 0.25, %v4144_v35 }
 0x3c7   :  { %v18331_v16 = vpop.f32.mrf.mxu1 }
 0x3c8   :  { %v5305_v36 = vsel %vm5304_vm2, %v20737_v15, -inf }
 0x3c9   :  { %5306 = vmax.xlane.f32.xlu0 %v5305_v36 }
 0x3cd   :  { %v4296_v38 = vpop.f32.mrf.mxu1 }
 0x3ce   :  { %v20741_v39 = vmul.f32 0.25, %v4296_v38 }
 0x3cf   :  { %v18341_v40 = vpop.f32.mrf.mxu1 }
 0x3d0   :  { %v5311_v41 = vsel %vm5304_vm2, %v20741_v39, -inf }
 0x3d1   :  { %5312 = vmax.xlane.f32.xlu1 %v5311_v41 }
 0x3d5   :  { %v4220_v19 = vpop.f32.mrf.mxu0  ;;  %v4448_v42 = vpop.f32.mrf.mxu1 }
 0x3d6   :  { %v20745_v20 = vmul.f32 0.25, %v4220_v19  ;;  %v20747_v45 = vmul.f32 0.25, %v4448_v42 }
 0x3d7   :  { %v18336_v43 = vpop.f32.mrf.mxu0  ;;  %v18351_v44 = vpop.f32.mrf.mxu1 }
 0x3d8   :  { %v5308_v46 = vsel %vm5304_vm2, %v20745_v20, -inf  ;;  %v5317_v47 = vsel %vm5304_vm2, %v20747_v45, -inf }
 0x3d9   :  { %5309 = vmax.xlane.f32.xlu0 %v5308_v46 }
 0x3dd   :  { %v4600_v48 = vpop.f32.mrf.mxu1  ;;  %5318 = vmax.xlane.f32.xlu0 %v5317_v47  ;;  %v4372_v23 = vpop.f32.mrf.mxu0 }
 0x3de   :  { %v20753_v49 = vmul.f32 0.25, %v4600_v48  ;;  %v20755_v24 = vmul.f32 0.25, %v4372_v23 }
 0x3df   :  { %v18346_v50 = vpop.f32.mrf.mxu0  ;;  %v18361_v51 = vpop.f32.mrf.mxu1 }
 0x3e0   :  { %v5323_v52 = vsel %vm5304_vm2, %v20753_v49, -inf  ;;  %v5314_v53 = vsel %vm5304_vm2, %v20755_v24, -inf }
 0x3e1   :  { %5324 = vmax.xlane.f32.xlu0 %v5323_v52  ;;  %5315 = vmax.xlane.f32.xlu1 %v5314_v53 }
 0x3e5   :  { %v4524_v55 = vpop.f32.mrf.mxu0  ;;  %v4752_v56 = vpop.f32.mrf.mxu1 }
 0x3e6   :  { %v20761_v57 = vmul.f32 0.25, %v4524_v55  ;;  %v20763_v29 = vmul.f32 0.25, %v4752_v56 }
 0x3e7   :  { %v18356_v58 = vpop.f32.mrf.mxu0  ;;  %v18371_v59 = vpop.f32.mrf.mxu1 }
 0x3e8   :  { %v5329_v61 = vsel %vm5304_vm2, %v20763_v29, -inf  ;;  %v5320_v62 = vsel %vm5304_vm2, %v20761_v57, -inf }
 0x3e9   :  { %5330 = vmax.xlane.f32.xlu0 %v5329_v61  ;;  %5321 = vmax.xlane.f32.xlu1 %v5320_v62 }
 0x3ed   :  { %v4676_v63 = vpop.f32.mrf.mxu0  ;;  %v4904_v2 = vpop.f32.mrf.mxu1 }
 0x3ee   :  { %v20769_v3 = vmul.f32 0.25, %v4676_v63  ;;  %v20771_v5 = vmul.f32 0.25, %v4904_v2 }
 0x3ef   :  { %v18366_v8 = vpop.f32.mrf.mxu0  ;;  %v18381_v7 = vpop.f32.mrf.mxu1 }
 0x3f0   :  { %v5335_v13 = vsel %vm5304_vm2, %v20771_v5, -inf  ;;  %v5326_v17 = vsel %vm5304_vm2, %v20769_v3, -inf }
 0x3f1   :  { %5336 = vmax.xlane.f32.xlu0 %v5335_v13  ;;  %5327 = vmax.xlane.f32.xlu1 %v5326_v17 }
 0x3f5   :  { %v4828_v18 = vpop.f32.mrf.mxu0  ;;  %v5056_v10 = vpop.f32.mrf.mxu1 }
 0x3f6   :  { %v20777_v25 = vmul.f32 0.25, %v4828_v18  ;;  %v20779_v28 = vmul.f32 0.25, %v5056_v10 }
 0x3f7   :  { %v18376_v30 = vpop.f32.mrf.mxu0  ;;  %v18391_v32 = vpop.f32.mrf.mxu1 }
 0x3f8   :  { %v5341_v34 = vsel %vm5304_vm2, %v20779_v28, -inf  ;;  %v5332_v35 = vsel %vm5304_vm2, %v20777_v25, -inf }
 0x3f9   :  { %5342 = vmax.xlane.f32.xlu0 %v5341_v34  ;;  %5333 = vmax.xlane.f32.xlu1 %v5332_v35 }
 0x3fd   :  { %v4980_v16 = vpop.f32.mrf.mxu0  ;;  %v5208_v36 = vpop.f32.mrf.mxu1 }
 0x3fe   :  { %v20785_v38 = vmul.f32 0.25, %v4980_v16  ;;  %v20787_v40 = vmul.f32 0.25, %v5208_v36 }
 0x3ff   :  { %v18386_v41 = vpop.f32.mrf.mxu0  ;;  %v18401_v19 = vpop.f32.mrf.mxu1 }
 0x400   :  { %v5347_v42 = vsel %vm5304_vm2, %v20787_v40, -inf  ;;  %v5338_v43 = vsel %vm5304_vm2, %v20785_v38, -inf }
 0x401   :  { %5348 = vmax.xlane.f32.xlu0 %v5347_v42  ;;  %5339 = vmax.xlane.f32.xlu1 %v5338_v43 }
 0x405   :  { %v5132_v44 = vpop.f32.mrf.mxu0 }
 0x406   :  { %v20793_v46 = vmul.f32 0.25, %v5132_v44 }
 0x407   :  { %v18396_v47 = vpop.f32.mrf.mxu0 }
 0x408   :  { %v5344_v48 = vsel %vm5304_vm2, %v20793_v46, -inf }
 0x409   :  { %5345 = vmax.xlane.f32.xlu1 %v5344_v48 }
 0x40d   :  { %v5284_v23 = vpop.f32.mrf.mxu0 }
 0x40e   :  { %v20797_v50 = vmul.f32 0.25, %v5284_v23 }
 0x40f   :  { %v18406_v51 = vpop.f32.mrf.mxu0 }
 0x410   :  { %v5350_v52 = vsel %vm5304_vm2, %v20797_v50, -inf }
 0x411   :  { %5351 = vmax.xlane.f32.xlu1 %v5350_v52 }
 0x452   :  { %v5307_v53 = vpop.xlane.xlu0 %5306 }
 0x453   :  { %v5353_v55 = vsub.f32 %v20737_v15, %v5307_v53 }
 0x455   :  { %v5369_v56 = vmul.f32 1.442695, %v5353_v55 }
 0x457   :  { %19275 = vpow2.f32 %v5369_v56 }
 0x45a   :  { %v5313_v58 = vpop.xlane.xlu1 %5312 }
 0x45b   :  { %v5355_v59 = vsub.f32 %v20741_v39, %v5313_v58 }
 0x45d   :  { %v5373_v61 = vmul.f32 1.442695, %v5355_v59 }
 0x45f   :  { %19277 = vpow2.f32 %v5373_v61 }
 0x462   :  { %v5310_v62 = vpop.xlane.xlu0 %5309 }
 0x463   :  { %v5354_v63 = vsub.f32 %v20745_v20, %v5310_v62 }
 0x464   :  { %v20804_v2 = vpop.eup %19275 }
 0x465   :  { %v5371_v8 = vmul.f32 1.442695, %v5354_v63  ;;  %v5401_v7 = vsel %vm5304_vm2, %v20804_v2, 0.0 }
 0x466   :  { %5402 = vadd.xlane.f32.xlu0 %v5401_v7  ;;  %v5319_v13 = vpop.xlane.xlu0 %5318 }
 0x467   :  { %19279 = vpow2.f32 %v5371_v8  ;;  %v5357_v15 = vsub.f32 %v20747_v45, %v5319_v13 }
 0x469   :  { %v5377_v17 = vmul.f32 1.442695, %v5357_v15 }
 0x46a   :  { %v5325_v18 = vpop.xlane.xlu0 %5324  ;;  %v5316_v10 = vpop.xlane.xlu1 %5315 }
 0x46b   :  { %19281 = vpow2.f32 %v5377_v17  ;;  %v5359_v39 = vsub.f32 %v20753_v49, %v5325_v18  ;;  %v5356_v30 = vsub.f32 %v20755_v24, %v5316_v10 }
 0x46c   :  { %v20811_v20 = vpop.eup %19277 }
 0x46d   :  { %v5381_v32 = vmul.f32 1.442695, %v5359_v39  ;;  %v5375_v34 = vmul.f32 1.442695, %v5356_v30  ;;  %v5407_v35 = vsel %vm5304_vm2, %v20811_v20, 0.0 }
 0x46e   :  { %5408 = vadd.xlane.f32.xlu0 %v5407_v35 }
 0x46f   :  { %19283 = vpow2.f32 %v5381_v32 }
 0x470   :  { %19285 = vpow2.f32 %v5375_v34 }
 0x472   :  { %v5331_v16 = vpop.xlane.xlu0 %5330  ;;  %v5322_v45 = vpop.xlane.xlu1 %5321 }
 0x473   :  { %v5361_v36 = vsub.f32 %v20763_v29, %v5331_v16  ;;  %v5358_v41 = vsub.f32 %v20761_v57, %v5322_v45 }
 0x474   :  { %v20817_v19 = vpop.eup %19279 }
 0x475   :  { %v5385_v49 = vmul.f32 1.442695, %v5361_v36  ;;  %v5379_v24 = vmul.f32 1.442695, %v5358_v41  ;;  %v5404_v42 = vsel %vm5304_vm2, %v20817_v19, 0.0 }
 0x476   :  { %5405 = vadd.xlane.f32.xlu1 %v5404_v42 }
 0x477   :  { %19287 = vpow2.f32 %v5385_v49 }
 0x478   :  { %v20821_v43 = vpop.eup %19281  ;;  %19289 = vpow2.f32 %v5379_v24 }
 0x479   :  { %v5413_v44 = vsel %vm5304_vm2, %v20821_v43, 0.0 }
 0x47a   :  { %5414 = vadd.xlane.f32.xlu0 %v5413_v44  ;;  %v5337_v47 = vpop.xlane.xlu0 %5336  ;;  %v5328_v29 = vpop.xlane.xlu1 %5327 }
 0x47b   :  { %v5363_v57 = vsub.f32 %v20771_v5, %v5337_v47  ;;  %v5360_v48 = vsub.f32 %v20769_v3, %v5328_v29 }
 0x47c   :  { %v20827_v23 = vpop.eup %19283 }
 0x47d   :  { %v20829_v51 = vpop.eup %19285  ;;  %v5389_v52 = vmul.f32 1.442695, %v5363_v57  ;;  %v5383_v53 = vmul.f32 1.442695, %v5360_v48  ;;  %v5419_v55 = vsel %vm5304_vm2, %v20827_v23, 0.0 }
 0x47e   :  { %5420 = vadd.xlane.f32.xlu0 %v5419_v55  ;;  %v5410_v56 = vsel %vm5304_vm2, %v20829_v51, 0.0 }
 0x47f   :  { %19291 = vpow2.f32 %v5389_v52  ;;  %5411 = vadd.xlane.f32.xlu1 %v5410_v56  ;;  %v20882_v56 = vld [vmem:[%s22583_s10 + $0x12] ss:$0 sm:$0xff] }
 0x480   :  { %19293 = vpow2.f32 %v5383_v53 }
 0x482   :  { %v5343_v58 = vpop.xlane.xlu0 %5342  ;;  %v5334_v5 = vpop.xlane.xlu1 %5333 }
 0x483   :  { %v5365_v3 = vsub.f32 %v20779_v28, %v5343_v58  ;;  %v5362_v59 = vsub.f32 %v20777_v25, %v5334_v5 }
 0x484   :  { %v20837_v61 = vpop.eup %19287 }
 0x485   :  { %v20839_v62 = vpop.eup %19289  ;;  %v5393_v63 = vmul.f32 1.442695, %v5365_v3  ;;  %v5387_v8 = vmul.f32 1.442695, %v5362_v59  ;;  %v5425_v7 = vsel %vm5304_vm2, %v20837_v61, 0.0  ;;  %v3159_v3 = vadd.f32 %v20882_v56, %v20699_v54 }
 0x486   :  { %5426 = vadd.xlane.f32.xlu0 %v5425_v7  ;;  %v5416_v13 = vsel %vm5304_vm2, %v20839_v62, 0.0 }
 0x487   :  { %19295 = vpow2.f32 %v5393_v63  ;;  %5417 = vadd.xlane.f32.xlu1 %v5416_v13 }
 0x488   :  { %19297 = vpow2.f32 %v5387_v8  ;;  %v20892_v8 = vld [vmem:[%s22583_s10 + $0x14] ss:$0 sm:$0xff] }
 0x489   :  { %v3299_v54 = vadd.f32 %v20892_v8, %v20710_v60 }
 0x48a   :  { %v5349_v15 = vpop.xlane.xlu0 %5348  ;;  %v5340_v28 = vpop.xlane.xlu1 %5339 }
 0x48b   :  { %v5367_v25 = vsub.f32 %v20787_v40, %v5349_v15  ;;  %v5364_v17 = vsub.f32 %v20785_v38, %v5340_v28  ;;  %v20902_v28 = vld [vmem:[%s22583_s10 + $0x13] ss:$0 sm:$0xff] }
 0x48c   :  { %v20847_v18 = vpop.eup %19291  ;;  %v3229_v60 = vadd.f32 %v20902_v28, %v20713_v1 }
 0x48d   :  { %v20849_v10 = vpop.eup %19293  ;;  %v5397_v39 = vmul.f32 1.442695, %v5367_v25  ;;  %v5391_v30 = vmul.f32 1.442695, %v5364_v17  ;;  %v5431_v32 = vsel %vm5304_vm2, %v20847_v18, 0.0 }
 0x48e   :  { %5432 = vadd.xlane.f32.xlu0 %v5431_v32  ;;  %v5422_v34 = vsel %vm5304_vm2, %v20849_v10, 0.0 }
 0x48f   :  { %19299 = vpow2.f32 %v5397_v39  ;;  %5423 = vadd.xlane.f32.xlu1 %v5422_v34  ;;  %v20908_v39 = vld [vmem:[%s22583_s10 + $0x16] ss:$0 sm:$0xff] }
 0x490   :  { %19301 = vpow2.f32 %v5391_v30  ;;  %v3439_v1 = vadd.f32 %v20908_v39, %v20715_v37 }
 0x492   :  { %v5346_v35 = vpop.xlane.xlu1 %5345 }
 0x493   :  { %v5366_v40 = vsub.f32 %v20793_v46, %v5346_v35  ;;  %v20919_v35 = vld [vmem:[%s22583_s10 + $0x15] ss:$0 sm:$0xff] }
 0x494   :  { %v20856_v38 = vpop.eup %19295  ;;  %v3369_v37 = vadd.f32 %v20919_v35, %v20717_v4 }
 0x495   :  { %v20858_v16 = vpop.eup %19297  ;;  %v5395_v45 = vmul.f32 1.442695, %v5366_v40  ;;  %v5437_v36 = vsel %vm5304_vm2, %v20856_v38, 0.0 }
 0x496   :  { %5438 = vadd.xlane.f32.xlu0 %v5437_v36  ;;  %v5428_v41 = vsel %vm5304_vm2, %v20858_v16, 0.0 }
 0x497   :  { %19303 = vpow2.f32 %v5395_v45  ;;  %5429 = vadd.xlane.f32.xlu1 %v5428_v41 }
 0x49a   :  { %v5352_v49 = vpop.xlane.xlu1 %5351 }
 0x49b   :  { %v5368_v24 = vsub.f32 %v20797_v50, %v5352_v49 }
 0x49c   :  { %v20865_v42 = vpop.eup %19299 }
 0x49d   :  { %v20867_v46 = vpop.eup %19301  ;;  %v5399_v44 = vmul.f32 1.442695, %v5368_v24  ;;  %v5443_v47 = vsel %vm5304_vm2, %v20865_v42, 0.0 }
 0x49e   :  { %5444 = vadd.xlane.f32.xlu0 %v5443_v47  ;;  %v5434_v29 = vsel %vm5304_vm2, %v20867_v46, 0.0 }
 0x49f   :  { %19305 = vpow2.f32 %v5399_v44  ;;  %5435 = vadd.xlane.f32.xlu1 %v5434_v29 }
 0x4a4   :  { %v20873_v57 = vpop.eup %19303 }
 0x4a5   :  { %v5440_v50 = vsel %vm5304_vm2, %v20873_v57, 0.0 }
 0x4a6   :  { %5441 = vadd.xlane.f32.xlu1 %v5440_v50 }
 0x4ac   :  { %v20877_v48 = vpop.eup %19305 }
 0x4ad   :  { %v5446_v52 = vsel %vm5304_vm2, %v20877_v48, 0.0 }
 0x4ae   :  { %5447 = vadd.xlane.f32.xlu1 %v5446_v52 }
 0x4ef   :  { %v5403_v53 = vpop.xlane.xlu0 %5402 }
 0x4f0   :  { %19307 = vrcp.f32 %v5403_v53 }
 0x4f7   :  { %v5409_v55 = vpop.xlane.xlu0 %5408 }
 0x4f8   :  { %19309 = vrcp.f32 %v5409_v55  ;;  %v3999_v55 = vadd.f32 %v20908_v39, %v20731_v11  ;;  %v21044_v39 = vld [vmem:[#allocation4 + $0x30] sm:$0xff] }
 0x4fd   :  { %v19308_v58 = vpop.eup %19307 }
 0x4fe   :  { %v5450_v5 = vmul.f32 %v19308_v58, %v20804_v2  ;;  %v3789_v58 = vadd.f32 %v20902_v28, %v20729_v27 }
 0x4ff   :  { %v5406_v59 = vpop.xlane.xlu1 %5405 }
 0x500   :  { %19311 = vrcp.f32 %v5406_v59  ;;  %18410 = vmatmul.mubr.msk.f32.vlgmr.msra.gmra.mxu1 %vm5304_vm2, %v5450_v5  ;;  %v3929_v59 = vadd.f32 %v20919_v35, %v20733_v31 }
 0x501   :  { %18418 = vmatpush3.msra.mxu1 %v3159_v3  ;;  %18419 = vmatprep.mubr.msk.f32.mxu1 %vm19984_vm1, %v19983_v0 }
 0x502   :  { %18427 = vmatprep.subr.mxu1 %v19983_v0 }
 0x503   :  { %v5415_v63 = vpop.xlane.xlu0 %5414 }
 0x504   :  { %19313 = vrcp.f32 %v5415_v63  ;;  %v21000_v63 = vld [vmem:[#allocation4] sm:$0xff] }
 0x505   :  { %v19310_v7 = vpop.eup %19309 }
 0x506   :  { %v5454_v2 = vmul.f32 %v19310_v7, %v20811_v20  ;;  %v21015_v7 = vld [vmem:[#allocation4 + $0x10] sm:$0xff] }
 0x507   :  { %v5421_v13 = vpop.xlane.xlu0 %5420 }
 0x508   :  { %19315 = vrcp.f32 %v5421_v13  ;;  %v5412_v15 = vpop.xlane.xlu1 %5411  ;;  %18420 = vmatmul.mubr.msk.f32.vlgmr.msra.gmra.mxu1 %vm5304_vm2, %v5454_v2  ;;  %v21019_v2 = vld [vmem:[#allocation4 + $0x28] sm:$0xff] }
 0x509   :  { %19317 = vrcp.f32 %v5412_v15  ;;  %18428 = vmatpush3.msra.mxu1 %v3299_v54  ;;  %18429 = vmatprep.mubr.msk.f32.mxu1 %vm19984_vm1, %v19983_v0  ;;  %v21022_v54 = vld [vmem:[#allocation4 + $0x20] sm:$0xff]  ;;  %v21030_v15 = vld [vmem:[#allocation4 + $0x48] sm:$0xff] }
 0x50a   :  { %18437 = vmatprep.subr.mxu1 %v19983_v0 }
 0x50d   :  { %v19312_v25 = vpop.eup %19311 }
 0x50e   :  { %v5452_v20 = vmul.f32 %v19312_v25, %v20817_v19  ;;  %v21033_v25 = vld [vmem:[#allocation4 + $0x40] sm:$0xff] }
 0x50f   :  { %v5427_v17 = vpop.xlane.xlu0 %5426 }
 0x510   :  { %19319 = vrcp.f32 %v5427_v17  ;;  %v5418_v30 = vpop.xlane.xlu1 %5417  ;;  %18415 = vmatmul.mubr.msk.f32.vlgmr.msra.gmra.mxu0 %vm5304_vm2, %v5452_v20 }
 0x511   :  { %v19314_v32 = vpop.eup %19313  ;;  %19321 = vrcp.f32 %v5418_v30  ;;  %18423 = vmatpush3.msra.mxu0 %v3229_v60  ;;  %18424 = vmatprep.mubr.msk.f32.mxu0 %vm19984_vm1, %v19983_v0  ;;  %v21041_v60 = vld [vmem:[#allocation4 + $0x38] sm:$0xff] }
 0x512   :  { %v5458_v34 = vmul.f32 %v19314_v32, %v20821_v43  ;;  %18432 = vmatprep.subr.mxu0 %v19983_v0  ;;  %v21049_v32 = vld [vmem:[#allocation4 + $0x68] sm:$0xff] }
 0x514   :  { %18430 = vmatmul.mubr.msk.f32.vlgmr.msra.gmra.mxu1 %vm5304_vm2, %v5458_v34 }
 0x515   :  { %v19316_v19 = vpop.eup %19315  ;;  %18438 = vmatpush3.msra.mxu1 %v3439_v1  ;;  %18439 = vmatprep.mubr.msk.f32.mxu1 %vm19984_vm1, %v19983_v0  ;;  %v21054_v1 = vld [vmem:[#allocation4 + $0x60] sm:$0xff] }
 0x516   :  { %v19318_v40 = vpop.eup %19317  ;;  %18447 = vmatprep.subr.mxu1 %v19983_v0  ;;  %v5462_v45 = vmul.f32 %v19316_v19, %v20827_v23  ;;  %v20938_v23 = vld [vmem:[%s22583_s10 + $0x17] ss:$0 sm:$0xff] }
 0x517   :  { %v5433_v43 = vpop.xlane.xlu0 %5432  ;;  %v5456_v36 = vmul.f32 %v19318_v40, %v20829_v51  ;;  %v3509_v47 = vadd.f32 %v20938_v23, %v20721_v9  ;;  %v21062_v40 = vld [vmem:[#allocation4 + $0x58] sm:$0xff] }
 0x518   :  { %19323 = vrcp.f32 %v5433_v43  ;;  %v5424_v41 = vpop.xlane.xlu1 %5423  ;;  %18440 = vmatmul.mubr.msk.f32.vlgmr.msra.gmra.mxu1 %vm5304_vm2, %v5462_v45 }
 0x519   :  { %19325 = vrcp.f32 %v5424_v41  ;;  %18425 = vmatmul.mubr.msk.f32.vlgmr.msra.gmra.mxu0 %vm5304_vm2, %v5456_v36  ;;  %18448 = vmatpush3.msra.mxu1 %v20719_v6  ;;  %v3719_v6 = vadd.f32 %v20882_v56, %v20723_v12  ;;  %v21068_v36 = vld [vmem:[#allocation4 + $0x50] sm:$0xff] }
 0x51a   :  { %18433 = vmatpush3.msra.mxu0 %v3369_v37  ;;  %18449 = vmatprep.mubr.msk.f32.mxu1 %vm19984_vm1, %v19983_v0 }
 0x51b   :  { %18457 = vmatprep.subr.mxu1 %v19983_v0  ;;  %18434 = vmatprep.mubr.msk.f32.mxu0 %vm19984_vm1, %v19983_v0 }
 0x51c   :  { %18442 = vmatprep.subr.mxu0 %v19983_v0 }
 0x51d   :  { %v19320_v4 = vpop.eup %19319 }
 0x51e   :  { %v19322_v51 = vpop.eup %19321  ;;  %v5466_v49 = vmul.f32 %v19320_v4, %v20837_v61  ;;  %v6664_v4 = vld [vmem:[#allocation4 + $0x78] sm:$0xff] }
 0x51f   :  { %v5439_v24 = vpop.xlane.xlu0 %5438  ;;  %v5460_v44 = vmul.f32 %v19322_v51, %v20839_v62  ;;  %v3859_v62 = vadd.f32 %v20892_v8, %v20725_v21 }
 0x520   :  { %19327 = vrcp.f32 %v5439_v24  ;;  %v5430_v29 = vpop.xlane.xlu1 %5429  ;;  %18450 = vmatmul.mubr.msk.f32.vlgmr.msra.gmra.mxu1 %vm5304_vm2, %v5466_v49  ;;  %v6663_v49 = vld [vmem:[#allocation4 + $0x70] sm:$0xff] }
 0x521   :  { %19329 = vrcp.f32 %v5430_v29  ;;  %18435 = vmatmul.mubr.msk.f32.vlgmr.msra.gmra.mxu0 %vm5304_vm2, %v5460_v44  ;;  %18458 = vmatpush3.msra.mxu1 %v3719_v6 }
 0x522   :  { %18443 = vmatpush3.msra.mxu0 %v3509_v47  ;;  %18459 = vmatprep.mubr.msk.f32.mxu1 %vm19984_vm1, %v19983_v0 }
 0x523   :  { %18467 = vmatprep.subr.mxu1 %v19983_v0  ;;  %18444 = vmatprep.mubr.msk.f32.mxu0 %vm19984_vm1, %v19983_v0 }
 0x524   :  { %18452 = vmatprep.subr.mxu0 %v19983_v0 }
 0x525   :  { %v19324_v9 = vpop.eup %19323 }
 0x526   :  { %v19326_v12 = vpop.eup %19325  ;;  %v5470_v61 = vmul.f32 %v19324_v9, %v20847_v18 }
 0x527   :  { %v5445_v50 = vpop.xlane.xlu0 %5444  ;;  %v5464_v52 = vmul.f32 %v19326_v12, %v20849_v10 }
 0x528   :  { %19331 = vrcp.f32 %v5445_v50  ;;  %v5436_v53 = vpop.xlane.xlu1 %5435  ;;  %18460 = vmatmul.mubr.msk.f32.vlgmr.msra.gmra.mxu1 %vm5304_vm2, %v5470_v61 }
 0x529   :  { %19333 = vrcp.f32 %v5436_v53  ;;  %18445 = vmatmul.mubr.msk.f32.vlgmr.msra.gmra.mxu0 %vm5304_vm2, %v5464_v52  ;;  %18468 = vmatpush3.msra.mxu1 %v3859_v62 }
 0x52a   :  { %18453 = vmatpush3.msra.mxu0 %v20727_v22  ;;  %18454 = vmatprep.mubr.msk.f32.mxu0 %vm19984_vm1, %v19983_v0 }
 0x52b   :  { %18462 = vmatprep.subr.mxu0 %v19983_v0  ;;  %18469 = vmatprep.mubr.msk.f32.mxu1 %vm19984_vm1, %v19983_v0 }
 0x52c   :  { %18477 = vmatprep.subr.mxu1 %v19983_v0 }
 0x52d   :  { %v19328_v21 = vpop.eup %19327 }
 0x52e   :  { %v19330_v18 = vpop.eup %19329  ;;  %v5474_v10 = vmul.f32 %v19328_v21, %v20856_v38 }
 0x52f   :  { %v5442_v56 = vpop.xlane.xlu1 %5441  ;;  %v5468_v22 = vmul.f32 %v19330_v18, %v20858_v16  ;;  %v20982_v16 = vld [vmem:[#allocation4 + $0x8] sm:$0xff] }
 0x530   :  { %19335 = vrcp.f32 %v5442_v56  ;;  %18470 = vmatmul.mubr.msk.f32.vlgmr.msra.gmra.mxu1 %vm5304_vm2, %v5474_v10 }
 0x531   :  { %18455 = vmatmul.mubr.msk.f32.vlgmr.msra.gmra.mxu0 %vm5304_vm2, %v5468_v22  ;;  %18478 = vmatpush3.msra.mxu1 %v3999_v55 }
 0x532   :  { %18463 = vmatpush3.msra.mxu0 %v3789_v58  ;;  %18464 = vmatprep.mubr.msk.f32.mxu0 %vm19984_vm1, %v19983_v0 }
 0x533   :  { %18472 = vmatprep.subr.mxu0 %v19983_v0  ;;  %18479 = vmatprep.mubr.msk.f32.mxu1 %vm19984_vm1, %v19983_v0 }
 0x534   :  { %18487 = vmatprep.subr.mxu1 %v19983_v0 }
 0x535   :  { %v19332_v11 = vpop.eup %19331 }
 0x536   :  { %v19334_v38 = vpop.eup %19333  ;;  %v5478_v27 = vmul.f32 %v19332_v11, %v20865_v42 }
 0x537   :  { %v5448_v5 = vpop.xlane.xlu1 %5447  ;;  %v5472_v3 = vmul.f32 %v19334_v38, %v20867_v46  ;;  %v4069_v46 = vadd.f32 %v20938_v23, %v20735_v33  ;;  %v21011_v33 = vld [vmem:[#allocation4 + $0x18] sm:$0xff] }
 0x538   :  { %19337 = vrcp.f32 %v5448_v5  ;;  %18480 = vmatmul.mubr.msk.f32.vlgmr.msra.gmra.mxu1 %vm5304_vm2, %v5478_v27 }
 0x539   :  { %18465 = vmatmul.mubr.msk.f32.vlgmr.msra.gmra.mxu0 %vm5304_vm2, %v5472_v3  ;;  %18488 = vmatpush3.msra.mxu1 %v20982_v16 }
 0x53a   :  { %18473 = vmatpush3.msra.mxu0 %v3929_v59  ;;  %18474 = vmatprep.mubr.msk.f32.mxu0 %vm19984_vm1, %v19983_v0 }
 0x53b   :  { %18482 = vmatprep.subr.mxu0 %v19983_v0  ;;  %18489 = vmatprep.subr.mxu1 %v19983_v0 }
 0x53c   :  { %18491 = vmatprep.mubr.msk.f32.mxu1 %vm19984_vm1, %v19983_v0  ;;  %18490 = vmatpush3.msra.mxu1 %v21000_v63 }
 0x53d   :  { %v19336_v42 = vpop.eup %19335  ;;  %18501 = vmatprep.subr.mxu1 %v19983_v0 }
 0x53e   :  { %v5476_v31 = vmul.f32 %v19336_v42, %v20873_v57 }
 0x540   :  { %18475 = vmatmul.mubr.msk.f32.vlgmr.msra.gmra.mxu0 %vm5304_vm2, %v5476_v31 }
 0x541   :  { %18483 = vmatpush3.msra.mxu0 %v4069_v46  ;;  %18484 = vmatprep.mubr.msk.f32.mxu0 %vm19984_vm1, %v19983_v0 }
 0x542   :  { %18494 = vmatprep.subr.mxu0 %v19983_v0 }
 0x545   :  { %v19338_v8 = vpop.eup %19337 }
 0x546   :  { %v5480_v57 = vmul.f32 %v19338_v8, %v20877_v48 }
 0x548   :  { %18485 = vmatmul.mubr.msk.f32.vlgmr.msra.gmra.mxu0 %vm5304_vm2, %v5480_v57 }
 0x549   :  { %18498 = vmatprep.mubr.msk.f32.mxu0 %vm19984_vm1, %v19983_v0  ;;  %18495 = vmatpush3.msra.mxu0 %v21011_v33 }
 0x54a   :  { %18496 = vmatprep.subr.mxu0 %v19983_v0 }
 0x54b   :  { %18497 = vmatpush3.msra.mxu0 %v21015_v7 }
 0x54c   :  { %18508 = vmatprep.subr.mxu0 %v19983_v0 }
 0x5c0   :  { %v5550_v48 = vpop.f32.mrf.mxu1 }
 0x5c1   :  { %18492 = vmatmul.mubr.msk.f32.vlgmr.msra.gmra.mxu1 %vm407_vm0, %v5550_v48 }
 0x5c2   :  { %v18411_v13 = vpop.f32.mrf.mxu1  ;;  %18502 = vmatpush3.msra.mxu1 %v21019_v2  ;;  %18505 = vmatprep.mubr.msk.f32.mxu1 %vm19984_vm1, %v19983_v0 }
 0x5c3   :  { %18503 = vmatprep.subr.mxu1 %v19983_v0 }
 0x5c4   :  { %18504 = vmatpush3.msra.mxu1 %v21022_v54 }
 0x5c5   :  { %18515 = vmatprep.subr.mxu1 %v19983_v0 }
 0x5c8   :  { %v5696_v28 = vpop.f32.mrf.mxu1 }
 0x5c9   :  { %18506 = vmatmul.mubr.msk.f32.vlgmr.msra.gmra.mxu1 %vm407_vm0, %v5696_v28 }
 0x5ca   :  { %v18421_v20 = vpop.f32.mrf.mxu1  ;;  %18516 = vmatpush3.msra.mxu1 %v21030_v15  ;;  %18519 = vmatprep.mubr.msk.f32.mxu1 %vm19984_vm1, %v19983_v0 }
 0x5cb   :  { %18517 = vmatprep.subr.mxu1 %v19983_v0  ;;  %v17194_v20 = vld [vmem:[#allocation6] ss:$0 sm:$0xff] }
 0x5cc   :  { %18518 = vmatpush3.msra.mxu1 %v21033_v25 }
 0x5cd   :  { %18529 = vmatprep.subr.mxu1 %v19983_v0 }
 0x5d0   :  { %v5623_v17 = vpop.f32.mrf.mxu0 }
 0x5d1   :  { %18499 = vmatmul.mubr.msk.f32.vlgmr.msra.gmra.mxu0 %vm407_vm0, %v5623_v17 }
 0x5d2   :  { %v18416_v30 = vpop.f32.mrf.mxu0  ;;  %18509 = vmatpush3.msra.mxu0 %v21041_v60  ;;  %18512 = vmatprep.mubr.msk.f32.mxu0 %vm19984_vm1, %v19983_v0 }
 0x5d3   :  { %18510 = vmatprep.subr.mxu0 %v19983_v0 }
 0x5d4   :  { %v5842_v34 = vpop.f32.mrf.mxu1  ;;  %18511 = vmatpush3.msra.mxu0 %v21044_v39 }
 0x5d5   :  { %18520 = vmatmul.mubr.msk.f32.vlgmr.msra.gmra.mxu1 %vm407_vm0, %v5842_v34  ;;  %18522 = vmatprep.subr.mxu0 %v19983_v0 }
 0x5d6   :  { %v18431_v19 = vpop.f32.mrf.mxu1  ;;  %18530 = vmatpush3.msra.mxu1 %v21049_v32  ;;  %18533 = vmatprep.mubr.msk.f32.mxu1 %vm19984_vm1, %v19983_v0 }
 0x5d7   :  { %18531 = vmatprep.subr.mxu1 %v19983_v0 }
 0x5d8   :  { %v5988_v35 = vpop.f32.mrf.mxu1  ;;  %18532 = vmatpush3.msra.mxu1 %v21054_v1 }
 0x5d9   :  { %v5769_v45 = vpop.f32.mrf.mxu0  ;;  %18534 = vmatmul.mubr.msk.f32.vlgmr.msra.gmra.mxu1 %vm407_vm0, %v5988_v35  ;;  %18543 = vmatprep.subr.mxu1 %v19983_v0 }
 0x5da   :  { %18513 = vmatmul.mubr.msk.f32.vlgmr.msra.gmra.mxu0 %vm407_vm0, %v5769_v45  ;;  %v18441_v43 = vpop.f32.mrf.mxu1  ;;  %18544 = vmatpush3.msra.mxu1 %v20982_v16 }
 0x5db   :  { %v18426_v37 = vpop.f32.mrf.mxu0  ;;  %18523 = vmatpush3.msra.mxu0 %v21062_v40  ;;  %18545 = vmatprep.subr.mxu1 %v19983_v0 }
 0x5dc   :  { %18524 = vmatprep.subr.mxu0 %v19983_v0  ;;  %18526 = vmatprep.mubr.msk.f32.mxu0 %vm19984_vm1, %v19983_v0 }
 0x5dd   :  { %18525 = vmatpush3.msra.mxu0 %v21068_v36  ;;  %18546 = vmatpush3.msra.mxu1 %v21000_v63 }
 0x5de   :  { %18547 = vmatprep.mubr.msk.f32.mxu1 %vm19984_vm1, %v19983_v0  ;;  %18536 = vmatprep.subr.mxu0 %v19983_v0 }
 0x5df   :  { %18557 = vmatprep.subr.mxu1 %v19983_v0 }
 0x5e0   :  { %v6134_v41 = vpop.f32.mrf.mxu1 }
 0x5e1   :  { %v5915_v23 = vpop.f32.mrf.mxu0  ;;  %18548 = vmatmul.mubr.msk.f32.vlgmr.msra.gmra.mxu1 %vm407_vm0, %v6134_v41 }
 0x5e2   :  { %18527 = vmatmul.mubr.msk.f32.vlgmr.msra.gmra.mxu0 %vm407_vm0, %v5915_v23  ;;  %v18451_v51 = vpop.f32.mrf.mxu1  ;;  %18558 = vmatpush3.msra.mxu1 %v21019_v2 }
 0x5e3   :  { %v18436_v6 = vpop.f32.mrf.mxu0  ;;  %18537 = vmatpush3.msra.mxu0 %v6664_v4  ;;  %18559 = vmatprep.subr.mxu1 %v19983_v0 }
 0x5e4   :  { %18538 = vmatprep.subr.mxu0 %v19983_v0  ;;  %18540 = vmatprep.mubr.msk.f32.mxu0 %vm19984_vm1, %v19983_v0 }
 0x5e5   :  { %18539 = vmatpush3.msra.mxu0 %v6663_v49  ;;  %18560 = vmatpush3.msra.mxu1 %v21022_v54 }
 0x5e6   :  { %18561 = vmatprep.mubr.msk.f32.mxu1 %vm19984_vm1, %v19983_v0  ;;  %18550 = vmatprep.subr.mxu0 %v19983_v0 }
 0x5e7   :  { %18571 = vmatprep.subr.mxu1 %v19983_v0 }
 0x5e8   :  { %v6280_v24 = vpop.f32.mrf.mxu1 }
 0x5e9   :  { %v6061_v44 = vpop.f32.mrf.mxu0  ;;  %18562 = vmatmul.mubr.msk.f32.vlgmr.msra.gmra.mxu1 %vm407_vm0, %v6280_v24 }
 0x5ea   :  { %18541 = vmatmul.mubr.msk.f32.vlgmr.msra.gmra.mxu0 %vm407_vm0, %v6061_v44  ;;  %v18461_v47 = vpop.f32.mrf.mxu1  ;;  %18572 = vmatpush3.msra.mxu1 %v21030_v15 }
 0x5eb   :  { %v18446_v29 = vpop.f32.mrf.mxu0  ;;  %18551 = vmatpush3.msra.mxu0 %v21011_v33  ;;  %18573 = vmatprep.subr.mxu1 %v19983_v0 }
 0x5ec   :  { %18552 = vmatprep.subr.mxu0 %v19983_v0  ;;  %18554 = vmatprep.mubr.msk.f32.mxu0 %vm19984_vm1, %v19983_v0 }
 0x5ed   :  { %18553 = vmatpush3.msra.mxu0 %v21015_v7  ;;  %18574 = vmatpush3.msra.mxu1 %v21033_v25 }
 0x5ee   :  { %18575 = vmatprep.mubr.msk.f32.mxu1 %vm19984_vm1, %v19983_v0  ;;  %18564 = vmatprep.subr.mxu0 %v19983_v0 }
 0x5ef   :  { %18585 = vmatprep.subr.mxu1 %v19983_v0 }
 0x5f0   :  { %v6426_v9 = vpop.f32.mrf.mxu1 }
 0x5f1   :  { %v6207_v12 = vpop.f32.mrf.mxu0  ;;  %18576 = vmatmul.mubr.msk.f32.vlgmr.msra.gmra.mxu1 %vm407_vm0, %v6426_v9 }
 0x5f2   :  { %18555 = vmatmul.mubr.msk.f32.vlgmr.msra.gmra.mxu0 %vm407_vm0, %v6207_v12  ;;  %v18471_v61 = vpop.f32.mrf.mxu1  ;;  %18586 = vmatpush3.msra.mxu1 %v21049_v32  ;;  %v7960_v12 = vld [vmem:[%s22584_s19 + $0x1e8] sm:$0xff] }
 0x5f3   :  { %v18456_v62 = vpop.f32.mrf.mxu0  ;;  %18565 = vmatpush3.msra.mxu0 %v21041_v60  ;;  %18587 = vmatprep.subr.mxu1 %v19983_v0  ;;  %v7962_v61 = vld [vmem:[%s22584_s19 + $0x1f8] sm:$0xff] }
 0x5f4   :  { %18566 = vmatprep.subr.mxu0 %v19983_v0  ;;  %18568 = vmatprep.mubr.msk.f32.mxu0 %vm19984_vm1, %v19983_v0  ;;  %v7959_v62 = vld [vmem:[%s22584_s19 + $0x1e0] sm:$0xff] }
 0x5f5   :  { %18567 = vmatpush3.msra.mxu0 %v21044_v39  ;;  %18588 = vmatpush3.msra.mxu1 %v21054_v1 }
 0x5f6   :  { %18589 = vmatprep.mubr.msk.f32.mxu1 %vm19984_vm1, %v19983_v0  ;;  %18578 = vmatprep.subr.mxu0 %v19983_v0 }
 0x5f7   :  { %7985 = vmatprep.subr.mxu1 %v7960_v12  ;;  %v7909_v12 = vld [vmem:[%s22584_s19 + $0x50] sm:$0xff] }
 0x5f8   :  { %v6572_v50 = vpop.f32.mrf.mxu1 }
 0x5f9   :  { %v6353_v52 = vpop.f32.mrf.mxu0  ;;  %18590 = vmatmul.mubr.msk.f32.vlgmr.msra.gmra.mxu1 %vm407_vm0, %v6572_v50  ;;  %v7961_v50 = vld [vmem:[%s22584_s19 + $0x1f0] sm:$0xff] }
 0x5fa   :  { %18569 = vmatmul.mubr.msk.f32.vlgmr.msra.gmra.mxu0 %vm407_vm0, %v6353_v52  ;;  %v18481_v53 = vpop.f32.mrf.mxu1  ;;  %8049 = vmatprep.mubr.f32.mxu1 %v19983_v0  ;;  %v7956_v52 = vld [vmem:[%s22584_s19 + $0x1c8] sm:$0xff] }
 0x5fb   :  { %v18466_v21 = vpop.f32.mrf.mxu0  ;;  %18579 = vmatpush3.msra.mxu0 %v21062_v40  ;;  %18582 = vmatprep.mubr.msk.f32.mxu0 %vm19984_vm1, %v19983_v0  ;;  %v7958_v53 = vld [vmem:[%s22584_s19 + $0x1d8] sm:$0xff] }
 0x5fc   :  { %18580 = vmatprep.subr.mxu0 %v19983_v0  ;;  %7986 = vmatpush1.msra.mxu1 %v7959_v62  ;;  %v7957_v21 = vld [vmem:[%s22584_s19 + $0x1d0] sm:$0xff] }
 0x5fd   :  { %18581 = vmatpush3.msra.mxu0 %v21068_v36  ;;  %7987 = vmatprep.subr.mxu1 %v7956_v52  ;;  %v7903_v52 = vld [vmem:[%s22584_s19 + $0x20] sm:$0xff] }
 0x5fe   :  { %18592 = vmatprep.subr.mxu0 %v19983_v0 }
 0x600   :  { %v6499_v18 = vpop.f32.mrf.mxu0 }
 0x601   :  { %18583 = vmatmul.mubr.msk.f32.vlgmr.msra.gmra.mxu0 %vm407_vm0, %v6499_v18  ;;  %v7952_v18 = vld [vmem:[%s22584_s19 + $0x1a8] sm:$0xff] }
 0x602   :  { %v18476_v10 = vpop.f32.mrf.mxu0  ;;  %18593 = vmatpush3.msra.mxu0 %v6664_v4  ;;  %18596 = vmatprep.mubr.msk.f32.mxu0 %vm19984_vm1, %v19983_v0 }
 0x603   :  { %18594 = vmatprep.subr.mxu0 %v19983_v0  ;;  %v7954_v10 = vld [vmem:[%s22584_s19 + $0x1b8] sm:$0xff] }
 0x604   :  { %18595 = vmatpush3.msra.mxu0 %v6663_v49 }
 0x605   :  { %8062 = vmatprep.subr.mxu0 %v7962_v61  ;;  %v7904_v61 = vld [vmem:[%s22584_s19 + $0x28] sm:$0xff] }
 0x608   :  { %v6645_v55 = vpop.f32.mrf.mxu0 }
 0x609   :  { %18597 = vmatmul.mubr.msk.f32.vlgmr.msra.gmra.mxu0 %vm407_vm0, %v6645_v55  ;;  %v7951_v55 = vld [vmem:[%s22584_s19 + $0x1a0] sm:$0xff] }
 0x60a   :  { %v18486_v56 = vpop.f32.mrf.mxu0  ;;  %8126 = vmatprep.mubr.f32.mxu0 %v19983_v0  ;;  %8063 = vmatpush1.msra.mxu0 %v7961_v50  ;;  %v7906_v50 = vld [vmem:[%s22584_s19 + $0x38] sm:$0xff] }
 0x60b   :  { %8064 = vmatprep.subr.mxu0 %v7958_v53  ;;  %v7953_v56 = vld [vmem:[%s22584_s19 + $0x1b0] sm:$0xff] }
 0x60c   :  { %8065 = vmatpush1.msra.mxu0 %v7957_v21  ;;  %v7905_v53 = vld [vmem:[%s22584_s19 + $0x30] sm:$0xff]  ;;  %v7899_v21 = vld [vmem:[%s22584_s19] sm:$0xff] }
 0x60d   :  { %8066 = vmatprep.subr.mxu0 %v7954_v10 }
 0x60e   :  { %8067 = vmatpush1.msra.mxu0 %v7953_v56 }
 0x681   :  { %v6734_v22 = vpop.f32.mrf.mxu1 }
 0x683   :  { %v18493_v58 = vpop.f32.mrf.mxu1 }
 0x684   :  { %v7950_v58 = vld [vmem:[%s22584_s19 + $0x198] sm:$0xff] }
 0x685   :  { %8068 = vmatprep.subr.mxu0 %v7950_v58  ;;  %v17195_v58 = vld [vmem:[#allocation7] ss:$0 sm:$0xff] }
 0x689   :  { %v6880_v11 = vpop.f32.mrf.mxu1 }
 0x68b   :  { %v18507_v38 = vpop.f32.mrf.mxu1 }
 0x68c   :  { %v7949_v38 = vld [vmem:[%s22584_s19 + $0x190] sm:$0xff] }
 0x68d   :  { %8069 = vmatpush1.msra.mxu0 %v7949_v38  ;;  %v17196_v38 = vld [vmem:[#allocation9] ss:$0 sm:$0xff] }
 0x691   :  { %v6807_v27 = vpop.f32.mrf.mxu0 }
 0x692   :  { %v7833_v59 = vadd.f32 %v6807_v27, %v6734_v22  ;;  %v7948_v22 = vld [vmem:[%s22584_s19 + $0x188] sm:$0xff] }
 0x693   :  { %v18500_v16 = vpop.f32.mrf.mxu0 }
 0x694   :  { %v7835_v8 = vadd.f32 %v7833_v59, %v6880_v11  ;;  %v7947_v11 = vld [vmem:[%s22584_s19 + $0x180] sm:$0xff]  ;;  %v7944_v59 = vld [vmem:[%s22584_s19 + $0x168] sm:$0xff] }
 0x695   :  { %v7026_v5 = vpop.f32.mrf.mxu1 }
 0x697   :  { %v18521_v3 = vpop.f32.mrf.mxu1 }
 0x699   :  { %v7172_v42 = vpop.f32.mrf.mxu1 }
 0x69a   :  { %v6953_v31 = vpop.f32.mrf.mxu0 }
 0x69b   :  { %v18535_v46 = vpop.f32.mrf.mxu1  ;;  %v7837_v57 = vadd.f32 %v7835_v8, %v6953_v31  ;;  %v7943_v31 = vld [vmem:[%s22584_s19 + $0x160] sm:$0xff]  ;;  %v7942_v8 = vld [vmem:[%s22584_s19 + $0x158] sm:$0xff] }
 0x69c   :  { %v18514_v63 = vpop.f32.mrf.mxu0  ;;  %v7945_v46 = vld [vmem:[%s22584_s19 + $0x170] sm:$0xff] }
 0x69d   :  { %v7839_v2 = vadd.f32 %v7837_v57, %v7026_v5  ;;  %v7940_v63 = vld [vmem:[%s22584_s19 + $0x148] sm:$0xff]  ;;  %v7939_v57 = vld [vmem:[%s22584_s19 + $0x140] sm:$0xff] }
 0x6a1   :  { %v7318_v33 = vpop.f32.mrf.mxu1 }
 0x6a2   :  { %v7099_v7 = vpop.f32.mrf.mxu0 }
 0x6a3   :  { %v18549_v48 = vpop.f32.mrf.mxu1  ;;  %v7841_v13 = vadd.f32 %v7839_v2, %v7099_v7  ;;  %v7936_v7 = vld [vmem:[%s22584_s19 + $0x128] sm:$0xff]  ;;  %v7938_v2 = vld [vmem:[%s22584_s19 + $0x138] sm:$0xff] }
 0x6a4   :  { %v18528_v54 = vpop.f32.mrf.mxu0  ;;  %v7935_v48 = vld [vmem:[%s22584_s19 + $0x120] sm:$0xff] }
 0x6a5   :  { %v7843_v15 = vadd.f32 %v7841_v13, %v7172_v42  ;;  %v7946_v42 = vld [vmem:[%s22584_s19 + $0x178] sm:$0xff]  ;;  %v7937_v54 = vld [vmem:[%s22584_s19 + $0x130] sm:$0xff]  ;;  %v7932_v13 = vld [vmem:[%s22584_s19 + $0x108] sm:$0xff] }
 0x6a6   :  { %8070 = vmatprep.subr.mxu0 %v7946_v42 }
 0x6a7   :  { %8071 = vmatpush1.msra.mxu0 %v7945_v46 }
 0x6a8   :  { %8072 = vmatprep.subr.mxu0 %v7942_v8  ;;  %v8386_v8 = vld [vmem:[#allocation12 + $0xf8] sm:$0xff] }
 0x6a9   :  { %v7464_v28 = vpop.f32.mrf.mxu1 }
 0x6aa   :  { %v7245_v25 = vpop.f32.mrf.mxu0 }
 0x6ab   :  { %v7845_v60 = vadd.f32 %v7843_v15, %v7245_v25  ;;  %v18563_v17 = vpop.f32.mrf.mxu1  ;;  %v7934_v15 = vld [vmem:[%s22584_s19 + $0x118] sm:$0xff]  ;;  %v7933_v25 = vld [vmem:[%s22584_s19 + $0x110] sm:$0xff] }
 0x6ac   :  { %v18542_v39 = vpop.f32.mrf.mxu0  ;;  %v7927_v17 = vld [vmem:[%s22584_s19 + $0xe0] sm:$0xff] }
 0x6ad   :  { %v7854_v30 = vadd.f32 %v17194_v20, %v7845_v60  ;;  %v7930_v60 = vld [vmem:[%s22584_s19 + $0xf8] sm:$0xff]  ;;  %v7929_v39 = vld [vmem:[%s22584_s19 + $0xf0] sm:$0xff] }
 0x6af   :  { %v7856_v32 = vadd.f32 %v7854_v30, %v20227_v14  ;;  %v7924_v30 = vld [vmem:[%s22584_s19 + $0xc8] sm:$0xff] }
 0x6b1   :  { %7860 = vadd.xlane.f32.xlu0 %v7856_v32  ;;  %v7610_v34 = vpop.f32.mrf.mxu1 }
 0x6b2   :  { %v7391_v1 = vpop.f32.mrf.mxu0 }
 0x6b3   :  { %v18577_v19 = vpop.f32.mrf.mxu1  ;;  %v7834_v40 = vadd.f32 %v7391_v1, %v7318_v33  ;;  %v7941_v33 = vld [vmem:[%s22584_s19 + $0x150] sm:$0xff] }
 0x6b4   :  { %v18556_v35 = vpop.f32.mrf.mxu0  ;;  %8073 = vmatpush1.msra.mxu0 %v7941_v33  ;;  %v7925_v1 = vld [vmem:[%s22584_s19 + $0xd0] sm:$0xff]  ;;  %v7920_v19 = vld [vmem:[%s22584_s19 + $0xa8] sm:$0xff] }
 0x6b5   :  { %v7836_v37 = vadd.f32 %v7834_v40, %v7464_v28  ;;  %8074 = vmatprep.subr.mxu0 %v7938_v2  ;;  %v7931_v28 = vld [vmem:[%s22584_s19 + $0x100] sm:$0xff]  ;;  %v7922_v35 = vld [vmem:[%s22584_s19 + $0xb8] sm:$0xff] }
 0x6b6   :  { %8075 = vmatpush1.msra.mxu0 %v7937_v54  ;;  %v7919_v40 = vld [vmem:[%s22584_s19 + $0xa0] sm:$0xff] }
 0x6b7   :  { %8076 = vmatprep.subr.mxu0 %v7934_v15  ;;  %v8370_v33 = vld [vmem:[#allocation12 + $0x78] sm:$0xff]  ;;  %v8385_v2 = vld [vmem:[#allocation12 + $0xf0] sm:$0xff]  ;;  %v8384_v15 = vld [vmem:[#allocation12 + $0xe8] sm:$0xff] }
 0x6b8   :  { %8077 = vmatpush1.msra.mxu0 %v7933_v25  ;;  %v8369_v54 = vld [vmem:[#allocation12 + $0x70] sm:$0xff]  ;;  %v8368_v25 = vld [vmem:[#allocation12 + $0x68] sm:$0xff] }
 0x6b9   :  { %v7756_v45 = vpop.f32.mrf.mxu1  ;;  %8078 = vmatprep.subr.mxu0 %v7930_v60  ;;  %v8383_v60 = vld [vmem:[#allocation12 + $0xe0] sm:$0xff] }
 0x6ba   :  { %v7537_v43 = vpop.f32.mrf.mxu0  ;;  %8079 = vmatpush1.msra.mxu0 %v7929_v39  ;;  %v8367_v39 = vld [vmem:[#allocation12 + $0x60] sm:$0xff] }
 0x6bb   :  { %v18591_v36 = vpop.f32.mrf.mxu1  ;;  %v7838_v4 = vadd.f32 %v7836_v37, %v7537_v43  ;;  %v7916_v43 = vld [vmem:[%s22584_s19 + $0x88] sm:$0xff]  ;;  %v7915_v37 = vld [vmem:[%s22584_s19 + $0x80] sm:$0xff] }
 0x6bc   :  { %v18570_v41 = vpop.f32.mrf.mxu0  ;;  %v7918_v36 = vld [vmem:[%s22584_s19 + $0x98] sm:$0xff] }
 0x6bd   :  { %v7840_v51 = vadd.f32 %v7838_v4, %v7610_v34  ;;  %v7923_v34 = vld [vmem:[%s22584_s19 + $0xc0] sm:$0xff]  ;;  %v7917_v41 = vld [vmem:[%s22584_s19 + $0x90] sm:$0xff] }
 0x6c1   :  { %v7683_v23 = vpop.f32.mrf.mxu0 }
 0x6c2   :  { %v7842_v49 = vadd.f32 %v7840_v51, %v7683_v23  ;;  %v7912_v23 = vld [vmem:[%s22584_s19 + $0x68] sm:$0xff]  ;;  %v7914_v51 = vld [vmem:[%s22584_s19 + $0x78] sm:$0xff] }
 0x6c3   :  { %v18584_v14 = vpop.f32.mrf.mxu0 }
 0x6c4   :  { %v7844_v6 = vadd.f32 %v7842_v49, %v7756_v45  ;;  %v7921_v45 = vld [vmem:[%s22584_s19 + $0xb0] sm:$0xff]  ;;  %v7911_v49 = vld [vmem:[%s22584_s19 + $0x60] sm:$0xff] }
 0x6c9   :  { %v7829_v24 = vpop.f32.mrf.mxu0 }
 0x6ca   :  { %v7846_v44 = vadd.f32 %v7844_v6, %v7829_v24  ;;  %v7913_v6 = vld [vmem:[%s22584_s19 + $0x70] sm:$0xff]  ;;  %v7908_v24 = vld [vmem:[%s22584_s19 + $0x48] sm:$0xff] }
 0x6cb   :  { %v18598_v47 = vpop.f32.mrf.mxu0 }
 0x6cc   :  { %v7855_v29 = vadd.f32 %v17194_v20, %v7846_v44  ;;  %v7928_v20 = vld [vmem:[%s22584_s19 + $0xe8] sm:$0xff]  ;;  %v7910_v44 = vld [vmem:[%s22584_s19 + $0x58] sm:$0xff] }
 0x6ce   :  { %v21137_v9 = vadd.f32 %v7855_v29, %v20263_v26  ;;  %v7955_v26 = vld [vmem:[%s22584_s19 + $0x1c0] sm:$0xff] }
 0x6cf   :  { %7988 = vmatpush1.msra.mxu1 %v7955_v26  ;;  %v7907_v29 = vld [vmem:[%s22584_s19 + $0x40] sm:$0xff]  ;;  %v7902_v26 = vld [vmem:[%s22584_s19 + $0x18] sm:$0xff] }
 0x6d0   :  { %7862 = vadd.xlane.f32.xlu1 %v21137_v9  ;;  %7989 = vmatprep.subr.mxu1 %v7952_v18  ;;  %v7901_v18 = vld [vmem:[%s22584_s19 + $0x10] sm:$0xff] }
 0x6d1   :  { %7990 = vmatpush1.msra.mxu1 %v7951_v55 }
 0x6d2   :  { %7991 = vmatprep.subr.mxu1 %v7948_v22 }
 0x6d3   :  { %7992 = vmatpush1.msra.mxu1 %v7947_v11 }
 0x6d4   :  { %7993 = vmatprep.subr.mxu1 %v7944_v59 }
 0x6d5   :  { %7994 = vmatpush1.msra.mxu1 %v7943_v31 }
 0x6d6   :  { %7995 = vmatprep.subr.mxu1 %v7940_v63 }
 0x6d7   :  { %7996 = vmatpush1.msra.mxu1 %v7939_v57  ;;  %v8418_v57 = vld [vmem:[#allocation12 + $0x1f8] sm:$0xff] }
 0x6d8   :  { %7997 = vmatprep.subr.mxu1 %v7936_v7  ;;  %v8402_v7 = vld [vmem:[#allocation12 + $0x178] sm:$0xff] }
 0x6d9   :  { %7998 = vmatpush1.msra.mxu1 %v7935_v48  ;;  %v8417_v48 = vld [vmem:[#allocation12 + $0x1f0] sm:$0xff] }
 0x6da   :  { %7999 = vmatprep.subr.mxu1 %v7932_v13  ;;  %v8401_v13 = vld [vmem:[#allocation12 + $0x170] sm:$0xff] }
 0x6db   :  { %8000 = vmatpush1.msra.mxu1 %v7931_v28  ;;  %v8416_v28 = vld [vmem:[#allocation12 + $0x1e8] sm:$0xff] }
 0x6dc   :  { %8001 = vmatprep.subr.mxu1 %v7928_v20  ;;  %v8400_v20 = vld [vmem:[#allocation12 + $0x168] sm:$0xff] }
 0x6dd   :  { %8002 = vmatpush1.msra.mxu1 %v7927_v17  ;;  %v8415_v17 = vld [vmem:[#allocation12 + $0x1e0] sm:$0xff] }
 0x6de   :  { %8003 = vmatprep.subr.mxu1 %v7924_v30  ;;  %v8399_v30 = vld [vmem:[#allocation12 + $0x160] sm:$0xff] }
 0x6df   :  { %8004 = vmatpush1.msra.mxu1 %v7923_v34  ;;  %v8414_v34 = vld [vmem:[#allocation12 + $0x1d8] sm:$0xff] }
 0x6e0   :  { %8005 = vmatprep.subr.mxu1 %v7920_v19  ;;  %v8398_v19 = vld [vmem:[#allocation12 + $0x158] sm:$0xff] }
 0x6e1   :  { %8006 = vmatpush1.msra.mxu1 %v7919_v40  ;;  %v8413_v40 = vld [vmem:[#allocation12 + $0x1d0] sm:$0xff] }
 0x6e2   :  { %8007 = vmatprep.subr.mxu1 %v7916_v43  ;;  %v8397_v43 = vld [vmem:[#allocation12 + $0x150] sm:$0xff] }
 0x6e3   :  { %8008 = vmatpush1.msra.mxu1 %v7915_v37  ;;  %v8412_v37 = vld [vmem:[#allocation12 + $0x1c8] sm:$0xff] }
 0x6e4   :  { %8009 = vmatprep.subr.mxu1 %v7912_v23  ;;  %v8379_v23 = vld [vmem:[#allocation12 + $0xc0] sm:$0xff] }
 0x6e5   :  { %8010 = vmatpush1.msra.mxu1 %v7911_v49  ;;  %v8395_v49 = vld [vmem:[#allocation12 + $0x140] sm:$0xff] }
 0x6e6   :  { %8011 = vmatprep.subr.mxu1 %v7908_v24  ;;  %v8410_v24 = vld [vmem:[#allocation12 + $0x1b8] sm:$0xff] }
 0x6e7   :  { %8012 = vmatpush1.msra.mxu1 %v7907_v29  ;;  %v8377_v29 = vld [vmem:[#allocation12 + $0xb0] sm:$0xff] }
 0x6e8   :  { %8013 = vmatprep.subr.mxu1 %v7904_v61  ;;  %v8361_v61 = vld [vmem:[#allocation12 + $0x30] sm:$0xff] }
 0x6e9   :  { %8014 = vmatpush1.msra.mxu1 %v7903_v52  ;;  %v8408_v52 = vld [vmem:[#allocation12 + $0x1a8] sm:$0xff] }
 0x73a   :  { %v7861_v27 = vpop.xlane.xlu0 %7860 }
 0x73b   :  { %v7865_v16 = vmul.f32 0.0078125, %v7861_v27 }
 0x73d   :  { %v21156_v5 = vsub.f32 %v7856_v32, %v7865_v16  ;;  %v7926_v32 = vld [vmem:[%s22584_s19 + $0xd8] sm:$0xff] }
 0x73e   :  { %8080 = vmatprep.subr.mxu0 %v7926_v32  ;;  %v8382_v32 = vld [vmem:[#allocation12 + $0xd8] sm:$0xff] }
 0x73f   :  { %v7869_v3 = vmul.f32 %v21156_v5, %v21156_v5  ;;  %8081 = vmatpush1.msra.mxu0 %v7925_v1  ;;  %v8366_v1 = vld [vmem:[#allocation12 + $0x58] sm:$0xff] }
 0x740   :  { %8082 = vmatprep.subr.mxu0 %v7922_v35  ;;  %v8381_v35 = vld [vmem:[#allocation12 + $0xd0] sm:$0xff] }
 0x741   :  { %7871 = vadd.xlane.f32.xlu0 %v7869_v3  ;;  %8083 = vmatpush1.msra.mxu0 %v7921_v45  ;;  %v8365_v45 = vld [vmem:[#allocation12 + $0x50] sm:$0xff] }
 0x742   :  { %8084 = vmatprep.subr.mxu0 %v7918_v36  ;;  %v8380_v36 = vld [vmem:[#allocation12 + $0xc8] sm:$0xff] }
 0x743   :  { %8085 = vmatpush1.msra.mxu0 %v7917_v41  ;;  %v8364_v41 = vld [vmem:[#allocation12 + $0x48] sm:$0xff] }
 0x744   :  { %8086 = vmatprep.subr.mxu0 %v7914_v51  ;;  %v8411_v51 = vld [vmem:[#allocation12 + $0x1c0] sm:$0xff] }
 0x745   :  { %8087 = vmatpush1.msra.mxu0 %v7913_v6  ;;  %v8378_v6 = vld [vmem:[#allocation12 + $0xb8] sm:$0xff] }
 0x746   :  { %8088 = vmatprep.subr.mxu0 %v7910_v44  ;;  %v8362_v44 = vld [vmem:[#allocation12 + $0x38] sm:$0xff] }
 0x747   :  { %8089 = vmatpush1.msra.mxu0 %v7909_v12  ;;  %v8409_v12 = vld [vmem:[#allocation12 + $0x1b0] sm:$0xff] }
 0x748   :  { %8090 = vmatprep.subr.mxu0 %v7906_v50  ;;  %v8376_v50 = vld [vmem:[#allocation12 + $0xa8] sm:$0xff] }
 0x749   :  { %8091 = vmatpush1.msra.mxu0 %v7905_v53  ;;  %v8360_v53 = vld [vmem:[#allocation12 + $0x28] sm:$0xff] }
 0x74a   :  { %8092 = vmatprep.subr.mxu0 %v7902_v26  ;;  %v8375_v26 = vld [vmem:[#allocation12 + $0xa0] sm:$0xff] }
 0x74b   :  { %8093 = vmatpush1.msra.mxu0 %v7901_v18  ;;  %v8359_v18 = vld [vmem:[#allocation12 + $0x20] sm:$0xff] }
 0x74c   :  { %17611 = vmatprep.subr.mxu0 %v8418_v57  ;;  %v8355_v57 = vld [vmem:[#allocation12] sm:$0xff] }
 0x759   :  { %v7863_v4 = vpop.xlane.xlu1 %7862 }
 0x75a   :  { %v7866_v14 = vmul.f32 0.0078125, %v7863_v4  ;;  %v8396_v4 = vld [vmem:[#allocation12 + $0x148] sm:$0xff] }
 0x75c   :  { %v7868_v47 = vsub.f32 %v21137_v9, %v7866_v14  ;;  %v7900_v9 = vld [vmem:[%s22584_s19 + $0x8] sm:$0xff] }
 0x75d   :  { %8015 = vmatprep.subr.mxu1 %v7900_v9  ;;  %v8363_v14 = vld [vmem:[#allocation12 + $0x40] sm:$0xff]  ;;  %v8392_v9 = vld [vmem:[#allocation12 + $0x128] sm:$0xff] }
 0x75e   :  { %v7870_v62 = vmul.f32 %v7868_v47, %v7868_v47  ;;  %8016 = vmatpush1.msra.mxu1 %v7899_v21  ;;  %v8407_v21 = vld [vmem:[#allocation12 + $0x1a0] sm:$0xff] }
 0x75f   :  { %17573 = vmatprep.subr.mxu1 %v8386_v8  ;;  %v8403_v8 = vld [vmem:[#allocation12 + $0x180] sm:$0xff] }
 0x760   :  { %7873 = vadd.xlane.f32.xlu1 %v7870_v62  ;;  %v8393_v62 = vld [vmem:[#allocation12 + $0x130] sm:$0xff] }
 0x7ca   :  { %v7872_v10 = vpop.xlane.xlu0 %7871 }
 0x7cb   :  { %v7875_v55 = vmul.f32 0.0078125, %v7872_v10  ;;  %v8391_v10 = vld [vmem:[#allocation12 + $0x120] sm:$0xff] }
 0x7cd   :  { %v7877_v56 = vadd.f32 1e-05, %v7875_v55  ;;  %v8374_v55 = vld [vmem:[#allocation12 + $0x98] sm:$0xff] }
 0x7cf   :  { %19339 = vrsqrt.f32 %v7877_v56  ;;  %v8406_v56 = vld [vmem:[#allocation12 + $0x198] sm:$0xff] }
 0x7dc   :  { %v19340_v22 = vpop.eup %19339 }
 0x7dd   :  { %v7881_v11 = vmul.f32 %v19340_v22, %v21156_v5  ;;  %v8358_v22 = vld [vmem:[#allocation12 + $0x18] sm:$0xff] }
 0x7df   :  { %v7889_v27 = vmul.f32 %v17195_v58, %v7881_v11  ;;  %v8373_v11 = vld [vmem:[#allocation12 + $0x90] sm:$0xff] }
 0x7e1   :  { %v21210_v16 = vadd.f32 %v17196_v38, %v7889_v27  ;;  %v8357_v27 = vld [vmem:[#allocation12 + $0x10] sm:$0xff] }
 0x7e3   :  { %8050 = vmatmul.mubr.f32.vlgmr.msra.gmra.mxu1 %v21210_v16  ;;  %8127 = vmatmul.mubr.f32.vlgmr.msra.gmra.mxu0 %v21210_v16 }
 0x7e4   :  { %8055 = vmatprep.mubr.f32.mxu1 %v19983_v0  ;;  %8132 = vmatprep.mubr.f32.mxu0 %v19983_v0 }
 0x7e5   :  { %17574 = vmatpush3.msra.mxu1 %v8370_v33  ;;  %17612 = vmatpush3.msra.mxu0 %v8402_v7  ;;  %v8387_v33 = vld [vmem:[#allocation12 + $0x100] sm:$0xff]  ;;  %v7965_v7 = vlaneseq }
 0x7e6   :  { %17575 = vmatprep.subr.mxu1 %v8385_v2  ;;  %17613 = vmatprep.subr.mxu0 %v8417_v48 }
 0x7e7   :  { %17576 = vmatpush3.msra.mxu1 %v8369_v54  ;;  %17614 = vmatpush3.msra.mxu0 %v8401_v13  ;;  %v21222_v2 = vshrl.u32 %v7965_v7, 7  ;;  %v7963_v13 = vld [vmem:[#allocation10] sm:$0xf] }
 0x7e8   :  { %17577 = vmatprep.subr.mxu1 %v8384_v15  ;;  %17615 = vmatprep.subr.mxu0 %v8416_v28 }
 0x7e9   :  { %v7874_v3 = vpop.xlane.xlu1 %7873  ;;  %17578 = vmatpush3.msra.mxu1 %v8368_v25  ;;  %17616 = vmatpush3.msra.mxu0 %v8400_v20  ;;  %v21225_v48 = vsub.s32 0, %v21222_v2  ;;  %v7975_v54 = vsub.s32 2, %v21222_v2  ;;  %v21229_v15 = vsub.s32 1, %v21222_v2  ;;  %v7979_v20 = vsub.s32 3, %v21222_v2 }
 0x7ea   :  { %v7876_v59 = vmul.f32 0.0078125, %v7874_v3  ;;  %17579 = vmatprep.subr.mxu1 %v8383_v60  ;;  %17617 = vmatprep.subr.mxu0 %v8415_v17  ;;  %v8389_v3 = vld [vmem:[#allocation12 + $0x110] sm:$0xff] }
 0x7eb   :  { %17580 = vmatpush3.msra.mxu1 %v8367_v39  ;;  %17618 = vmatpush3.msra.mxu0 %v8399_v30  ;;  %v7968_v28 = vrot.slane %v7963_v13, %v21225_v48  ;;  %v7976_v25 = vrot.slane %v7963_v13, %v7975_v54  ;;  %v7972_v39 = vrot.slane %v7963_v13, %v21229_v15 }
 0x7ec   :  { %v7878_v42 = vadd.f32 1e-05, %v7876_v59  ;;  %17581 = vmatprep.subr.mxu1 %v8382_v32  ;;  %17619 = vmatprep.subr.mxu0 %v8414_v34  ;;  %v8372_v59 = vld [vmem:[#allocation12 + $0x88] sm:$0xff]  ;;  %v21242_v34 = vrot.slane %v7963_v13, %v7979_v20 }
 0x7ed   :  { %17582 = vmatpush3.msra.mxu1 %v8366_v1  ;;  %17620 = vmatpush3.msra.mxu0 %v8398_v19 }
 0x7ee   :  { %19341 = vrsqrt.f32 %v7878_v42  ;;  %17583 = vmatprep.subr.mxu1 %v8381_v35  ;;  %17621 = vmatprep.subr.mxu0 %v8413_v40  ;;  %v8404_v42 = vld [vmem:[#allocation12 + $0x188] sm:$0xff] }
 0x7ef   :  { %17584 = vmatpush3.msra.mxu1 %v8365_v45  ;;  %17622 = vmatpush3.msra.mxu0 %v8397_v43 }
 0x7f0   :  { %17585 = vmatprep.subr.mxu1 %v8380_v36  ;;  %17623 = vmatprep.subr.mxu0 %v8412_v37 }
 0x7f1   :  { %17586 = vmatpush3.msra.mxu1 %v8364_v41  ;;  %17624 = vmatpush3.msra.mxu0 %v8396_v4 }
 0x7f2   :  { %17587 = vmatprep.subr.mxu1 %v8379_v23  ;;  %17625 = vmatprep.subr.mxu0 %v8411_v51 }
 0x7f3   :  { %17588 = vmatpush3.msra.mxu1 %v8363_v14  ;;  %17626 = vmatpush3.msra.mxu0 %v8395_v49 }
 0x7f4   :  { %17589 = vmatprep.subr.mxu1 %v8378_v6  ;;  %17627 = vmatprep.subr.mxu0 %v8410_v24 }
 0x7f5   :  { %17590 = vmatpush3.msra.mxu1 %v8362_v44 }
 0x7f6   :  { %17591 = vmatprep.subr.mxu1 %v8377_v29 }
 0x7f7   :  { %17592 = vmatpush3.msra.mxu1 %v8361_v61 }
 0x7f8   :  { %17593 = vmatprep.subr.mxu1 %v8376_v50 }
 0x7f9   :  { %17594 = vmatpush3.msra.mxu1 %v8360_v53 }
 0x7fa   :  { %17595 = vmatprep.subr.mxu1 %v8375_v26 }
 0x7fb   :  { %v19342_v31 = vpop.eup %19341  ;;  %17596 = vmatpush3.msra.mxu1 %v8359_v18 }
 0x7fc   :  { %v7882_v46 = vmul.f32 %v19342_v31, %v7868_v47  ;;  %v8394_v47 = vld [vmem:[#allocation12 + $0x138] sm:$0xff]  ;;  %17597 = vmatprep.subr.mxu1 %v8374_v55  ;;  %v8356_v31 = vld [vmem:[#allocation12 + $0x8] sm:$0xff] }
 0x7fd   :  { %17628 = vmatpush3.msra.mxu0 %v8394_v47  ;;  %17598 = vmatpush3.msra.mxu1 %v8358_v22 }
 0x7fe   :  { %v7890_v63 = vmul.f32 %v17195_v58, %v7882_v46  ;;  %17629 = vmatprep.subr.mxu0 %v8409_v12  ;;  %v8390_v58 = vld [vmem:[#allocation12 + $0x118] sm:$0xff]  ;;  %17599 = vmatprep.subr.mxu1 %v8373_v11  ;;  %v8388_v46 = vld [vmem:[#allocation12 + $0x108] sm:$0xff] }
 0x7ff   :  { %17630 = vmatpush3.msra.mxu0 %v8393_v62  ;;  %17600 = vmatpush3.msra.mxu1 %v8357_v27 }
 0x800   :  { %v21216_v5 = vadd.f32 %v17196_v38, %v7890_v63  ;;  %17631 = vmatprep.subr.mxu0 %v8408_v52  ;;  %v8405_v38 = vld [vmem:[#allocation12 + $0x190] sm:$0xff]  ;;  %v8371_v63 = vld [vmem:[#allocation12 + $0x80] sm:$0xff]  ;;  %17601 = vmatprep.subr.mxu1 %v8372_v59 }
 0x801   :  { %17632 = vmatpush3.msra.mxu0 %v8392_v9  ;;  %17602 = vmatpush3.msra.mxu1 %v8356_v31 }
 0x802   :  { %8056 = vmatmul.mubr.f32.gmra.mxu1 %v21216_v5  ;;  %8133 = vmatmul.mubr.f32.gmra.mxu0 %v21216_v5 }
 0x803   :  { %17633 = vmatprep.subr.mxu0 %v8407_v21  ;;  %17603 = vmatprep.subr.mxu1 %v8371_v63 }
 0x804   :  { %17634 = vmatpush3.msra.mxu0 %v8391_v10  ;;  %17604 = vmatpush3.msra.mxu1 %v8355_v57 }
 0x805   :  { %17635 = vmatprep.subr.mxu0 %v8406_v56  ;;  %18599 = vmatprep.subr.mxu1 %v19983_v0 }
 0x806   :  { %17636 = vmatpush3.msra.mxu0 %v8390_v58 }
 0x807   :  { %17637 = vmatprep.subr.mxu0 %v8405_v38 }
 0x808   :  { %17638 = vmatpush3.msra.mxu0 %v8389_v3 }
 0x809   :  { %17639 = vmatprep.subr.mxu0 %v8404_v42 }
 0x80a   :  { %17640 = vmatpush3.msra.mxu0 %v8388_v46 }
 0x80b   :  { %17641 = vmatprep.subr.mxu0 %v8403_v8 }
 0x80c   :  { %17642 = vmatpush3.msra.mxu0 %v8387_v33 }
 0x80d   :  { %18606 = vmatprep.subr.mxu0 %v19983_v0 }
 0x8a3   :  { %v8051_v60 = vpop.f32.mrf.mxu1  ;;  %v8128_v17 = vpop.f32.mrf.mxu0 }
 0x8a4   :  { %v21236_v30 = vadd.f32 %v8051_v60, %v7968_v28  ;;  %v21238_v32 = vadd.f32 %v8128_v17, %v7976_v25 }
 0x8a5   :  { %v8053_v1 = vpop.f32.mrf.mxu1  ;;  %v8130_v19 = vpop.f32.mrf.mxu0 }
 0x8a6   :  { %v21245_v35 = vmul.f32 0.70710677, %v21236_v30  ;;  %v21248_v40 = vmul.f32 0.70710677, %v21238_v32  ;;  %v21250_v45 = vadd.f32 %v8053_v1, %v7972_v39  ;;  %v21255_v37 = vadd.f32 %v8130_v19, %v21242_v34 }
 0x8a8   :  { %v8171_v43 = vand.u32 2147483647, %v21245_v35  ;;  %v8173_v36 = vand.u32 2147483647, %v21248_v40  ;;  %v21258_v41 = vmul.f32 0.70710677, %v21250_v45 }
 0x8a9   :  { %v21262_v6 = vmul.f32 0.70710677, %v21255_v37  ;;  %vm8155_vm3 = vcmp.ge.f32.partialorder %v21245_v35, 0.0  ;;  %vm8157_vm4 = vcmp.ge.f32.partialorder %v21248_v40, 0.0 }
 0x8aa   :  { %v8179_v4 = vmul.f32 0.3275911, %v8171_v43  ;;  %v8181_v23 = vmul.f32 0.3275911, %v8173_v36  ;;  %v8172_v51 = vand.u32 2147483647, %v21258_v41 }
 0x8ab   :  { %v8174_v47 = vand.u32 2147483647, %v21262_v6  ;;  %v8283_v62 = vsub.f32 0.0, %v8171_v43  ;;  %v8285_v9 = vsub.f32 0.0, %v8173_v36  ;;  %vm8156_vm5 = vcmp.ge.f32.partialorder %v21258_v41, 0.0 }
 0x8ac   :  { %v8187_v14 = vadd.f32 1.0, %v8179_v4  ;;  %v8189_v49 = vadd.f32 1.0, %v8181_v23  ;;  %v8180_v24 = vmul.f32 0.3275911, %v8172_v51  ;;  %v8284_v21 = vsub.f32 0.0, %v8172_v51 }
 0x8ad   :  { %v8182_v29 = vmul.f32 0.3275911, %v8174_v47  ;;  %v8291_v18 = vmul.f32 %v8283_v62, %v8171_v43  ;;  %v8293_v58 = vmul.f32 %v8285_v9, %v8173_v36  ;;  %vm8158_vm6 = vcmp.ge.f32.partialorder %v21262_v6, 0.0 }
 0x8ae   :  { %19343 = vrcp.f32 %v8187_v14  ;;  %v8188_v44 = vadd.f32 1.0, %v8180_v24  ;;  %v8292_v38 = vmul.f32 %v8284_v21, %v8172_v51 }
 0x8af   :  { %19345 = vrcp.f32 %v8189_v49  ;;  %v8190_v12 = vadd.f32 1.0, %v8182_v29  ;;  %v8299_v59 = vmul.f32 1.442695, %v8291_v18  ;;  %v8303_v7 = vmul.f32 1.442695, %v8293_v58 }
 0x8b0   :  { %19347 = vrcp.f32 %v8188_v44  ;;  %v8301_v17 = vmul.f32 1.442695, %v8292_v38 }
 0x8b1   :  { %19349 = vrcp.f32 %v8190_v12 }
 0x8b2   :  { %19351 = vpow2.f32 %v8299_v59 }
 0x8b3   :  { %19353 = vpow2.f32 %v8303_v7 }
 0x8b4   :  { %19355 = vpow2.f32 %v8301_v17 }
 0x8bb   :  { %v21265_v61 = vpop.eup %19343 }
 0x8bc   :  { %v21267_v50 = vpop.eup %19345  ;;  %v8211_v52 = vmul.f32 1.0614054, %v21265_v61 }
 0x8bd   :  { %v8213_v53 = vmul.f32 1.0614054, %v21267_v50  ;;  %v21272_v56 = vpop.eup %19347 }
 0x8be   :  { %v8219_v26 = vadd.f32 -1.4531521, %v8211_v52  ;;  %v8212_v57 = vmul.f32 1.0614054, %v21272_v56  ;;  %v21292_v51 = vpop.eup %19349 }
 0x8bf   :  { %v8221_v10 = vadd.f32 -1.4531521, %v8213_v53  ;;  %v8214_v9 = vmul.f32 1.0614054, %v21292_v51  ;;  %v19352_v59 = vpop.eup %19351 }
 0x8c0   :  { %v8227_v55 = vmul.f32 %v21265_v61, %v8219_v26  ;;  %v8220_v23 = vadd.f32 -1.4531521, %v8212_v57  ;;  %v19354_v7 = vpop.eup %19353 }
 0x8c1   :  { %v8229_v22 = vmul.f32 %v21267_v50, %v8221_v10 }
 0x8c2   :  { %v8235_v11 = vadd.f32 1.4214138, %v8227_v55  ;;  %v8057_v27 = vpop.f32.mrf.mxu1  ;;  %v8134_v3 = vpop.f32.mrf.mxu0  ;;  %v8228_v53 = vmul.f32 %v21272_v56, %v8220_v23 }
 0x8c3   :  { %v8237_v42 = vadd.f32 1.4214138, %v8229_v22  ;;  %v21275_v31 = vadd.f32 %v8057_v27, %v7968_v28  ;;  %v21277_v46 = vadd.f32 %v8134_v3, %v7976_v25  ;;  %v8286_v28 = vsub.f32 0.0, %v8174_v47 }
 0x8c4   :  { %v8243_v63 = vmul.f32 %v21265_v61, %v8235_v11  ;;  %v8059_v8 = vpop.f32.mrf.mxu1  ;;  %v8136_v4 = vpop.f32.mrf.mxu0  ;;  %v8236_v55 = vadd.f32 1.4214138, %v8228_v53  ;;  %v8140_v53 = vmul.f32 0.5, %v21250_v45  ;;  %v8142_v45 = vmul.f32 0.5, %v21255_v37 }
 0x8c5   :  { %v8245_v33 = vmul.f32 %v21267_v50, %v8237_v42  ;;  %v21283_v13 = vmul.f32 0.70710677, %v21275_v31  ;;  %v21286_v1 = vmul.f32 0.70710677, %v21277_v46  ;;  %v21289_v19 = vadd.f32 %v8059_v8, %v7972_v39 }
 0x8c6   :  { %v8251_v60 = vadd.f32 -0.28449672, %v8243_v63  ;;  %v8294_v44 = vmul.f32 %v8286_v28, %v8174_v47  ;;  %v21299_v39 = vadd.f32 %v8136_v4, %v21242_v34  ;;  %v8222_v34 = vadd.f32 -1.4531521, %v8214_v9 }
 0x8c7   :  { %v8175_v25 = vand.u32 2147483647, %v21283_v13  ;;  %v8253_v43 = vadd.f32 -0.28449672, %v8245_v33  ;;  %v8177_v36 = vand.u32 2147483647, %v21286_v1  ;;  %v8244_v38 = vmul.f32 %v21272_v56, %v8236_v55 }
 0x8c8   :  { %v8259_v14 = vmul.f32 %v21265_v61, %v8251_v60  ;;  %v21296_v12 = vmul.f32 0.70710677, %v21289_v19  ;;  %v8305_v21 = vmul.f32 1.442695, %v8294_v44  ;;  %v21306_v18 = vmul.f32 0.70710677, %v21299_v39 }
 0x8c9   :  { %v8183_v49 = vmul.f32 0.3275911, %v8175_v25  ;;  %v8185_v24 = vmul.f32 0.3275911, %v8177_v36  ;;  %v8261_v62 = vmul.f32 %v21267_v50, %v8253_v43  ;;  %v8230_v3 = vmul.f32 %v21292_v51, %v8222_v34  ;;  %v19356_v43 = vpop.eup %19355 }
 0x8ca   :  { %v8267_v26 = vadd.f32 0.2548296, %v8259_v14  ;;  %v8176_v47 = vand.u32 2147483647, %v21296_v12  ;;  %v21310_v11 = vand.u32 2147483647, %v21306_v18 }
 0x8cb   :  { %v8191_v29 = vadd.f32 1.0, %v8183_v49  ;;  %v8193_v52 = vadd.f32 1.0, %v8185_v24  ;;  %v8269_v10 = vadd.f32 0.2548296, %v8261_v62  ;;  %v8287_v63 = vsub.f32 0.0, %v8175_v25 }
 0x8cc   :  { %v8275_v22 = vmul.f32 %v21265_v61, %v8267_v26  ;;  %v8184_v58 = vmul.f32 0.3275911, %v8176_v47  ;;  %v8186_v8 = vmul.f32 0.3275911, %v21310_v11  ;;  %v8252_v57 = vadd.f32 -0.28449672, %v8244_v38 }
 0x8cd   :  { %19357 = vrcp.f32 %v8191_v29  ;;  %v8277_v42 = vmul.f32 %v21267_v50, %v8269_v10  ;;  %v8238_v61 = vadd.f32 1.4214138, %v8230_v3  ;;  %v8289_v60 = vsub.f32 0.0, %v8177_v36 }
 0x8ce   :  { %19359 = vrcp.f32 %v8193_v52  ;;  %v8192_v27 = vadd.f32 1.0, %v8184_v58  ;;  %v8315_v33 = vmul.f32 %v19352_v59, %v8275_v22  ;;  %v8194_v17 = vadd.f32 1.0, %v8186_v8 }
 0x8cf   :  { %19361 = vpow2.f32 %v8305_v21  ;;  %v8260_v28 = vmul.f32 %v21272_v56, %v8252_v57  ;;  %v8246_v4 = vmul.f32 %v21292_v51, %v8238_v61  ;;  %v8317_v50 = vmul.f32 %v19354_v7, %v8277_v42 }
 0x8d0   :  { %19363 = vrcp.f32 %v8192_v27  ;;  %v8295_v23 = vmul.f32 %v8287_v63, %v8175_v25  ;;  %v8139_v49 = vmul.f32 0.5, %v21236_v30  ;;  %v19985_v24 = vmov -1.0  }
 0x8d1   :  { %19365 = vrcp.f32 %v8194_v17  ;;  %v8268_v14 = vadd.f32 0.2548296, %v8260_v28  ;;  %v8163_v44 = vsel %vm8155_vm3, 1.0, %v19985_v24  ;;  %v8323_v29 = vsub.f32 1.0, %v8315_v33 }
 0x8d2   :  { %v8254_v35 = vadd.f32 -0.28449672, %v8246_v4  ;;  %v8165_v52 = vsel %vm8157_vm4, 1.0, %v19985_v24  ;;  %v8297_v40 = vmul.f32 %v8289_v60, %v8177_v36  ;;  %v8288_v25 = vsub.f32 0.0, %v8176_v47 }
 0x8d3   :  { %v8276_v9 = vmul.f32 %v21272_v56, %v8268_v14  ;;  %v8325_v10 = vsub.f32 1.0, %v8317_v50  ;;  %v8307_v55 = vmul.f32 1.442695, %v8295_v23  ;;  %v8331_v58 = vmul.f32 %v8323_v29, %v8163_v44 }
 0x8d4   :  { %v8262_v30 = vmul.f32 %v21292_v51, %v8254_v35  ;;  %v8311_v56 = vmul.f32 1.442695, %v8297_v40  ;;  %v8290_v27 = vsub.f32 0.0, %v21310_v11  ;;  %v8164_v42 = vsel %vm8156_vm5, 1.0, %v19985_v24 }
 0x8d5   :  { %v8316_v34 = vmul.f32 %v19356_v43, %v8276_v9  ;;  %v8296_v63 = vmul.f32 %v8288_v25, %v8176_v47  ;;  %v8333_v61 = vmul.f32 %v8325_v10, %v8165_v52  ;;  %19367 = vpow2.f32 %v8307_v55 }
 0x8d6   :  { %v8270_v36 = vadd.f32 0.2548296, %v8262_v30  ;;  %v8339_v60 = vadd.f32 1.0, %v8331_v58  ;;  %19369 = vpow2.f32 %v8311_v56  ;;  %v8298_v41 = vmul.f32 %v8290_v27, %v21310_v11 }
 0x8d7   :  { %v8324_v3 = vsub.f32 1.0, %v8316_v34  ;;  %v8341_v44 = vadd.f32 1.0, %v8333_v61  ;;  %v8166_v29 = vsel %vm8158_vm6, 1.0, %v19985_v24  ;;  %v8141_v58 = vmul.f32 0.5, %v21238_v32 }
 0x8d8   :  { %v8278_v8 = vmul.f32 %v21292_v51, %v8270_v36  ;;  %v8309_v51 = vmul.f32 1.442695, %v8296_v63  ;;  %v8347_v40 = vmul.f32 %v8339_v60, %v8139_v49  ;;  %vm8159_vm7 = vcmp.ge.f32.partialorder %v21283_v13, 0.0 }
 0x8d9   :  { %v8332_v37 = vmul.f32 %v8324_v3, %v8164_v42  ;;  %v8349_v27 = vmul.f32 %v8341_v44, %v8141_v58  ;;  %vm8161_vm8 = vcmp.ge.f32.partialorder %v21286_v1, 0.0  ;;  %vm8160_vm9 = vcmp.ge.f32.partialorder %v21296_v12, 0.0 }
 0x8da   :  { %v21322_v62 = vpop.eup %19357  ;;  %19371 = vpow2.f32 %v8309_v51  ;;  %v8169_v13 = vsel %vm8161_vm8, 1.0, %v19985_v24  ;;  %vm8162_vm10 = vcmp.ge.f32.partialorder %v21306_v18, 0.0  ;;  %v8144_v1 = vmul.f32 0.5, %v21289_v19 }
 0x8db   :  { %v21327_v26 = vpop.eup %19359  ;;  %v8215_v21 = vmul.f32 1.0614054, %v21322_v62  ;;  %v8340_v47 = vadd.f32 1.0, %v8332_v37  ;;  %v8170_v12 = vsel %vm8162_vm10, 1.0, %v19985_v24  ;;  %v8145_v18 = vmul.f32 0.5, %v21277_v46 }
 0x8dc   :  { %v8217_v22 = vmul.f32 1.0614054, %v21327_v26  ;;  %v19362_v33 = vpop.eup %19361 }
 0x8dd   :  { %v8223_v38 = vadd.f32 -1.4531521, %v8215_v21  ;;  %v8318_v17 = vmul.f32 %v19362_v33, %v8278_v8  ;;  %v19364_v43 = vpop.eup %19363  ;;  %v8348_v35 = vmul.f32 %v8340_v47, %v8140_v53  ;;  %v8313_v21 = vmul.f32 1.442695, %v8298_v41 }
 0x8de   :  { %v8225_v59 = vadd.f32 -1.4531521, %v8217_v22  ;;  %v8216_v23 = vmul.f32 1.0614054, %v19364_v43  ;;  %v19366_v6 = vpop.eup %19365 }
 0x8df   :  { %v8231_v57 = vmul.f32 %v21322_v62, %v8223_v38  ;;  %v8326_v50 = vsub.f32 1.0, %v8318_v17  ;;  %8490 = vmatprep.mubr.f32.mxu1 %v8348_v35  ;;  %v8218_v11 = vmul.f32 1.0614054, %v19366_v6  ;;  %19373 = vpow2.f32 %v8313_v21 }
 0x8e0   :  { %v8233_v7 = vmul.f32 %v21327_v26, %v8225_v59  ;;  %v8224_v25 = vadd.f32 -1.4531521, %v8216_v23  ;;  %8491 = vmatmul.mubr.f32.vlgmr.msra.gmra.mxu1 %v8347_v40 }
 0x8e1   :  { %v8239_v28 = vadd.f32 1.4214138, %v8231_v57  ;;  %v8334_v9 = vmul.f32 %v8326_v50, %v8166_v29  ;;  %v8226_v53 = vadd.f32 -1.4531521, %v8218_v11 }
 0x8e2   :  { %v8241_v4 = vadd.f32 1.4214138, %v8233_v7  ;;  %v8232_v34 = vmul.f32 %v19364_v43, %v8224_v25  ;;  %v19368_v57 = vpop.eup %19367 }
 0x8e3   :  { %v8247_v14 = vmul.f32 %v21322_v62, %v8239_v28  ;;  %v8342_v55 = vadd.f32 1.0, %v8334_v9  ;;  %v8234_v3 = vmul.f32 %v19366_v6, %v8226_v53  ;;  %v19370_v7 = vpop.eup %19369 }
 0x8e4   :  { %v8249_v52 = vmul.f32 %v21327_v26, %v8241_v4  ;;  %v8240_v49 = vadd.f32 1.4214138, %v8232_v34  ;;  %v8146_v34 = vmul.f32 0.5, %v21299_v39 }
 0x8e5   :  { %v8255_v30 = vadd.f32 -0.28449672, %v8247_v14  ;;  %v8350_v38 = vmul.f32 %v8342_v55, %v8142_v45  ;;  %v8242_v8 = vadd.f32 1.4214138, %v8234_v3 }
 0x8e6   :  { %v8257_v10 = vadd.f32 -0.28449672, %v8249_v52  ;;  %v8248_v42 = vmul.f32 %v19364_v43, %v8240_v49  ;;  %v8168_v52 = vsel %vm8160_vm9, 1.0, %v19985_v24 }
 0x8e7   :  { %v8263_v22 = vmul.f32 %v21322_v62, %v8255_v30  ;;  %8565 = vmatprep.mubr.f32.mxu0 %v8350_v38  ;;  %v8250_v61 = vmul.f32 %v19366_v6, %v8242_v8  ;;  %v19372_v51 = vpop.eup %19371  ;;  %v17197_v38 = vld [vmem:[#allocation13] ss:$0 sm:$0xff] }
 0x8e8   :  { %v8265_v36 = vmul.f32 %v21327_v26, %v8257_v10  ;;  %8566 = vmatmul.mubr.f32.vlgmr.msra.gmra.mxu0 %v8349_v27  ;;  %v8256_v33 = vadd.f32 -0.28449672, %v8248_v42 }
 0x8e9   :  { %v8271_v56 = vadd.f32 0.2548296, %v8263_v22  ;;  %v8258_v60 = vadd.f32 -0.28449672, %v8250_v61 }
 0x8ea   :  { %v8273_v59 = vadd.f32 0.2548296, %v8265_v36  ;;  %v8264_v45 = vmul.f32 %v19364_v43, %v8256_v33 }
 0x8eb   :  { %v8279_v63 = vmul.f32 %v21322_v62, %v8271_v56  ;;  %v8266_v41 = vmul.f32 %v19366_v6, %v8258_v60  ;;  %v8167_v62 = vsel %vm8159_vm7, 1.0, %v19985_v24 }
 0x8ec   :  { %v8281_v32 = vmul.f32 %v21327_v26, %v8273_v59  ;;  %v8272_v17 = vadd.f32 0.2548296, %v8264_v45  ;;  %v19374_v29 = vpop.eup %19373 }
 0x8ed   :  { %v8319_v37 = vmul.f32 %v19368_v57, %v8279_v63  ;;  %v8274_v50 = vadd.f32 0.2548296, %v8266_v41 }
 0x8ee   :  { %v8321_v28 = vmul.f32 %v19370_v7, %v8281_v32  ;;  %v8280_v4 = vmul.f32 %v19364_v43, %v8272_v17 }
 0x8ef   :  { %v8327_v47 = vsub.f32 1.0, %v8319_v37  ;;  %v8282_v14 = vmul.f32 %v19366_v6, %v8274_v50  ;;  %v8143_v6 = vmul.f32 0.5, %v21275_v31  ;;  %v21383_v50 = vld [vmem:[#allocation18 + $0x10] sm:$0xff] }
 0x8f0   :  { %v8320_v26 = vmul.f32 %v19372_v51, %v8280_v4  ;;  %v8329_v23 = vsub.f32 1.0, %v8321_v28  ;;  %v21373_v51 = vld [vmem:[#allocation18 + $0x8] sm:$0xff] }
 0x8f1   :  { %v8335_v44 = vmul.f32 %v8327_v47, %v8167_v62  ;;  %v8322_v43 = vmul.f32 %v19374_v29, %v8282_v14  ;;  %v21375_v62 = vld [vmem:[#allocation18 + $0x18] sm:$0xff]  ;;  %18600 = vmatpush3.xpose.msra.mxu1 %v21373_v51 }
 0x8f2   :  { %v8328_v35 = vsub.f32 1.0, %v8320_v26  ;;  %v8337_v9 = vmul.f32 %v8329_v23, %v8169_v13  ;;  %18607 = vmatpush3.xpose.msra.mxu0 %v21375_v62  ;;  %18601 = vmatprep.subr.mxu1 %v19983_v0  ;;  %v17198_v29 = vld [vmem:[#allocation15] ss:$0 sm:$0xff]  ;;  %v21389_v13 = vld [vmem:[#allocation16] ss:$0 sm:$0xff] }
 0x8f3   :  { %v8330_v25 = vsub.f32 1.0, %v8322_v43  ;;  %v8343_v30 = vadd.f32 1.0, %v8335_v44  ;;  %18608 = vmatprep.subr.mxu0 %v19983_v0 }
 0x8f4   :  { %v8336_v40 = vmul.f32 %v8328_v35, %v8168_v52  ;;  %v8345_v55 = vadd.f32 1.0, %v8337_v9  ;;  %v21396_v9 = vld [vmem:[#allocation18 + $0x38] sm:$0xff] }
 0x8f5   :  { %v8338_v11 = vmul.f32 %v8330_v25, %v8170_v12  ;;  %v8351_v58 = vmul.f32 %v8343_v30, %v8143_v6  ;;  %v21404_v12 = vld [vmem:[#allocation18 + $0x20] sm:$0xff]  ;;  %v8627_v6 = vld [vmem:[#allocation18 + $0x48] sm:$0xff] }
 0x8f6   :  { %v8344_v21 = vadd.f32 1.0, %v8336_v40  ;;  %v8353_v36 = vmul.f32 %v8345_v55, %v8145_v18  ;;  %18609 = vmatpush3.xpose.msra.mxu0 %v21383_v50  ;;  %v21394_v40 = vld [vmem:[#allocation18 + $0x28] sm:$0xff]  ;;  %v8628_v55 = vld [vmem:[#allocation18 + $0x50] sm:$0xff]  ;;  %v8630_v18 = vld [vmem:[#allocation18 + $0x60] sm:$0xff] }
 0x8f7   :  { %v8346_v22 = vadd.f32 1.0, %v8338_v11  ;;  %18620 = vmatprep.subr.mxu0 %v19983_v0  ;;  %v8629_v11 = vld [vmem:[#allocation18 + $0x58] sm:$0xff] }
 0x8f8   :  { %v8352_v10 = vmul.f32 %v8344_v21, %v8144_v1  ;;  %v21406_v21 = vld [vmem:[#allocation18 + $0x30] sm:$0xff] }
 0x8f9   :  { %v8354_v53 = vmul.f32 %v8346_v22, %v8146_v34  ;;  %v8631_v34 = vld [vmem:[#allocation18 + $0x68] sm:$0xff]  ;;  %v8633_v22 = vld [vmem:[#allocation18 + $0x78] sm:$0xff] }
 0x8fa   :  { %8495 = vmatprep.mubr.f32.mxu1 %v8352_v10  ;;  %v8626_v10 = vld [vmem:[#allocation18 + $0x40] sm:$0xff] }
 0x8fb   :  { %8496 = vmatmul.mubr.f32.gmra.mxu1 %v8351_v58  ;;  %8570 = vmatprep.mubr.f32.mxu0 %v8354_v53  ;;  %v8632_v53 = vld [vmem:[#allocation18 + $0x70] sm:$0xff] }
 0x8fc   :  { %18603 = vmatprep.mubr.msk.f32.mxu1 %vm19984_vm1, %v19983_v0  ;;  %8571 = vmatmul.mubr.f32.gmra.mxu0 %v8353_v36 }
 0x8fd   :  { %18610 = vmatprep.mubr.msk.f32.mxu0 %vm19984_vm1, %v19983_v0 }
 0x9a0   :  { %v17605_v31 = vpop.f32.mrf.mxu1 }
 0x9a2   :  { %v17606_v19 = vpop.f32.mrf.mxu1 }
 0x9a3   :  { %v17607_v39 = vadd.f32 %v17606_v19, %v17605_v31 }
 0x9a5   :  { %v8493_v56 = vadd.f32 %v17607_v39, %v17197_v38  ;;  %v21490_v39 = vld [vmem:[#allocation18 + $0x98] sm:$0xff] }
 0x9a8   :  { %v17643_v49 = vpop.f32.mrf.mxu0 }
 0x9aa   :  { %v17644_v27 = vpop.f32.mrf.mxu0 }
 0x9ab   :  { %v17645_v46 = vadd.f32 %v17644_v27, %v17643_v49  ;;  %v21498_v49 = vld [vmem:[#allocation18 + $0x80] sm:$0xff]  ;;  %v9816_v27 = vld [vmem:[#allocation18 + $0xa8] sm:$0xff] }
 0x9ad   :  { %v8568_v3 = vadd.f32 %v17645_v46, %v8493_v56  ;;  %v21500_v56 = vld [vmem:[#allocation18 + $0x90] sm:$0xff]  ;;  %v9818_v46 = vld [vmem:[#allocation18 + $0xb8] sm:$0xff] }
 0x9af   :  { %v8576_v59 = vadd.f32 %v8568_v3, %v21210_v16  ;;  %v9815_v3 = vld [vmem:[#allocation18 + $0xa0] sm:$0xff] }
 0x9b1   :  { %8580 = vadd.xlane.f32.xlu0 %v8576_v59 }
 0x9bb   :  { %v17608_v42 = vpop.f32.mrf.mxu1 }
 0x9bc   :  { %v17646_v8 = vpop.f32.mrf.mxu0 }
 0x9bd   :  { %v17609_v63 = vpop.f32.mrf.mxu1 }
 0x9be   :  { %v17610_v57 = vadd.f32 %v17609_v63, %v17608_v42  ;;  %v17647_v32 = vpop.f32.mrf.mxu0  ;;  %v9820_v42 = vld [vmem:[#allocation18 + $0xc8] sm:$0xff]  ;;  %v9822_v63 = vld [vmem:[#allocation18 + $0xd8] sm:$0xff] }
 0x9bf   :  { %v17648_v61 = vadd.f32 %v17647_v32, %v17646_v8  ;;  %v9819_v8 = vld [vmem:[#allocation18 + $0xc0] sm:$0xff]  ;;  %v9826_v32 = vld [vmem:[#allocation18 + $0xf8] sm:$0xff] }
 0x9c0   :  { %v8498_v33 = vadd.f32 %v17610_v57, %v17197_v38  ;;  %v21488_v38 = vld [vmem:[#allocation18 + $0x88] sm:$0xff]  ;;  %v9821_v57 = vld [vmem:[#allocation18 + $0xd0] sm:$0xff] }
 0x9c2   :  { %v8573_v37 = vadd.f32 %v17648_v61, %v8498_v33  ;;  %v9824_v33 = vld [vmem:[#allocation18 + $0xe8] sm:$0xff]  ;;  %v9823_v61 = vld [vmem:[#allocation18 + $0xe0] sm:$0xff] }
 0x9c4   :  { %v8577_v7 = vadd.f32 %v8573_v37, %v21216_v5  ;;  %v21381_v5 = vld [vmem:[#allocation18] sm:$0xff]  ;;  %v9825_v37 = vld [vmem:[#allocation18 + $0xf0] sm:$0xff] }
 0x9c5   :  { %18602 = vmatpush3.xpose.msra.mxu1 %v21381_v5 }
 0x9c6   :  { %8582 = vadd.xlane.f32.xlu1 %v8577_v7  ;;  %18613 = vmatprep.subr.mxu1 %v19983_v0 }
 0xa3a   :  { %v8581_v45 = vpop.xlane.xlu0 %8580 }
 0xa3b   :  { %v8584_v60 = vmul.f32 0.0078125, %v8581_v45  ;;  %v21586_v45 = vld [vmem:[#allocation18 + $0x118] sm:$0xff] }
 0xa3d   :  { %v8586_v17 = vsub.f32 %v8576_v59, %v8584_v60  ;;  %v9817_v59 = vld [vmem:[#allocation18 + $0xb0] sm:$0xff]  ;;  %v21594_v60 = vld [vmem:[#allocation18 + $0x100] sm:$0xff] }
 0xa3f   :  { %v8588_v28 = vmul.f32 %v8586_v17, %v8586_v17 }
 0xa41   :  { %8590 = vadd.xlane.f32.xlu0 %v8588_v28  ;;  %v11010_v28 = vld [vmem:[#allocation18 + $0x128] sm:$0xff] }
 0xa4f   :  { %v8583_v41 = vpop.xlane.xlu1 %8582 }
 0xa50   :  { %v8585_v47 = vmul.f32 0.0078125, %v8583_v41  ;;  %v11012_v41 = vld [vmem:[#allocation18 + $0x138] sm:$0xff] }
 0xa52   :  { %v21369_v16 = vsub.f32 %v8577_v7, %v8585_v47  ;;  %v21584_v7 = vld [vmem:[#allocation18 + $0x108] sm:$0xff]  ;;  %v11009_v47 = vld [vmem:[#allocation18 + $0x120] sm:$0xff] }
 0xa54   :  { %v8589_v4 = vmul.f32 %v21369_v16, %v21369_v16 }
 0xa56   :  { %8592 = vadd.xlane.f32.xlu1 %v8589_v4  ;;  %v11014_v4 = vld [vmem:[#allocation18 + $0x148] sm:$0xff] }
 0xaca   :  { %v8591_v26 = vpop.xlane.xlu0 %8590 }
 0xacb   :  { %v8594_v23 = vmul.f32 0.0078125, %v8591_v26  ;;  %v11020_v26 = vld [vmem:[#allocation18 + $0x178] sm:$0xff] }
 0xacd   :  { %v8596_v14 = vadd.f32 1e-05, %v8594_v23  ;;  %v11017_v23 = vld [vmem:[#allocation18 + $0x160] sm:$0xff] }
 0xacf   :  { %19375 = vrsqrt.f32 %v8596_v14  ;;  %v11019_v14 = vld [vmem:[#allocation18 + $0x170] sm:$0xff] }
 0xadc   :  { %v19376_v44 = vpop.eup %19375 }
 0xadd   :  { %v8600_v35 = vmul.f32 %v19376_v44, %v8586_v17  ;;  %v21596_v17 = vld [vmem:[#allocation18 + $0x110] sm:$0xff] }
 0xadf   :  { %v8608_v52 = vmul.f32 %v17198_v29, %v8600_v35  ;;  %v8593_v25 = vpop.xlane.xlu1 %8592 }
 0xae0   :  { %v8595_v30 = vmul.f32 0.0078125, %v8593_v25 }
 0xae1   :  { %v21392_v43 = vadd.f32 %v21389_v13, %v8608_v52 }
 0xae2   :  { %v8597_v1 = vadd.f32 1e-05, %v8595_v30 }
 0xae3   :  { %18604 = vmatmul.mubr.f32.vlgmr.msra.gmra.mxu1 %v21392_v43  ;;  %18611 = vmatmul.mubr.f32.vlgmr.msra.gmra.mxu0 %v21392_v43 }
 0xae4   :  { %18614 = vmatpush3.xpose.msra.mxu1 %v21394_v40  ;;  %18621 = vmatpush3.xpose.msra.mxu0 %v21396_v9  ;;  %19377 = vrsqrt.f32 %v8597_v1 }
 0xae5   :  { %18615 = vmatprep.subr.mxu1 %v19983_v0  ;;  %18622 = vmatprep.subr.mxu0 %v19983_v0 }
 0xae6   :  { %18617 = vmatprep.mubr.msk.f32.mxu1 %vm19984_vm1, %v19983_v0  ;;  %18624 = vmatprep.mubr.msk.f32.mxu0 %vm19984_vm1, %v19983_v0 }
 0xae8   :  { %18616 = vmatpush3.xpose.msra.mxu1 %v21404_v12  ;;  %18623 = vmatpush3.xpose.msra.mxu0 %v21406_v21 }
 0xae9   :  { %18627 = vmatprep.subr.mxu1 %v19983_v0  ;;  %18634 = vmatprep.subr.mxu0 %v19983_v0 }
 0xaeb   :  { %18618 = vmatmul.mubr.f32.vlgmr.msra.gmra.mxu1 %v21392_v43  ;;  %18625 = vmatmul.mubr.f32.vlgmr.msra.gmra.mxu0 %v21392_v43 }
 0xaec   :  { %18628 = vmatpush3.xpose.msra.mxu1 %v8627_v6  ;;  %18635 = vmatpush3.xpose.msra.mxu0 %v8629_v11 }
 0xaed   :  { %18629 = vmatprep.subr.mxu1 %v19983_v0  ;;  %18636 = vmatprep.subr.mxu0 %v19983_v0 }
 0xaee   :  { %18631 = vmatprep.mubr.msk.f32.mxu1 %vm19984_vm1, %v19983_v0  ;;  %18638 = vmatprep.mubr.msk.f32.mxu0 %vm19984_vm1, %v19983_v0 }
 0xaf0   :  { %18630 = vmatpush3.xpose.msra.mxu1 %v8626_v10  ;;  %18637 = vmatpush3.xpose.msra.mxu0 %v8628_v55 }
 0xaf1   :  { %18641 = vmatprep.subr.mxu1 %v19983_v0  ;;  %18648 = vmatprep.subr.mxu0 %v19983_v0  ;;  %v19378_v58 = vpop.eup %19377 }
 0xaf2   :  { %v8601_v36 = vmul.f32 %v19378_v58, %v21369_v16  ;;  %v11011_v16 = vld [vmem:[#allocation18 + $0x130] sm:$0xff] }
 0xaf3   :  { %18632 = vmatmul.mubr.f32.vlgmr.msra.gmra.mxu1 %v21392_v43  ;;  %18639 = vmatmul.mubr.f32.vlgmr.msra.gmra.mxu0 %v21392_v43 }
 0xaf4   :  { %18642 = vmatpush3.xpose.msra.mxu1 %v8631_v34  ;;  %18649 = vmatpush3.xpose.msra.mxu0 %v8633_v22  ;;  %v8609_v31 = vmul.f32 %v17198_v29, %v8601_v36 }
 0xaf5   :  { %18643 = vmatprep.subr.mxu1 %v19983_v0  ;;  %18650 = vmatprep.subr.mxu0 %v19983_v0 }
 0xaf6   :  { %18645 = vmatprep.mubr.msk.f32.mxu1 %vm19984_vm1, %v19983_v0  ;;  %18652 = vmatprep.mubr.msk.f32.mxu0 %vm19984_vm1, %v19983_v0  ;;  %v21448_v19 = vadd.f32 %v21389_v13, %v8609_v31 }
 0xaf8   :  { %18644 = vmatpush3.xpose.msra.mxu1 %v8630_v18  ;;  %18651 = vmatpush3.xpose.msra.mxu0 %v8632_v53 }
 0xaf9   :  { %18655 = vmatprep.subr.mxu1 %v19983_v0  ;;  %18662 = vmatprep.subr.mxu0 %v19983_v0 }
 0xafb   :  { %18646 = vmatmul.mubr.f32.vlgmr.msra.gmra.mxu1 %v21392_v43  ;;  %18653 = vmatmul.mubr.f32.vlgmr.msra.gmra.mxu0 %v21392_v43 }
 0xafc   :  { %18656 = vmatpush3.xpose.msra.mxu1 %v21373_v51  ;;  %18663 = vmatpush3.xpose.msra.mxu0 %v21375_v62  ;;  %v11016_v51 = vld [vmem:[#allocation18 + $0x158] sm:$0xff]  ;;  %v11013_v62 = vld [vmem:[#allocation18 + $0x140] sm:$0xff] }
 0xafd   :  { %18657 = vmatprep.subr.mxu1 %v19983_v0  ;;  %18664 = vmatprep.subr.mxu0 %v19983_v0 }
 0xafe   :  { %18659 = vmatprep.mubr.msk.f32.mxu1 %vm19984_vm1, %v19983_v0  ;;  %18666 = vmatprep.mubr.msk.f32.mxu0 %vm19984_vm1, %v19983_v0 }
 0xb00   :  { %18658 = vmatpush3.xpose.msra.mxu1 %v21381_v5  ;;  %18665 = vmatpush3.xpose.msra.mxu0 %v21383_v50  ;;  %v11015_v5 = vld [vmem:[#allocation18 + $0x150] sm:$0xff]  ;;  %v11018_v50 = vld [vmem:[#allocation18 + $0x168] sm:$0xff] }
 0xb01   :  { %18669 = vmatprep.subr.mxu1 %v19983_v0  ;;  %18676 = vmatprep.subr.mxu0 %v19983_v0 }
 0xb03   :  { %18660 = vmatmul.mubr.f32.vlgmr.msra.gmra.mxu1 %v21448_v19  ;;  %18667 = vmatmul.mubr.f32.vlgmr.msra.gmra.mxu0 %v21448_v19 }
 0xb04   :  { %18670 = vmatpush3.xpose.msra.mxu1 %v21394_v40  ;;  %18677 = vmatpush3.xpose.msra.mxu0 %v21396_v9 }
 0xb05   :  { %18671 = vmatprep.subr.mxu1 %v19983_v0  ;;  %18678 = vmatprep.subr.mxu0 %v19983_v0 }
 0xb06   :  { %18673 = vmatprep.mubr.msk.f32.mxu1 %vm19984_vm1, %v19983_v0  ;;  %18680 = vmatprep.mubr.msk.f32.mxu0 %vm19984_vm1, %v19983_v0 }
 0xb08   :  { %18672 = vmatpush3.xpose.msra.mxu1 %v21404_v12  ;;  %18679 = vmatpush3.xpose.msra.mxu0 %v21406_v21 }
 0xb09   :  { %18683 = vmatprep.subr.mxu1 %v19983_v0  ;;  %18690 = vmatprep.subr.mxu0 %v19983_v0 }
 0xb0b   :  { %18674 = vmatmul.mubr.f32.vlgmr.msra.gmra.mxu1 %v21448_v19  ;;  %18681 = vmatmul.mubr.f32.vlgmr.msra.gmra.mxu0 %v21448_v19 }
 0xb0c   :  { %18684 = vmatpush3.xpose.msra.mxu1 %v8627_v6  ;;  %18691 = vmatpush3.xpose.msra.mxu0 %v8629_v11 }
 0xb0d   :  { %18685 = vmatprep.subr.mxu1 %v19983_v0  ;;  %18692 = vmatprep.subr.mxu0 %v19983_v0 }
 0xb0e   :  { %18687 = vmatprep.mubr.msk.f32.mxu1 %vm19984_vm1, %v19983_v0  ;;  %18694 = vmatprep.mubr.msk.f32.mxu0 %vm19984_vm1, %v19983_v0 }
 0xb10   :  { %18686 = vmatpush3.xpose.msra.mxu1 %v8626_v10  ;;  %18693 = vmatpush3.xpose.msra.mxu0 %v8628_v55 }
 0xb11   :  { %18697 = vmatprep.subr.mxu1 %v19983_v0  ;;  %18704 = vmatprep.subr.mxu0 %v19983_v0 }
 0xb13   :  { %18688 = vmatmul.mubr.f32.vlgmr.msra.gmra.mxu1 %v21448_v19  ;;  %18695 = vmatmul.mubr.f32.vlgmr.msra.gmra.mxu0 %v21448_v19 }
 0xb14   :  { %18698 = vmatpush3.xpose.msra.mxu1 %v8631_v34  ;;  %18705 = vmatpush3.xpose.msra.mxu0 %v8633_v22 }
 0xb15   :  { %18699 = vmatprep.subr.mxu1 %v19983_v0  ;;  %18706 = vmatprep.subr.mxu0 %v19983_v0 }
 0xb16   :  { %18701 = vmatprep.mubr.msk.f32.mxu1 %vm19984_vm1, %v19983_v0  ;;  %18708 = vmatprep.mubr.msk.f32.mxu0 %vm19984_vm1, %v19983_v0 }
 0xb18   :  { %18700 = vmatpush3.xpose.msra.mxu1 %v8630_v18  ;;  %18707 = vmatpush3.xpose.msra.mxu0 %v8632_v53 }
 0xb19   :  { %18711 = vmatprep.subr.mxu1 %v19983_v0  ;;  %18718 = vmatprep.subr.mxu0 %v19983_v0 }
 0xb1b   :  { %18702 = vmatmul.mubr.f32.vlgmr.msra.gmra.mxu1 %v21448_v19  ;;  %18709 = vmatmul.mubr.f32.vlgmr.msra.gmra.mxu0 %v21448_v19 }
 0xb1c   :  { %18712 = vmatpush3.xpose.msra.mxu1 %v21488_v38  ;;  %18719 = vmatpush3.xpose.msra.mxu0 %v21490_v39 }
 0xb1d   :  { %18713 = vmatprep.subr.mxu1 %v19983_v0  ;;  %18720 = vmatprep.subr.mxu0 %v19983_v0 }
 0xb1e   :  { %18715 = vmatprep.mubr.msk.f32.mxu1 %vm19984_vm1, %v19983_v0  ;;  %18722 = vmatprep.mubr.msk.f32.mxu0 %vm19984_vm1, %v19983_v0 }
 0xb20   :  { %18714 = vmatpush3.xpose.msra.mxu1 %v21498_v49  ;;  %18721 = vmatpush3.xpose.msra.mxu0 %v21500_v56 }
 0xb21   :  { %18725 = vmatprep.subr.mxu1 %v19983_v0  ;;  %18732 = vmatprep.subr.mxu0 %v19983_v0 }
 0xb23   :  { %18716 = vmatmul.mubr.f32.vlgmr.msra.gmra.mxu1 %v21392_v43  ;;  %18723 = vmatmul.mubr.f32.vlgmr.msra.gmra.mxu0 %v21392_v43 }
 0xb24   :  { %18726 = vmatpush3.xpose.msra.mxu1 %v9816_v27  ;;  %18733 = vmatpush3.xpose.msra.mxu0 %v9818_v46 }
 0xb25   :  { %18727 = vmatprep.subr.mxu1 %v19983_v0  ;;  %18734 = vmatprep.subr.mxu0 %v19983_v0 }
 0xb26   :  { %18729 = vmatprep.mubr.msk.f32.mxu1 %vm19984_vm1, %v19983_v0  ;;  %18736 = vmatprep.mubr.msk.f32.mxu0 %vm19984_vm1, %v19983_v0 }
 0xb28   :  { %18728 = vmatpush3.xpose.msra.mxu1 %v9815_v3  ;;  %18735 = vmatpush3.xpose.msra.mxu0 %v9817_v59 }
 0xb29   :  { %18739 = vmatprep.subr.mxu1 %v19983_v0  ;;  %18746 = vmatprep.subr.mxu0 %v19983_v0 }
 0xb2b   :  { %18730 = vmatmul.mubr.f32.vlgmr.msra.gmra.mxu1 %v21392_v43  ;;  %18737 = vmatmul.mubr.f32.vlgmr.msra.gmra.mxu0 %v21392_v43 }
 0xb2c   :  { %18740 = vmatpush3.xpose.msra.mxu1 %v9820_v42  ;;  %18747 = vmatpush3.xpose.msra.mxu0 %v9822_v63 }
 0xb2d   :  { %18741 = vmatprep.subr.mxu1 %v19983_v0  ;;  %18748 = vmatprep.subr.mxu0 %v19983_v0 }
 0xb2e   :  { %18743 = vmatprep.mubr.msk.f32.mxu1 %vm19984_vm1, %v19983_v0  ;;  %18750 = vmatprep.mubr.msk.f32.mxu0 %vm19984_vm1, %v19983_v0 }
 0xb30   :  { %18742 = vmatpush3.xpose.msra.mxu1 %v9819_v8  ;;  %18749 = vmatpush3.xpose.msra.mxu0 %v9821_v57 }
 0xb31   :  { %18753 = vmatprep.subr.mxu1 %v19983_v0  ;;  %18760 = vmatprep.subr.mxu0 %v19983_v0 }
 0xb33   :  { %18744 = vmatmul.mubr.f32.vlgmr.msra.gmra.mxu1 %v21392_v43  ;;  %18751 = vmatmul.mubr.f32.vlgmr.msra.gmra.mxu0 %v21392_v43 }
 0xb34   :  { %18754 = vmatpush3.xpose.msra.mxu1 %v9824_v33  ;;  %18761 = vmatpush3.xpose.msra.mxu0 %v9826_v32 }
 0xb35   :  { %18755 = vmatprep.subr.mxu1 %v19983_v0  ;;  %18762 = vmatprep.subr.mxu0 %v19983_v0 }
 0xb36   :  { %18757 = vmatprep.mubr.msk.f32.mxu1 %vm19984_vm1, %v19983_v0  ;;  %18764 = vmatprep.mubr.msk.f32.mxu0 %vm19984_vm1, %v19983_v0 }
 0xb38   :  { %18756 = vmatpush3.xpose.msra.mxu1 %v9823_v61  ;;  %18763 = vmatpush3.xpose.msra.mxu0 %v9825_v37 }
 0xb39   :  { %18767 = vmatprep.subr.mxu1 %v19983_v0  ;;  %18774 = vmatprep.subr.mxu0 %v19983_v0 }
 0xb3b   :  { %18758 = vmatmul.mubr.f32.vlgmr.msra.gmra.mxu1 %v21392_v43  ;;  %18765 = vmatmul.mubr.f32.vlgmr.msra.gmra.mxu0 %v21392_v43 }
 0xb3c   :  { %18768 = vmatpush3.xpose.msra.mxu1 %v21488_v38  ;;  %18775 = vmatpush3.xpose.msra.mxu0 %v21490_v39 }
 0xb3d   :  { %18769 = vmatprep.subr.mxu1 %v19983_v0  ;;  %18776 = vmatprep.subr.mxu0 %v19983_v0 }
 0xb3e   :  { %18771 = vmatprep.mubr.msk.f32.mxu1 %vm19984_vm1, %v19983_v0  ;;  %18778 = vmatprep.mubr.msk.f32.mxu0 %vm19984_vm1, %v19983_v0 }
 0xb40   :  { %18770 = vmatpush3.xpose.msra.mxu1 %v21498_v49  ;;  %18777 = vmatpush3.xpose.msra.mxu0 %v21500_v56 }
 0xb41   :  { %18781 = vmatprep.subr.mxu1 %v19983_v0  ;;  %18788 = vmatprep.subr.mxu0 %v19983_v0 }
 0xb43   :  { %18772 = vmatmul.mubr.f32.vlgmr.msra.gmra.mxu1 %v21448_v19  ;;  %18779 = vmatmul.mubr.f32.vlgmr.msra.gmra.mxu0 %v21448_v19 }
 0xb44   :  { %18782 = vmatpush3.xpose.msra.mxu1 %v9816_v27  ;;  %18789 = vmatpush3.xpose.msra.mxu0 %v9818_v46 }
 0xb45   :  { %18783 = vmatprep.subr.mxu1 %v19983_v0  ;;  %18790 = vmatprep.subr.mxu0 %v19983_v0 }
 0xb46   :  { %18785 = vmatprep.mubr.msk.f32.mxu1 %vm19984_vm1, %v19983_v0  ;;  %18792 = vmatprep.mubr.msk.f32.mxu0 %vm19984_vm1, %v19983_v0 }
 0xb48   :  { %18784 = vmatpush3.xpose.msra.mxu1 %v9815_v3  ;;  %18791 = vmatpush3.xpose.msra.mxu0 %v9817_v59 }
 0xb49   :  { %18795 = vmatprep.subr.mxu1 %v19983_v0  ;;  %18802 = vmatprep.subr.mxu0 %v19983_v0 }
 0xb4b   :  { %18786 = vmatmul.mubr.f32.vlgmr.msra.gmra.mxu1 %v21448_v19  ;;  %18793 = vmatmul.mubr.f32.vlgmr.msra.gmra.mxu0 %v21448_v19 }
 0xb4c   :  { %18796 = vmatpush3.xpose.msra.mxu1 %v9820_v42  ;;  %18803 = vmatpush3.xpose.msra.mxu0 %v9822_v63  ;;  %v21711_v63 = vld [vmem:[%s22585_s14 + $0x8] ss:$0 sm:$0xff] }
 0xb4d   :  { %18797 = vmatprep.subr.mxu1 %v19983_v0  ;;  %18804 = vmatprep.subr.mxu0 %v19983_v0 }
 0xb4e   :  { %18799 = vmatprep.mubr.msk.f32.mxu1 %vm19984_vm1, %v19983_v0  ;;  %18806 = vmatprep.mubr.msk.f32.mxu0 %vm19984_vm1, %v19983_v0 }
 0xb50   :  { %18798 = vmatpush3.xpose.msra.mxu1 %v9819_v8  ;;  %18805 = vmatpush3.xpose.msra.mxu0 %v9821_v57  ;;  %v21714_v8 = vld [vmem:[%s22585_s14 + $0x9] ss:$0 sm:$0xff] }
 0xb51   :  { %18809 = vmatprep.subr.mxu1 %v19983_v0  ;;  %18816 = vmatprep.subr.mxu0 %v19983_v0 }
 0xb53   :  { %18800 = vmatmul.mubr.f32.vlgmr.msra.gmra.mxu1 %v21448_v19  ;;  %18807 = vmatmul.mubr.f32.vlgmr.msra.gmra.mxu0 %v21448_v19 }
 0xb54   :  { %18810 = vmatpush3.xpose.msra.mxu1 %v9824_v33  ;;  %18817 = vmatpush3.xpose.msra.mxu0 %v9826_v32  ;;  %v21717_v32 = vld [vmem:[%s22585_s14] ss:$0 sm:$0xff] }
 0xb55   :  { %18811 = vmatprep.subr.mxu1 %v19983_v0  ;;  %18818 = vmatprep.subr.mxu0 %v19983_v0 }
 0xb56   :  { %18813 = vmatprep.mubr.msk.f32.mxu1 %vm19984_vm1, %v19983_v0  ;;  %18820 = vmatprep.mubr.msk.f32.mxu0 %vm19984_vm1, %v19983_v0 }
 0xb58   :  { %18812 = vmatpush3.xpose.msra.mxu1 %v9823_v61  ;;  %18819 = vmatpush3.xpose.msra.mxu0 %v9825_v37  ;;  %v21720_v61 = vld [vmem:[%s22585_s14 + $0x1] ss:$0 sm:$0xff] }
 0xb59   :  { %18823 = vmatprep.subr.mxu1 %v19983_v0  ;;  %18830 = vmatprep.subr.mxu0 %v19983_v0 }
 0xb5b   :  { %18814 = vmatmul.mubr.f32.vlgmr.msra.gmra.mxu1 %v21448_v19  ;;  %18821 = vmatmul.mubr.f32.vlgmr.msra.gmra.mxu0 %v21448_v19 }
 0xb5c   :  { %18824 = vmatpush3.xpose.msra.mxu1 %v21584_v7  ;;  %18831 = vmatpush3.xpose.msra.mxu0 %v21586_v45 }
 0xb5d   :  { %18825 = vmatprep.subr.mxu1 %v19983_v0  ;;  %18832 = vmatprep.subr.mxu0 %v19983_v0 }
 0xb5e   :  { %18827 = vmatprep.mubr.msk.f32.mxu1 %vm19984_vm1, %v19983_v0  ;;  %18834 = vmatprep.mubr.msk.f32.mxu0 %vm19984_vm1, %v19983_v0 }
 0xb60   :  { %18826 = vmatpush3.xpose.msra.mxu1 %v21594_v60  ;;  %18833 = vmatpush3.xpose.msra.mxu0 %v21596_v17 }
 0xb61   :  { %18837 = vmatprep.subr.mxu1 %v19983_v0  ;;  %18844 = vmatprep.subr.mxu0 %v19983_v0 }
 0xb63   :  { %18828 = vmatmul.mubr.f32.vlgmr.msra.gmra.mxu1 %v21392_v43  ;;  %18835 = vmatmul.mubr.f32.vlgmr.msra.gmra.mxu0 %v21392_v43 }
 0xb64   :  { %18838 = vmatpush3.xpose.msra.mxu1 %v11010_v28  ;;  %18845 = vmatpush3.xpose.msra.mxu0 %v11012_v41 }
 0xb65   :  { %18839 = vmatprep.subr.mxu1 %v19983_v0  ;;  %18846 = vmatprep.subr.mxu0 %v19983_v0 }
 0xb66   :  { %18841 = vmatprep.mubr.msk.f32.mxu1 %vm19984_vm1, %v19983_v0  ;;  %18848 = vmatprep.mubr.msk.f32.mxu0 %vm19984_vm1, %v19983_v0 }
 0xb68   :  { %18840 = vmatpush3.xpose.msra.mxu1 %v11009_v47  ;;  %18847 = vmatpush3.xpose.msra.mxu0 %v11011_v16 }
 0xb69   :  { %18851 = vmatprep.subr.mxu1 %v19983_v0  ;;  %18858 = vmatprep.subr.mxu0 %v19983_v0 }
 0xb6b   :  { %18842 = vmatmul.mubr.f32.vlgmr.msra.gmra.mxu1 %v21392_v43  ;;  %18849 = vmatmul.mubr.f32.vlgmr.msra.gmra.mxu0 %v21392_v43 }
 0xb6c   :  { %18852 = vmatpush3.xpose.msra.mxu1 %v11014_v4  ;;  %18859 = vmatpush3.xpose.msra.mxu0 %v11016_v51 }
 0xb6d   :  { %18853 = vmatprep.subr.mxu1 %v19983_v0  ;;  %18860 = vmatprep.subr.mxu0 %v19983_v0 }
 0xb6e   :  { %18855 = vmatprep.mubr.msk.f32.mxu1 %vm19984_vm1, %v19983_v0  ;;  %18862 = vmatprep.mubr.msk.f32.mxu0 %vm19984_vm1, %v19983_v0 }
 0xb70   :  { %18854 = vmatpush3.xpose.msra.mxu1 %v11013_v62  ;;  %18861 = vmatpush3.xpose.msra.mxu0 %v11015_v5 }
 0xb71   :  { %18865 = vmatprep.subr.mxu1 %v19983_v0  ;;  %18872 = vmatprep.subr.mxu0 %v19983_v0 }
 0xb73   :  { %18856 = vmatmul.mubr.f32.vlgmr.msra.gmra.mxu1 %v21392_v43  ;;  %18863 = vmatmul.mubr.f32.vlgmr.msra.gmra.mxu0 %v21392_v43 }
 0xb74   :  { %18866 = vmatpush3.xpose.msra.mxu1 %v11018_v50  ;;  %18873 = vmatpush3.xpose.msra.mxu0 %v11020_v26 }
 0xb75   :  { %18867 = vmatprep.subr.mxu1 %v19983_v0  ;;  %18874 = vmatprep.subr.mxu0 %v19983_v0 }
 0xb76   :  { %18869 = vmatprep.mubr.msk.f32.mxu1 %vm19984_vm1, %v19983_v0  ;;  %18876 = vmatprep.mubr.msk.f32.mxu0 %vm19984_vm1, %v19983_v0 }
 0xb78   :  { %18868 = vmatpush3.xpose.msra.mxu1 %v11017_v23  ;;  %18875 = vmatpush3.xpose.msra.mxu0 %v11019_v14 }
 0xb79   :  { %18879 = vmatprep.subr.mxu1 %v19983_v0  ;;  %18886 = vmatprep.subr.mxu0 %v19983_v0 }
 0xb7b   :  { %18870 = vmatmul.mubr.f32.vlgmr.msra.gmra.mxu1 %v21392_v43  ;;  %18877 = vmatmul.mubr.f32.vlgmr.msra.gmra.mxu0 %v21392_v43 }
 0xb7c   :  { %18880 = vmatpush3.xpose.msra.mxu1 %v21584_v7  ;;  %18887 = vmatpush3.xpose.msra.mxu0 %v21586_v45 }
 0xb7d   :  { %18881 = vmatprep.subr.mxu1 %v19983_v0  ;;  %18888 = vmatprep.subr.mxu0 %v19983_v0 }
 0xb7e   :  { %18883 = vmatprep.mubr.msk.f32.mxu1 %vm19984_vm1, %v19983_v0  ;;  %18890 = vmatprep.mubr.msk.f32.mxu0 %vm19984_vm1, %v19983_v0 }
 0xb80   :  { %18882 = vmatpush3.xpose.msra.mxu1 %v21594_v60  ;;  %18889 = vmatpush3.xpose.msra.mxu0 %v21596_v17 }
 0xb81   :  { %18893 = vmatprep.subr.mxu1 %v19983_v0  ;;  %18900 = vmatprep.subr.mxu0 %v19983_v0 }
 0xb83   :  { %18884 = vmatmul.mubr.f32.vlgmr.msra.gmra.mxu1 %v21448_v19  ;;  %18891 = vmatmul.mubr.f32.vlgmr.msra.gmra.mxu0 %v21448_v19 }
 0xb84   :  { %18894 = vmatpush3.xpose.msra.mxu1 %v11010_v28  ;;  %18901 = vmatpush3.xpose.msra.mxu0 %v11012_v41  ;;  %v21733_v41 = vld [vmem:[%s22585_s14 + $0xa] ss:$0 sm:$0xff] }
 0xb85   :  { %18895 = vmatprep.subr.mxu1 %v19983_v0  ;;  %18902 = vmatprep.subr.mxu0 %v19983_v0 }
 0xb86   :  { %18897 = vmatprep.mubr.msk.f32.mxu1 %vm19984_vm1, %v19983_v0  ;;  %18904 = vmatprep.mubr.msk.f32.mxu0 %vm19984_vm1, %v19983_v0 }
 0xb88   :  { %18896 = vmatpush3.xpose.msra.mxu1 %v11009_v47  ;;  %18903 = vmatpush3.xpose.msra.mxu0 %v11011_v16  ;;  %v21736_v47 = vld [vmem:[%s22585_s14 + $0xb] ss:$0 sm:$0xff] }
 0xb89   :  { %18907 = vmatprep.subr.mxu1 %v19983_v0  ;;  %18914 = vmatprep.subr.mxu0 %v19983_v0 }
 0xb8b   :  { %18898 = vmatmul.mubr.f32.vlgmr.msra.gmra.mxu1 %v21448_v19  ;;  %18905 = vmatmul.mubr.f32.vlgmr.msra.gmra.mxu0 %v21448_v19 }
 0xb8c   :  { %18908 = vmatpush3.xpose.msra.mxu1 %v11014_v4  ;;  %18915 = vmatpush3.xpose.msra.mxu0 %v11016_v51  ;;  %v21743_v51 = vld [vmem:[%s22585_s14 + $0x2] ss:$0 sm:$0xff] }
 0xb8d   :  { %18909 = vmatprep.subr.mxu1 %v19983_v0  ;;  %18916 = vmatprep.subr.mxu0 %v19983_v0 }
 0xb8e   :  { %18911 = vmatprep.mubr.msk.f32.mxu1 %vm19984_vm1, %v19983_v0  ;;  %18918 = vmatprep.mubr.msk.f32.mxu0 %vm19984_vm1, %v19983_v0 }
 0xb90   :  { %18910 = vmatpush3.xpose.msra.mxu1 %v11013_v62  ;;  %18917 = vmatpush3.xpose.msra.mxu0 %v11015_v5  ;;  %v21746_v62 = vld [vmem:[%s22585_s14 + $0x3] ss:$0 sm:$0xff] }
 0xb91   :  { %18921 = vmatprep.subr.mxu1 %v19983_v0  ;;  %18928 = vmatprep.subr.mxu0 %v19983_v0 }
 0xb93   :  { %18912 = vmatmul.mubr.f32.vlgmr.msra.gmra.mxu1 %v21448_v19  ;;  %18919 = vmatmul.mubr.f32.vlgmr.msra.gmra.mxu0 %v21448_v19 }
 0xb94   :  { %18922 = vmatpush3.xpose.msra.mxu1 %v11018_v50  ;;  %18929 = vmatpush3.xpose.msra.mxu0 %v11020_v26 }
 0xb95   :  { %18923 = vmatprep.subr.mxu1 %v19983_v0  ;;  %18930 = vmatprep.subr.mxu0 %v19983_v0 }
 0xb96   :  { %18925 = vmatprep.mubr.msk.f32.mxu1 %vm19984_vm1, %v19983_v0  ;;  %18932 = vmatprep.mubr.msk.f32.mxu0 %vm19984_vm1, %v19983_v0 }
 0xb98   :  { %18924 = vmatpush3.xpose.msra.mxu1 %v11017_v23  ;;  %18931 = vmatpush3.xpose.msra.mxu0 %v11019_v14 }
 0xb99   :  { %18935 = vmatprep.subr.mxu1 %v19983_v0  ;;  %18940 = vmatprep.subr.mxu0 %v19983_v0 }
 0xb9b   :  { %18926 = vmatmul.mubr.f32.vlgmr.msra.gmra.mxu1 %v21448_v19  ;;  %18933 = vmatmul.mubr.f32.vlgmr.msra.gmra.mxu0 %v21448_v19 }
 0xb9c   :  { %18937 = vmatprep.mubr.msk.f32.mxu1 %vm19984_vm1, %v19983_v0  ;;  %18942 = vmatprep.mubr.msk.f32.mxu0 %vm19984_vm1, %v19983_v0 }
 0xba3   :  { %v8756_v44 = vpop.f32.mrf.mxu1  ;;  %v8826_v29 = vpop.f32.mrf.mxu0 }
 0xba4   :  { %v8757_v17 = vadd.f32 %v21717_v32, %v8756_v44  ;;  %v8827_v28 = vadd.f32 %v21720_v61, %v8826_v29  ;;  %v21759_v29 = vld [vmem:[%s22585_s14 + $0xc] ss:$0 sm:$0xff] }
 0xba5   :  { %v18605_v35 = vpop.f32.mrf.mxu1  ;;  %v18612_v13 = vpop.f32.mrf.mxu0 }
 0xba6   :  { %v21762_v35 = vld [vmem:[%s22585_s14 + $0xd] ss:$0 sm:$0xff] }
 0xbab   :  { %v8896_v52 = vpop.f32.mrf.mxu1  ;;  %v8966_v40 = vpop.f32.mrf.mxu0 }
 0xbac   :  { %v8897_v14 = vadd.f32 %v21743_v51, %v8896_v52  ;;  %v8967_v44 = vadd.f32 %v21746_v62, %v8966_v40  ;;  %v21769_v40 = vld [vmem:[%s22585_s14 + $0x4] ss:$0 sm:$0xff] }
 0xbad   :  { %v18619_v9 = vpop.f32.mrf.mxu1  ;;  %v18626_v25 = vpop.f32.mrf.mxu0 }
 0xbae   :  { %v21772_v9 = vld [vmem:[%s22585_s14 + $0x5] ss:$0 sm:$0xff] }
 0xbb3   :  { %v21686_v30 = vpop.f32.mrf.mxu1  ;;  %v21688_v1 = vpop.f32.mrf.mxu0 }
 0xbb5   :  { %v18633_v12 = vpop.f32.mrf.mxu1  ;;  %v18640_v21 = vpop.f32.mrf.mxu0 }
 0xbbb   :  { %v21690_v6 = vpop.f32.mrf.mxu1  ;;  %v21692_v11 = vpop.f32.mrf.mxu0 }
 0xbbd   :  { %v18647_v10 = vpop.f32.mrf.mxu1  ;;  %v18654_v55 = vpop.f32.mrf.mxu0 }
 0xbbe   :  { %v9037_v55 = vadd.f32 %v21769_v40, %v21686_v30 }
 0xbc3   :  { %v21694_v34 = vpop.f32.mrf.mxu1  ;;  %v21696_v22 = vpop.f32.mrf.mxu0 }
 0xbc5   :  { %v18661_v58 = vpop.f32.mrf.mxu1  ;;  %v18668_v18 = vpop.f32.mrf.mxu0 }
 0xbc6   :  { %v9107_v58 = vadd.f32 %v21772_v9, %v21688_v1  ;;  %v21787_v18 = vld [vmem:[%s22585_s14 + $0xe] ss:$0 sm:$0xff] }
 0xbcb   :  { %v21698_v53 = vpop.f32.mrf.mxu1  ;;  %v21700_v36 = vpop.f32.mrf.mxu0 }
 0xbcd   :  { %v18675_v31 = vpop.f32.mrf.mxu1  ;;  %v18682_v38 = vpop.f32.mrf.mxu0 }
 0xbce   :  { %v21790_v31 = vld [vmem:[%s22585_s14 + $0xf] ss:$0 sm:$0xff]  ;;  %v21797_v38 = vld [vmem:[%s22585_s14 + $0x6] ss:$0 sm:$0xff] }
 0xbd3   :  { %v21702_v39 = vpop.f32.mrf.mxu1  ;;  %v21704_v49 = vpop.f32.mrf.mxu0 }
 0xbd5   :  { %v18689_v56 = vpop.f32.mrf.mxu1  ;;  %v18696_v27 = vpop.f32.mrf.mxu0 }
 0xbd6   :  { %v21800_v56 = vld [vmem:[%s22585_s14 + $0x7] ss:$0 sm:$0xff] }
 0xbdb   :  { %v21706_v46 = vpop.f32.mrf.mxu1  ;;  %v21708_v3 = vpop.f32.mrf.mxu0 }
 0xbdd   :  { %v18703_v59 = vpop.f32.mrf.mxu1  ;;  %v18710_v42 = vpop.f32.mrf.mxu0 }
 0xbe3   :  { %v9950_v57 = vpop.f32.mrf.mxu1  ;;  %v10020_v33 = vpop.f32.mrf.mxu0 }
 0xbe4   :  { %v9951_v37 = vadd.f32 %v21711_v63, %v9950_v57  ;;  %v10021_v7 = vadd.f32 %v21714_v8, %v10020_v33  ;;  %v9177_v33 = vadd.f32 %v21797_v38, %v21690_v6 }
 0xbe5   :  { %v18717_v45 = vpop.f32.mrf.mxu1  ;;  %v18724_v60 = vpop.f32.mrf.mxu0 }
 0xbe6   :  { %18936 = vmatpush3.xpose.msk.msra.mxu1 %vm407_vm0, %v9951_v37  ;;  %18941 = vmatpush3.xpose.msk.msra.mxu0 %vm407_vm0, %v10021_v7  ;;  %v9247_v37 = vadd.f32 %v21800_v56, %v21692_v11 }
 0xbe7   :  { %18945 = vmatprep.subr.mxu1 %v19983_v0  ;;  %18950 = vmatprep.subr.mxu0 %v19983_v0 }
 0xbe9   :  { %18938 = vmatmul.mubr.msk.f32.vlgmr.msra.gmra.mxu1 %vm407_vm0, %v8757_v17  ;;  %18943 = vmatmul.mubr.msk.f32.vlgmr.msra.gmra.mxu0 %vm407_vm0, %v8827_v28  ;;  %v9317_v28 = vadd.f32 %v21717_v32, %v21694_v34 }
 0xbea   :  { %18947 = vmatprep.mubr.msk.f32.mxu1 %vm19984_vm1, %v19983_v0  ;;  %18952 = vmatprep.mubr.msk.f32.mxu0 %vm19984_vm1, %v19983_v0 }
 0xbeb   :  { %v10090_v16 = vpop.f32.mrf.mxu1  ;;  %v10160_v4 = vpop.f32.mrf.mxu0 }
 0xbec   :  { %v10091_v5 = vadd.f32 %v21733_v41, %v10090_v16  ;;  %v10161_v50 = vadd.f32 %v21736_v47, %v10160_v4  ;;  %v9387_v16 = vadd.f32 %v21720_v61, %v21696_v22  ;;  %v9457_v4 = vadd.f32 %v21743_v51, %v21698_v53 }
 0xbed   :  { %v18731_v26 = vpop.f32.mrf.mxu1  ;;  %v18738_v23 = vpop.f32.mrf.mxu0 }
 0xbee   :  { %18946 = vmatpush3.xpose.msk.msra.mxu1 %vm407_vm0, %v10091_v5  ;;  %18951 = vmatpush3.xpose.msk.msra.mxu0 %vm407_vm0, %v10161_v50  ;;  %v9527_v5 = vadd.f32 %v21746_v62, %v21700_v36  ;;  %v9597_v50 = vadd.f32 %v21769_v40, %v21702_v39  ;;  %v9667_v26 = vadd.f32 %v21772_v9, %v21704_v49  ;;  %v17233_v40 = vld [vmem:[%s22585_s14 + $0x11] ss:$0 sm:$0xff] }
 0xbef   :  { %18955 = vmatprep.subr.mxu1 %v19983_v0  ;;  %18960 = vmatprep.subr.mxu0 %v19983_v0 }
 0xbf1   :  { %18948 = vmatmul.mubr.msk.f32.vlgmr.msra.gmra.mxu1 %vm407_vm0, %v8897_v14  ;;  %18953 = vmatmul.mubr.msk.f32.vlgmr.msra.gmra.mxu0 %vm407_vm0, %v8967_v44 }
 0xbf2   :  { %18957 = vmatprep.mubr.msk.f32.mxu1 %vm19984_vm1, %v19983_v0  ;;  %18962 = vmatprep.mubr.msk.f32.mxu0 %vm19984_vm1, %v19983_v0 }
 0xbf3   :  { %v10230_v13 = vpop.f32.mrf.mxu1  ;;  %v10300_v52 = vpop.f32.mrf.mxu0 }
 0xbf4   :  { %v10231_v25 = vadd.f32 %v21759_v29, %v10230_v13  ;;  %v10301_v12 = vadd.f32 %v21762_v35, %v10300_v52  ;;  %v9807_v13 = vadd.f32 %v21800_v56, %v21708_v3  ;;  %v17232_v52 = vld [vmem:[%s22585_s14 + $0x10] ss:$0 sm:$0xff] }
 0xbf5   :  { %v18745_v21 = vpop.f32.mrf.mxu1  ;;  %v18752_v10 = vpop.f32.mrf.mxu0 }
 0xbf6   :  { %18956 = vmatpush3.xpose.msk.msra.mxu1 %vm407_vm0, %v10231_v25  ;;  %18961 = vmatpush3.xpose.msk.msra.mxu0 %vm407_vm0, %v10301_v12 }
 0xbf7   :  { %18965 = vmatprep.subr.mxu1 %v19983_v0  ;;  %18970 = vmatprep.subr.mxu0 %v19983_v0 }
 0xbf9   :  { %18958 = vmatmul.mubr.msk.f32.vlgmr.msra.gmra.mxu1 %vm407_vm0, %v9037_v55  ;;  %18963 = vmatmul.mubr.msk.f32.vlgmr.msra.gmra.mxu0 %vm407_vm0, %v9107_v58 }
 0xbfa   :  { %18967 = vmatprep.mubr.msk.f32.mxu1 %vm19984_vm1, %v19983_v0  ;;  %18972 = vmatprep.mubr.msk.f32.mxu0 %vm19984_vm1, %v19983_v0 }
 0xbfb   :  { %v10370_v30 = vpop.f32.mrf.mxu1  ;;  %v10440_v1 = vpop.f32.mrf.mxu0 }
 0xbfc   :  { %v10371_v27 = vadd.f32 %v21787_v18, %v10370_v30  ;;  %v10441_v59 = vadd.f32 %v21790_v31, %v10440_v1 }
 0xbfd   :  { %v18759_v42 = vpop.f32.mrf.mxu1  ;;  %v18766_v57 = vpop.f32.mrf.mxu0 }
 0xbfe   :  { %18966 = vmatpush3.xpose.msk.msra.mxu1 %vm407_vm0, %v10371_v27  ;;  %18971 = vmatpush3.xpose.msk.msra.mxu0 %vm407_vm0, %v10441_v59 }
 0xbff   :  { %18975 = vmatprep.subr.mxu1 %v19983_v0  ;;  %18980 = vmatprep.subr.mxu0 %v19983_v0 }
 0xc01   :  { %18968 = vmatmul.mubr.msk.f32.vlgmr.msra.gmra.mxu1 %vm407_vm0, %v9177_v33  ;;  %18973 = vmatmul.mubr.msk.f32.vlgmr.msra.gmra.mxu0 %vm407_vm0, %v9247_v37 }
 0xc02   :  { %18977 = vmatprep.mubr.msk.f32.mxu1 %vm19984_vm1, %v19983_v0  ;;  %18982 = vmatprep.mubr.msk.f32.mxu0 %vm19984_vm1, %v19983_v0 }
 0xc03   :  { %v10510_v7 = vpop.f32.mrf.mxu1  ;;  %v10580_v45 = vpop.f32.mrf.mxu0 }
 0xc04   :  { %v10511_v6 = vadd.f32 %v21711_v63, %v10510_v7  ;;  %v10581_v11 = vadd.f32 %v21714_v8, %v10580_v45 }
 0xc05   :  { %v18773_v60 = vpop.f32.mrf.mxu1  ;;  %v18780_v17 = vpop.f32.mrf.mxu0 }
 0xc06   :  { %18976 = vmatpush3.xpose.msk.msra.mxu1 %vm407_vm0, %v10511_v6  ;;  %18981 = vmatpush3.xpose.msk.msra.mxu0 %vm407_vm0, %v10581_v11 }
 0xc07   :  { %18985 = vmatprep.subr.mxu1 %v19983_v0  ;;  %18990 = vmatprep.subr.mxu0 %v19983_v0 }
 0xc09   :  { %18978 = vmatmul.mubr.msk.f32.vlgmr.msra.gmra.mxu1 %vm407_vm0, %v9317_v28  ;;  %18983 = vmatmul.mubr.msk.f32.vlgmr.msra.gmra.mxu0 %vm407_vm0, %v9387_v16 }
 0xc0a   :  { %18987 = vmatprep.mubr.msk.f32.mxu1 %vm19984_vm1, %v19983_v0  ;;  %18992 = vmatprep.mubr.msk.f32.mxu0 %vm19984_vm1, %v19983_v0 }
 0xc0b   :  { %v10650_v63 = vpop.f32.mrf.mxu1  ;;  %v10720_v8 = vpop.f32.mrf.mxu0 }
 0xc0c   :  { %v10651_v34 = vadd.f32 %v21733_v41, %v10650_v63  ;;  %v10721_v22 = vadd.f32 %v21736_v47, %v10720_v8 }
 0xc0d   :  { %v18787_v32 = vpop.f32.mrf.mxu1  ;;  %v18794_v61 = vpop.f32.mrf.mxu0 }
 0xc0e   :  { %18986 = vmatpush3.xpose.msk.msra.mxu1 %vm407_vm0, %v10651_v34  ;;  %18991 = vmatpush3.xpose.msk.msra.mxu0 %vm407_vm0, %v10721_v22 }
 0xc0f   :  { %18995 = vmatprep.subr.mxu1 %v19983_v0  ;;  %19000 = vmatprep.subr.mxu0 %v19983_v0 }
 0xc11   :  { %18988 = vmatmul.mubr.msk.f32.vlgmr.msra.gmra.mxu1 %vm407_vm0, %v9457_v4  ;;  %18993 = vmatmul.mubr.msk.f32.vlgmr.msra.gmra.mxu0 %vm407_vm0, %v9527_v5 }
 0xc12   :  { %18997 = vmatprep.mubr.msk.f32.mxu1 %vm19984_vm1, %v19983_v0  ;;  %19002 = vmatprep.mubr.msk.f32.mxu0 %vm19984_vm1, %v19983_v0 }
 0xc13   :  { %v10790_v41 = vpop.f32.mrf.mxu1  ;;  %v10860_v47 = vpop.f32.mrf.mxu0 }
 0xc14   :  { %v10791_v53 = vadd.f32 %v21759_v29, %v10790_v41  ;;  %v10861_v36 = vadd.f32 %v21762_v35, %v10860_v47  ;;  %v9737_v35 = vadd.f32 %v21797_v38, %v21706_v46 }
 0xc15   :  { %v18801_v51 = vpop.f32.mrf.mxu1  ;;  %v18808_v62 = vpop.f32.mrf.mxu0 }
 0xc16   :  { %18996 = vmatpush3.xpose.msk.msra.mxu1 %vm407_vm0, %v10791_v53  ;;  %19001 = vmatpush3.xpose.msk.msra.mxu0 %vm407_vm0, %v10861_v36 }
 0xc17   :  { %19005 = vmatprep.subr.mxu1 %v19983_v0  ;;  %19010 = vmatprep.subr.mxu0 %v19983_v0 }
 0xc19   :  { %18998 = vmatmul.mubr.msk.f32.vlgmr.msra.gmra.mxu1 %vm407_vm0, %v9597_v50  ;;  %19003 = vmatmul.mubr.msk.f32.vlgmr.msra.gmra.mxu0 %vm407_vm0, %v9667_v26 }
 0xc1a   :  { %19007 = vmatprep.mubr.msk.f32.mxu1 %vm19984_vm1, %v19983_v0  ;;  %19012 = vmatprep.mubr.msk.f32.mxu0 %vm19984_vm1, %v19983_v0 }
 0xc1b   :  { %v10930_v39 = vpop.f32.mrf.mxu1  ;;  %v11000_v23 = vpop.f32.mrf.mxu0 }
 0xc1c   :  { %v10931_v49 = vadd.f32 %v21787_v18, %v10930_v39  ;;  %v11001_v14 = vadd.f32 %v21790_v31, %v11000_v23 }
 0xc1d   :  { %v18815_v44 = vpop.f32.mrf.mxu1  ;;  %v18822_v29 = vpop.f32.mrf.mxu0 }
 0xc1e   :  { %19006 = vmatpush3.xpose.msk.msra.mxu1 %vm407_vm0, %v10931_v49  ;;  %19011 = vmatpush3.xpose.msk.msra.mxu0 %vm407_vm0, %v11001_v14 }
 0xc1f   :  { %19015 = vmatprep.subr.mxu1 %v19983_v0  ;;  %19020 = vmatprep.subr.mxu0 %v19983_v0 }
 0xc21   :  { %19008 = vmatmul.mubr.msk.f32.vlgmr.msra.gmra.mxu1 %vm407_vm0, %v9737_v35  ;;  %19013 = vmatmul.mubr.msk.f32.vlgmr.msra.gmra.mxu0 %vm407_vm0, %v9807_v13 }
 0xc22   :  { %19022 = vmatprep.mubr.msk.f32.mxu0 %vm19984_vm1, %v19983_v0  ;;  %19017 = vmatprep.mubr.msk.f32.mxu1 %vm19984_vm1, %v19983_v0 }
 0xc23   :  { %v11144_v46 = vpop.f32.mrf.mxu1  ;;  %v11214_v9 = vpop.f32.mrf.mxu0 }
 0xc24   :  { %v11145_v25 = vadd.f32 %v17232_v52, %v11144_v46  ;;  %v11215_v3 = vadd.f32 %v17233_v40, %v11214_v9 }
 0xc25   :  { %v18829_v12 = vpop.f32.mrf.mxu1  ;;  %v18836_v21 = vpop.f32.mrf.mxu0 }
 0xc26   :  { %19016 = vmatpush3.msra.mxu1 %v11145_v25  ;;  %19021 = vmatpush3.msra.mxu0 %v11215_v3 }
 0xc27   :  { %19030 = vmatprep.subr.mxu0 %v19983_v0  ;;  %19025 = vmatprep.subr.mxu1 %v19983_v0 }
 0xc2b   :  { %v21886_v10 = vpop.f32.mrf.mxu1  ;;  %v21888_v55 = vpop.f32.mrf.mxu0 }
 0xc2d   :  { %v18843_v58 = vpop.f32.mrf.mxu1  ;;  %v18850_v18 = vpop.f32.mrf.mxu0 }
 0xc33   :  { %v21890_v31 = vpop.f32.mrf.mxu1  ;;  %v21892_v30 = vpop.f32.mrf.mxu0 }
 0xc35   :  { %v18857_v1 = vpop.f32.mrf.mxu1  ;;  %v18864_v38 = vpop.f32.mrf.mxu0 }
 0xc3b   :  { %v21894_v56 = vpop.f32.mrf.mxu1  ;;  %v21896_v27 = vpop.f32.mrf.mxu0 }
 0xc3d   :  { %v18871_v59 = vpop.f32.mrf.mxu1  ;;  %v18878_v42 = vpop.f32.mrf.mxu0 }
 0xc43   :  { %v11704_v57 = vpop.f32.mrf.mxu1  ;;  %v11774_v33 = vpop.f32.mrf.mxu0 }
 0xc44   :  { %v21898_v37 = vadd.f32 %v17232_v52, %v11704_v57  ;;  %v21900_v7 = vadd.f32 %v17233_v40, %v11774_v33 }
 0xc45   :  { %v18885_v45 = vpop.f32.mrf.mxu1  ;;  %v18892_v6 = vpop.f32.mrf.mxu0 }
 0xc4b   :  { %v21902_v11 = vpop.f32.mrf.mxu1  ;;  %v21904_v60 = vpop.f32.mrf.mxu0 }
 0xc4d   :  { %v18899_v17 = vpop.f32.mrf.mxu1  ;;  %v18906_v28 = vpop.f32.mrf.mxu0 }
 0xc53   :  { %v21906_v16 = vpop.f32.mrf.mxu1  ;;  %v21908_v63 = vpop.f32.mrf.mxu0 }
 0xc55   :  { %v18913_v8 = vpop.f32.mrf.mxu1  ;;  %v18920_v34 = vpop.f32.mrf.mxu0 }
 0xc5b   :  { %v21910_v22 = vpop.f32.mrf.mxu1  ;;  %v21912_v32 = vpop.f32.mrf.mxu0 }
 0xc5d   :  { %v18927_v61 = vpop.f32.mrf.mxu1  ;;  %v18934_v4 = vpop.f32.mrf.mxu0 }
 0xca9   :  { %v12270_v5 = vpop.f32.mrf.mxu1  ;;  %v12346_v41 = vpop.f32.mrf.mxu0 }
 0xcaa   :  { %v21914_v47 = vmul.f32 0.25, %v12270_v5  ;;  %v21916_v53 = vmul.f32 0.25, %v12346_v41 }
 0xcab   :  { %v18939_v36 = vpop.f32.mrf.mxu1  ;;  %v18944_v51 = vpop.f32.mrf.mxu0 }
 0xcac   :  { %v13433_v62 = vsel %vm5304_vm2, %v21916_v53, -inf  ;;  %v13430_v50 = vsel %vm5304_vm2, %v21914_v47, -inf }
 0xcad   :  { %13434 = vmax.xlane.f32.xlu1 %v13433_v62  ;;  %13431 = vmax.xlane.f32.xlu0 %v13430_v50 }
 0xcb1   :  { %v12422_v26 = vpop.f32.mrf.mxu1  ;;  %v12498_v39 = vpop.f32.mrf.mxu0 }
 0xcb2   :  { %v21922_v23 = vmul.f32 0.25, %v12422_v26  ;;  %v21924_v49 = vmul.f32 0.25, %v12498_v39 }
 0xcb3   :  { %v18949_v14 = vpop.f32.mrf.mxu1  ;;  %v18954_v44 = vpop.f32.mrf.mxu0 }
 0xcb4   :  { %v13439_v29 = vsel %vm5304_vm2, %v21924_v49, -inf  ;;  %v13436_v35 = vsel %vm5304_vm2, %v21922_v23, -inf }
 0xcb5   :  { %13440 = vmax.xlane.f32.xlu1 %v13439_v29  ;;  %13437 = vmax.xlane.f32.xlu0 %v13436_v35 }
 0xcb9   :  { %v12574_v13 = vpop.f32.mrf.mxu1  ;;  %v12650_v52 = vpop.f32.mrf.mxu0 }
 0xcba   :  { %v21930_v40 = vmul.f32 0.25, %v12574_v13  ;;  %v21932_v46 = vmul.f32 0.25, %v12650_v52 }
 0xcbb   :  { %v18959_v9 = vpop.f32.mrf.mxu1  ;;  %v18964_v25 = vpop.f32.mrf.mxu0 }
 0xcbc   :  { %v13445_v3 = vsel %vm5304_vm2, %v21932_v46, -inf  ;;  %v13442_v12 = vsel %vm5304_vm2, %v21930_v40, -inf }
 0xcbd   :  { %13446 = vmax.xlane.f32.xlu1 %v13445_v3  ;;  %13443 = vmax.xlane.f32.xlu0 %v13442_v12 }
 0xcc1   :  { %v12726_v21 = vpop.f32.mrf.mxu1  ;;  %v12802_v58 = vpop.f32.mrf.mxu0 }
 0xcc2   :  { %v21938_v18 = vmul.f32 0.25, %v12726_v21  ;;  %v21940_v1 = vmul.f32 0.25, %v12802_v58 }
 0xcc3   :  { %v18969_v38 = vpop.f32.mrf.mxu1  ;;  %v18974_v59 = vpop.f32.mrf.mxu0 }
 0xcc4   :  { %v13451_v42 = vsel %vm5304_vm2, %v21940_v1, -inf  ;;  %v13448_v57 = vsel %vm5304_vm2, %v21938_v18, -inf }
 0xcc5   :  { %13452 = vmax.xlane.f32.xlu1 %v13451_v42  ;;  %13449 = vmax.xlane.f32.xlu0 %v13448_v57 }
 0xcc9   :  { %v12878_v33 = vpop.f32.mrf.mxu1  ;;  %v12954_v45 = vpop.f32.mrf.mxu0 }
 0xcca   :  { %v21946_v6 = vmul.f32 0.25, %v12878_v33  ;;  %v21948_v17 = vmul.f32 0.25, %v12954_v45 }
 0xccb   :  { %v18979_v28 = vpop.f32.mrf.mxu1  ;;  %v18984_v8 = vpop.f32.mrf.mxu0 }
 0xccc   :  { %v13457_v34 = vsel %vm5304_vm2, %v21948_v17, -inf  ;;  %v13454_v61 = vsel %vm5304_vm2, %v21946_v6, -inf }
 0xccd   :  { %13458 = vmax.xlane.f32.xlu1 %v13457_v34  ;;  %13455 = vmax.xlane.f32.xlu0 %v13454_v61 }
 0xcd1   :  { %v13030_v4 = vpop.f32.mrf.mxu1  ;;  %v13106_v5 = vpop.f32.mrf.mxu0 }
 0xcd2   :  { %v21954_v41 = vmul.f32 0.25, %v13030_v4  ;;  %v21956_v36 = vmul.f32 0.25, %v13106_v5 }
 0xcd3   :  { %v18989_v51 = vpop.f32.mrf.mxu1  ;;  %v18994_v62 = vpop.f32.mrf.mxu0 }
 0xcd4   :  { %v13463_v50 = vsel %vm5304_vm2, %v21956_v36, -inf  ;;  %v13460_v26 = vsel %vm5304_vm2, %v21954_v41, -inf }
 0xcd5   :  { %13464 = vmax.xlane.f32.xlu1 %v13463_v50  ;;  %13461 = vmax.xlane.f32.xlu0 %v13460_v26 }
 0xcd9   :  { %v13182_v39 = vpop.f32.mrf.mxu1  ;;  %v13258_v14 = vpop.f32.mrf.mxu0 }
 0xcda   :  { %v21962_v44 = vmul.f32 0.25, %v13182_v39  ;;  %v21964_v29 = vmul.f32 0.25, %v13258_v14 }
 0xcdb   :  { %v18999_v35 = vpop.f32.mrf.mxu1  ;;  %v19004_v13 = vpop.f32.mrf.mxu0 }
 0xcdc   :  { %v13469_v52 = vsel %vm5304_vm2, %v21964_v29, -inf  ;;  %v13466_v9 = vsel %vm5304_vm2, %v21962_v44, -inf }
 0xcdd   :  { %13470 = vmax.xlane.f32.xlu1 %v13469_v52  ;;  %13467 = vmax.xlane.f32.xlu0 %v13466_v9 }
 0xce1   :  { %v13334_v25 = vpop.f32.mrf.mxu1  ;;  %v13410_v3 = vpop.f32.mrf.mxu0 }
 0xce2   :  { %v21970_v12 = vmul.f32 0.25, %v13334_v25  ;;  %v21972_v21 = vmul.f32 0.25, %v13410_v3 }
 0xce3   :  { %v19009_v58 = vpop.f32.mrf.mxu1  ;;  %v19014_v38 = vpop.f32.mrf.mxu0 }
 0xce4   :  { %v13475_v59 = vsel %vm5304_vm2, %v21972_v21, -inf  ;;  %v13472_v42 = vsel %vm5304_vm2, %v21970_v12, -inf }
 0xce5   :  { %13476 = vmax.xlane.f32.xlu1 %v13475_v59  ;;  %13473 = vmax.xlane.f32.xlu0 %v13472_v42 }
 0xd36   :  { %v13435_v57 = vpop.xlane.xlu1 %13434  ;;  %v13432_v33 = vpop.xlane.xlu0 %13431 }
 0xd37   :  { %v13479_v45 = vsub.f32 %v21916_v53, %v13435_v57  ;;  %v13478_v28 = vsub.f32 %v21914_v47, %v13432_v33 }
 0xd39   :  { %v13496_v8 = vmul.f32 1.442695, %v13479_v45  ;;  %v13494_v34 = vmul.f32 1.442695, %v13478_v28 }
 0xd3b   :  { %19379 = vpow2.f32 %v13496_v8 }
 0xd3c   :  { %19381 = vpow2.f32 %v13494_v34 }
 0xd3e   :  { %v13441_v61 = vpop.xlane.xlu1 %13440  ;;  %v13438_v4 = vpop.xlane.xlu0 %13437 }
 0xd3f   :  { %v13481_v5 = vsub.f32 %v21924_v49, %v13441_v61  ;;  %v13480_v51 = vsub.f32 %v21922_v23, %v13438_v4 }
 0xd41   :  { %v13500_v62 = vmul.f32 1.442695, %v13481_v5  ;;  %v13498_v50 = vmul.f32 1.442695, %v13480_v51 }
 0xd43   :  { %19383 = vpow2.f32 %v13500_v62 }
 0xd44   :  { %19385 = vpow2.f32 %v13498_v50 }
 0xd46   :  { %v13447_v26 = vpop.xlane.xlu1 %13446  ;;  %v13444_v39 = vpop.xlane.xlu0 %13443 }
 0xd47   :  { %v13483_v53 = vsub.f32 %v21932_v46, %v13447_v26  ;;  %v13482_v47 = vsub.f32 %v21930_v40, %v13444_v39 }
 0xd48   :  { %v21984_v14 = vpop.eup %19379 }
 0xd49   :  { %v21986_v35 = vpop.eup %19381  ;;  %v13504_v13 = vmul.f32 1.442695, %v13483_v53  ;;  %v13502_v52 = vmul.f32 1.442695, %v13482_v47  ;;  %v13529_v49 = vsel %vm5304_vm2, %v21984_v14, 0.0 }
 0xd4a   :  { %13530 = vadd.xlane.f32.xlu1 %v13529_v49  ;;  %v13526_v23 = vsel %vm5304_vm2, %v21986_v35, 0.0 }
 0xd4b   :  { %19387 = vpow2.f32 %v13504_v13  ;;  %13527 = vadd.xlane.f32.xlu0 %v13526_v23 }
 0xd4c   :  { %19389 = vpow2.f32 %v13502_v52 }
 0xd4e   :  { %v13453_v9 = vpop.xlane.xlu1 %13452  ;;  %v13450_v46 = vpop.xlane.xlu0 %13449 }
 0xd4f   :  { %v13485_v40 = vsub.f32 %v21940_v1, %v13453_v9  ;;  %v13484_v25 = vsub.f32 %v21938_v18, %v13450_v46 }
 0xd50   :  { %v21994_v3 = vpop.eup %19383 }
 0xd51   :  { %v21996_v58 = vpop.eup %19385  ;;  %v13508_v38 = vmul.f32 1.442695, %v13485_v40  ;;  %v13506_v59 = vmul.f32 1.442695, %v13484_v25  ;;  %v13535_v42 = vsel %vm5304_vm2, %v21994_v3, 0.0 }
 0xd52   :  { %13536 = vadd.xlane.f32.xlu1 %v13535_v42  ;;  %v13532_v57 = vsel %vm5304_vm2, %v21996_v58, 0.0 }
 0xd53   :  { %19391 = vpow2.f32 %v13508_v38  ;;  %13533 = vadd.xlane.f32.xlu0 %v13532_v57 }
 0xd54   :  { %19393 = vpow2.f32 %v13506_v59 }
 0xd56   :  { %v13459_v33 = vpop.xlane.xlu1 %13458  ;;  %v13456_v1 = vpop.xlane.xlu0 %13455 }
 0xd57   :  { %v13487_v18 = vsub.f32 %v21948_v17, %v13459_v33  ;;  %v13486_v45 = vsub.f32 %v21946_v6, %v13456_v1 }
 0xd58   :  { %v22004_v28 = vpop.eup %19387 }
 0xd59   :  { %v22006_v8 = vpop.eup %19389  ;;  %v13512_v34 = vmul.f32 1.442695, %v13487_v18  ;;  %v13510_v61 = vmul.f32 1.442695, %v13486_v45  ;;  %v13541_v4 = vsel %vm5304_vm2, %v22004_v28, 0.0 }
 0xd5a   :  { %13542 = vadd.xlane.f32.xlu1 %v13541_v4  ;;  %v13538_v5 = vsel %vm5304_vm2, %v22006_v8, 0.0 }
 0xd5b   :  { %19395 = vpow2.f32 %v13512_v34  ;;  %13539 = vadd.xlane.f32.xlu0 %v13538_v5 }
 0xd5c   :  { %19397 = vpow2.f32 %v13510_v61 }
 0xd5e   :  { %v13465_v51 = vpop.xlane.xlu1 %13464  ;;  %v13462_v17 = vpop.xlane.xlu0 %13461 }
 0xd5f   :  { %v13489_v6 = vsub.f32 %v21956_v36, %v13465_v51  ;;  %v13488_v62 = vsub.f32 %v21954_v41, %v13462_v17 }
 0xd60   :  { %v22014_v50 = vpop.eup %19391 }
 0xd61   :  { %v22016_v26 = vpop.eup %19393  ;;  %v13516_v39 = vmul.f32 1.442695, %v13489_v6  ;;  %v13514_v53 = vmul.f32 1.442695, %v13488_v62  ;;  %v13547_v47 = vsel %vm5304_vm2, %v22014_v50, 0.0 }
 0xd62   :  { %13548 = vadd.xlane.f32.xlu1 %v13547_v47  ;;  %v13544_v13 = vsel %vm5304_vm2, %v22016_v26, 0.0 }
 0xd63   :  { %19399 = vpow2.f32 %v13516_v39  ;;  %13545 = vadd.xlane.f32.xlu0 %v13544_v13  ;;  %v22059_v13 = vld [vmem:[%s22585_s14 + $0x13] ss:$0 sm:$0xff] }
 0xd64   :  { %19401 = vpow2.f32 %v13514_v53 }
 0xd66   :  { %v13471_v52 = vpop.xlane.xlu1 %13470  ;;  %v13468_v36 = vpop.xlane.xlu0 %13467 }
 0xd67   :  { %v13491_v41 = vsub.f32 %v21964_v29, %v13471_v52  ;;  %v13490_v49 = vsub.f32 %v21962_v44, %v13468_v36  ;;  %v22062_v36 = vld [vmem:[%s22585_s14 + $0x12] ss:$0 sm:$0xff] }
 0xd68   :  { %v22024_v23 = vpop.eup %19395 }
 0xd69   :  { %v22026_v9 = vpop.eup %19397  ;;  %v13520_v46 = vmul.f32 1.442695, %v13491_v41  ;;  %v13518_v40 = vmul.f32 1.442695, %v13490_v49  ;;  %v13553_v25 = vsel %vm5304_vm2, %v22024_v23, 0.0 }
 0xd6a   :  { %13554 = vadd.xlane.f32.xlu1 %v13553_v25  ;;  %v13550_v38 = vsel %vm5304_vm2, %v22026_v9, 0.0 }
 0xd6b   :  { %19403 = vpow2.f32 %v13520_v46  ;;  %13551 = vadd.xlane.f32.xlu0 %v13550_v38  ;;  %v11355_v46 = vadd.f32 %v22059_v13, %v21888_v55  ;;  %v11285_v38 = vadd.f32 %v22062_v36, %v21886_v10  ;;  %v22078_v55 = vld [vmem:[%s22585_s14 + $0x15] ss:$0 sm:$0xff] }
 0xd6c   :  { %19405 = vpow2.f32 %v13518_v40 }
 0xd6e   :  { %v13477_v59 = vpop.xlane.xlu1 %13476  ;;  %v13474_v29 = vpop.xlane.xlu0 %13473 }
 0xd6f   :  { %v13493_v44 = vsub.f32 %v21972_v21, %v13477_v59  ;;  %v13492_v42 = vsub.f32 %v21970_v12, %v13474_v29 }
 0xd70   :  { %v22034_v57 = vpop.eup %19399 }
 0xd71   :  { %v22036_v33 = vpop.eup %19401  ;;  %v13524_v1 = vmul.f32 1.442695, %v13493_v44  ;;  %v13522_v18 = vmul.f32 1.442695, %v13492_v42  ;;  %v13559_v45 = vsel %vm5304_vm2, %v22034_v57, 0.0  ;;  %v11495_v44 = vadd.f32 %v22078_v55, %v21892_v30 }
 0xd72   :  { %13560 = vadd.xlane.f32.xlu1 %v13559_v45  ;;  %v13556_v34 = vsel %vm5304_vm2, %v22036_v33, 0.0  ;;  %v22098_v30 = vld [vmem:[%s22585_s14 + $0x17] ss:$0 sm:$0xff] }
 0xd73   :  { %19407 = vpow2.f32 %v13524_v1  ;;  %13557 = vadd.xlane.f32.xlu0 %v13556_v34 }
 0xd74   :  { %19409 = vpow2.f32 %v13522_v18 }
 0xd78   :  { %v22042_v61 = vpop.eup %19403 }
 0xd79   :  { %v22044_v21 = vpop.eup %19405  ;;  %v13565_v12 = vsel %vm5304_vm2, %v22042_v61, 0.0 }
 0xd7a   :  { %13566 = vadd.xlane.f32.xlu1 %v13565_v12  ;;  %v13562_v4 = vsel %vm5304_vm2, %v22044_v21, 0.0  ;;  %v11635_v12 = vadd.f32 %v22098_v30, %v21896_v27 }
 0xd7b   :  { %13563 = vadd.xlane.f32.xlu0 %v13562_v4 }
 0xd80   :  { %v22050_v5 = vpop.eup %19407 }
 0xd81   :  { %v22052_v51 = vpop.eup %19409  ;;  %v13571_v17 = vsel %vm5304_vm2, %v22050_v5, 0.0 }
 0xd82   :  { %13572 = vadd.xlane.f32.xlu1 %v13571_v17  ;;  %v13568_v6 = vsel %vm5304_vm2, %v22052_v51, 0.0 }
 0xd83   :  { %13569 = vadd.xlane.f32.xlu0 %v13568_v6 }
 0xdd3   :  { %v13531_v62 = vpop.xlane.xlu1 %13530 }
 0xdd4   :  { %19411 = vrcp.f32 %v13531_v62  ;;  %v13528_v39 = vpop.xlane.xlu0 %13527 }
 0xdd5   :  { %19413 = vrcp.f32 %v13528_v39 }
 0xddb   :  { %v13537_v53 = vpop.xlane.xlu1 %13536 }
 0xddc   :  { %19415 = vrcp.f32 %v13537_v53  ;;  %v13534_v47 = vpop.xlane.xlu0 %13533 }
 0xddd   :  { %19417 = vrcp.f32 %v13534_v47 }
 0xde1   :  { %v19412_v52 = vpop.eup %19411 }
 0xde2   :  { %v19414_v41 = vpop.eup %19413  ;;  %v13577_v49 = vmul.f32 %v19412_v52, %v21984_v14  ;;  %v22082_v14 = vld [vmem:[%s22585_s14 + $0x14] ss:$0 sm:$0xff]  ;;  %v11915_v52 = vadd.f32 %v22059_v13, %v21904_v60 }
 0xde3   :  { %v13575_v40 = vmul.f32 %v19414_v41, %v21986_v35  ;;  %v13543_v25 = vpop.xlane.xlu1 %13542  ;;  %v11425_v18 = vadd.f32 %v22082_v14, %v21890_v31  ;;  %v11845_v41 = vadd.f32 %v22062_v36, %v21902_v11 }
 0xde4   :  { %19419 = vrcp.f32 %v13543_v25  ;;  %v13540_v59 = vpop.xlane.xlu0 %13539  ;;  %19023 = vmatmul.mubr.msk.f32.vlgmr.msra.gmra.mxu0 %vm5304_vm2, %v13577_v49 }
 0xde5   :  { %19421 = vrcp.f32 %v13540_v59  ;;  %19018 = vmatmul.mubr.msk.f32.vlgmr.msra.gmra.mxu1 %vm5304_vm2, %v13575_v40  ;;  %19031 = vmatpush3.msra.mxu0 %v11355_v46  ;;  %v11985_v46 = vadd.f32 %v22082_v14, %v21906_v16 }
 0xde6   :  { %19026 = vmatpush3.msra.mxu1 %v11285_v38  ;;  %19032 = vmatprep.mubr.msk.f32.mxu0 %vm19984_vm1, %v19983_v0 }
 0xde7   :  { %19040 = vmatprep.subr.mxu0 %v19983_v0  ;;  %19027 = vmatprep.mubr.msk.f32.mxu1 %vm19984_vm1, %v19983_v0 }
 0xde8   :  { %19035 = vmatprep.subr.mxu1 %v19983_v0 }
 0xde9   :  { %v19416_v10 = vpop.eup %19415 }
 0xdea   :  { %v19418_v35 = vpop.eup %19417  ;;  %v13581_v29 = vmul.f32 %v19416_v10, %v21994_v3  ;;  %v22102_v3 = vld [vmem:[%s22585_s14 + $0x16] ss:$0 sm:$0xff]  ;;  %v22196_v10 = vld [vmem:[#allocation19 + $0x38] sm:$0xff] }
 0xdeb   :  { %v13579_v42 = vmul.f32 %v19418_v35, %v21996_v58  ;;  %v13549_v1 = vpop.xlane.xlu1 %13548  ;;  %v11565_v6 = vadd.f32 %v22102_v3, %v21894_v56  ;;  %v12125_v38 = vadd.f32 %v22102_v3, %v21910_v22  ;;  %v22198_v35 = vld [vmem:[#allocation19 + $0x28] sm:$0xff] }
 0xdec   :  { %19423 = vrcp.f32 %v13549_v1  ;;  %v13546_v45 = vpop.xlane.xlu0 %13545  ;;  %19033 = vmatmul.mubr.msk.f32.vlgmr.msra.gmra.mxu0 %vm5304_vm2, %v13581_v29  ;;  %v22205_v1 = vld [vmem:[#allocation19 + $0x30] sm:$0xff] }
 0xded   :  { %19425 = vrcp.f32 %v13546_v45  ;;  %19028 = vmatmul.mubr.msk.f32.vlgmr.msra.gmra.mxu1 %vm5304_vm2, %v13579_v42  ;;  %19041 = vmatpush3.msra.mxu0 %v11495_v44  ;;  %v22203_v42 = vld [vmem:[#allocation19 + $0x20] sm:$0xff]  ;;  %v22218_v45 = vld [vmem:[#allocation19 + $0x58] sm:$0xff] }
 0xdee   :  { %19036 = vmatpush3.msra.mxu1 %v11425_v18  ;;  %19042 = vmatprep.mubr.msk.f32.mxu0 %vm19984_vm1, %v19983_v0 }
 0xdef   :  { %19050 = vmatprep.subr.mxu0 %v19983_v0  ;;  %19037 = vmatprep.mubr.msk.f32.mxu1 %vm19984_vm1, %v19983_v0 }
 0xdf0   :  { %19045 = vmatprep.subr.mxu1 %v19983_v0 }
 0xdf1   :  { %v19420_v31 = vpop.eup %19419 }
 0xdf2   :  { %v19422_v58 = vpop.eup %19421  ;;  %v13585_v34 = vmul.f32 %v19420_v31, %v22004_v28  ;;  %v22220_v31 = vld [vmem:[#allocation19 + $0x48] sm:$0xff] }
 0xdf3   :  { %v13583_v4 = vmul.f32 %v19422_v58, %v22006_v8  ;;  %v13555_v17 = vpop.xlane.xlu1 %13554 }
 0xdf4   :  { %19427 = vrcp.f32 %v13555_v17  ;;  %v13552_v62 = vpop.xlane.xlu0 %13551  ;;  %19043 = vmatmul.mubr.msk.f32.vlgmr.msra.gmra.mxu0 %vm5304_vm2, %v13585_v34  ;;  %v22225_v34 = vld [vmem:[#allocation19 + $0x40] sm:$0xff]  ;;  %v22240_v17 = vld [vmem:[#allocation19 + $0x78] sm:$0xff] }
 0xdf5   :  { %19429 = vrcp.f32 %v13552_v62  ;;  %19038 = vmatmul.mubr.msk.f32.vlgmr.msra.gmra.mxu1 %vm5304_vm2, %v13583_v4  ;;  %19051 = vmatpush3.msra.mxu0 %v11635_v12  ;;  %v22227_v12 = vld [vmem:[#allocation19 + $0x50] sm:$0xff]  ;;  %v22242_v62 = vld [vmem:[#allocation19 + $0x68] sm:$0xff] }
 0xdf6   :  { %19046 = vmatpush3.msra.mxu1 %v11565_v6  ;;  %19052 = vmatprep.mubr.msk.f32.mxu0 %vm19984_vm1, %v19983_v0 }
 0xdf7   :  { %19060 = vmatprep.subr.mxu0 %v19983_v0  ;;  %19047 = vmatprep.mubr.msk.f32.mxu1 %vm19984_vm1, %v19983_v0 }
 0xdf8   :  { %19055 = vmatprep.subr.mxu1 %v19983_v0 }
 0xdf9   :  { %v19424_v56 = vpop.eup %19423 }
 0xdfa   :  { %v19426_v27 = vpop.eup %19425  ;;  %v13589_v28 = vmul.f32 %v19424_v56, %v22014_v50 }
 0xdfb   :  { %v13587_v8 = vmul.f32 %v19426_v27, %v22016_v26  ;;  %v13561_v39 = vpop.xlane.xlu1 %13560 }
 0xdfc   :  { %19431 = vrcp.f32 %v13561_v39  ;;  %v13558_v53 = vpop.xlane.xlu0 %13557  ;;  %19053 = vmatmul.mubr.msk.f32.vlgmr.msra.gmra.mxu0 %vm5304_vm2, %v13589_v28  ;;  %v22247_v28 = vld [vmem:[#allocation19 + $0x60] sm:$0xff] }
 0xdfd   :  { %19433 = vrcp.f32 %v13558_v53  ;;  %19048 = vmatmul.mubr.msk.f32.vlgmr.msra.gmra.mxu1 %vm5304_vm2, %v13587_v8  ;;  %19061 = vmatpush3.msra.mxu0 %v21900_v7  ;;  %v22249_v8 = vld [vmem:[#allocation19 + $0x70] sm:$0xff] }
 0xdfe   :  { %19056 = vmatpush3.msra.mxu1 %v21898_v37  ;;  %19062 = vmatprep.mubr.msk.f32.mxu0 %vm19984_vm1, %v19983_v0 }
 0xdff   :  { %19070 = vmatprep.subr.mxu0 %v19983_v0  ;;  %19057 = vmatprep.mubr.msk.f32.mxu1 %vm19984_vm1, %v19983_v0 }
 0xe00   :  { %19065 = vmatprep.subr.mxu1 %v19983_v0 }
 0xe01   :  { %v19428_v50 = vpop.eup %19427 }
 0xe02   :  { %v19430_v26 = vpop.eup %19429  ;;  %v13593_v47 = vmul.f32 %v19428_v50, %v22024_v23 }
 0xe03   :  { %v13591_v7 = vmul.f32 %v19430_v26, %v22026_v9  ;;  %v13567_v37 = vpop.xlane.xlu1 %13566  ;;  %v12055_v9 = vadd.f32 %v22078_v55, %v21908_v63  ;;  %v22176_v55 = vld [vmem:[#allocation19 + $0x8] sm:$0xff] }
 0xe04   :  { %19435 = vrcp.f32 %v13567_v37  ;;  %v13564_v49 = vpop.xlane.xlu0 %13563  ;;  %19063 = vmatmul.mubr.msk.f32.vlgmr.msra.gmra.mxu0 %vm5304_vm2, %v13593_v47 }
 0xe05   :  { %19437 = vrcp.f32 %v13564_v49  ;;  %19058 = vmatmul.mubr.msk.f32.vlgmr.msra.gmra.mxu1 %vm5304_vm2, %v13591_v7  ;;  %19071 = vmatpush3.msra.mxu0 %v11915_v52 }
 0xe06   :  { %19066 = vmatpush3.msra.mxu1 %v11845_v41  ;;  %19072 = vmatprep.mubr.msk.f32.mxu0 %vm19984_vm1, %v19983_v0 }
 0xe07   :  { %19080 = vmatprep.subr.mxu0 %v19983_v0  ;;  %19067 = vmatprep.mubr.msk.f32.mxu1 %vm19984_vm1, %v19983_v0 }
 0xe08   :  { %19075 = vmatprep.subr.mxu1 %v19983_v0 }
 0xe09   :  { %v19432_v11 = vpop.eup %19431 }
 0xe0a   :  { %v19434_v60 = vpop.eup %19433  ;;  %v13597_v23 = vmul.f32 %v19432_v11, %v22034_v57 }
 0xe0b   :  { %v13595_v13 = vmul.f32 %v19434_v60, %v22036_v33  ;;  %v13573_v36 = vpop.xlane.xlu1 %13572  ;;  %v12195_v33 = vadd.f32 %v22098_v30, %v21912_v32 }
 0xe0c   :  { %19439 = vrcp.f32 %v13573_v36  ;;  %v13570_v40 = vpop.xlane.xlu0 %13569  ;;  %19073 = vmatmul.mubr.msk.f32.vlgmr.msra.gmra.mxu0 %vm5304_vm2, %v13597_v23 }
 0xe0d   :  { %19441 = vrcp.f32 %v13570_v40  ;;  %19068 = vmatmul.mubr.msk.f32.vlgmr.msra.gmra.mxu1 %vm5304_vm2, %v13595_v13  ;;  %19081 = vmatpush3.msra.mxu0 %v12055_v9 }
 0xe0e   :  { %19076 = vmatpush3.msra.mxu1 %v11985_v46  ;;  %19077 = vmatprep.mubr.msk.f32.mxu1 %vm19984_vm1, %v19983_v0 }
 0xe0f   :  { %19082 = vmatprep.mubr.msk.f32.mxu0 %vm19984_vm1, %v19983_v0  ;;  %19085 = vmatprep.subr.mxu1 %v19983_v0 }
 0xe10   :  { %19090 = vmatprep.subr.mxu0 %v19983_v0 }
 0xe11   :  { %v19436_v16 = vpop.eup %19435 }
 0xe12   :  { %v19438_v63 = vpop.eup %19437  ;;  %v13601_v57 = vmul.f32 %v19436_v16, %v22042_v61 }
 0xe13   :  { %v13599_v25 = vmul.f32 %v19438_v63, %v22044_v21  ;;  %v22173_v21 = vld [vmem:[#allocation19 + $0x18] sm:$0xff] }
 0xe14   :  { %19083 = vmatmul.mubr.msk.f32.vlgmr.msra.gmra.mxu0 %vm5304_vm2, %v13601_v57 }
 0xe15   :  { %19078 = vmatmul.mubr.msk.f32.vlgmr.msra.gmra.mxu1 %vm5304_vm2, %v13599_v25  ;;  %19091 = vmatpush3.msra.mxu0 %v12195_v33 }
 0xe16   :  { %19086 = vmatpush3.msra.mxu1 %v12125_v38  ;;  %19087 = vmatprep.mubr.msk.f32.mxu1 %vm19984_vm1, %v19983_v0 }
 0xe17   :  { %19092 = vmatprep.mubr.msk.f32.mxu0 %vm19984_vm1, %v19983_v0  ;;  %19095 = vmatprep.subr.mxu1 %v19983_v0 }
 0xe18   :  { %19102 = vmatprep.subr.mxu0 %v19983_v0 }
 0xe19   :  { %v19440_v32 = vpop.eup %19439 }
 0xe1a   :  { %v19442_v61 = vpop.eup %19441  ;;  %v13605_v22 = vmul.f32 %v19440_v32, %v22050_v5  ;;  %v22188_v5 = vld [vmem:[#allocation19] sm:$0xff] }
 0xe1b   :  { %v13603_v59 = vmul.f32 %v19442_v61, %v22052_v51  ;;  %v22190_v51 = vld [vmem:[#allocation19 + $0x10] sm:$0xff] }
 0xe1c   :  { %19093 = vmatmul.mubr.msk.f32.vlgmr.msra.gmra.mxu0 %vm5304_vm2, %v13605_v22 }
 0xe1d   :  { %19088 = vmatmul.mubr.msk.f32.vlgmr.msra.gmra.mxu1 %vm5304_vm2, %v13603_v59  ;;  %19103 = vmatpush3.msra.mxu0 %v22173_v21 }
 0xe1e   :  { %19096 = vmatpush3.msra.mxu1 %v22176_v55  ;;  %19104 = vmatprep.subr.mxu0 %v19983_v0 }
 0xe1f   :  { %19097 = vmatprep.subr.mxu1 %v19983_v0  ;;  %19099 = vmatprep.mubr.msk.f32.mxu1 %vm19984_vm1, %v19983_v0 }
 0xe20   :  { %19106 = vmatprep.mubr.msk.f32.mxu0 %vm19984_vm1, %v19983_v0  ;;  %19098 = vmatpush3.msra.mxu1 %v22188_v5 }
 0xe21   :  { %19105 = vmatpush3.msra.mxu0 %v22190_v51  ;;  %19109 = vmatprep.subr.mxu1 %v19983_v0 }
 0xe22   :  { %19116 = vmatprep.subr.mxu0 %v19983_v0 }
 0xea4   :  { %v13748_v14 = vpop.f32.mrf.mxu0 }
 0xea5   :  { %v13675_v29 = vpop.f32.mrf.mxu1  ;;  %19107 = vmatmul.mubr.msk.f32.vlgmr.msra.gmra.mxu0 %vm407_vm0, %v13748_v14 }
 0xea6   :  { %19100 = vmatmul.mubr.msk.f32.vlgmr.msra.gmra.mxu1 %vm407_vm0, %v13675_v29  ;;  %v19024_v44 = vpop.f32.mrf.mxu0  ;;  %19117 = vmatpush3.msra.mxu0 %v22196_v10 }
 0xea7   :  { %v19019_v18 = vpop.f32.mrf.mxu1  ;;  %19110 = vmatpush3.msra.mxu1 %v22198_v35  ;;  %19118 = vmatprep.subr.mxu0 %v19983_v0 }
 0xea8   :  { %19111 = vmatprep.subr.mxu1 %v19983_v0  ;;  %19113 = vmatprep.mubr.msk.f32.mxu1 %vm19984_vm1, %v19983_v0 }
 0xea9   :  { %19112 = vmatpush3.msra.mxu1 %v22203_v42  ;;  %19119 = vmatpush3.msra.mxu0 %v22205_v1 }
 0xeaa   :  { %19120 = vmatprep.mubr.msk.f32.mxu0 %vm19984_vm1, %v19983_v0  ;;  %19123 = vmatprep.subr.mxu1 %v19983_v0 }
 0xeab   :  { %19130 = vmatprep.subr.mxu0 %v19983_v0 }
 0xeac   :  { %v13894_v30 = vpop.f32.mrf.mxu0 }
 0xead   :  { %v13821_v3 = vpop.f32.mrf.mxu1  ;;  %19121 = vmatmul.mubr.msk.f32.vlgmr.msra.gmra.mxu0 %vm407_vm0, %v13894_v30 }
 0xeae   :  { %19114 = vmatmul.mubr.msk.f32.vlgmr.msra.gmra.mxu1 %vm407_vm0, %v13821_v3  ;;  %v19034_v58 = vpop.f32.mrf.mxu0  ;;  %19131 = vmatpush3.msra.mxu0 %v22218_v45 }
 0xeaf   :  { %v19029_v4 = vpop.f32.mrf.mxu1  ;;  %19124 = vmatpush3.msra.mxu1 %v22220_v31  ;;  %19132 = vmatprep.subr.mxu0 %v19983_v0 }
 0xeb0   :  { %19125 = vmatprep.subr.mxu1 %v19983_v0  ;;  %19127 = vmatprep.mubr.msk.f32.mxu1 %vm19984_vm1, %v19983_v0 }
 0xeb1   :  { %19126 = vmatpush3.msra.mxu1 %v22225_v34  ;;  %19133 = vmatpush3.msra.mxu0 %v22227_v12 }
 0xeb2   :  { %19134 = vmatprep.mubr.msk.f32.mxu0 %vm19984_vm1, %v19983_v0  ;;  %19137 = vmatprep.subr.mxu1 %v19983_v0 }
 0xeb3   :  { %19144 = vmatprep.subr.mxu0 %v19983_v0 }
 0xeb4   :  { %v14040_v6 = vpop.f32.mrf.mxu0 }
 0xeb5   :  { %v13967_v56 = vpop.f32.mrf.mxu1  ;;  %19135 = vmatmul.mubr.msk.f32.vlgmr.msra.gmra.mxu0 %vm407_vm0, %v14040_v6 }
 0xeb6   :  { %19128 = vmatmul.mubr.msk.f32.vlgmr.msra.gmra.mxu1 %vm407_vm0, %v13967_v56  ;;  %v19044_v27 = vpop.f32.mrf.mxu0  ;;  %19145 = vmatpush3.msra.mxu0 %v22240_v17 }
 0xeb7   :  { %v19039_v39 = vpop.f32.mrf.mxu1  ;;  %19138 = vmatpush3.msra.mxu1 %v22242_v62  ;;  %19146 = vmatprep.subr.mxu0 %v19983_v0 }
 0xeb8   :  { %19139 = vmatprep.subr.mxu1 %v19983_v0  ;;  %19141 = vmatprep.mubr.msk.f32.mxu1 %vm19984_vm1, %v19983_v0 }
 0xeb9   :  { %19140 = vmatpush3.msra.mxu1 %v22247_v28  ;;  %19147 = vmatpush3.msra.mxu0 %v22249_v8 }
 0xeba   :  { %19148 = vmatprep.mubr.msk.f32.mxu0 %vm19984_vm1, %v19983_v0  ;;  %19151 = vmatprep.subr.mxu1 %v19983_v0 }
 0xebb   :  { %19158 = vmatprep.subr.mxu0 %v19983_v0 }
 0xebc   :  { %v14186_v53 = vpop.f32.mrf.mxu0 }
 0xebd   :  { %v14113_v50 = vpop.f32.mrf.mxu1  ;;  %19149 = vmatmul.mubr.msk.f32.vlgmr.msra.gmra.mxu0 %vm407_vm0, %v14186_v53 }
 0xebe   :  { %19142 = vmatmul.mubr.msk.f32.vlgmr.msra.gmra.mxu1 %vm407_vm0, %v14113_v50  ;;  %v19054_v26 = vpop.f32.mrf.mxu0  ;;  %19159 = vmatpush3.msra.mxu0 %v22173_v21 }
 0xebf   :  { %v19049_v47 = vpop.f32.mrf.mxu1  ;;  %19152 = vmatpush3.msra.mxu1 %v22176_v55  ;;  %19160 = vmatprep.subr.mxu0 %v19983_v0 }
 0xec0   :  { %19153 = vmatprep.subr.mxu1 %v19983_v0  ;;  %19155 = vmatprep.mubr.msk.f32.mxu1 %vm19984_vm1, %v19983_v0 }
 0xec1   :  { %19154 = vmatpush3.msra.mxu1 %v22188_v5  ;;  %19161 = vmatpush3.msra.mxu0 %v22190_v51 }
 0xec2   :  { %19162 = vmatprep.mubr.msk.f32.mxu0 %vm19984_vm1, %v19983_v0  ;;  %19165 = vmatprep.subr.mxu1 %v19983_v0 }
 0xec3   :  { %19172 = vmatprep.subr.mxu0 %v19983_v0 }
 0xec4   :  { %v14332_v52 = vpop.f32.mrf.mxu0 }
 0xec5   :  { %v14259_v7 = vpop.f32.mrf.mxu1  ;;  %19163 = vmatmul.mubr.msk.f32.vlgmr.msra.gmra.mxu0 %vm407_vm0, %v14332_v52 }
 0xec6   :  { %19156 = vmatmul.mubr.msk.f32.vlgmr.msra.gmra.mxu1 %vm407_vm0, %v14259_v7  ;;  %v19064_v37 = vpop.f32.mrf.mxu0  ;;  %19173 = vmatpush3.msra.mxu0 %v22196_v10 }
 0xec7   :  { %v19059_v41 = vpop.f32.mrf.mxu1  ;;  %19166 = vmatpush3.msra.mxu1 %v22198_v35  ;;  %19174 = vmatprep.subr.mxu0 %v19983_v0 }
 0xec8   :  { %19167 = vmatprep.subr.mxu1 %v19983_v0  ;;  %19169 = vmatprep.mubr.msk.f32.mxu1 %vm19984_vm1, %v19983_v0 }
 0xec9   :  { %19168 = vmatpush3.msra.mxu1 %v22203_v42  ;;  %19175 = vmatpush3.msra.mxu0 %v22205_v1 }
 0xeca   :  { %19176 = vmatprep.mubr.msk.f32.mxu0 %vm19984_vm1, %v19983_v0  ;;  %19179 = vmatprep.subr.mxu1 %v19983_v0 }
 0xecb   :  { %19186 = vmatprep.subr.mxu0 %v19983_v0 }
 0xecc   :  { %v14478_v49 = vpop.f32.mrf.mxu0 }
 0xecd   :  { %v14405_v11 = vpop.f32.mrf.mxu1  ;;  %19177 = vmatmul.mubr.msk.f32.vlgmr.msra.gmra.mxu0 %vm407_vm0, %v14478_v49 }
 0xece   :  { %19170 = vmatmul.mubr.msk.f32.vlgmr.msra.gmra.mxu1 %vm407_vm0, %v14405_v11  ;;  %v19074_v60 = vpop.f32.mrf.mxu0  ;;  %19187 = vmatpush3.msra.mxu0 %v22218_v45 }
 0xecf   :  { %v19069_v23 = vpop.f32.mrf.mxu1  ;;  %19180 = vmatpush3.msra.mxu1 %v22220_v31  ;;  %19188 = vmatprep.subr.mxu0 %v19983_v0  ;;  %v17304_v31 = vld [vmem:[%s22586_s6] ss:$0 sm:$0xff] }
 0xed0   :  { %19181 = vmatprep.subr.mxu1 %v19983_v0  ;;  %19183 = vmatprep.mubr.msk.f32.mxu1 %vm19984_vm1, %v19983_v0 }
 0xed1   :  { %19182 = vmatpush3.msra.mxu1 %v22225_v34  ;;  %19189 = vmatpush3.msra.mxu0 %v22227_v12 }
 0xed2   :  { %19190 = vmatprep.mubr.msk.f32.mxu0 %vm19984_vm1, %v19983_v0  ;;  %19193 = vmatprep.subr.mxu1 %v19983_v0 }
 0xed3   :  { %19200 = vmatprep.subr.mxu0 %v19983_v0 }
 0xed4   :  { %v14624_v9 = vpop.f32.mrf.mxu0 }
 0xed5   :  { %v14551_v13 = vpop.f32.mrf.mxu1  ;;  %19191 = vmatmul.mubr.msk.f32.vlgmr.msra.gmra.mxu0 %vm407_vm0, %v14624_v9 }
 0xed6   :  { %19184 = vmatmul.mubr.msk.f32.vlgmr.msra.gmra.mxu1 %vm407_vm0, %v14551_v13  ;;  %v19084_v36 = vpop.f32.mrf.mxu0  ;;  %19201 = vmatpush3.msra.mxu0 %v22240_v17 }
 0xed7   :  { %v19079_v46 = vpop.f32.mrf.mxu1  ;;  %19194 = vmatpush3.msra.mxu1 %v22242_v62  ;;  %19202 = vmatprep.subr.mxu0 %v19983_v0 }
 0xed8   :  { %19195 = vmatprep.subr.mxu1 %v19983_v0  ;;  %19197 = vmatprep.mubr.msk.f32.mxu1 %vm19984_vm1, %v19983_v0  ;;  %v16084_v46 = vld [vmem:[#allocation24 + $0x1e8] sm:$0xff] }
 0xed9   :  { %19196 = vmatpush3.msra.mxu1 %v22247_v28  ;;  %19203 = vmatpush3.msra.mxu0 %v22249_v8 }
 0xeda   :  { %19204 = vmatprep.mubr.msk.f32.mxu0 %vm19984_vm1, %v19983_v0  ;;  %16109 = vmatprep.subr.mxu1 %v16084_v46  ;;  %v16035_v46 = vld [vmem:[#allocation24 + $0x60] sm:$0xff] }
 0xedc   :  { %v14770_v40 = vpop.f32.mrf.mxu0 }
 0xedd   :  { %v14697_v16 = vpop.f32.mrf.mxu1  ;;  %19205 = vmatmul.mubr.msk.f32.vlgmr.msra.gmra.mxu0 %vm407_vm0, %v14770_v40  ;;  %v16086_v40 = vld [vmem:[#allocation24 + $0x1f8] sm:$0xff] }
 0xede   :  { %19198 = vmatmul.mubr.msk.f32.vlgmr.msra.gmra.mxu1 %vm407_vm0, %v14697_v16  ;;  %v19094_v63 = vpop.f32.mrf.mxu0  ;;  %16250 = vmatprep.mubr.f32.mxu0 %v19983_v0  ;;  %v16083_v16 = vld [vmem:[#allocation24 + $0x1e0] sm:$0xff] }
 0xedf   :  { %v19089_v57 = vpop.f32.mrf.mxu1  ;;  %16173 = vmatprep.mubr.f32.mxu1 %v19983_v0  ;;  %16186 = vmatprep.subr.mxu0 %v16086_v40  ;;  %v16085_v63 = vld [vmem:[#allocation24 + $0x1f0] sm:$0xff] }
 0xee0   :  { %v16080_v57 = vld [vmem:[#allocation24 + $0x1c8] sm:$0xff]  ;;  %16110 = vmatpush1.msra.mxu1 %v16083_v16  ;;  %16187 = vmatpush1.msra.mxu0 %v16085_v63  ;;  %v16037_v40 = vld [vmem:[#allocation24 + $0x70] sm:$0xff] }
 0xee1   :  { %16111 = vmatprep.subr.mxu1 %v16080_v57  ;;  %v16032_v63 = vld [vmem:[#allocation24 + $0x48] sm:$0xff]  ;;  %v16034_v57 = vld [vmem:[#allocation24 + $0x58] sm:$0xff] }
 0xf65   :  { %v14932_v33 = vpop.f32.mrf.mxu0 }
 0xf66   :  { %v14859_v25 = vpop.f32.mrf.mxu1 }
 0xf67   :  { %v19108_v38 = vpop.f32.mrf.mxu0  ;;  %v15958_v55 = vadd.f32 %v14932_v33, %v14859_v25  ;;  %v16082_v33 = vld [vmem:[#allocation24 + $0x1d8] sm:$0xff]  ;;  %v16079_v25 = vld [vmem:[#allocation24 + $0x1c0] sm:$0xff] }
 0xf68   :  { %v19101_v32 = vpop.f32.mrf.mxu1  ;;  %v16081_v38 = vld [vmem:[#allocation24 + $0x1d0] sm:$0xff]  ;;  %16188 = vmatprep.subr.mxu0 %v16082_v33  ;;  %16112 = vmatpush1.msra.mxu1 %v16079_v25  ;;  %v16031_v33 = vld [vmem:[#allocation24 + $0x40] sm:$0xff] }
 0xf69   :  { %v16076_v32 = vld [vmem:[#allocation24 + $0x1a8] sm:$0xff]  ;;  %16189 = vmatpush1.msra.mxu0 %v16081_v38  ;;  %v16033_v25 = vld [vmem:[#allocation24 + $0x50] sm:$0xff] }
 0xf6a   :  { %16113 = vmatprep.subr.mxu1 %v16076_v32  ;;  %v16028_v38 = vld [vmem:[#allocation24 + $0x28] sm:$0xff]  ;;  %v16030_v32 = vld [vmem:[#allocation24 + $0x38] sm:$0xff] }
 0xf6d   :  { %v15078_v61 = vpop.f32.mrf.mxu0 }
 0xf6e   :  { %v15005_v22 = vpop.f32.mrf.mxu1 }
 0xf6f   :  { %v19122_v21 = vpop.f32.mrf.mxu0  ;;  %v15960_v5 = vadd.f32 %v15958_v55, %v15005_v22  ;;  %v16077_v22 = vld [vmem:[#allocation24 + $0x1b0] sm:$0xff]  ;;  %v16071_v55 = vld [vmem:[#allocation24 + $0x180] sm:$0xff] }
 0xf70   :  { %v19115_v59 = vpop.f32.mrf.mxu1  ;;  %v16072_v21 = vld [vmem:[#allocation24 + $0x188] sm:$0xff] }
 0xf71   :  { %v15962_v14 = vadd.f32 %v15960_v5, %v15078_v61  ;;  %v16078_v61 = vld [vmem:[#allocation24 + $0x1b8] sm:$0xff]  ;;  %v16073_v5 = vld [vmem:[#allocation24 + $0x190] sm:$0xff] }
 0xf72   :  { %v16074_v59 = vld [vmem:[#allocation24 + $0x198] sm:$0xff]  ;;  %16190 = vmatprep.subr.mxu0 %v16078_v61 }
 0xf73   :  { %16191 = vmatpush1.msra.mxu0 %v16077_v22  ;;  %v16029_v22 = vld [vmem:[#allocation24 + $0x30] sm:$0xff] }
 0xf74   :  { %16192 = vmatprep.subr.mxu0 %v16074_v59  ;;  %v16026_v59 = vld [vmem:[#allocation24 + $0x18] sm:$0xff] }
 0xf75   :  { %v15224_v51 = vpop.f32.mrf.mxu0  ;;  %16193 = vmatpush1.msra.mxu0 %v16073_v5 }
 0xf76   :  { %v15151_v10 = vpop.f32.mrf.mxu1 }
 0xf77   :  { %v19136_v35 = vpop.f32.mrf.mxu0  ;;  %v15964_v44 = vadd.f32 %v15962_v14, %v15151_v10 }
 0xf78   :  { %v19129_v29 = vpop.f32.mrf.mxu1 }
 0xf79   :  { %v15966_v42 = vadd.f32 %v15964_v44, %v15224_v51  ;;  %v16068_v29 = vld [vmem:[#allocation24 + $0x168] sm:$0xff]  ;;  %v16070_v44 = vld [vmem:[#allocation24 + $0x178] sm:$0xff] }
 0xf7a   :  { %16194 = vmatprep.subr.mxu0 %v16070_v44 }
 0xf7d   :  { %v15370_v1 = vpop.f32.mrf.mxu0 }
 0xf7e   :  { %v15297_v18 = vpop.f32.mrf.mxu1 }
 0xf7f   :  { %v15968_v45 = vadd.f32 %v15966_v42, %v15297_v18  ;;  %v19150_v30 = vpop.f32.mrf.mxu0  ;;  %v16067_v42 = vld [vmem:[#allocation24 + $0x160] sm:$0xff]  ;;  %v16064_v18 = vld [vmem:[#allocation24 + $0x148] sm:$0xff] }
 0xf80   :  { %v19143_v3 = vpop.f32.mrf.mxu1  ;;  %v16063_v30 = vld [vmem:[#allocation24 + $0x140] sm:$0xff] }
 0xf81   :  { %v15970_v58 = vadd.f32 %v15968_v45, %v15370_v1  ;;  %v16069_v1 = vld [vmem:[#allocation24 + $0x170] sm:$0xff]  ;;  %v16066_v45 = vld [vmem:[#allocation24 + $0x158] sm:$0xff]  ;;  %v16060_v3 = vld [vmem:[#allocation24 + $0x128] sm:$0xff] }
 0xf82   :  { %16195 = vmatpush1.msra.mxu0 %v16069_v1 }
 0xf83   :  { %v15979_v34 = vadd.f32 %v17304_v31, %v15970_v58  ;;  %16196 = vmatprep.subr.mxu0 %v16066_v45  ;;  %v16062_v58 = vld [vmem:[#allocation24 + $0x138] sm:$0xff] }
 0xf85   :  { %v15516_v12 = vpop.f32.mrf.mxu0  ;;  %v15981_v4 = vadd.f32 %v15979_v34, %v21392_v43  ;;  %v16059_v34 = vld [vmem:[#allocation24 + $0x120] sm:$0xff] }
 0xf86   :  { %v15443_v17 = vpop.f32.mrf.mxu1 }
 0xf87   :  { %15985 = vadd.xlane.f32.xlu0 %v15981_v4  ;;  %v19164_v6 = vpop.f32.mrf.mxu0  ;;  %v15959_v39 = vadd.f32 %v15516_v12, %v15443_v17  ;;  %v16061_v12 = vld [vmem:[#allocation24 + $0x130] sm:$0xff]  ;;  %v16058_v17 = vld [vmem:[#allocation24 + $0x118] sm:$0xff] }
 0xf88   :  { %v19157_v62 = vpop.f32.mrf.mxu1  ;;  %v16055_v6 = vld [vmem:[#allocation24 + $0x100] sm:$0xff] }
 0xf89   :  { %v16057_v62 = vld [vmem:[#allocation24 + $0x110] sm:$0xff] }
 0xf8d   :  { %v15662_v56 = vpop.f32.mrf.mxu0 }
 0xf8e   :  { %v15589_v27 = vpop.f32.mrf.mxu1 }
 0xf8f   :  { %v19178_v28 = vpop.f32.mrf.mxu0  ;;  %v15961_v53 = vadd.f32 %v15959_v39, %v15589_v27  ;;  %v16054_v27 = vld [vmem:[#allocation24 + $0xf8] sm:$0xff]  ;;  %v16048_v39 = vld [vmem:[#allocation24 + $0xc8] sm:$0xff] }
 0xf90   :  { %v19171_v8 = vpop.f32.mrf.mxu1  ;;  %v16051_v28 = vld [vmem:[#allocation24 + $0xe0] sm:$0xff] }
 0xf91   :  { %v15963_v47 = vadd.f32 %v15961_v53, %v15662_v56  ;;  %v16052_v56 = vld [vmem:[#allocation24 + $0xe8] sm:$0xff]  ;;  %v16053_v8 = vld [vmem:[#allocation24 + $0xf0] sm:$0xff]  ;;  %v16050_v53 = vld [vmem:[#allocation24 + $0xd8] sm:$0xff] }
 0xf95   :  { %v15808_v50 = vpop.f32.mrf.mxu0 }
 0xf96   :  { %v15735_v26 = vpop.f32.mrf.mxu1 }
 0xf97   :  { %v19192_v52 = vpop.f32.mrf.mxu0  ;;  %v15965_v37 = vadd.f32 %v15963_v47, %v15735_v26  ;;  %v16049_v26 = vld [vmem:[#allocation24 + $0xd0] sm:$0xff]  ;;  %v16044_v47 = vld [vmem:[#allocation24 + $0xa8] sm:$0xff] }
 0xf98   :  { %v19185_v7 = vpop.f32.mrf.mxu1  ;;  %v16046_v52 = vld [vmem:[#allocation24 + $0xb8] sm:$0xff] }
 0xf99   :  { %v15967_v41 = vadd.f32 %v15965_v37, %v15808_v50  ;;  %v16047_v50 = vld [vmem:[#allocation24 + $0xc0] sm:$0xff]  ;;  %v16045_v37 = vld [vmem:[#allocation24 + $0xb0] sm:$0xff] }
 0xf9a   :  { %v16043_v7 = vld [vmem:[#allocation24 + $0xa0] sm:$0xff] }
 0xf9d   :  { %v15954_v49 = vpop.f32.mrf.mxu0 }
 0xf9e   :  { %v15881_v11 = vpop.f32.mrf.mxu1 }
 0xf9f   :  { %v15969_v43 = vadd.f32 %v15967_v41, %v15881_v11  ;;  %v19206_v60 = vpop.f32.mrf.mxu0  ;;  %v16040_v41 = vld [vmem:[#allocation24 + $0x88] sm:$0xff] }
 0xfa0   :  { %v19199_v23 = vpop.f32.mrf.mxu1  ;;  %v16041_v60 = vld [vmem:[#allocation24 + $0x90] sm:$0xff] }
 0xfa1   :  { %v15971_v9 = vadd.f32 %v15969_v43, %v15954_v49  ;;  %v16042_v49 = vld [vmem:[#allocation24 + $0x98] sm:$0xff]  ;;  %v16039_v43 = vld [vmem:[#allocation24 + $0x80] sm:$0xff] }
 0xfa3   :  { %v15980_v13 = vadd.f32 %v17304_v31, %v15971_v9  ;;  %v16065_v31 = vld [vmem:[#allocation24 + $0x150] sm:$0xff]  ;;  %v16036_v9 = vld [vmem:[#allocation24 + $0x68] sm:$0xff] }
 0xfa4   :  { %16197 = vmatpush1.msra.mxu0 %v16065_v31 }
 0xfa5   :  { %v22323_v36 = vadd.f32 %v15980_v13, %v21448_v19  ;;  %v16075_v19 = vld [vmem:[#allocation24 + $0x1a0] sm:$0xff]  ;;  %16198 = vmatprep.subr.mxu0 %v16062_v58  ;;  %v16038_v13 = vld [vmem:[#allocation24 + $0x78] sm:$0xff] }
 0xfa6   :  { %16114 = vmatpush1.msra.mxu1 %v16075_v19  ;;  %16199 = vmatpush1.msra.mxu0 %v16061_v12  ;;  %v16027_v19 = vld [vmem:[#allocation24 + $0x20] sm:$0xff] }
 0xfa7   :  { %15987 = vadd.xlane.f32.xlu1 %v22323_v36  ;;  %16115 = vmatprep.subr.mxu1 %v16072_v21  ;;  %v16024_v21 = vld [vmem:[#allocation24 + $0x8] sm:$0xff]  ;;  %v16510_v12 = vld [vmem:[#allocation27 + $0xf8] sm:$0xff] }
 0xfa8   :  { %16116 = vmatpush1.msra.mxu1 %v16071_v55  ;;  %16200 = vmatprep.subr.mxu0 %v16058_v17  ;;  %v16025_v55 = vld [vmem:[#allocation24 + $0x10] sm:$0xff]  ;;  %v16494_v17 = vld [vmem:[#allocation27 + $0x78] sm:$0xff] }
 0xfa9   :  { %16117 = vmatprep.subr.mxu1 %v16068_v29  ;;  %16201 = vmatpush1.msra.mxu0 %v16057_v62  ;;  %v17305_v29 = vld [vmem:[#allocation21] ss:$0 sm:$0xff]  ;;  %v16509_v62 = vld [vmem:[#allocation27 + $0xf0] sm:$0xff] }
 0xfaa   :  { %16118 = vmatpush1.msra.mxu1 %v16067_v42  ;;  %16202 = vmatprep.subr.mxu0 %v16054_v27  ;;  %v17306_v42 = vld [vmem:[#allocation22] ss:$0 sm:$0xff]  ;;  %v16493_v27 = vld [vmem:[#allocation27 + $0x70] sm:$0xff] }
 0xfab   :  { %16119 = vmatprep.subr.mxu1 %v16064_v18  ;;  %16203 = vmatpush1.msra.mxu0 %v16053_v8  ;;  %v16508_v8 = vld [vmem:[#allocation27 + $0xe8] sm:$0xff] }
 0xfac   :  { %16120 = vmatpush1.msra.mxu1 %v16063_v30  ;;  %16204 = vmatprep.subr.mxu0 %v16050_v53  ;;  %v16492_v53 = vld [vmem:[#allocation27 + $0x68] sm:$0xff] }
 0xfad   :  { %16121 = vmatprep.subr.mxu1 %v16060_v3  ;;  %16205 = vmatpush1.msra.mxu0 %v16049_v26  ;;  %v16507_v26 = vld [vmem:[#allocation27 + $0xe0] sm:$0xff] }
 0xfae   :  { %16122 = vmatpush1.msra.mxu1 %v16059_v34  ;;  %16206 = vmatprep.subr.mxu0 %v16046_v52  ;;  %v16491_v52 = vld [vmem:[#allocation27 + $0x60] sm:$0xff] }
 0xfaf   :  { %16207 = vmatpush1.msra.mxu0 %v16045_v37  ;;  %v16506_v37 = vld [vmem:[#allocation27 + $0xd8] sm:$0xff] }
 0xfb0   :  { %16208 = vmatprep.subr.mxu0 %v16042_v49  ;;  %v16490_v49 = vld [vmem:[#allocation27 + $0x58] sm:$0xff] }
 0xfb1   :  { %16209 = vmatpush1.msra.mxu0 %v16041_v60  ;;  %v16537_v60 = vld [vmem:[#allocation27 + $0x1d0] sm:$0xff] }
 0xfb2   :  { %16210 = vmatprep.subr.mxu0 %v16038_v13  ;;  %v16504_v13 = vld [vmem:[#allocation27 + $0xc8] sm:$0xff] }
 0xfb3   :  { %16211 = vmatpush1.msra.mxu0 %v16037_v40  ;;  %v16488_v40 = vld [vmem:[#allocation27 + $0x48] sm:$0xff] }
 0xfb4   :  { %16212 = vmatprep.subr.mxu0 %v16034_v57  ;;  %v16535_v57 = vld [vmem:[#allocation27 + $0x1c0] sm:$0xff] }
 0xfb5   :  { %16213 = vmatpush1.msra.mxu0 %v16033_v25  ;;  %v16519_v25 = vld [vmem:[#allocation27 + $0x140] sm:$0xff] }
 0xfb6   :  { %16214 = vmatprep.subr.mxu0 %v16030_v32  ;;  %v16534_v32 = vld [vmem:[#allocation27 + $0x1b8] sm:$0xff] }
 0xfb7   :  { %16215 = vmatpush1.msra.mxu0 %v16029_v22  ;;  %v16501_v22 = vld [vmem:[#allocation27 + $0xb0] sm:$0xff] }
 0xfb8   :  { %16216 = vmatprep.subr.mxu0 %v16026_v59  ;;  %v16485_v59 = vld [vmem:[#allocation27 + $0x30] sm:$0xff] }
 0xfb9   :  { %16217 = vmatpush1.msra.mxu0 %v16025_v55  ;;  %v16500_v55 = vld [vmem:[#allocation27 + $0xa8] sm:$0xff] }
0x1010   :  { %v15986_v51 = vpop.xlane.xlu0 %15985 }
0x1011   :  { %v15989_v10 = vmul.f32 0.0078125, %v15986_v51 }
0x1013   :  { %v22326_v14 = vsub.f32 %v15981_v4, %v15989_v10  ;;  %v16056_v4 = vld [vmem:[#allocation24 + $0x108] sm:$0xff] }
0x1014   :  { %16123 = vmatprep.subr.mxu1 %v16056_v4  ;;  %v16542_v4 = vld [vmem:[#allocation27 + $0x1f8] sm:$0xff] }
0x1015   :  { %v15993_v35 = vmul.f32 %v22326_v14, %v22326_v14  ;;  %16124 = vmatpush1.msra.mxu1 %v16055_v6  ;;  %17943 = vmatprep.subr.mxu0 %v16542_v4  ;;  %v16526_v6 = vld [vmem:[#allocation27 + $0x178] sm:$0xff]  ;;  %v16496_v4 = vld [vmem:[#allocation27 + $0x88] sm:$0xff] }
0x1016   :  { %16125 = vmatprep.subr.mxu1 %v16052_v56  ;;  %v16541_v56 = vld [vmem:[#allocation27 + $0x1f0] sm:$0xff] }
0x1017   :  { %15995 = vadd.xlane.f32.xlu0 %v15993_v35  ;;  %16126 = vmatpush1.msra.mxu1 %v16051_v28  ;;  %v16525_v28 = vld [vmem:[#allocation27 + $0x170] sm:$0xff] }
0x1018   :  { %16127 = vmatprep.subr.mxu1 %v16048_v39  ;;  %v16540_v39 = vld [vmem:[#allocation27 + $0x1e8] sm:$0xff] }
0x1019   :  { %16128 = vmatpush1.msra.mxu1 %v16047_v50  ;;  %v16524_v50 = vld [vmem:[#allocation27 + $0x168] sm:$0xff] }
0x101a   :  { %16129 = vmatprep.subr.mxu1 %v16044_v47  ;;  %v16539_v47 = vld [vmem:[#allocation27 + $0x1e0] sm:$0xff] }
0x101b   :  { %16130 = vmatpush1.msra.mxu1 %v16043_v7  ;;  %v16523_v7 = vld [vmem:[#allocation27 + $0x160] sm:$0xff] }
0x101c   :  { %16131 = vmatprep.subr.mxu1 %v16040_v41  ;;  %v16538_v41 = vld [vmem:[#allocation27 + $0x1d8] sm:$0xff] }
0x101d   :  { %16132 = vmatpush1.msra.mxu1 %v16039_v43  ;;  %v16505_v43 = vld [vmem:[#allocation27 + $0xd0] sm:$0xff] }
0x101e   :  { %16133 = vmatprep.subr.mxu1 %v16036_v9  ;;  %v16521_v9 = vld [vmem:[#allocation27 + $0x150] sm:$0xff] }
0x101f   :  { %16134 = vmatpush1.msra.mxu1 %v16035_v46  ;;  %v16536_v46 = vld [vmem:[#allocation27 + $0x1c8] sm:$0xff] }
0x1020   :  { %16135 = vmatprep.subr.mxu1 %v16032_v63  ;;  %v16503_v63 = vld [vmem:[#allocation27 + $0xc0] sm:$0xff] }
0x1021   :  { %16136 = vmatpush1.msra.mxu1 %v16031_v33  ;;  %v16487_v33 = vld [vmem:[#allocation27 + $0x40] sm:$0xff] }
0x1022   :  { %16137 = vmatprep.subr.mxu1 %v16028_v38  ;;  %v16502_v38 = vld [vmem:[#allocation27 + $0xb8] sm:$0xff] }
0x1023   :  { %16138 = vmatpush1.msra.mxu1 %v16027_v19  ;;  %v16518_v19 = vld [vmem:[#allocation27 + $0x138] sm:$0xff] }
0x1024   :  { %16139 = vmatprep.subr.mxu1 %v16024_v21  ;;  %v16533_v21 = vld [vmem:[#allocation27 + $0x1b0] sm:$0xff] }
0x1030   :  { %v15988_v11 = vpop.xlane.xlu1 %15987 }
0x1031   :  { %v15990_v23 = vmul.f32 0.0078125, %v15988_v11  ;;  %v16522_v11 = vld [vmem:[#allocation27 + $0x158] sm:$0xff] }
0x1033   :  { %v15992_v16 = vsub.f32 %v22323_v36, %v15990_v23  ;;  %v16023_v36 = vld [vmem:[#allocation24] sm:$0xff]  ;;  %v16489_v23 = vld [vmem:[#allocation27 + $0x50] sm:$0xff] }
0x1034   :  { %16140 = vmatpush1.msra.mxu1 %v16023_v36  ;;  %v16517_v36 = vld [vmem:[#allocation27 + $0x130] sm:$0xff] }
0x1035   :  { %v15994_v61 = vmul.f32 %v15992_v16, %v15992_v16  ;;  %17905 = vmatprep.subr.mxu1 %v16510_v12  ;;  %v16513_v12 = vld [vmem:[#allocation27 + $0x110] sm:$0xff] }
0x1037   :  { %15997 = vadd.xlane.f32.xlu1 %v15994_v61  ;;  %v16486_v61 = vld [vmem:[#allocation27 + $0x38] sm:$0xff] }
0x10a0   :  { %v15996_v5 = vpop.xlane.xlu0 %15995 }
0x10a1   :  { %v15999_v51 = vmul.f32 0.0078125, %v15996_v5  ;;  %v16532_v5 = vld [vmem:[#allocation27 + $0x1a8] sm:$0xff] }
0x10a3   :  { %v16001_v10 = vadd.f32 1e-05, %v15999_v51  ;;  %v16484_v51 = vld [vmem:[#allocation27 + $0x28] sm:$0xff] }
0x10a5   :  { %19443 = vrsqrt.f32 %v16001_v10  ;;  %v16516_v10 = vld [vmem:[#allocation27 + $0x128] sm:$0xff] }
0x10b2   :  { %v19444_v35 = vpop.eup %19443 }
0x10b3   :  { %v16005_v44 = vmul.f32 %v19444_v35, %v22326_v14  ;;  %v16499_v35 = vld [vmem:[#allocation27 + $0xa0] sm:$0xff] }
0x10b5   :  { %v16013_v1 = vmul.f32 %v17305_v29, %v16005_v44  ;;  %v16483_v44 = vld [vmem:[#allocation27 + $0x20] sm:$0xff] }
0x10b7   :  { %v22332_v18 = vadd.f32 %v17306_v42, %v16013_v1  ;;  %v16498_v1 = vld [vmem:[#allocation27 + $0x98] sm:$0xff] }
0x10b9   :  { %16174 = vmatmul.mubr.f32.vlgmr.msra.gmra.mxu1 %v22332_v18  ;;  %16251 = vmatmul.mubr.f32.vlgmr.msra.gmra.mxu0 %v22332_v18 }
0x10ba   :  { %16179 = vmatprep.mubr.f32.mxu1 %v19983_v0  ;;  %16256 = vmatprep.mubr.f32.mxu0 %v19983_v0 }
0x10bb   :  { %17906 = vmatpush3.msra.mxu1 %v16494_v17  ;;  %17944 = vmatpush3.msra.mxu0 %v16526_v6  ;;  %v16528_v17 = vld [vmem:[#allocation27 + $0x188] sm:$0xff] }
0x10bc   :  { %17907 = vmatprep.subr.mxu1 %v16509_v62  ;;  %17945 = vmatprep.subr.mxu0 %v16541_v56  ;;  %v16480_v6 = vld [vmem:[#allocation27 + $0x8] sm:$0xff]  ;;  %v16495_v56 = vld [vmem:[#allocation27 + $0x80] sm:$0xff] }
0x10bd   :  { %17908 = vmatpush3.msra.mxu1 %v16493_v27  ;;  %17946 = vmatpush3.msra.mxu0 %v16525_v28  ;;  %v16512_v62 = vld [vmem:[#allocation27 + $0x108] sm:$0xff]  ;;  %v16527_v27 = vld [vmem:[#allocation27 + $0x180] sm:$0xff] }
0x10be   :  { %17909 = vmatprep.subr.mxu1 %v16508_v8  ;;  %17947 = vmatprep.subr.mxu0 %v16540_v39  ;;  %v16479_v28 = vld [vmem:[#allocation27] sm:$0xff]  ;;  %v16087_v39 = vld [vmem:[#allocation25] sm:$0xf] }
0x10bf   :  { %17910 = vmatpush3.msra.mxu1 %v16492_v53  ;;  %17948 = vmatpush3.msra.mxu0 %v16524_v50  ;;  %v16511_v8 = vld [vmem:[#allocation27 + $0x100] sm:$0xff]  ;;  %v16092_v53 = vrot.slane %v16087_v39, %v21225_v48  ;;  %v16100_v50 = vrot.slane %v16087_v39, %v7975_v54 }
0x10c0   :  { %v15998_v45 = vpop.xlane.xlu1 %15997  ;;  %17911 = vmatprep.subr.mxu1 %v16507_v26  ;;  %17949 = vmatprep.subr.mxu0 %v16539_v47 }
0x10c1   :  { %v16000_v30 = vmul.f32 0.0078125, %v15998_v45  ;;  %17912 = vmatpush3.msra.mxu1 %v16491_v52  ;;  %17950 = vmatpush3.msra.mxu0 %v16523_v7  ;;  %v16530_v45 = vld [vmem:[#allocation27 + $0x198] sm:$0xff]  ;;  %v22347_v52 = vrot.slane %v16087_v39, %v21229_v15  ;;  %v22351_v7 = vrot.slane %v16087_v39, %v7979_v20 }
0x10c2   :  { %17913 = vmatprep.subr.mxu1 %v16506_v37  ;;  %17951 = vmatprep.subr.mxu0 %v16538_v41 }
0x10c3   :  { %v16002_v31 = vadd.f32 1e-05, %v16000_v30  ;;  %17914 = vmatpush3.msra.mxu1 %v16490_v49  ;;  %17952 = vmatpush3.msra.mxu0 %v16522_v11  ;;  %v16482_v30 = vld [vmem:[#allocation27 + $0x18] sm:$0xff] }
0x10c4   :  { %17915 = vmatprep.subr.mxu1 %v16505_v43  ;;  %17953 = vmatprep.subr.mxu0 %v16537_v60 }
0x10c5   :  { %19445 = vrsqrt.f32 %v16002_v31  ;;  %17916 = vmatpush3.msra.mxu1 %v16489_v23  ;;  %17954 = vmatpush3.msra.mxu0 %v16521_v9  ;;  %v16514_v31 = vld [vmem:[#allocation27 + $0x118] sm:$0xff] }
0x10c6   :  { %17917 = vmatprep.subr.mxu1 %v16504_v13  ;;  %17955 = vmatprep.subr.mxu0 %v16536_v46 }
0x10c7   :  { %17918 = vmatpush3.msra.mxu1 %v16488_v40 }
0x10c8   :  { %17919 = vmatprep.subr.mxu1 %v16503_v63 }
0x10c9   :  { %17920 = vmatpush3.msra.mxu1 %v16487_v33 }
0x10ca   :  { %17921 = vmatprep.subr.mxu1 %v16502_v38 }
0x10cb   :  { %17922 = vmatpush3.msra.mxu1 %v16486_v61 }
0x10cc   :  { %17923 = vmatprep.subr.mxu1 %v16501_v22 }
0x10cd   :  { %17924 = vmatpush3.msra.mxu1 %v16485_v59 }
0x10ce   :  { %17925 = vmatprep.subr.mxu1 %v16500_v55 }
0x10cf   :  { %17926 = vmatpush3.msra.mxu1 %v16484_v51 }
0x10d0   :  { %17927 = vmatprep.subr.mxu1 %v16499_v35 }
0x10d1   :  { %17928 = vmatpush3.msra.mxu1 %v16483_v44 }
0x10d2   :  { %v19446_v3 = vpop.eup %19445  ;;  %17929 = vmatprep.subr.mxu1 %v16498_v1 }
0x10d3   :  { %v16006_v58 = vmul.f32 %v19446_v3, %v15992_v16  ;;  %v16520_v16 = vld [vmem:[#allocation27 + $0x148] sm:$0xff]  ;;  %17930 = vmatpush3.msra.mxu1 %v16482_v30  ;;  %v16497_v3 = vld [vmem:[#allocation27 + $0x90] sm:$0xff] }
0x10d4   :  { %17956 = vmatpush3.msra.mxu0 %v16520_v16  ;;  %17931 = vmatprep.subr.mxu1 %v16497_v3 }
0x10d5   :  { %v16014_v34 = vmul.f32 %v17305_v29, %v16006_v58  ;;  %17957 = vmatprep.subr.mxu0 %v16535_v57  ;;  %v16531_v29 = vld [vmem:[#allocation27 + $0x1a0] sm:$0xff]  ;;  %v16529_v58 = vld [vmem:[#allocation27 + $0x190] sm:$0xff] }
0x10d6   :  { %17958 = vmatpush3.msra.mxu0 %v16519_v25 }
0x10d7   :  { %v22338_v14 = vadd.f32 %v17306_v42, %v16014_v34  ;;  %17959 = vmatprep.subr.mxu0 %v16534_v32  ;;  %v16515_v42 = vld [vmem:[#allocation27 + $0x120] sm:$0xff]  ;;  %v16481_v34 = vld [vmem:[#allocation27 + $0x10] sm:$0xff] }
0x10d8   :  { %17960 = vmatpush3.msra.mxu0 %v16518_v19  ;;  %17932 = vmatpush3.msra.mxu1 %v16481_v34 }
0x10d9   :  { %16180 = vmatmul.mubr.f32.gmra.mxu1 %v22338_v14  ;;  %16257 = vmatmul.mubr.f32.gmra.mxu0 %v22338_v14 }
0x10da   :  { %17961 = vmatprep.subr.mxu0 %v16533_v21  ;;  %17933 = vmatprep.subr.mxu1 %v16496_v4 }
0x10db   :  { %17962 = vmatpush3.msra.mxu0 %v16517_v36  ;;  %17934 = vmatpush3.msra.mxu1 %v16480_v6 }
0x10dc   :  { %17963 = vmatprep.subr.mxu0 %v16532_v5  ;;  %17935 = vmatprep.subr.mxu1 %v16495_v56 }
0x10dd   :  { %17964 = vmatpush3.msra.mxu0 %v16516_v10  ;;  %17936 = vmatpush3.msra.mxu1 %v16479_v28 }
0x10de   :  { %17965 = vmatprep.subr.mxu0 %v16531_v29  ;;  %19207 = vmatprep.subr.mxu1 %v19983_v0 }
0x10df   :  { %17966 = vmatpush3.msra.mxu0 %v16515_v42 }
0x10e0   :  { %17967 = vmatprep.subr.mxu0 %v16530_v45 }
0x10e1   :  { %17968 = vmatpush3.msra.mxu0 %v16514_v31 }
0x10e2   :  { %17969 = vmatprep.subr.mxu0 %v16529_v58 }
0x10e3   :  { %17970 = vmatpush3.msra.mxu0 %v16513_v12 }
0x10e4   :  { %17971 = vmatprep.subr.mxu0 %v16528_v17 }
0x10e5   :  { %17972 = vmatpush3.msra.mxu0 %v16512_v62 }
0x10e6   :  { %17973 = vmatprep.subr.mxu0 %v16527_v27 }
0x10e7   :  { %17974 = vmatpush3.msra.mxu0 %v16511_v8 }
0x1179   :  { %v16175_v26 = vpop.f32.mrf.mxu1  ;;  %v16252_v47 = vpop.f32.mrf.mxu0 }
0x117a   :  { %v22353_v37 = vadd.f32 %v16175_v26, %v16092_v53  ;;  %v22355_v41 = vadd.f32 %v16252_v47, %v16100_v50 }
0x117b   :  { %v16177_v49 = vpop.f32.mrf.mxu1  ;;  %v16254_v11 = vpop.f32.mrf.mxu0 }
0x117c   :  { %v22358_v43 = vmul.f32 0.70710677, %v22353_v37  ;;  %v22361_v54 = vmul.f32 0.70710677, %v22355_v41  ;;  %v22364_v60 = vadd.f32 %v16177_v49, %v22347_v52  ;;  %v22367_v23 = vadd.f32 %v16254_v11, %v22351_v7 }
0x117e   :  { %v16295_v2 = vand.u32 2147483647, %v22358_v43  ;;  %v16297_v20 = vand.u32 2147483647, %v22361_v54  ;;  %v22372_v9 = vmul.f32 0.70710677, %v22364_v60 }
0x117f   :  { %v22376_v16 = vmul.f32 0.70710677, %v22367_v23  ;;  %vm16279_vm11 = vcmp.ge.f32.partialorder %v22358_v43, 0.0  ;;  %vm16281_vm12 = vcmp.ge.f32.partialorder %v22361_v54, 0.0 }
0x1180   :  { %v16303_v13 = vmul.f32 0.3275911, %v16295_v2  ;;  %v16305_v46 = vmul.f32 0.3275911, %v16297_v20  ;;  %v16296_v40 = vand.u32 2147483647, %v22372_v9 }
0x1181   :  { %v16298_v38 = vand.u32 2147483647, %v22376_v16  ;;  %v16407_v19 = vsub.f32 0.0, %v16295_v2  ;;  %v16409_v35 = vsub.f32 0.0, %v16297_v20  ;;  %vm16280_vm13 = vcmp.ge.f32.partialorder %v22372_v9, 0.0 }
0x1182   :  { %v16311_v63 = vadd.f32 1.0, %v16303_v13  ;;  %v16313_v57 = vadd.f32 1.0, %v16305_v46  ;;  %v16304_v33 = vmul.f32 0.3275911, %v16296_v40  ;;  %v16408_v44 = vsub.f32 0.0, %v16296_v40 }
0x1183   :  { %v16306_v32 = vmul.f32 0.3275911, %v16298_v38  ;;  %v16415_v36 = vmul.f32 %v16407_v19, %v16295_v2  ;;  %v16417_v3 = vmul.f32 %v16409_v35, %v16297_v20  ;;  %v16410_v39 = vsub.f32 0.0, %v16298_v38 }
0x1184   :  { %19447 = vrcp.f32 %v16311_v63  ;;  %v16312_v25 = vadd.f32 1.0, %v16304_v33  ;;  %v16416_v4 = vmul.f32 %v16408_v44, %v16296_v40  ;;  %v16289_v54 = vsel %vm16281_vm12, 1.0, %v19985_v24 }
0x1185   :  { %19449 = vrcp.f32 %v16313_v57  ;;  %v16314_v61 = vadd.f32 1.0, %v16306_v32  ;;  %v16423_v42 = vmul.f32 1.442695, %v16415_v36  ;;  %v16427_v47 = vmul.f32 1.442695, %v16417_v3 }
0x1186   :  { %19451 = vrcp.f32 %v16312_v25  ;;  %v16425_v11 = vmul.f32 1.442695, %v16416_v4  ;;  %v16418_v57 = vmul.f32 %v16410_v39, %v16298_v38  ;;  %vm16282_vm14 = vcmp.ge.f32.partialorder %v22376_v16, 0.0 }
0x1187   :  { %19453 = vrcp.f32 %v16314_v61 }
0x1188   :  { %19455 = vpow2.f32 %v16423_v42 }
0x1189   :  { %19457 = vpow2.f32 %v16427_v47 }
0x118a   :  { %19459 = vpow2.f32 %v16425_v11 }
0x1191   :  { %v19448_v22 = vpop.eup %19447 }
0x1192   :  { %v22379_v21 = vpop.eup %19449  ;;  %v16335_v59 = vmul.f32 1.0614054, %v19448_v22 }
0x1193   :  { %v16337_v55 = vmul.f32 1.0614054, %v22379_v21  ;;  %v22382_v51 = vpop.eup %19451 }
0x1194   :  { %v16343_v5 = vadd.f32 -1.4531521, %v16335_v59  ;;  %v16336_v45 = vmul.f32 1.0614054, %v22382_v51  ;;  %v22391_v28 = vpop.eup %19453 }
0x1195   :  { %v16345_v10 = vadd.f32 -1.4531521, %v16337_v55  ;;  %v16338_v63 = vmul.f32 1.0614054, %v22391_v28 }
0x1196   :  { %v16351_v29 = vmul.f32 %v19448_v22, %v16343_v5  ;;  %v16344_v27 = vadd.f32 -1.4531521, %v16336_v45 }
0x1197   :  { %v16353_v1 = vmul.f32 %v22379_v21, %v16345_v10  ;;  %v16346_v5 = vadd.f32 -1.4531521, %v16338_v63  ;;  %v16429_v10 = vmul.f32 1.442695, %v16418_v57  ;;  %v16287_v63 = vsel %vm16279_vm11, 1.0, %v19985_v24 }
0x1198   :  { %v16359_v30 = vadd.f32 1.4214138, %v16351_v29  ;;  %v16352_v40 = vmul.f32 %v22382_v51, %v16344_v27 }
0x1199   :  { %v16361_v31 = vadd.f32 1.4214138, %v16353_v1  ;;  %v16181_v58 = vpop.f32.mrf.mxu1  ;;  %v16258_v34 = vpop.f32.mrf.mxu0 }
0x119a   :  { %v16367_v12 = vmul.f32 %v19448_v22, %v16359_v30  ;;  %v22386_v17 = vadd.f32 %v16181_v58, %v16092_v53  ;;  %v22388_v6 = vadd.f32 %v16258_v34, %v16100_v50  ;;  %v16360_v55 = vadd.f32 1.4214138, %v16352_v40  ;;  %v19456_v1 = vpop.eup %19455 }
0x119b   :  { %v16369_v62 = vmul.f32 %v22379_v21, %v16361_v31  ;;  %v16183_v56 = vpop.f32.mrf.mxu1  ;;  %v16260_v46 = vpop.f32.mrf.mxu0 }
0x119c   :  { %v16375_v8 = vadd.f32 -0.28449672, %v16367_v12  ;;  %v22394_v26 = vmul.f32 0.70710677, %v22386_v17  ;;  %v22397_v49 = vmul.f32 0.70710677, %v22388_v6  ;;  %v22401_v2 = vadd.f32 %v16183_v56, %v22347_v52 }
0x119d   :  { %v16377_v20 = vadd.f32 -0.28449672, %v16369_v62  ;;  %v22410_v52 = vadd.f32 %v16260_v46, %v22351_v7  ;;  %v16368_v42 = vmul.f32 %v22382_v51, %v16360_v55  ;;  %v16354_v7 = vmul.f32 %v22391_v28, %v16346_v5 }
0x119e   :  { %v16383_v53 = vmul.f32 %v19448_v22, %v16375_v8  ;;  %v16299_v50 = vand.u32 2147483647, %v22394_v26  ;;  %v16301_v13 = vand.u32 2147483647, %v22397_v49  ;;  %v22407_v19 = vmul.f32 0.70710677, %v22401_v2 }
0x119f   :  { %v16385_v59 = vmul.f32 %v22379_v21, %v16377_v20  ;;  %v22415_v29 = vmul.f32 0.70710677, %v22410_v52  ;;  %v16376_v3 = vadd.f32 -0.28449672, %v16368_v42  ;;  %v16362_v58 = vadd.f32 1.4214138, %v16354_v7 }
0x11a0   :  { %v16307_v33 = vmul.f32 0.3275911, %v16299_v50  ;;  %v16391_v25 = vadd.f32 0.2548296, %v16383_v53  ;;  %v16309_v32 = vmul.f32 0.3275911, %v16301_v13  ;;  %v19458_v53 = vpop.eup %19457 }
0x11a1   :  { %v16300_v35 = vand.u32 2147483647, %v22407_v19  ;;  %v16393_v44 = vadd.f32 0.2548296, %v16385_v59  ;;  %v22420_v31 = vand.u32 2147483647, %v22415_v29  ;;  %v16384_v62 = vmul.f32 %v22382_v51, %v16376_v3  ;;  %v19460_v11 = vpop.eup %19459 }
0x11a2   :  { %v16315_v61 = vadd.f32 1.0, %v16307_v33  ;;  %v16317_v36 = vadd.f32 1.0, %v16309_v32  ;;  %v16399_v38 = vmul.f32 %v19448_v22, %v16391_v25  ;;  %v16411_v12 = vsub.f32 0.0, %v16299_v50 }
0x11a3   :  { %v16308_v45 = vmul.f32 0.3275911, %v16300_v35  ;;  %v16401_v34 = vmul.f32 %v22379_v21, %v16393_v44  ;;  %v16310_v4 = vmul.f32 0.3275911, %v22420_v31  ;;  %v16413_v56 = vsub.f32 0.0, %v16301_v13 }
0x11a4   :  { %19461 = vrcp.f32 %v16315_v61  ;;  %v16439_v30 = vmul.f32 %v19456_v1, %v16399_v38  ;;  %v16370_v27 = vmul.f32 %v22391_v28, %v16362_v58  ;;  %v16392_v47 = vadd.f32 0.2548296, %v16384_v62 }
0x11a5   :  { %19463 = vrcp.f32 %v16317_v36  ;;  %v16316_v22 = vadd.f32 1.0, %v16308_v45  ;;  %v16318_v39 = vadd.f32 1.0, %v16310_v4  ;;  %v16441_v20 = vmul.f32 %v19458_v53, %v16401_v34 }
0x11a6   :  { %19465 = vpow2.f32 %v16429_v10  ;;  %v16447_v8 = vsub.f32 1.0, %v16439_v30  ;;  %v16378_v21 = vadd.f32 -0.28449672, %v16370_v27  ;;  %v16419_v46 = vmul.f32 %v16411_v12, %v16299_v50 }
0x11a7   :  { %19467 = vrcp.f32 %v16316_v22  ;;  %v16400_v40 = vmul.f32 %v22382_v51, %v16392_v47  ;;  %v16421_v57 = vmul.f32 %v16413_v56, %v16301_v13  ;;  %v16263_v25 = vmul.f32 0.5, %v22353_v37 }
0x11a8   :  { %19469 = vrcp.f32 %v16318_v39  ;;  %v16386_v43 = vmul.f32 %v22391_v28, %v16378_v21  ;;  %v16455_v32 = vmul.f32 %v16447_v8, %v16287_v63  ;;  %v16288_v50 = vsel %vm16280_vm13, 1.0, %v19985_v24 }
0x11a9   :  { %v16440_v61 = vmul.f32 %v19460_v11, %v16400_v40  ;;  %v16412_v36 = vsub.f32 0.0, %v16300_v35  ;;  %v16449_v55 = vsub.f32 1.0, %v16441_v20  ;;  %v16431_v5 = vmul.f32 1.442695, %v16419_v46 }
0x11aa   :  { %v16394_v13 = vadd.f32 0.2548296, %v16386_v43  ;;  %v16435_v44 = vmul.f32 1.442695, %v16421_v57  ;;  %v16463_v1 = vadd.f32 1.0, %v16455_v32  ;;  %v16414_v9 = vsub.f32 0.0, %v22420_v31 }
0x11ab   :  { %v16448_v38 = vsub.f32 1.0, %v16440_v61  ;;  %v16264_v3 = vmul.f32 0.5, %v22364_v60  ;;  %v16420_v58 = vmul.f32 %v16412_v36, %v16300_v35  ;;  %v16457_v12 = vmul.f32 %v16449_v55, %v16289_v54 }
0x11ac   :  { %v16402_v42 = vmul.f32 %v22391_v28, %v16394_v13  ;;  %19471 = vpow2.f32 %v16431_v5  ;;  %v16290_v28 = vsel %vm16282_vm14, 1.0, %v19985_v24  ;;  %v16471_v39 = vmul.f32 %v16463_v1, %v16263_v25 }
0x11ad   :  { %v16456_v30 = vmul.f32 %v16448_v38, %v16288_v50  ;;  %19473 = vpow2.f32 %v16435_v44  ;;  %v16422_v60 = vmul.f32 %v16414_v9, %v22420_v31  ;;  %v16433_v21 = vmul.f32 1.442695, %v16420_v58 }
0x11ae   :  { %v16265_v46 = vmul.f32 0.5, %v22355_v41  ;;  %v16465_v40 = vadd.f32 1.0, %v16457_v12  ;;  %v16266_v57 = vmul.f32 0.5, %v22367_v23  ;;  %vm16283_vm15 = vcmp.ge.f32.partialorder %v22394_v26, 0.0 }
0x11af   :  { %v16464_v62 = vadd.f32 1.0, %v16456_v30  ;;  %v16437_v54 = vmul.f32 1.442695, %v16422_v60  ;;  %19475 = vpow2.f32 %v16433_v21  ;;  %vm16285_vm2 = vcmp.ge.f32.partialorder %v22397_v49, 0.0 }
0x11b0   :  { %v16473_v41 = vmul.f32 %v16465_v40, %v16265_v46  ;;  %vm16284_vm3 = vcmp.ge.f32.partialorder %v22407_v19, 0.0  ;;  %v16293_v26 = vsel %vm16285_vm2, 1.0, %v19985_v24  ;;  %vm16286_vm4 = vcmp.ge.f32.partialorder %v22415_v29, 0.0 }
0x11b1   :  { %v22432_v33 = vpop.eup %19461  ;;  %v16472_v53 = vmul.f32 %v16464_v62, %v16264_v3  ;;  %19477 = vpow2.f32 %v16437_v54  ;;  %v16292_v21 = vsel %vm16284_vm3, 1.0, %v19985_v24  ;;  %v16268_v49 = vmul.f32 0.5, %v22401_v2  ;;  %v17307_v2 = vld [vmem:[#allocation28] ss:$0 sm:$0xff] }
0x11b2   :  { %v22436_v59 = vpop.eup %19463  ;;  %v16339_v51 = vmul.f32 1.0614054, %v22432_v33  ;;  %v16294_v19 = vsel %vm16286_vm4, 1.0, %v19985_v24  ;;  %v16269_v29 = vmul.f32 0.5, %v22388_v6 }
0x11b3   :  { %v16341_v10 = vmul.f32 1.0614054, %v22436_v59  ;;  %v19466_v7 = vpop.eup %19465  ;;  %16614 = vmatprep.mubr.f32.mxu1 %v16472_v53 }
0x11b4   :  { %v16347_v37 = vadd.f32 -1.4531521, %v16339_v51  ;;  %v16442_v34 = vmul.f32 %v19466_v7, %v16402_v42  ;;  %v19468_v8 = vpop.eup %19467  ;;  %16615 = vmatmul.mubr.f32.vlgmr.msra.gmra.mxu1 %v16471_v39 }
0x11b5   :  { %v16349_v45 = vadd.f32 -1.4531521, %v16341_v10  ;;  %v16340_v20 = vmul.f32 1.0614054, %v19468_v8  ;;  %v19470_v63 = vpop.eup %19469 }
0x11b6   :  { %v16355_v22 = vmul.f32 %v22432_v33, %v16347_v37  ;;  %v16450_v27 = vsub.f32 1.0, %v16442_v34  ;;  %v16342_v61 = vmul.f32 1.0614054, %v19470_v63 }
0x11b7   :  { %v16357_v4 = vmul.f32 %v22436_v59, %v16349_v45  ;;  %v16348_v32 = vadd.f32 -1.4531521, %v16340_v20 }
0x11b8   :  { %v16363_v56 = vadd.f32 1.4214138, %v16355_v22  ;;  %v16458_v11 = vmul.f32 %v16450_v27, %v16290_v28  ;;  %v16350_v55 = vadd.f32 -1.4531521, %v16342_v61 }
0x11b9   :  { %v16365_v47 = vadd.f32 1.4214138, %v16357_v4  ;;  %v16356_v36 = vmul.f32 %v19468_v8, %v16348_v32  ;;  %v19472_v7 = vpop.eup %19471 }
0x11ba   :  { %v16371_v35 = vmul.f32 %v22432_v33, %v16363_v56  ;;  %v16466_v25 = vadd.f32 1.0, %v16458_v11  ;;  %v16358_v38 = vmul.f32 %v19470_v63, %v16350_v55  ;;  %v19474_v9 = vpop.eup %19473 }
0x11bb   :  { %v16373_v16 = vmul.f32 %v22436_v59, %v16365_v47  ;;  %v16364_v10 = vadd.f32 1.4214138, %v16356_v36 }
0x11bc   :  { %v16379_v43 = vadd.f32 -0.28449672, %v16371_v35  ;;  %v16474_v51 = vmul.f32 %v16466_v25, %v16266_v57  ;;  %v16366_v42 = vadd.f32 1.4214138, %v16358_v38  ;;  %v19476_v56 = vpop.eup %19475 }
0x11bd   :  { %v16381_v31 = vadd.f32 -0.28449672, %v16373_v16  ;;  %v16372_v44 = vmul.f32 %v19468_v8, %v16364_v10 }
0x11be   :  { %v16387_v50 = vmul.f32 %v22432_v33, %v16379_v43  ;;  %16689 = vmatprep.mubr.f32.mxu0 %v16474_v51  ;;  %v16374_v3 = vmul.f32 %v19470_v63, %v16366_v42  ;;  %v19478_v53 = vpop.eup %19477 }
0x11bf   :  { %v16389_v13 = vmul.f32 %v22436_v59, %v16381_v31  ;;  %16690 = vmatmul.mubr.f32.vlgmr.msra.gmra.mxu0 %v16473_v41  ;;  %v16380_v45 = vadd.f32 -0.28449672, %v16372_v44  ;;  %v16270_v31 = vmul.f32 0.5, %v22410_v52 }
0x11c0   :  { %v16395_v5 = vadd.f32 0.2548296, %v16387_v50  ;;  %v16382_v58 = vadd.f32 -0.28449672, %v16374_v3 }
0x11c1   :  { %v16397_v23 = vadd.f32 0.2548296, %v16389_v13  ;;  %v16388_v22 = vmul.f32 %v19468_v8, %v16380_v45 }
0x11c2   :  { %v16403_v37 = vmul.f32 %v22432_v33, %v16395_v5  ;;  %v16390_v62 = vmul.f32 %v19470_v63, %v16382_v58  ;;  %v16291_v33 = vsel %vm16283_vm15, 1.0, %v19985_v24 }
0x11c3   :  { %v16405_v1 = vmul.f32 %v22436_v59, %v16397_v23  ;;  %v16396_v12 = vadd.f32 0.2548296, %v16388_v22 }
0x11c4   :  { %v16443_v30 = vmul.f32 %v19472_v7, %v16403_v37  ;;  %v16398_v27 = vadd.f32 0.2548296, %v16390_v62  ;;  %v16844_v62 = vld [vmem:[%s22587_s11 + $0xe0] sm:$0xff] }
0x11c5   :  { %v16445_v34 = vmul.f32 %v19474_v9, %v16405_v1  ;;  %v16404_v28 = vmul.f32 %v19468_v8, %v16396_v12  ;;  %v16846_v12 = vld [vmem:[%s22587_s11 + $0xf0] sm:$0xff] }
0x11c6   :  { %v16451_v4 = vsub.f32 1.0, %v16443_v30  ;;  %v16406_v60 = vmul.f32 %v19470_v63, %v16398_v27  ;;  %v16267_v63 = vmul.f32 0.5, %v22386_v17  ;;  %v16840_v27 = vld [vmem:[%s22587_s11 + $0xc0] sm:$0xff] }
0x11c7   :  { %v16453_v59 = vsub.f32 1.0, %v16445_v34  ;;  %v16444_v39 = vmul.f32 %v19476_v56, %v16404_v28  ;;  %v16847_v34 = vld [vmem:[%s22587_s11 + $0xf8] sm:$0xff]  ;;  %v16842_v56 = vld [vmem:[%s22587_s11 + $0xd0] sm:$0xff] }
0x11c8   :  { %v16459_v47 = vmul.f32 %v16451_v4, %v16291_v33  ;;  %v16446_v8 = vmul.f32 %v19478_v53, %v16406_v60  ;;  %v16845_v4 = vld [vmem:[%s22587_s11 + $0xe8] sm:$0xff]  ;;  %16860 = vmatprep.subr.mxu0 %v16847_v34  ;;  %v16843_v28 = vld [vmem:[%s22587_s11 + $0xd8] sm:$0xff]  ;;  %v16836_v60 = vld [vmem:[%s22587_s11 + $0xa0] sm:$0xff] }
0x11c9   :  { %v16452_v35 = vsub.f32 1.0, %v16444_v39  ;;  %v16461_v11 = vmul.f32 %v16453_v59, %v16293_v26  ;;  %16861 = vmatpush1.msra.mxu0 %v16846_v12  ;;  %v16841_v33 = vld [vmem:[%s22587_s11 + $0xc8] sm:$0xff]  ;;  %v16839_v59 = vld [vmem:[%s22587_s11 + $0xb8] sm:$0xff]  ;;  %v16838_v39 = vld [vmem:[%s22587_s11 + $0xb0] sm:$0xff] }
0x11ca   :  { %v16467_v46 = vadd.f32 1.0, %v16459_v47  ;;  %v16454_v40 = vsub.f32 1.0, %v16446_v8  ;;  %16862 = vmatprep.subr.mxu0 %v16845_v4  ;;  %v16837_v47 = vld [vmem:[%s22587_s11 + $0xa8] sm:$0xff]  ;;  %v16835_v53 = vld [vmem:[%s22587_s11 + $0x98] sm:$0xff] }
0x11cb   :  { %v16460_v20 = vmul.f32 %v16452_v35, %v16292_v21  ;;  %v16469_v43 = vadd.f32 1.0, %v16461_v11  ;;  %16863 = vmatpush1.msra.mxu0 %v16844_v62  ;;  %v16834_v35 = vld [vmem:[%s22587_s11 + $0x90] sm:$0xff]  ;;  %v16833_v26 = vld [vmem:[%s22587_s11 + $0x88] sm:$0xff]  ;;  %v16832_v21 = vld [vmem:[%s22587_s11 + $0x80] sm:$0xff] }
0x11cc   :  { %v16462_v57 = vmul.f32 %v16454_v40, %v16294_v19  ;;  %v16475_v32 = vmul.f32 %v16467_v46, %v16267_v63  ;;  %16864 = vmatprep.subr.mxu0 %v16843_v28  ;;  %v16831_v8 = vld [vmem:[%s22587_s11 + $0x78] sm:$0xff]  ;;  %v16830_v11 = vld [vmem:[%s22587_s11 + $0x70] sm:$0xff]  ;;  %v16828_v46 = vld [vmem:[%s22587_s11 + $0x60] sm:$0xff] }
0x11cd   :  { %v16468_v16 = vadd.f32 1.0, %v16460_v20  ;;  %v16477_v50 = vmul.f32 %v16469_v43, %v16269_v29  ;;  %16865 = vmatpush1.msra.mxu0 %v16842_v56  ;;  %v16829_v20 = vld [vmem:[%s22587_s11 + $0x68] sm:$0xff]  ;;  %v16827_v40 = vld [vmem:[%s22587_s11 + $0x58] sm:$0xff] }
0x11ce   :  { %v16470_v54 = vadd.f32 1.0, %v16462_v57  ;;  %16866 = vmatprep.subr.mxu0 %v16841_v33  ;;  %v16825_v19 = vld [vmem:[%s22587_s11 + $0x48] sm:$0xff]  ;;  %v16823_v63 = vld [vmem:[%s22587_s11 + $0x38] sm:$0xff]  ;;  %v16822_v57 = vld [vmem:[%s22587_s11 + $0x30] sm:$0xff] }
0x11cf   :  { %v16476_v25 = vmul.f32 %v16468_v16, %v16268_v49  ;;  %16867 = vmatpush1.msra.mxu0 %v16840_v27  ;;  %v16826_v49 = vld [vmem:[%s22587_s11 + $0x50] sm:$0xff]  ;;  %v16824_v16 = vld [vmem:[%s22587_s11 + $0x40] sm:$0xff]  ;;  %v16821_v43 = vld [vmem:[%s22587_s11 + $0x28] sm:$0xff] }
0x11d0   :  { %v16478_v61 = vmul.f32 %v16470_v54, %v16270_v31  ;;  %16868 = vmatprep.subr.mxu0 %v16839_v59  ;;  %v16818_v31 = vld [vmem:[%s22587_s11 + $0x10] sm:$0xff]  ;;  %v16817_v54 = vld [vmem:[%s22587_s11 + $0x8] sm:$0xff]  ;;  %v16933_v62 = vld [vmem:[#allocation31] sm:$0xff] }
0x11d1   :  { %16619 = vmatprep.mubr.f32.mxu1 %v16476_v25  ;;  %16869 = vmatpush1.msra.mxu0 %v16838_v39  ;;  %v16820_v25 = vld [vmem:[%s22587_s11 + $0x20] sm:$0xff]  ;;  %v16936_v34 = vld [vmem:[#allocation31 + $0x18] sm:$0xff]  ;;  %v16935_v12 = vld [vmem:[#allocation31 + $0x10] sm:$0xff] }
0x11d2   :  { %16620 = vmatmul.mubr.f32.gmra.mxu1 %v16475_v32  ;;  %16694 = vmatprep.mubr.f32.mxu0 %v16478_v61  ;;  %v16819_v32 = vld [vmem:[%s22587_s11 + $0x18] sm:$0xff]  ;;  %v16934_v4 = vld [vmem:[#allocation31 + $0x8] sm:$0xff]  ;;  %v16955_v56 = vld [vmem:[#allocation31 + $0xb0] sm:$0xff] }
0x11d3   :  { %19211 = vmatprep.mubr.msk.f32.mxu1 %vm19984_vm1, %v19983_v0  ;;  %16695 = vmatmul.mubr.f32.gmra.mxu0 %v16477_v50  ;;  %v16956_v28 = vld [vmem:[#allocation31 + $0xb8] sm:$0xff]  ;;  %v16954_v33 = vld [vmem:[#allocation31 + $0xa8] sm:$0xff]  ;;  %v16953_v27 = vld [vmem:[#allocation31 + $0xa0] sm:$0xff] }
0x11d4   :  { %16924 = vmatprep.mubr.f32.mxu0 %v19983_v0  ;;  %16870 = vmatprep.subr.mxu0 %v16837_v47  ;;  %v16952_v47 = vld [vmem:[#allocation31 + $0x98] sm:$0xff] }
0x11d5   :  { %16871 = vmatpush1.msra.mxu0 %v16836_v60  ;;  %v16951_v60 = vld [vmem:[#allocation31 + $0x90] sm:$0xff] }
0x11d6   :  { %16872 = vmatprep.subr.mxu0 %v16835_v53  ;;  %v16950_v53 = vld [vmem:[#allocation31 + $0x88] sm:$0xff] }
0x11d7   :  { %16873 = vmatpush1.msra.mxu0 %v16834_v35  ;;  %v16949_v35 = vld [vmem:[#allocation31 + $0x80] sm:$0xff] }
0x11d8   :  { %16874 = vmatprep.subr.mxu0 %v16833_v26  ;;  %v16848_v26 = vld [vmem:[#allocation30] sm:$0x3] }
0x11d9   :  { %16875 = vmatpush1.msra.mxu0 %v16832_v21  ;;  %v16853_v21 = vrot.slane %v16848_v26, %v21225_v48 }
0x11da   :  { %16876 = vmatprep.subr.mxu0 %v16831_v8  ;;  %v16857_v8 = vrot.slane %v16848_v26, %v21229_v15 }
0x11db   :  { %16877 = vmatpush1.msra.mxu0 %v16830_v11 }
0x11dc   :  { %16878 = vmatprep.subr.mxu0 %v16829_v20 }
0x11dd   :  { %16879 = vmatpush1.msra.mxu0 %v16828_v46 }
0x11de   :  { %16880 = vmatprep.subr.mxu0 %v16827_v40 }
0x11df   :  { %16881 = vmatpush1.msra.mxu0 %v16826_v49 }
0x11e0   :  { %16882 = vmatprep.subr.mxu0 %v16825_v19 }
0x11e1   :  { %16883 = vmatpush1.msra.mxu0 %v16824_v16  ;;  %v17311_v16 = vld [vmem:[#allocation33] ss:$0 sm:$0xff] }
0x11e2   :  { %16884 = vmatprep.subr.mxu0 %v16823_v63 }
0x11e3   :  { %16885 = vmatpush1.msra.mxu0 %v16822_v57 }
0x11e4   :  { %16886 = vmatprep.subr.mxu0 %v16821_v43 }
0x11e5   :  { %16887 = vmatpush1.msra.mxu0 %v16820_v25 }
0x11e6   :  { %16888 = vmatprep.subr.mxu0 %v16819_v32 }
0x11e7   :  { %16889 = vmatpush1.msra.mxu0 %v16818_v31 }
0x11e8   :  { %16890 = vmatprep.subr.mxu0 %v16817_v54 }
0x1274   :  { %v17937_v24 = vpop.f32.mrf.mxu1 }
0x1276   :  { %v17938_v17 = vpop.f32.mrf.mxu1 }
0x1277   :  { %v17939_v51 = vadd.f32 %v17938_v17, %v17937_v24 }
0x1279   :  { %v16617_v52 = vadd.f32 %v17939_v51, %v17307_v2 }
0x127f   :  { %v17975_v36 = vpop.f32.mrf.mxu0 }
0x1281   :  { %v17976_v41 = vpop.f32.mrf.mxu0 }
0x1282   :  { %v17977_v13 = vadd.f32 %v17976_v41, %v17975_v36  ;;  %v17308_v41 = vld [vmem:[%s22588_s15] ss:$0 sm:$0xff] }
0x1284   :  { %v16692_v6 = vadd.f32 %v17977_v13, %v16617_v52 }
0x1286   :  { %v16700_v55 = vadd.f32 %v16692_v6, %v22332_v18 }
0x1288   :  { %16704 = vadd.xlane.f32.xlu1 %v16700_v55 }
0x1292   :  { %v17940_v5 = vpop.f32.mrf.mxu1 }
0x1293   :  { %v17978_v23 = vpop.f32.mrf.mxu0 }
0x1294   :  { %v17941_v10 = vpop.f32.mrf.mxu1 }
0x1295   :  { %v17942_v38 = vadd.f32 %v17941_v10, %v17940_v5  ;;  %v17979_v44 = vpop.f32.mrf.mxu0  ;;  %v17309_v5 = vld [vmem:[%s22589_s21] ss:$0 sm:$0xff] }
0x1296   :  { %v17980_v42 = vadd.f32 %v17979_v44, %v17978_v23  ;;  %v16948_v44 = vld [vmem:[#allocation31 + $0x78] sm:$0xff] }
0x1297   :  { %v16622_v37 = vadd.f32 %v17942_v38, %v17307_v2  ;;  %v16742_v38 = vld [vmem:[%s22590_s29] sm:$0x3] }
0x1299   :  { %v16697_v7 = vadd.f32 %v17980_v42, %v16622_v37  ;;  %v16816_v37 = vld [vmem:[%s22587_s11] sm:$0xff]  ;;  %v16947_v42 = vld [vmem:[#allocation31 + $0x70] sm:$0xff] }
0x129a   :  { %16891 = vmatpush1.msra.mxu0 %v16816_v37 }
0x129b   :  { %v16701_v1 = vadd.f32 %v16697_v7, %v22338_v14  ;;  %v16946_v7 = vld [vmem:[#allocation31 + $0x68] sm:$0xff] }
0x129d   :  { %16706 = vadd.xlane.f32.xlu0 %v16701_v1 }
0x1311   :  { %v16705_v45 = vpop.xlane.xlu1 %16704 }
0x1312   :  { %v16708_v9 = vmul.f32 0.0078125, %v16705_v45  ;;  %v16944_v45 = vld [vmem:[#allocation31 + $0x58] sm:$0xff] }
0x1314   :  { %v22478_v18 = vsub.f32 %v16700_v55, %v16708_v9  ;;  %v16943_v9 = vld [vmem:[#allocation31 + $0x50] sm:$0xff] }
0x1316   :  { %v16712_v30 = vmul.f32 %v22478_v18, %v22478_v18 }
0x1318   :  { %16714 = vadd.xlane.f32.xlu1 %v16712_v30  ;;  %v16941_v30 = vld [vmem:[#allocation31 + $0x40] sm:$0xff] }
0x1326   :  { %v16707_v3 = vpop.xlane.xlu0 %16706 }
0x1327   :  { %v16709_v22 = vmul.f32 0.0078125, %v16707_v3  ;;  %v16940_v3 = vld [vmem:[#allocation31 + $0x38] sm:$0xff] }
0x1329   :  { %v22482_v58 = vsub.f32 %v16701_v1, %v16709_v22  ;;  %v16945_v1 = vld [vmem:[#allocation31 + $0x60] sm:$0xff]  ;;  %v16939_v22 = vld [vmem:[#allocation31 + $0x30] sm:$0xff] }
0x132b   :  { %v16713_v14 = vmul.f32 %v22482_v58, %v22482_v58 }
0x132d   :  { %16716 = vadd.xlane.f32.xlu0 %v16713_v14  ;;  %v16937_v14 = vld [vmem:[#allocation31 + $0x20] sm:$0xff] }
0x13a1   :  { %v16715_v29 = vpop.xlane.xlu1 %16714 }
0x13a2   :  { %v16718_v61 = vmul.f32 0.0078125, %v16715_v29 }
0x13a4   :  { %v16720_v50 = vadd.f32 1e-05, %v16718_v61 }
0x13a6   :  { %19479 = vrsqrt.f32 %v16720_v50 }
0x13b3   :  { %v19480_v51 = vpop.eup %19479 }
0x13b4   :  { %v16724_v36 = vmul.f32 %v19480_v51, %v22478_v18  ;;  %v16942_v18 = vld [vmem:[#allocation31 + $0x48] sm:$0xff] }
0x13b6   :  { %v16717_v24 = vpop.xlane.xlu0 %16716  ;;  %v16732_v55 = vmul.f32 %v17308_v41, %v16724_v36 }
0x13b7   :  { %v16719_v17 = vmul.f32 0.0078125, %v16717_v24 }
0x13b8   :  { %v16740_v23 = vadd.f32 %v17309_v5, %v16732_v55 }
0x13b9   :  { %v16721_v2 = vadd.f32 1e-05, %v16719_v17 }
0x13bb   :  { %19481 = vrsqrt.f32 %v16721_v2 }
0x13c8   :  { %v19482_v52 = vpop.eup %19481 }
0x13c9   :  { %v16725_v13 = vmul.f32 %v19482_v52, %v22482_v58  ;;  %v16938_v58 = vld [vmem:[#allocation31 + $0x28] sm:$0xff] }
0x13cb   :  { %v16733_v6 = vmul.f32 %v17308_v41, %v16725_v13 }
0x13cd   :  { %v16741_v10 = vadd.f32 %v17309_v5, %v16733_v6 }
0x13cf   :  { %19208 = vmatpush3.msra.mxu1 %v16741_v10 }
0x13d0   :  { %19209 = vmatprep.subr.mxu1 %v19983_v0 }
0x13d1   :  { %19210 = vmatpush3.msra.mxu1 %v16740_v23 }
0x13d2   :  { %19212 = vmatmul.mubr.msk.f32.vlgmr.msra.gmra.mxu1 %vm407_vm0, %v16742_v38  ;;  %16968 = vmatprep.subr.mxu1 %v19983_v0  ;;  %vm16964_vm0 = vcmask 523264  }
0x13d3   :  { %16969 = vmatpush1.msra.mxu1 %v16948_v44 }
0x13d4   :  { %16970 = vmatprep.subr.mxu1 %v19983_v0 }
0x13d5   :  { %16971 = vmatpush1.msra.mxu1 %v16947_v42 }
0x13d6   :  { %16972 = vmatprep.subr.mxu1 %v19983_v0 }
0x13d7   :  { %16973 = vmatpush1.msra.mxu1 %v16946_v7 }
0x13d8   :  { %16974 = vmatprep.subr.mxu1 %v19983_v0 }
0x13d9   :  { %16975 = vmatpush1.msra.mxu1 %v16945_v1 }
0x13da   :  { %16976 = vmatprep.subr.mxu1 %v19983_v0 }
0x13db   :  { %16977 = vmatpush1.msra.mxu1 %v16944_v45 }
0x13dc   :  { %16978 = vmatprep.subr.mxu1 %v19983_v0 }
0x13dd   :  { %16979 = vmatpush1.msra.mxu1 %v16943_v9 }
0x13de   :  { %16980 = vmatprep.subr.mxu1 %v19983_v0 }
0x13df   :  { %16981 = vmatpush1.msra.mxu1 %v16942_v18 }
0x13e0   :  { %16982 = vmatprep.subr.mxu1 %v19983_v0 }
0x13e1   :  { %16983 = vmatpush1.msra.mxu1 %v16941_v30 }
0x13e2   :  { %16984 = vmatprep.subr.mxu1 %v19983_v0 }
0x13e3   :  { %16985 = vmatpush1.msra.mxu1 %v16940_v3 }
0x13e4   :  { %16986 = vmatprep.subr.mxu1 %v19983_v0 }
0x13e5   :  { %16987 = vmatpush1.msra.mxu1 %v16939_v22 }
0x13e6   :  { %16988 = vmatprep.subr.mxu1 %v19983_v0 }
0x13e7   :  { %16989 = vmatpush1.msra.mxu1 %v16938_v58 }
0x13e8   :  { %16990 = vmatprep.subr.mxu1 %v19983_v0 }
0x13e9   :  { %16991 = vmatpush1.msra.mxu1 %v16937_v14 }
0x13ea   :  { %16992 = vmatprep.subr.mxu1 %v19983_v0 }
0x13eb   :  { %16993 = vmatpush1.msra.mxu1 %v16936_v34 }
0x13ec   :  { %16994 = vmatprep.subr.mxu1 %v19983_v0 }
0x13ed   :  { %16995 = vmatpush1.msra.mxu1 %v16935_v12 }
0x13ee   :  { %16996 = vmatprep.subr.mxu1 %v19983_v0 }
0x13ef   :  { %16997 = vmatpush1.msra.mxu1 %v16934_v4 }
0x13f0   :  { %16998 = vmatprep.subr.mxu1 %v19983_v0 }
0x13f1   :  { %16999 = vmatpush1.msra.mxu1 %v16933_v62 }
0x13f2   :  { %17016 = vmatprep.subr.mxu1 %v19983_v0 }
0x13f3   :  { %17017 = vmatpush2.msra.mxu1 %v16956_v28 }
0x13f4   :  { %17018 = vmatprep.subr.mxu1 %v19983_v0 }
0x13f5   :  { %17019 = vmatpush2.msra.mxu1 %v16955_v56 }
0x13f6   :  { %17020 = vmatprep.subr.mxu1 %v19983_v0 }
0x13f7   :  { %17021 = vmatpush2.msra.mxu1 %v16954_v33 }
0x13f8   :  { %17022 = vmatprep.subr.mxu1 %v19983_v0 }
0x13f9   :  { %17023 = vmatpush2.msra.mxu1 %v16953_v27 }
0x13fa   :  { %17024 = vmatprep.subr.mxu1 %v19983_v0 }
0x13fb   :  { %17025 = vmatpush2.msra.mxu1 %v16952_v47 }
0x13fc   :  { %17026 = vmatprep.subr.mxu1 %v19983_v0 }
0x13fd   :  { %17027 = vmatpush2.msra.mxu1 %v16951_v60 }
0x13fe   :  { %17028 = vmatprep.subr.mxu1 %v19983_v0 }
0x13ff   :  { %17029 = vmatpush2.msra.mxu1 %v16950_v53 }
0x1400   :  { %17030 = vmatprep.subr.mxu1 %v19983_v0 }
0x1401   :  { %17031 = vmatpush2.msra.mxu1 %v16949_v35 }
0x1492   :  { %v16812_v59 = vpop.f32.mrf.mxu1 }
0x1493   :  { %16925 = vmatmul.mubr.f32.vlgmr.msra.gmra.mxu0 %v16812_v59 }
0x1494   :  { %v19213_v39 = vpop.f32.mrf.mxu1 }
0x1553   :  { %v16926_v11 = vpop.f32.mrf.mxu0 }
0x1554   :  { %v16927_v20 = vadd.f32 %v16926_v11, %v16853_v21 }
0x1555   :  { %v16928_v46 = vpop.f32.mrf.mxu0 }
0x1556   :  { %v16929_v40 = vadd.f32 %v16928_v46, %v16857_v8  ;;  %v16931_v19 = vmax.f32 %v16927_v20, 0.0 }
0x1558   :  { %v16932_v49 = vmax.f32 %v16929_v40, 0.0 }
0x155a   :  { %17312 = vmatprep.mubr.msk.f32.mxu1 %vm16964_vm0, %v16932_v49 }
0x155b   :  { %17033 = vmatmul.mubr.f32.vlgmr.msra.gmra.mxu1 %v16931_v19 }
0x161b   :  { %v17034_v63 = vpop.f32.mrf.mxu1 }
0x161c   :  { %v17035_v57 = vadd.f32 %v17311_v16, %v17034_v63 }
0x161d   :  { %v17036_v0 = vpop.f32.mrf.mxu1 }
0x161e   :  { %17038 = vst [vmem:[%s20159_s5] sm:$0x3] %v17035_v57 }
0x161f   :  { %17043 = vsyncpa [#allocation3], 1 }
0x1620   :  { %17044 = vsyncpa [#allocation5], 1 }
0x1621   :  { %17045 = vsyncpa [#allocation8], 1 }
0x1622   :  { %17046 = vsyncpa [#allocation11], 1 }
0x1623   :  { %17047 = vsyncpa [#allocation14], 1 }
0x1624   :  { %17048 = vsyncpa [#allocation17], 1 }
0x1625   :  { %17049 = vsyncpa [#allocation20], 1 }
0x1626   :  { %17050 = vsyncpa [#allocation23], 1 }
0x1627   :  { %17051 = vsyncpa [#allocation26], 1 }
0x1628   :  { %17052 = vsyncpa [#allocation29], 1 }
0x1629   :  { %17053 = vsyncpa [#allocation32], 1 }

</bundles_post_ra>
